<compile_context>
chip_gen: v7x
topology: tpu7x:2x2x1
jax: 0.10.0
libtpu: 0.0.40
codegen_flags: <defaults>
</compile_context>

<pallas_src>
import jax
import jax.numpy as jnp
from jax.experimental import pallas as pl
from jax.experimental.pallas import tpu as pltpu

# ---- small, module-consistent sizes (original: batch=64, nz=128, ngf=64) ----
BATCH = 8        # multiple of 8 keeps every row-block sublane-aligned
NZ = 32          # nz
NGF = 8          # ngf
NC = 3           # output channels
IMAGE_SIZE = 32  # 4 -> 8 -> 16 -> 32 (structure of the module)
EPS = 1e-5       # PyTorch BatchNorm default eps

C0 = 8 * NGF         # 64
C1 = 4 * NGF         # 32
C2 = 2 * NGF         # 16
N1 = 4 * 4 * C0      # 1024


# ----------------------------- fused Pallas kernel ---------------------------

def _grouped_bn_scale_shift(y, c, gamma, beta):
    """Training-mode BN coefficients for a slab whose columns are (k, c), k=0..3.

    Per-channel statistics cover all rows of `y` and all 4 (ky,kx) column
    groups, i.e. exactly BatchNorm2d's (batch, H, W) reduction after the
    ConvTranspose2d 2x2/stride-2 rearrangement.  One pass (sum & sum-of-squares).
    """
    n = 4.0 * y.shape[0]
    s1 = jnp.sum(y, axis=0, keepdims=True)
    s2 = jnp.sum(y * y, axis=0, keepdims=True)
    sg1 = s1[:, 0:c] + s1[:, c:2 * c] + s1[:, 2 * c:3 * c] + s1[:, 3 * c:4 * c]
    sg2 = s2[:, 0:c] + s2[:, c:2 * c] + s2[:, 2 * c:3 * c] + s2[:, 3 * c:4 * c]
    mean = sg1 / n
    var = sg2 / n - mean * mean                     # biased variance
    scale = gamma * jax.lax.rsqrt(var + EPS)
    shift = beta - mean * scale
    return scale, shift


def _generator_kernel(z_ref, wl_ref, bl_ref, g0_ref, be0_ref,
                      w1_ref, bd1_ref, g1_ref, be1_ref,
                      w2_ref, bd2_ref, g2_ref, be2_ref,
                      w3_ref, bd3_ref,
                      out_ref, x1_ref, x2_ref, x3_ref):
    b = z_ref.shape[0]

    # ---- preprocess: Linear -> BatchNorm1d (batch stats) -> ReLU -------------
    h = jnp.dot(z_ref[...], wl_ref[...],
                preferred_element_type=jnp.float32) + bl_ref[...]
    m0 = jnp.sum(h, axis=0, keepdims=True) / b
    v0 = jnp.sum(h * h, axis=0, keepdims=True) / b - m0 * m0
    a0 = jnp.maximum(
        (h - m0) * jax.lax.rsqrt(v0 + EPS) * g0_ref[...] + be0_ref[...], 0.0)

    # view(B, 8*ngf, 4, 4) -> channels-last slab x1[(s0, b), c0].
    # Columns of h were pre-permuted to (s0, c0), so this is 16 contiguous copies.
    for s in range(16):
        x1_ref[s * b:(s + 1) * b, :] = a0[:, s * C0:(s + 1) * C0]

    # ---- block1: ConvTranspose2d(8ngf->4ngf, 2, s=2) -> BN2d -> ReLU ---------
    r1 = x1_ref.shape[0]
    y1 = jnp.dot(x1_ref[...], w1_ref[...],
                 preferred_element_type=jnp.float32) + bd1_ref[...]
    sc1, sh1 = _grouped_bn_scale_shift(y1, C1, g1_ref[...], be1_ref[...])
    for k in range(4):                       # branch (k1y,k1x) -> rows of x2
        x2_ref[k * r1:(k + 1) * r1, :] = jnp.maximum(
            y1[:, k * C1:(k + 1) * C1] * sc1 + sh1, 0.0)

    # ---- block2: ConvTranspose2d(4ngf->2ngf, 2, s=2) -> BN2d -> ReLU ---------
    r2 = x2_ref.shape[0]
    y2 = jnp.dot(x2_ref[...], w2_ref[...],
                 preferred_element_type=jnp.float32) + bd2_ref[...]
    sc2, sh2 = _grouped_bn_scale_shift(y2, C2, g2_ref[...], be2_ref[...])
    for k in range(4):                       # branch (k2y,k2x) -> rows of x3
        x3_ref[k * r2:(k + 1) * r2, :] = jnp.maximum(
            y2[:, k * C2:(k + 1) * C2] * sc2 + sh2, 0.0)

    # ---- deconv_out: ConvTranspose2d(2ngf->3, 2, s=2) -> Tanh ----------------
    out_ref[...] = jnp.tanh(
        jnp.dot(x3_ref[...], w3_ref[...],
                preferred_element_type=jnp.float32) + bd3_ref[...])


# --------------------------------- wrappers ----------------------------------

def prepare_kernel_params(p):
    """One-time re-layout of module parameters for the fused kernel.

    * Linear / BN1d columns permuted from PyTorch's (c0, i, j) feature order to
      (s=i*4+j, c0) so the NCHW->slab rearrange is 16 contiguous block copies.
    * Deconv weight columns permuted from (cout, ky, kx) to (k=ky*2+kx, cout)
      so each 2x2 branch is a contiguous lane slice; biases tiled to match.
    """
    def feat_perm(a):              # (..., C0*16) ordered (c0, i, j) -> (s, c0)
        return a.reshape(a.shape[:-1] + (C0, 16)).swapaxes(-1, -2).reshape(a.shape)

    def deconv_perm(w, cout):      # (cin, cout*4) ordered (cout, k) -> (k, cout)
        cin = w.shape[0]
        return w.reshape(cin, cout, 4).swapaxes(-1, -2).reshape(cin, 4 * cout)

    def row(v):
        return v.reshape(1, -1)

    return dict(
        wl=feat_perm(p["w_lin"]),
        bl=row(feat_perm(p["b_lin"])),
        g0=row(feat_perm(p["g_bn0"])),
        be0=row(feat_perm(p["be_bn0"])),
        w1=deconv_perm(p["w_d1"], C1), bd1=row(jnp.tile(p["b_d1"], 4)),
        g1=row(p["g_bn1"]), be1=row(p["be_bn1"]),
        w2=deconv_perm(p["w_d2"], C2), bd2=row(jnp.tile(p["b_d2"], 4)),
        g2=row(p["g_bn2"]), be2=row(p["be_bn2"]),
        w3=deconv_perm(p["w_out"], NC), bd3=row(jnp.tile(p["b_out"], 4)),
    )


def generator_forward(z, kp):
    """Fused Generator forward: one pallas_call, all intermediates VMEM-resident."""
    B = z.shape[0]
    r_out = 256 * B                     # final slab rows ordered (k2, k1, s0, b)
    args = (z, kp["wl"], kp["bl"], kp["g0"], kp["be0"],
            kp["w1"], kp["bd1"], kp["g1"], kp["be1"],
            kp["w2"], kp["bd2"], kp["g2"], kp["be2"],
            kp["w3"], kp["bd3"])
    vmem = pl.BlockSpec(memory_space=pltpu.MemorySpace.VMEM)
    o = pl.pallas_call(
        _generator_kernel,
        out_shape=jax.ShapeDtypeStruct((r_out, 4 * NC), jnp.float32),
        in_specs=[vmem] * len(args),
        out_specs=vmem,
        scratch_shapes=[
            pltpu.VMEM((16 * B, C0), jnp.float32),    # x1: rows (s0, b)
            pltpu.VMEM((64 * B, C1), jnp.float32),    # x2: rows (k1, s0, b)
            pltpu.VMEM((256 * B, C2), jnp.float32),   # x3: rows (k2, k1, s0, b)
        ],
    )(*args)

    # Final layout unscramble, done once by XLA on the tiny (~96 KiB) slab:
    # rows (k2y,k2x,k1y,k1x,i0,j0,b), cols (k3y,k3x,c)  ->  NCHW (B, 3, 32, 32)
    # with H = 8*i0 + 4*k1y + 2*k2y + k3y,  W = 8*j0 + 4*k1x + 2*k2x + k3x.
    # (If the consumer accepted the raw slab / NHWC this permute could be skipped.)
    o = o.reshape(2, 2, 2, 2, 4, 4, B, 2, 2, NC)
    o = jnp.transpose(o, (6, 9, 4, 2, 0, 7, 5, 3, 1, 8))
    return o.reshape(B, NC, IMAGE_SIZE, IMAGE_SIZE)


# ------------------------------ parameters -----------------------------------

def init_params(key):
    ks = jax.random.split(key, 14)

    def w(k, shape, s=0.05):
        return (s * jax.random.normal(k, shape)).astype(jnp.float32)

    return dict(
        # Linear(nz, 4*4*8*ngf): torch weight is [out, in]; stored transposed.
        w_lin=w(ks[0], (NZ, N1)), b_lin=w(ks[1], (N1,)),
        g_bn0=(1.0 + 0.1 * jax.random.normal(ks[2], (N1,))).astype(jnp.float32),
        be_bn0=w(ks[3], (N1,), 0.1),
        # ConvTranspose2d(c0, c1, 2, 2): torch weight [c0, c1, 2, 2] -> [c0, c1*4]
        w_d1=w(ks[4], (C0, C1 * 4)), b_d1=w(ks[5], (C1,)),
        g_bn1=(1.0 + 0.1 * jax.random.normal(ks[6], (C1,))).astype(jnp.float32),
        be_bn1=w(ks[7], (C1,), 0.1),
        w_d2=w(ks[8], (C1, C2 * 4)), b_d2=w(ks[9], (C2,)),
        g_bn2=(1.0 + 0.1 * jax.random.normal(ks[10], (C2,))).astype(jnp.float32),
        be_bn2=w(ks[11], (C2,), 0.1),
        w_out=w(ks[12], (C2, NC * 4)), b_out=w(ks[13], (NC,)),
    )


# ------------------------- pure-JAX reference ---------------------------------

def _deconv2x2_rearrange(y_mat, B, H, W, cout):
    # y_mat rows ordered (b, i, j); cols ordered (cout, ky, kx).
    y = y_mat.reshape(B, H, W, cout, 2, 2)
    y = jnp.transpose(y, (0, 1, 4, 2, 5, 3))       # (B, H, ky, W, kx, Cout)
    return y.reshape(B, 2 * H, 2 * W, cout)


def generator_reference(z, p):
    def bn_relu(x, g, be):
        mean = x.mean(0, keepdims=True)
        var = ((x - mean) ** 2).mean(0, keepdims=True)
        return jnp.maximum((x - mean) * jax.lax.rsqrt(var + EPS) * g + be, 0.0)

    B = z.shape[0]
    h = jnp.dot(z.reshape(B, -1), p["w_lin"]) + p["b_lin"]
    h = bn_relu(h, p["g_bn0"], p["be_bn0"])
    h = h.reshape(B, C0, 4, 4).transpose(0, 2, 3, 1).reshape(B * 16, C0)
    y = _deconv2x2_rearrange(
        jnp.dot(h, p["w_d1"]) + jnp.repeat(p["b_d1"], 4), B, 4, 4, C1)
    h = bn_relu(y.reshape(B * 64, C1), p["g_bn1"], p["be_bn1"])
    y = _deconv2x2_rearrange(
        jnp.dot(h, p["w_d2"]) + jnp.repeat(p["b_d2"], 4), B, 8, 8, C2)
    h = bn_relu(y.reshape(B * 256, C2), p["g_bn2"], p["be_bn2"])
    y = jnp.tanh(jnp.dot(h, p["w_out"]) + jnp.repeat(p["b_out"], 4))
    y = _deconv2x2_rearrange(y, B, 16, 16, NC)
    return jnp.transpose(y, (0, 3, 1, 2))           # NCHW (B, 3, 32, 32)


# ----------------------------------- main -------------------------------------

if __name__ == "__main__":
    key = jax.random.PRNGKey(0)
    kz, kp = jax.random.split(key)
    z = jax.random.normal(kz, (BATCH, NZ), dtype=jnp.float32)
    params = init_params(kp)
    kparams = prepare_kernel_params(params)          # one-time layout prep

    out = jax.jit(generator_forward)(z, kparams)
    out = jax.block_until_ready(out)

    assert out.shape == (BATCH, NC, IMAGE_SIZE, IMAGE_SIZE), out.shape
    assert bool(jnp.all(jnp.isfinite(out)))

    ref = jax.block_until_ready(jax.jit(generator_reference)(z, params))
    max_err = float(jnp.max(jnp.abs(out - ref)))
    assert bool(jnp.allclose(out, ref, atol=1e-2, rtol=1e-2)), max_err

    print("KERNEL_OK")
</pallas_src>

<mosaic_0001>
module attributes {stable_mosaic.version = 11 : i64} {
  func.func @_generator_kernel(%arg0: memref<8x32xf32, #tpu.memory_space<vmem>>, %arg1: memref<32x1024xf32, #tpu.memory_space<vmem>>, %arg2: memref<1x1024xf32, #tpu.memory_space<vmem>>, %arg3: memref<1x1024xf32, #tpu.memory_space<vmem>>, %arg4: memref<1x1024xf32, #tpu.memory_space<vmem>>, %arg5: memref<64x128xf32, #tpu.memory_space<vmem>>, %arg6: memref<1x128xf32, #tpu.memory_space<vmem>>, %arg7: memref<1x32xf32, #tpu.memory_space<vmem>>, %arg8: memref<1x32xf32, #tpu.memory_space<vmem>>, %arg9: memref<32x64xf32, #tpu.memory_space<vmem>>, %arg10: memref<1x64xf32, #tpu.memory_space<vmem>>, %arg11: memref<1x16xf32, #tpu.memory_space<vmem>>, %arg12: memref<1x16xf32, #tpu.memory_space<vmem>>, %arg13: memref<16x12xf32, #tpu.memory_space<vmem>>, %arg14: memref<1x12xf32, #tpu.memory_space<vmem>>, %arg15: memref<2048x12xf32, #tpu.memory_space<vmem>>, %arg16: memref<128x64xf32, #tpu.memory_space<vmem>>, %arg17: memref<512x32xf32, #tpu.memory_space<vmem>>, %arg18: memref<2048x16xf32, #tpu.memory_space<vmem>>) attributes {dimension_semantics = [], scalar_prefetch = 0 : i64, scratch_operands = 3 : i64, tpu.core_type = #tpu.core_type<tc>} {
    %c0 = arith.constant 0 : index
    %c0_0 = arith.constant 0 : index
    %0 = vector.load %arg0[%c0, %c0_0] : memref<8x32xf32, #tpu.memory_space<vmem>>, vector<8x32xf32>
    %c0_1 = arith.constant 0 : index
    %c0_2 = arith.constant 0 : index
    %1 = vector.load %arg1[%c0_1, %c0_2] : memref<32x1024xf32, #tpu.memory_space<vmem>>, vector<32x1024xf32>
    %cst = arith.constant dense<0.000000e+00> : vector<8x1024xf32>
    %2 = tpu.matmul %0, %1, %cst {dimension_numbers = #tpu.dot_dimension_numbers<[1], [0], [0], [1], [0, 0, 1, 1], [], []>} : vector<8x32xf32>, vector<32x1024xf32>, vector<8x1024xf32> -> vector<8x1024xf32>
    %c0_3 = arith.constant 0 : index
    %c0_4 = arith.constant 0 : index
    %3 = vector.load %arg2[%c0_3, %c0_4] : memref<1x1024xf32, #tpu.memory_space<vmem>>, vector<1x1024xf32>
    %4 = vector.broadcast %3 : vector<1x1024xf32> to vector<8x1024xf32>
    %5 = arith.addf %2, %4 : vector<8x1024xf32>
    %cst_5 = arith.constant dense<0.000000e+00> : vector<1024xf32>
    %6 = vector.multi_reduction <add>, %5, %cst_5 [0] : vector<8x1024xf32> to vector<1024xf32>
    %7 = vector.shape_cast %6 : vector<1024xf32> to vector<1x1024xf32>
    %cst_6 = arith.constant 8.000000e+00 : f32
    %8 = vector.broadcast %cst_6 : f32 to vector<1x1024xf32>
    %9 = arith.divf %7, %8 : vector<1x1024xf32>
    %10 = arith.mulf %5, %5 : vector<8x1024xf32>
    %cst_7 = arith.constant dense<0.000000e+00> : vector<1024xf32>
    %11 = vector.multi_reduction <add>, %10, %cst_7 [0] : vector<8x1024xf32> to vector<1024xf32>
    %12 = vector.shape_cast %11 : vector<1024xf32> to vector<1x1024xf32>
    %cst_8 = arith.constant 8.000000e+00 : f32
    %13 = vector.broadcast %cst_8 : f32 to vector<1x1024xf32>
    %14 = arith.divf %12, %13 : vector<1x1024xf32>
    %15 = arith.mulf %9, %9 : vector<1x1024xf32>
    %16 = arith.subf %14, %15 : vector<1x1024xf32>
    %17 = vector.broadcast %9 : vector<1x1024xf32> to vector<8x1024xf32>
    %18 = arith.subf %5, %17 : vector<8x1024xf32>
    %cst_9 = arith.constant 9.99999974E-6 : f32
    %19 = vector.broadcast %cst_9 : f32 to vector<1x1024xf32>
    %20 = arith.addf %16, %19 : vector<1x1024xf32>
    %21 = math.rsqrt %20 : vector<1x1024xf32>
    %22 = vector.broadcast %21 : vector<1x1024xf32> to vector<8x1024xf32>
    %23 = arith.mulf %18, %22 : vector<8x1024xf32>
    %c0_10 = arith.constant 0 : index
    %c0_11 = arith.constant 0 : index
    %24 = vector.load %arg3[%c0_10, %c0_11] : memref<1x1024xf32, #tpu.memory_space<vmem>>, vector<1x1024xf32>
    %25 = vector.broadcast %24 : vector<1x1024xf32> to vector<8x1024xf32>
    %26 = arith.mulf %23, %25 : vector<8x1024xf32>
    %c0_12 = arith.constant 0 : index
    %c0_13 = arith.constant 0 : index
    %27 = vector.load %arg4[%c0_12, %c0_13] : memref<1x1024xf32, #tpu.memory_space<vmem>>, vector<1x1024xf32>
    %28 = vector.broadcast %27 : vector<1x1024xf32> to vector<8x1024xf32>
    %29 = arith.addf %26, %28 : vector<8x1024xf32>
    %cst_14 = arith.constant 0.000000e+00 : f32
    %30 = vector.broadcast %cst_14 : f32 to vector<8x1024xf32>
    %31 = arith.maximumf %29, %30 : vector<8x1024xf32>
    %32 = vector.extract_strided_slice %31 {offsets = [0, 0], sizes = [8, 64], strides = [1, 1]} : vector<8x1024xf32> to vector<8x64xf32>
    %c0_15 = arith.constant 0 : index
    %c0_16 = arith.constant 0 : index
    %33 = vector.load %arg16[%c0_15, %c0_16] : memref<128x64xf32, #tpu.memory_space<vmem>>, vector<8x64xf32>
    tpu.vector_store %arg16[%c0_15, %c0_16], %32 {strides = array<i32>} : memref<128x64xf32, #tpu.memory_space<vmem>>, vector<8x64xf32>,
    %34 = vector.extract_strided_slice %31 {offsets = [0, 64], sizes = [8, 64], strides = [1, 1]} : vector<8x1024xf32> to vector<8x64xf32>
    %c8 = arith.constant 8 : index
    %c0_17 = arith.constant 0 : index
    %35 = vector.load %arg16[%c8, %c0_17] : memref<128x64xf32, #tpu.memory_space<vmem>>, vector<8x64xf32>
    tpu.vector_store %arg16[%c8, %c0_17], %34 {strides = array<i32>} : memref<128x64xf32, #tpu.memory_space<vmem>>, vector<8x64xf32>,
    %36 = vector.extract_strided_slice %31 {offsets = [0, 128], sizes = [8, 64], strides = [1, 1]} : vector<8x1024xf32> to vector<8x64xf32>
    %c16 = arith.constant 16 : index
    %c0_18 = arith.constant 0 : index
    %37 = vector.load %arg16[%c16, %c0_18] : memref<128x64xf32, #tpu.memory_space<vmem>>, vector<8x64xf32>
    tpu.vector_store %arg16[%c16, %c0_18], %36 {strides = array<i32>} : memref<128x64xf32, #tpu.memory_space<vmem>>, vector<8x64xf32>,
    %38 = vector.extract_strided_slice %31 {offsets = [0, 192], sizes = [8, 64], strides = [1, 1]} : vector<8x1024xf32> to vector<8x64xf32>
    %c24 = arith.constant 24 : index
    %c0_19 = arith.constant 0 : index
    %39 = vector.load %arg16[%c24, %c0_19] : memref<128x64xf32, #tpu.memory_space<vmem>>, vector<8x64xf32>
    tpu.vector_store %arg16[%c24, %c0_19], %38 {strides = array<i32>} : memref<128x64xf32, #tpu.memory_space<vmem>>, vector<8x64xf32>,
    %40 = vector.extract_strided_slice %31 {offsets = [0, 256], sizes = [8, 64], strides = [1, 1]} : vector<8x1024xf32> to vector<8x64xf32>
    %c32 = arith.constant 32 : index
    %c0_20 = arith.constant 0 : index
    %41 = vector.load %arg16[%c32, %c0_20] : memref<128x64xf32, #tpu.memory_space<vmem>>, vector<8x64xf32>
    tpu.vector_store %arg16[%c32, %c0_20], %40 {strides = array<i32>} : memref<128x64xf32, #tpu.memory_space<vmem>>, vector<8x64xf32>,
    %42 = vector.extract_strided_slice %31 {offsets = [0, 320], sizes = [8, 64], strides = [1, 1]} : vector<8x1024xf32> to vector<8x64xf32>
    %c40 = arith.constant 40 : index
    %c0_21 = arith.constant 0 : index
    %43 = vector.load %arg16[%c40, %c0_21] : memref<128x64xf32, #tpu.memory_space<vmem>>, vector<8x64xf32>
    tpu.vector_store %arg16[%c40, %c0_21], %42 {strides = array<i32>} : memref<128x64xf32, #tpu.memory_space<vmem>>, vector<8x64xf32>,
    %44 = vector.extract_strided_slice %31 {offsets = [0, 384], sizes = [8, 64], strides = [1, 1]} : vector<8x1024xf32> to vector<8x64xf32>
    %c48 = arith.constant 48 : index
    %c0_22 = arith.constant 0 : index
    %45 = vector.load %arg16[%c48, %c0_22] : memref<128x64xf32, #tpu.memory_space<vmem>>, vector<8x64xf32>
    tpu.vector_store %arg16[%c48, %c0_22], %44 {strides = array<i32>} : memref<128x64xf32, #tpu.memory_space<vmem>>, vector<8x64xf32>,
    %46 = vector.extract_strided_slice %31 {offsets = [0, 448], sizes = [8, 64], strides = [1, 1]} : vector<8x1024xf32> to vector<8x64xf32>
    %c56 = arith.constant 56 : index
    %c0_23 = arith.constant 0 : index
    %47 = vector.load %arg16[%c56, %c0_23] : memref<128x64xf32, #tpu.memory_space<vmem>>, vector<8x64xf32>
    tpu.vector_store %arg16[%c56, %c0_23], %46 {strides = array<i32>} : memref<128x64xf32, #tpu.memory_space<vmem>>, vector<8x64xf32>,
    %48 = vector.extract_strided_slice %31 {offsets = [0, 512], sizes = [8, 64], strides = [1, 1]} : vector<8x1024xf32> to vector<8x64xf32>
    %c64 = arith.constant 64 : index
    %c0_24 = arith.constant 0 : index
    %49 = vector.load %arg16[%c64, %c0_24] : memref<128x64xf32, #tpu.memory_space<vmem>>, vector<8x64xf32>
    tpu.vector_store %arg16[%c64, %c0_24], %48 {strides = array<i32>} : memref<128x64xf32, #tpu.memory_space<vmem>>, vector<8x64xf32>,
    %50 = vector.extract_strided_slice %31 {offsets = [0, 576], sizes = [8, 64], strides = [1, 1]} : vector<8x1024xf32> to vector<8x64xf32>
    %c72 = arith.constant 72 : index
    %c0_25 = arith.constant 0 : index
    %51 = vector.load %arg16[%c72, %c0_25] : memref<128x64xf32, #tpu.memory_space<vmem>>, vector<8x64xf32>
    tpu.vector_store %arg16[%c72, %c0_25], %50 {strides = array<i32>} : memref<128x64xf32, #tpu.memory_space<vmem>>, vector<8x64xf32>,
    %52 = vector.extract_strided_slice %31 {offsets = [0, 640], sizes = [8, 64], strides = [1, 1]} : vector<8x1024xf32> to vector<8x64xf32>
    %c80 = arith.constant 80 : index
    %c0_26 = arith.constant 0 : index
    %53 = vector.load %arg16[%c80, %c0_26] : memref<128x64xf32, #tpu.memory_space<vmem>>, vector<8x64xf32>
    tpu.vector_store %arg16[%c80, %c0_26], %52 {strides = array<i32>} : memref<128x64xf32, #tpu.memory_space<vmem>>, vector<8x64xf32>,
    %54 = vector.extract_strided_slice %31 {offsets = [0, 704], sizes = [8, 64], strides = [1, 1]} : vector<8x1024xf32> to vector<8x64xf32>
    %c88 = arith.constant 88 : index
    %c0_27 = arith.constant 0 : index
    %55 = vector.load %arg16[%c88, %c0_27] : memref<128x64xf32, #tpu.memory_space<vmem>>, vector<8x64xf32>
    tpu.vector_store %arg16[%c88, %c0_27], %54 {strides = array<i32>} : memref<128x64xf32, #tpu.memory_space<vmem>>, vector<8x64xf32>,
    %56 = vector.extract_strided_slice %31 {offsets = [0, 768], sizes = [8, 64], strides = [1, 1]} : vector<8x1024xf32> to vector<8x64xf32>
    %c96 = arith.constant 96 : index
    %c0_28 = arith.constant 0 : index
    %57 = vector.load %arg16[%c96, %c0_28] : memref<128x64xf32, #tpu.memory_space<vmem>>, vector<8x64xf32>
    tpu.vector_store %arg16[%c96, %c0_28], %56 {strides = array<i32>} : memref<128x64xf32, #tpu.memory_space<vmem>>, vector<8x64xf32>,
    %58 = vector.extract_strided_slice %31 {offsets = [0, 832], sizes = [8, 64], strides = [1, 1]} : vector<8x1024xf32> to vector<8x64xf32>
    %c104 = arith.constant 104 : index
    %c0_29 = arith.constant 0 : index
    %59 = vector.load %arg16[%c104, %c0_29] : memref<128x64xf32, #tpu.memory_space<vmem>>, vector<8x64xf32>
    tpu.vector_store %arg16[%c104, %c0_29], %58 {strides = array<i32>} : memref<128x64xf32, #tpu.memory_space<vmem>>, vector<8x64xf32>,
    %60 = vector.extract_strided_slice %31 {offsets = [0, 896], sizes = [8, 64], strides = [1, 1]} : vector<8x1024xf32> to vector<8x64xf32>
    %c112 = arith.constant 112 : index
    %c0_30 = arith.constant 0 : index
    %61 = vector.load %arg16[%c112, %c0_30] : memref<128x64xf32, #tpu.memory_space<vmem>>, vector<8x64xf32>
    tpu.vector_store %arg16[%c112, %c0_30], %60 {strides = array<i32>} : memref<128x64xf32, #tpu.memory_space<vmem>>, vector<8x64xf32>,
    %62 = vector.extract_strided_slice %31 {offsets = [0, 960], sizes = [8, 64], strides = [1, 1]} : vector<8x1024xf32> to vector<8x64xf32>
    %c120 = arith.constant 120 : index
    %c0_31 = arith.constant 0 : index
    %63 = vector.load %arg16[%c120, %c0_31] : memref<128x64xf32, #tpu.memory_space<vmem>>, vector<8x64xf32>
    tpu.vector_store %arg16[%c120, %c0_31], %62 {strides = array<i32>} : memref<128x64xf32, #tpu.memory_space<vmem>>, vector<8x64xf32>,
    %c0_32 = arith.constant 0 : index
    %c0_33 = arith.constant 0 : index
    %64 = vector.load %arg16[%c0_32, %c0_33] : memref<128x64xf32, #tpu.memory_space<vmem>>, vector<128x64xf32>
    %c0_34 = arith.constant 0 : index
    %c0_35 = arith.constant 0 : index
    %65 = vector.load %arg5[%c0_34, %c0_35] : memref<64x128xf32, #tpu.memory_space<vmem>>, vector<64x128xf32>
    %cst_36 = arith.constant dense<0.000000e+00> : vector<128x128xf32>
    %66 = tpu.matmul %64, %65, %cst_36 {dimension_numbers = #tpu.dot_dimension_numbers<[1], [0], [0], [1], [0, 0, 1, 1], [], []>} : vector<128x64xf32>, vector<64x128xf32>, vector<128x128xf32> -> vector<128x128xf32>
    %c0_37 = arith.constant 0 : index
    %c0_38 = arith.constant 0 : index
    %67 = vector.load %arg6[%c0_37, %c0_38] : memref<1x128xf32, #tpu.memory_space<vmem>>, vector<1x128xf32>
    %68 = vector.broadcast %67 : vector<1x128xf32> to vector<128x128xf32>
    %69 = arith.addf %66, %68 : vector<128x128xf32>
    %c0_39 = arith.constant 0 : index
    %c0_40 = arith.constant 0 : index
    %70 = vector.load %arg7[%c0_39, %c0_40] : memref<1x32xf32, #tpu.memory_space<vmem>>, vector<1x32xf32>
    %c0_41 = arith.constant 0 : index
    %c0_42 = arith.constant 0 : index
    %71 = vector.load %arg8[%c0_41, %c0_42] : memref<1x32xf32, #tpu.memory_space<vmem>>, vector<1x32xf32>
    %cst_43 = arith.constant dense<0.000000e+00> : vector<128xf32>
    %72 = vector.multi_reduction <add>, %69, %cst_43 [0] : vector<128x128xf32> to vector<128xf32>
    %73 = vector.shape_cast %72 : vector<128xf32> to vector<1x128xf32>
    %74 = arith.mulf %69, %69 : vector<128x128xf32>
    %cst_44 = arith.constant dense<0.000000e+00> : vector<128xf32>
    %75 = vector.multi_reduction <add>, %74, %cst_44 [0] : vector<128x128xf32> to vector<128xf32>
    %76 = vector.shape_cast %75 : vector<128xf32> to vector<1x128xf32>
    %77 = vector.extract_strided_slice %73 {offsets = [0, 0], sizes = [1, 32], strides = [1, 1]} : vector<1x128xf32> to vector<1x32xf32>
    %78 = vector.extract_strided_slice %73 {offsets = [0, 32], sizes = [1, 32], strides = [1, 1]} : vector<1x128xf32> to vector<1x32xf32>
    %79 = arith.addf %77, %78 : vector<1x32xf32>
    %80 = vector.extract_strided_slice %73 {offsets = [0, 64], sizes = [1, 32], strides = [1, 1]} : vector<1x128xf32> to vector<1x32xf32>
    %81 = arith.addf %79, %80 : vector<1x32xf32>
    %82 = vector.extract_strided_slice %73 {offsets = [0, 96], sizes = [1, 32], strides = [1, 1]} : vector<1x128xf32> to vector<1x32xf32>
    %83 = arith.addf %81, %82 : vector<1x32xf32>
    %84 = vector.extract_strided_slice %76 {offsets = [0, 0], sizes = [1, 32], strides = [1, 1]} : vector<1x128xf32> to vector<1x32xf32>
    %85 = vector.extract_strided_slice %76 {offsets = [0, 32], sizes = [1, 32], strides = [1, 1]} : vector<1x128xf32> to vector<1x32xf32>
    %86 = arith.addf %84, %85 : vector<1x32xf32>
    %87 = vector.extract_strided_slice %76 {offsets = [0, 64], sizes = [1, 32], strides = [1, 1]} : vector<1x128xf32> to vector<1x32xf32>
    %88 = arith.addf %86, %87 : vector<1x32xf32>
    %89 = vector.extract_strided_slice %76 {offsets = [0, 96], sizes = [1, 32], strides = [1, 1]} : vector<1x128xf32> to vector<1x32xf32>
    %90 = arith.addf %88, %89 : vector<1x32xf32>
    %cst_45 = arith.constant 5.120000e+02 : f32
    %91 = vector.broadcast %cst_45 : f32 to vector<1x32xf32>
    %92 = arith.divf %83, %91 : vector<1x32xf32>
    %cst_46 = arith.constant 5.120000e+02 : f32
    %93 = vector.broadcast %cst_46 : f32 to vector<1x32xf32>
    %94 = arith.divf %90, %93 : vector<1x32xf32>
    %95 = arith.mulf %92, %92 : vector<1x32xf32>
    %96 = arith.subf %94, %95 : vector<1x32xf32>
    %cst_47 = arith.constant 9.99999974E-6 : f32
    %97 = vector.broadcast %cst_47 : f32 to vector<1x32xf32>
    %98 = arith.addf %96, %97 : vector<1x32xf32>
    %99 = math.rsqrt %98 : vector<1x32xf32>
    %100 = arith.mulf %70, %99 : vector<1x32xf32>
    %101 = arith.mulf %92, %100 : vector<1x32xf32>
    %102 = arith.subf %71, %101 : vector<1x32xf32>
    %103 = vector.extract_strided_slice %69 {offsets = [0, 0], sizes = [128, 32], strides = [1, 1]} : vector<128x128xf32> to vector<128x32xf32>
    %104 = vector.broadcast %100 : vector<1x32xf32> to vector<128x32xf32>
    %105 = arith.mulf %103, %104 : vector<128x32xf32>
    %106 = vector.broadcast %102 : vector<1x32xf32> to vector<128x32xf32>
    %107 = arith.addf %105, %106 : vector<128x32xf32>
    %cst_48 = arith.constant 0.000000e+00 : f32
    %108 = vector.broadcast %cst_48 : f32 to vector<128x32xf32>
    %109 = arith.maximumf %107, %108 : vector<128x32xf32>
    %c0_49 = arith.constant 0 : index
    %c0_50 = arith.constant 0 : index
    %110 = vector.load %arg17[%c0_49, %c0_50] : memref<512x32xf32, #tpu.memory_space<vmem>>, vector<128x32xf32>
    tpu.vector_store %arg17[%c0_49, %c0_50], %109 {strides = array<i32>} : memref<512x32xf32, #tpu.memory_space<vmem>>, vector<128x32xf32>,
    %111 = vector.extract_strided_slice %69 {offsets = [0, 32], sizes = [128, 32], strides = [1, 1]} : vector<128x128xf32> to vector<128x32xf32>
    %112 = vector.broadcast %100 : vector<1x32xf32> to vector<128x32xf32>
    %113 = arith.mulf %111, %112 : vector<128x32xf32>
    %114 = vector.broadcast %102 : vector<1x32xf32> to vector<128x32xf32>
    %115 = arith.addf %113, %114 : vector<128x32xf32>
    %cst_51 = arith.constant 0.000000e+00 : f32
    %116 = vector.broadcast %cst_51 : f32 to vector<128x32xf32>
    %117 = arith.maximumf %115, %116 : vector<128x32xf32>
    %c128 = arith.constant 128 : index
    %c0_52 = arith.constant 0 : index
    %118 = vector.load %arg17[%c128, %c0_52] : memref<512x32xf32, #tpu.memory_space<vmem>>, vector<128x32xf32>
    tpu.vector_store %arg17[%c128, %c0_52], %117 {strides = array<i32>} : memref<512x32xf32, #tpu.memory_space<vmem>>, vector<128x32xf32>,
    %119 = vector.extract_strided_slice %69 {offsets = [0, 64], sizes = [128, 32], strides = [1, 1]} : vector<128x128xf32> to vector<128x32xf32>
    %120 = vector.broadcast %100 : vector<1x32xf32> to vector<128x32xf32>
    %121 = arith.mulf %119, %120 : vector<128x32xf32>
    %122 = vector.broadcast %102 : vector<1x32xf32> to vector<128x32xf32>
    %123 = arith.addf %121, %122 : vector<128x32xf32>
    %cst_53 = arith.constant 0.000000e+00 : f32
    %124 = vector.broadcast %cst_53 : f32 to vector<128x32xf32>
    %125 = arith.maximumf %123, %124 : vector<128x32xf32>
    %c256 = arith.constant 256 : index
    %c0_54 = arith.constant 0 : index
    %126 = vector.load %arg17[%c256, %c0_54] : memref<512x32xf32, #tpu.memory_space<vmem>>, vector<128x32xf32>
    tpu.vector_store %arg17[%c256, %c0_54], %125 {strides = array<i32>} : memref<512x32xf32, #tpu.memory_space<vmem>>, vector<128x32xf32>,
    %127 = vector.extract_strided_slice %69 {offsets = [0, 96], sizes = [128, 32], strides = [1, 1]} : vector<128x128xf32> to vector<128x32xf32>
    %128 = vector.broadcast %100 : vector<1x32xf32> to vector<128x32xf32>
    %129 = arith.mulf %127, %128 : vector<128x32xf32>
    %130 = vector.broadcast %102 : vector<1x32xf32> to vector<128x32xf32>
    %131 = arith.addf %129, %130 : vector<128x32xf32>
    %cst_55 = arith.constant 0.000000e+00 : f32
    %132 = vector.broadcast %cst_55 : f32 to vector<128x32xf32>
    %133 = arith.maximumf %131, %132 : vector<128x32xf32>
    %c384 = arith.constant 384 : index
    %c0_56 = arith.constant 0 : index
    %134 = vector.load %arg17[%c384, %c0_56] : memref<512x32xf32, #tpu.memory_space<vmem>>, vector<128x32xf32>
    tpu.vector_store %arg17[%c384, %c0_56], %133 {strides = array<i32>} : memref<512x32xf32, #tpu.memory_space<vmem>>, vector<128x32xf32>,
    %c0_57 = arith.constant 0 : index
    %c0_58 = arith.constant 0 : index
    %135 = vector.load %arg17[%c0_57, %c0_58] : memref<512x32xf32, #tpu.memory_space<vmem>>, vector<512x32xf32>
    %c0_59 = arith.constant 0 : index
    %c0_60 = arith.constant 0 : index
    %136 = vector.load %arg9[%c0_59, %c0_60] : memref<32x64xf32, #tpu.memory_space<vmem>>, vector<32x64xf32>
    %cst_61 = arith.constant dense<0.000000e+00> : vector<512x64xf32>
    %137 = tpu.matmul %135, %136, %cst_61 {dimension_numbers = #tpu.dot_dimension_numbers<[1], [0], [0], [1], [0, 0, 1, 1], [], []>} : vector<512x32xf32>, vector<32x64xf32>, vector<512x64xf32> -> vector<512x64xf32>
    %c0_62 = arith.constant 0 : index
    %c0_63 = arith.constant 0 : index
    %138 = vector.load %arg10[%c0_62, %c0_63] : memref<1x64xf32, #tpu.memory_space<vmem>>, vector<1x64xf32>
    %139 = vector.broadcast %138 : vector<1x64xf32> to vector<512x64xf32>
    %140 = arith.addf %137, %139 : vector<512x64xf32>
    %c0_64 = arith.constant 0 : index
    %c0_65 = arith.constant 0 : index
    %141 = vector.load %arg11[%c0_64, %c0_65] : memref<1x16xf32, #tpu.memory_space<vmem>>, vector<1x16xf32>
    %c0_66 = arith.constant 0 : index
    %c0_67 = arith.constant 0 : index
    %142 = vector.load %arg12[%c0_66, %c0_67] : memref<1x16xf32, #tpu.memory_space<vmem>>, vector<1x16xf32>
    %cst_68 = arith.constant dense<0.000000e+00> : vector<64xf32>
    %143 = vector.multi_reduction <add>, %140, %cst_68 [0] : vector<512x64xf32> to vector<64xf32>
    %144 = vector.shape_cast %143 : vector<64xf32> to vector<1x64xf32>
    %145 = arith.mulf %140, %140 : vector<512x64xf32>
    %cst_69 = arith.constant dense<0.000000e+00> : vector<64xf32>
    %146 = vector.multi_reduction <add>, %145, %cst_69 [0] : vector<512x64xf32> to vector<64xf32>
    %147 = vector.shape_cast %146 : vector<64xf32> to vector<1x64xf32>
    %148 = vector.extract_strided_slice %144 {offsets = [0, 0], sizes = [1, 16], strides = [1, 1]} : vector<1x64xf32> to vector<1x16xf32>
    %149 = vector.extract_strided_slice %144 {offsets = [0, 16], sizes = [1, 16], strides = [1, 1]} : vector<1x64xf32> to vector<1x16xf32>
    %150 = arith.addf %148, %149 : vector<1x16xf32>
    %151 = vector.extract_strided_slice %144 {offsets = [0, 32], sizes = [1, 16], strides = [1, 1]} : vector<1x64xf32> to vector<1x16xf32>
    %152 = arith.addf %150, %151 : vector<1x16xf32>
    %153 = vector.extract_strided_slice %144 {offsets = [0, 48], sizes = [1, 16], strides = [1, 1]} : vector<1x64xf32> to vector<1x16xf32>
    %154 = arith.addf %152, %153 : vector<1x16xf32>
    %155 = vector.extract_strided_slice %147 {offsets = [0, 0], sizes = [1, 16], strides = [1, 1]} : vector<1x64xf32> to vector<1x16xf32>
    %156 = vector.extract_strided_slice %147 {offsets = [0, 16], sizes = [1, 16], strides = [1, 1]} : vector<1x64xf32> to vector<1x16xf32>
    %157 = arith.addf %155, %156 : vector<1x16xf32>
    %158 = vector.extract_strided_slice %147 {offsets = [0, 32], sizes = [1, 16], strides = [1, 1]} : vector<1x64xf32> to vector<1x16xf32>
    %159 = arith.addf %157, %158 : vector<1x16xf32>
    %160 = vector.extract_strided_slice %147 {offsets = [0, 48], sizes = [1, 16], strides = [1, 1]} : vector<1x64xf32> to vector<1x16xf32>
    %161 = arith.addf %159, %160 : vector<1x16xf32>
    %cst_70 = arith.constant 2.048000e+03 : f32
    %162 = vector.broadcast %cst_70 : f32 to vector<1x16xf32>
    %163 = arith.divf %154, %162 : vector<1x16xf32>
    %cst_71 = arith.constant 2.048000e+03 : f32
    %164 = vector.broadcast %cst_71 : f32 to vector<1x16xf32>
    %165 = arith.divf %161, %164 : vector<1x16xf32>
    %166 = arith.mulf %163, %163 : vector<1x16xf32>
    %167 = arith.subf %165, %166 : vector<1x16xf32>
    %cst_72 = arith.constant 9.99999974E-6 : f32
    %168 = vector.broadcast %cst_72 : f32 to vector<1x16xf32>
    %169 = arith.addf %167, %168 : vector<1x16xf32>
    %170 = math.rsqrt %169 : vector<1x16xf32>
    %171 = arith.mulf %141, %170 : vector<1x16xf32>
    %172 = arith.mulf %163, %171 : vector<1x16xf32>
    %173 = arith.subf %142, %172 : vector<1x16xf32>
    %174 = vector.extract_strided_slice %140 {offsets = [0, 0], sizes = [512, 16], strides = [1, 1]} : vector<512x64xf32> to vector<512x16xf32>
    %175 = vector.broadcast %171 : vector<1x16xf32> to vector<512x16xf32>
    %176 = arith.mulf %174, %175 : vector<512x16xf32>
    %177 = vector.broadcast %173 : vector<1x16xf32> to vector<512x16xf32>
    %178 = arith.addf %176, %177 : vector<512x16xf32>
    %cst_73 = arith.constant 0.000000e+00 : f32
    %179 = vector.broadcast %cst_73 : f32 to vector<512x16xf32>
    %180 = arith.maximumf %178, %179 : vector<512x16xf32>
    %c0_74 = arith.constant 0 : index
    %c0_75 = arith.constant 0 : index
    %181 = vector.load %arg18[%c0_74, %c0_75] : memref<2048x16xf32, #tpu.memory_space<vmem>>, vector<512x16xf32>
    tpu.vector_store %arg18[%c0_74, %c0_75], %180 {strides = array<i32>} : memref<2048x16xf32, #tpu.memory_space<vmem>>, vector<512x16xf32>,
    %182 = vector.extract_strided_slice %140 {offsets = [0, 16], sizes = [512, 16], strides = [1, 1]} : vector<512x64xf32> to vector<512x16xf32>
    %183 = vector.broadcast %171 : vector<1x16xf32> to vector<512x16xf32>
    %184 = arith.mulf %182, %183 : vector<512x16xf32>
    %185 = vector.broadcast %173 : vector<1x16xf32> to vector<512x16xf32>
    %186 = arith.addf %184, %185 : vector<512x16xf32>
    %cst_76 = arith.constant 0.000000e+00 : f32
    %187 = vector.broadcast %cst_76 : f32 to vector<512x16xf32>
    %188 = arith.maximumf %186, %187 : vector<512x16xf32>
    %c512 = arith.constant 512 : index
    %c0_77 = arith.constant 0 : index
    %189 = vector.load %arg18[%c512, %c0_77] : memref<2048x16xf32, #tpu.memory_space<vmem>>, vector<512x16xf32>
    tpu.vector_store %arg18[%c512, %c0_77], %188 {strides = array<i32>} : memref<2048x16xf32, #tpu.memory_space<vmem>>, vector<512x16xf32>,
    %190 = vector.extract_strided_slice %140 {offsets = [0, 32], sizes = [512, 16], strides = [1, 1]} : vector<512x64xf32> to vector<512x16xf32>
    %191 = vector.broadcast %171 : vector<1x16xf32> to vector<512x16xf32>
    %192 = arith.mulf %190, %191 : vector<512x16xf32>
    %193 = vector.broadcast %173 : vector<1x16xf32> to vector<512x16xf32>
    %194 = arith.addf %192, %193 : vector<512x16xf32>
    %cst_78 = arith.constant 0.000000e+00 : f32
    %195 = vector.broadcast %cst_78 : f32 to vector<512x16xf32>
    %196 = arith.maximumf %194, %195 : vector<512x16xf32>
    %c1024 = arith.constant 1024 : index
    %c0_79 = arith.constant 0 : index
    %197 = vector.load %arg18[%c1024, %c0_79] : memref<2048x16xf32, #tpu.memory_space<vmem>>, vector<512x16xf32>
    tpu.vector_store %arg18[%c1024, %c0_79], %196 {strides = array<i32>} : memref<2048x16xf32, #tpu.memory_space<vmem>>, vector<512x16xf32>,
    %198 = vector.extract_strided_slice %140 {offsets = [0, 48], sizes = [512, 16], strides = [1, 1]} : vector<512x64xf32> to vector<512x16xf32>
    %199 = vector.broadcast %171 : vector<1x16xf32> to vector<512x16xf32>
    %200 = arith.mulf %198, %199 : vector<512x16xf32>
    %201 = vector.broadcast %173 : vector<1x16xf32> to vector<512x16xf32>
    %202 = arith.addf %200, %201 : vector<512x16xf32>
    %cst_80 = arith.constant 0.000000e+00 : f32
    %203 = vector.broadcast %cst_80 : f32 to vector<512x16xf32>
    %204 = arith.maximumf %202, %203 : vector<512x16xf32>
    %c1536 = arith.constant 1536 : index
    %c0_81 = arith.constant 0 : index
    %205 = vector.load %arg18[%c1536, %c0_81] : memref<2048x16xf32, #tpu.memory_space<vmem>>, vector<512x16xf32>
    tpu.vector_store %arg18[%c1536, %c0_81], %204 {strides = array<i32>} : memref<2048x16xf32, #tpu.memory_space<vmem>>, vector<512x16xf32>,
    %c0_82 = arith.constant 0 : index
    %c0_83 = arith.constant 0 : index
    %206 = vector.load %arg18[%c0_82, %c0_83] : memref<2048x16xf32, #tpu.memory_space<vmem>>, vector<2048x16xf32>
    %c0_84 = arith.constant 0 : index
    %c0_85 = arith.constant 0 : index
    %207 = vector.load %arg13[%c0_84, %c0_85] : memref<16x12xf32, #tpu.memory_space<vmem>>, vector<16x12xf32>
    %cst_86 = arith.constant dense<0.000000e+00> : vector<2048x12xf32>
    %208 = tpu.matmul %206, %207, %cst_86 {dimension_numbers = #tpu.dot_dimension_numbers<[1], [0], [0], [1], [0, 0, 1, 1], [], []>} : vector<2048x16xf32>, vector<16x12xf32>, vector<2048x12xf32> -> vector<2048x12xf32>
    %c0_87 = arith.constant 0 : index
    %c0_88 = arith.constant 0 : index
    %209 = vector.load %arg14[%c0_87, %c0_88] : memref<1x12xf32, #tpu.memory_space<vmem>>, vector<1x12xf32>
    %210 = vector.broadcast %209 : vector<1x12xf32> to vector<2048x12xf32>
    %211 = arith.addf %208, %210 : vector<2048x12xf32>
    %212 = math.tanh %211 : vector<2048x12xf32>
    %c0_89 = arith.constant 0 : index
    %c0_90 = arith.constant 0 : index
    %213 = vector.load %arg15[%c0_89, %c0_90] : memref<2048x12xf32, #tpu.memory_space<vmem>>, vector<2048x12xf32>
    tpu.vector_store %arg15[%c0_89, %c0_90], %212 {strides = array<i32>} : memref<2048x12xf32, #tpu.memory_space<vmem>>, vector<2048x12xf32>,
    return
  }
}

</mosaic_0001>

<bundles_post_ra>
// kernel: generator_forward.1
= control target key start
LH: loop header
LB: loop body
LE: loop exit
PB: predicated region body
PF: predicated region fallthrough
CT: control target
= control target key end

     0   :  { %s14392_s0 = inlined_call_operand.hbm [shape: f32[8,32], index: 0, kind: input, shape index: {}]   ;;  %s14393_s1 = inlined_call_operand.hbm [shape: f32[32,1024], index: 1, kind: input, shape index: {}]   ;;  %s14394_s2 = inlined_call_operand.hbm [shape: f32[1,1024], index: 2, kind: input, shape index: {}]   ;;  %s14395_s3 = inlined_call_operand.hbm [shape: f32[1,1024], index: 3, kind: input, shape index: {}]   ;;  %s14396_s4 = inlined_call_operand.hbm [shape: f32[1,1024], index: 4, kind: input, shape index: {}]   ;;  %s14397_s5 = inlined_call_operand.hbm [shape: f32[64,128], index: 5, kind: input, shape index: {}]   ;;  %s14398_s6 = inlined_call_operand.hbm [shape: f32[1,128], index: 6, kind: input, shape index: {}]   ;;  %s14399_s7 = inlined_call_operand.hbm [shape: f32[1,32], index: 7, kind: input, shape index: {}]   ;;  %s14400_s8 = inlined_call_operand.hbm [shape: f32[1,32], index: 8, kind: input, shape index: {}]   ;;  %s14401_s9 = inlined_call_operand.hbm [shape: f32[32,64], index: 9, kind: input, shape index: {}]   ;;  %s14402_s10 = inlined_call_operand.hbm [shape: f32[1,64], index: 10, kind: input, shape index: {}]   ;;  %s14403_s11 = inlined_call_operand.hbm [shape: f32[1,16], index: 11, kind: input, shape index: {}]   ;;  %s14404_s12 = inlined_call_operand.hbm [shape: f32[1,16], index: 12, kind: input, shape index: {}]   ;;  %s14405_s13 = inlined_call_operand.hbm [shape: f32[16,12], index: 13, kind: input, shape index: {}]   ;;  %s14406_s14 = inlined_call_operand.hbm [shape: f32[1,12], index: 14, kind: input, shape index: {}]   ;;  %s14407_s15 = inlined_call_operand.vmem [shape: f32[2048,12], index: 15, kind: output, shape index: {}]  }
   0x1   :  { %14547 = sst [smem:[#allocation112_spill]] %s14407_s15 }
   0x2   :  { %20 = vsyncpa [#allocation6], 0 }
   0x3   :  { %21 = vsyncpa [#allocation8], 0 }
   0x4   :  { %22 = vsyncpa [#allocation11], 0 }
   0x5   :  { %23 = vsyncpa [#allocation14], 0 }
   0x6   :  { %24 = vsyncpa [#allocation17], 0 }
   0x7   :  { %25 = vsyncpa [#allocation20], 0 }
   0x8   :  { %26 = vsyncpa [#allocation23], 0 }
   0x9   :  { %27 = vsyncpa [#allocation26], 0  ;;  %s9659_s18 = smov [#allocation7]   ;;  %s9313_s22 = scalar_lea.hbm %s14393_s1, 4096 }
   0xa   :  { %s43_s19 = sshll.u32 %s9659_s18, 4  ;;  %p9314_p0 = scmp.ne.s32.totalorder %s14393_s1, %s9313_s22  ;;  %s44_s19 = int_to_ptr.vmem [resolvable:$true] %s43_s19 }
   0xb   :  { %p9317_p1 = scmp.lt.u32.totalorder %s9313_s22, %s14393_s1 }
   0xd   :  { %p9319_p2 = pnand %p9317_p1, %p9314_p0 }
   0xf   :  { %9322 = shalt.err (!%p9319_p2)
}
  0x10   :  { %s9323_s27 = scalar_lea.vmem %s44_s19, 4096  ;;  %p9328_p4 = scmp.lt.s32.totalorder %s44_s19, %s44_s19 }
  0x11   :  { %p9324_p3 = scmp.ne.s32.totalorder %s44_s19, %s9323_s27  ;;  %p9329_p5 = scmp.lt.s32.totalorder %s9323_s27, %s9323_s27 }
  0x13   :  { %p9330_p6 = por %p9329_p5, %p9328_p4 }
  0x15   :  { %p9331_p7 = pnand %p9330_p6, %p9324_p3 }
  0x17   :  { %9334 = shalt.err (!%p9331_p7)
}
  0x18   :  { %s9660_s28 = smov 1024   ;;  %s9661_s29 = smov 64  }
  0x19   :  { %49 = dma.hbm_to_vmem [thread:$0]  %s14393_s1, 4096, %s44_s19, [#allocation8], %s9660_s28, %s9660_s28, %s9661_s29  }
  0x1a   :  { %s9662_s17 = smov [#allocation10]   ;;  %s9663_s20 = smov [#allocation13]  }
  0x1b   :  { %s66_s18 = sshll.u32 %s9662_s17, 4  ;;  %s85_s21 = sshll.u32 %s9663_s20, 4  ;;  %s67_s18 = int_to_ptr.vmem [resolvable:$true] %s66_s18  ;;  %s86_s21 = int_to_ptr.vmem [resolvable:$true] %s85_s21 }
  0x1c   :  { %s9335_s24 = scalar_lea.hbm %s14395_s3, 128 }
  0x1d   :  { %p9336_p8 = scmp.ne.s32.totalorder %s14395_s3, %s9335_s24  ;;  %p9339_p9 = scmp.lt.u32.totalorder %s9335_s24, %s14395_s3 }
  0x1f   :  { %p9341_p10 = pnand %p9339_p9, %p9336_p8 }
  0x21   :  { %9344 = shalt.err (!%p9341_p10)
}
  0x22   :  { %s9345_s1 = scalar_lea.vmem %s67_s18, 128  ;;  %p9350_p12 = scmp.lt.s32.totalorder %s67_s18, %s67_s18 }
  0x23   :  { %p9346_p11 = scmp.ne.s32.totalorder %s67_s18, %s9345_s1  ;;  %p9351_p13 = scmp.lt.s32.totalorder %s9345_s1, %s9345_s1 }
  0x25   :  { %p9352_p0 = por %p9351_p13, %p9350_p12 }
  0x27   :  { %p9353_p1 = pnand %p9352_p0, %p9346_p11 }
  0x29   :  { %9356 = shalt.err (!%p9353_p1)
}
  0x2a   :  { %69 = dma.hbm_to_vmem [thread:$0]  %s14395_s3, 128, %s67_s18, [#allocation11]  }
  0x2b   :  { %s9357_s17 = scalar_lea.hbm %s14397_s5, 1024 }
  0x2c   :  { %p9358_p2 = scmp.ne.s32.totalorder %s14397_s5, %s9357_s17  ;;  %p9361_p3 = scmp.lt.u32.totalorder %s9357_s17, %s14397_s5 }
  0x2e   :  { %p9363_p4 = pnand %p9361_p3, %p9358_p2 }
  0x30   :  { %9366 = shalt.err (!%p9363_p4)
}
  0x31   :  { %s9367_s24 = scalar_lea.vmem %s86_s21, 1024  ;;  %p9372_p6 = scmp.lt.s32.totalorder %s86_s21, %s86_s21 }
  0x32   :  { %p9368_p5 = scmp.ne.s32.totalorder %s86_s21, %s9367_s24  ;;  %p9373_p7 = scmp.lt.s32.totalorder %s9367_s24, %s9367_s24 }
  0x34   :  { %p9374_p8 = por %p9373_p7, %p9372_p6 }
  0x36   :  { %p9375_p9 = pnand %p9374_p8, %p9368_p5 }
  0x38   :  { %9378 = shalt.err (!%p9375_p9)
}
  0x39   :  { %s9664_s3 = smov 128   ;;  %s9665_s18 = smov 8  }
  0x3a   :  { %91 = dma.hbm_to_vmem [thread:$0]  %s14397_s5, 1024, %s86_s21, [#allocation14], %s9664_s3, %s9664_s3, %s9665_s18  }
  0x3b   :  { %s9666_s27 = smov [#allocation16]   ;;  %s9667_s19 = smov [#allocation19]  }
  0x3c   :  { %s108_s1 = sshll.u32 %s9666_s27, 4  ;;  %s127_s28 = sshll.u32 %s9667_s19, 4  ;;  %s109_s1 = int_to_ptr.vmem [resolvable:$true] %s108_s1  ;;  %s128_s28 = int_to_ptr.vmem [resolvable:$true] %s127_s28 }
  0x3d   :  { %s9379_s17 = scalar_lea.hbm %s14399_s7, 16 }
  0x3e   :  { %p9380_p10 = scmp.ne.s32.totalorder %s14399_s7, %s9379_s17  ;;  %p9383_p11 = scmp.lt.u32.totalorder %s9379_s17, %s14399_s7 }
  0x40   :  { %p9385_p12 = pnand %p9383_p11, %p9380_p10 }
  0x42   :  { %9388 = shalt.err (!%p9385_p12)
}
  0x43   :  { %s9389_s5 = scalar_lea.vmem %s109_s1, 16  ;;  %s9393_s21 = scalar_lea.vmem %s109_s1, 32 }
  0x44   :  { %p9390_p13 = scmp.ne.s32.totalorder %s109_s1, %s9389_s5  ;;  %p9394_p0 = scmp.lt.s32.totalorder %s109_s1, %s109_s1 }
  0x45   :  { %p9395_p1 = scmp.lt.s32.totalorder %s9393_s21, %s9389_s5 }
  0x47   :  { %p9396_p2 = por %p9395_p1, %p9394_p0 }
  0x49   :  { %p9397_p3 = pnand %p9396_p2, %p9390_p13 }
  0x4b   :  { %9400 = shalt.err (!%p9397_p3)
}
  0x4c   :  { %111 = dma.hbm_to_vmem [thread:$0]  %s14399_s7, 16, %s109_s1, [#allocation17]  }
  0x4d   :  { %s9401_s19 = scalar_lea.hbm %s14401_s9, 512 }
  0x4e   :  { %p9402_p4 = scmp.ne.s32.totalorder %s14401_s9, %s9401_s19  ;;  %p9405_p5 = scmp.lt.u32.totalorder %s9401_s19, %s14401_s9 }
  0x50   :  { %p9407_p6 = pnand %p9405_p5, %p9402_p4 }
  0x52   :  { %9410 = shalt.err (!%p9407_p6)
}
  0x53   :  { %s9411_s20 = scalar_lea.vmem %s128_s28, 512  ;;  %p9416_p8 = scmp.lt.s32.totalorder %s128_s28, %s128_s28 }
  0x54   :  { %p9412_p7 = scmp.ne.s32.totalorder %s128_s28, %s9411_s20  ;;  %p9417_p9 = scmp.lt.s32.totalorder %s9411_s20, %s9411_s20 }
  0x56   :  { %p9418_p10 = por %p9417_p9, %p9416_p8 }
  0x58   :  { %p9419_p11 = pnand %p9418_p10, %p9412_p7 }
  0x5a   :  { %9422 = shalt.err (!%p9419_p11)
}
  0x5b   :  { %133 = dma.hbm_to_vmem [thread:$0]  %s14401_s9, 512, %s128_s28, [#allocation20], %s9664_s3, %s9664_s3, %s9665_s18  }
  0x5c   :  { %s9668_s22 = smov [#allocation22]   ;;  %s9669_s5 = smov [#allocation25]  }
  0x5d   :  { %s150_s23 = sshll.u32 %s9668_s22, 4  ;;  %s169_s21 = sshll.u32 %s9669_s5, 4  ;;  %s151_s23 = int_to_ptr.vmem [resolvable:$true] %s150_s23  ;;  %s170_s21 = int_to_ptr.vmem [resolvable:$true] %s169_s21 }
  0x5e   :  { %s9423_s26 = scalar_lea.hbm %s14403_s11, 16 }
  0x5f   :  { %p9424_p12 = scmp.ne.s32.totalorder %s14403_s11, %s9423_s26  ;;  %p9427_p13 = scmp.lt.u32.totalorder %s9423_s26, %s14403_s11 }
  0x61   :  { %p9429_p0 = pnand %p9427_p13, %p9424_p12 }
  0x63   :  { %9432 = shalt.err (!%p9429_p0)
}
  0x64   :  { %s9433_s9 = scalar_lea.vmem %s151_s23, 16  ;;  %s9437_s28 = scalar_lea.vmem %s151_s23, 32 }
  0x65   :  { %p9434_p1 = scmp.ne.s32.totalorder %s151_s23, %s9433_s9  ;;  %p9438_p2 = scmp.lt.s32.totalorder %s151_s23, %s151_s23 }
  0x66   :  { %p9439_p3 = scmp.lt.s32.totalorder %s9437_s28, %s9433_s9 }
  0x68   :  { %p9440_p4 = por %p9439_p3, %p9438_p2 }
  0x6a   :  { %p9441_p5 = pnand %p9440_p4, %p9434_p1 }
  0x6c   :  { %9444 = shalt.err (!%p9441_p5)
}
  0x6d   :  { %153 = dma.hbm_to_vmem [thread:$0]  %s14403_s11, 16, %s151_s23, [#allocation23]  }
  0x6e   :  { %s9445_s1 = scalar_lea.hbm %s14405_s13, 256 }
  0x6f   :  { %p9446_p6 = scmp.ne.s32.totalorder %s14405_s13, %s9445_s1  ;;  %p9449_p7 = scmp.lt.u32.totalorder %s9445_s1, %s14405_s13 }
  0x71   :  { %p9451_p8 = pnand %p9449_p7, %p9446_p6 }
  0x73   :  { %9454 = shalt.err (!%p9451_p8)
}
  0x74   :  { %s9455_s26 = scalar_lea.vmem %s170_s21, 256  ;;  %p9460_p10 = scmp.lt.s32.totalorder %s170_s21, %s170_s21 }
  0x75   :  { %p9456_p9 = scmp.ne.s32.totalorder %s170_s21, %s9455_s26  ;;  %p9461_p11 = scmp.lt.s32.totalorder %s9455_s26, %s9455_s26 }
  0x77   :  { %p9462_p12 = por %p9461_p11, %p9460_p10 }
  0x79   :  { %p9463_p13 = pnand %p9462_p12, %p9456_p9 }
  0x7b   :  { %9466 = shalt.err (!%p9463_p13)
}
  0x7c   :  { %175 = dma.hbm_to_vmem [thread:$0]  %s14405_s13, 256, %s170_s21, [#allocation26], %s9664_s3, %s9664_s3, %s9665_s18  }
  0x7d   :  { %s9670_s27 = smov [#allocation5]   ;;  %s9671_s30 = smov [#allocation9]  }
  0x7e   :  { %s34_s19 = sshll.u32 %s9670_s27, 4  ;;  %s56_s16 = sshll.u32 %s9671_s30, 4  ;;  %s35_s19 = int_to_ptr.vmem [resolvable:$true] %s34_s19  ;;  %s57_s16 = int_to_ptr.vmem [resolvable:$true] %s56_s16 }
  0x7f   :  { %s9467_s17 = scalar_lea.hbm %s14392_s0, 128 }
  0x80   :  { %p9468_p0 = scmp.ne.s32.totalorder %s14392_s0, %s9467_s17  ;;  %p9471_p1 = scmp.lt.u32.totalorder %s9467_s17, %s14392_s0 }
  0x82   :  { %p9473_p2 = pnand %p9471_p1, %p9468_p0 }
  0x84   :  { %9476 = shalt.err (!%p9473_p2)
}
  0x85   :  { %s9477_s13 = scalar_lea.vmem %s35_s19, 128  ;;  %p9482_p4 = scmp.lt.s32.totalorder %s35_s19, %s35_s19 }
  0x86   :  { %p9478_p3 = scmp.ne.s32.totalorder %s35_s19, %s9477_s13  ;;  %p9483_p5 = scmp.lt.s32.totalorder %s9477_s13, %s9477_s13 }
  0x88   :  { %p9484_p6 = por %p9483_p5, %p9482_p4 }
  0x8a   :  { %p9485_p7 = pnand %p9484_p6, %p9478_p3 }
  0x8c   :  { %9488 = shalt.err (!%p9485_p7)
}
  0x8d   :  { %37 = dma.hbm_to_vmem [thread:$0]  %s14392_s0, 128, %s35_s19, [#allocation6]  }
  0x8e   :  { %s9489_s5 = scalar_lea.hbm %s14394_s2, 128 }
  0x8f   :  { %p9490_p8 = scmp.ne.s32.totalorder %s14394_s2, %s9489_s5  ;;  %p9493_p9 = scmp.lt.u32.totalorder %s9489_s5, %s14394_s2 }
  0x91   :  { %p9495_p10 = pnand %p9493_p9, %p9490_p8 }
  0x93   :  { %9498 = shalt.err (!%p9495_p10)
}
  0x94   :  { %s9499_s23 = scalar_lea.vmem %s57_s16, 128  ;;  %p9504_p12 = scmp.lt.s32.totalorder %s57_s16, %s57_s16 }
  0x95   :  { %p9500_p11 = scmp.ne.s32.totalorder %s57_s16, %s9499_s23  ;;  %p9505_p13 = scmp.lt.s32.totalorder %s9499_s23, %s9499_s23 }
  0x97   :  { %p9506_p0 = por %p9505_p13, %p9504_p12 }
  0x99   :  { %p9507_p1 = pnand %p9506_p0, %p9500_p11 }
  0x9b   :  { %9510 = shalt.err (!%p9507_p1)
}
  0x9c   :  { %59 = dma.hbm_to_vmem [thread:$0]  %s14394_s2, 128, %s57_s16, [#allocation8]  }
  0x9d   :  { %s9672_s19 = smov [#allocation12]   ;;  %s9673_s9 = smov [#allocation15]  }
  0x9e   :  { %s76_s30 = sshll.u32 %s9672_s19, 4  ;;  %s98_s28 = sshll.u32 %s9673_s9, 4  ;;  %s77_s30 = int_to_ptr.vmem [resolvable:$true] %s76_s30  ;;  %s99_s28 = int_to_ptr.vmem [resolvable:$true] %s98_s28 }
  0x9f   :  { %s9511_s20 = scalar_lea.hbm %s14396_s4, 128 }
  0xa0   :  { %p9512_p2 = scmp.ne.s32.totalorder %s14396_s4, %s9511_s20  ;;  %p9515_p3 = scmp.lt.u32.totalorder %s9511_s20, %s14396_s4 }
  0xa2   :  { %p9517_p4 = pnand %p9515_p3, %p9512_p2 }
  0xa4   :  { %9520 = shalt.err (!%p9517_p4)
}
  0xa5   :  { %s9521_s2 = scalar_lea.vmem %s77_s30, 128  ;;  %p9526_p6 = scmp.lt.s32.totalorder %s77_s30, %s77_s30 }
  0xa6   :  { %p9522_p5 = scmp.ne.s32.totalorder %s77_s30, %s9521_s2  ;;  %p9527_p7 = scmp.lt.s32.totalorder %s9521_s2, %s9521_s2 }
  0xa8   :  { %p9528_p8 = por %p9527_p7, %p9526_p6 }
  0xaa   :  { %p9529_p9 = pnand %p9528_p8, %p9522_p5 }
  0xac   :  { %9532 = shalt.err (!%p9529_p9)
}
  0xad   :  { %79 = dma.hbm_to_vmem [thread:$0]  %s14396_s4, 128, %s77_s30, [#allocation11]  }
  0xae   :  { %s9533_s5 = scalar_lea.hbm %s14398_s6, 16 }
  0xaf   :  { %p9534_p10 = scmp.ne.s32.totalorder %s14398_s6, %s9533_s5  ;;  %p9537_p11 = scmp.lt.u32.totalorder %s9533_s5, %s14398_s6 }
  0xb1   :  { %p9539_p12 = pnand %p9537_p11, %p9534_p10 }
  0xb3   :  { %9542 = shalt.err (!%p9539_p12)
}
  0xb4   :  { %s9543_s23 = scalar_lea.vmem %s99_s28, 16  ;;  %s9547_s0 = scalar_lea.vmem %s99_s28, 32 }
  0xb5   :  { %p9544_p13 = scmp.ne.s32.totalorder %s99_s28, %s9543_s23  ;;  %p9548_p0 = scmp.lt.s32.totalorder %s99_s28, %s99_s28 }
  0xb6   :  { %p9549_p1 = scmp.lt.s32.totalorder %s9547_s0, %s9543_s23 }
  0xb8   :  { %p9550_p2 = por %p9549_p1, %p9548_p0 }
  0xba   :  { %p9551_p3 = pnand %p9550_p2, %p9544_p13 }
  0xbc   :  { %9554 = shalt.err (!%p9551_p3)
}
  0xbd   :  { %101 = dma.hbm_to_vmem [thread:$0]  %s14398_s6, 16, %s99_s28, [#allocation14]  }
  0xbe   :  { %s9674_s19 = smov [#allocation18]   ;;  %s9675_s9 = smov [#allocation21]  }
  0xbf   :  { %s118_s30 = sshll.u32 %s9674_s19, 4  ;;  %s140_s17 = sshll.u32 %s9675_s9, 4  ;;  %s119_s30 = int_to_ptr.vmem [resolvable:$true] %s118_s30  ;;  %s141_s17 = int_to_ptr.vmem [resolvable:$true] %s140_s17 }
  0xc0   :  { %s9555_s7 = scalar_lea.hbm %s14400_s8, 16 }
  0xc1   :  { %p9556_p4 = scmp.ne.s32.totalorder %s14400_s8, %s9555_s7  ;;  %p9559_p5 = scmp.lt.u32.totalorder %s9555_s7, %s14400_s8 }
  0xc3   :  { %p9561_p6 = pnand %p9559_p5, %p9556_p4 }
  0xc5   :  { %9564 = shalt.err (!%p9561_p6)
}
  0xc6   :  { %s9565_s6 = scalar_lea.vmem %s119_s30, 16  ;;  %s9569_s28 = scalar_lea.vmem %s119_s30, 32 }
  0xc7   :  { %p9566_p7 = scmp.ne.s32.totalorder %s119_s30, %s9565_s6  ;;  %p9570_p8 = scmp.lt.s32.totalorder %s119_s30, %s119_s30 }
  0xc8   :  { %p9571_p9 = scmp.lt.s32.totalorder %s9569_s28, %s9565_s6 }
  0xca   :  { %p9572_p10 = por %p9571_p9, %p9570_p8 }
  0xcc   :  { %p9573_p11 = pnand %p9572_p10, %p9566_p7 }
  0xce   :  { %9576 = shalt.err (!%p9573_p11)
}
  0xcf   :  { %121 = dma.hbm_to_vmem [thread:$0]  %s14400_s8, 16, %s119_s30, [#allocation17]  }
  0xd0   :  { %s9577_s5 = scalar_lea.hbm %s14402_s10, 16 }
  0xd1   :  { %p9578_p12 = scmp.ne.s32.totalorder %s14402_s10, %s9577_s5  ;;  %p9581_p13 = scmp.lt.u32.totalorder %s9577_s5, %s14402_s10 }
  0xd3   :  { %p9583_p0 = pnand %p9581_p13, %p9578_p12 }
  0xd5   :  { %9586 = shalt.err (!%p9583_p0)
}
  0xd6   :  { %s9587_s23 = scalar_lea.vmem %s141_s17, 16  ;;  %s9591_s0 = scalar_lea.vmem %s141_s17, 32 }
  0xd7   :  { %p9588_p1 = scmp.ne.s32.totalorder %s141_s17, %s9587_s23  ;;  %p9592_p2 = scmp.lt.s32.totalorder %s141_s17, %s141_s17 }
  0xd8   :  { %p9593_p3 = scmp.lt.s32.totalorder %s9591_s0, %s9587_s23 }
  0xda   :  { %p9594_p4 = por %p9593_p3, %p9592_p2 }
  0xdc   :  { %p9595_p5 = pnand %p9594_p4, %p9588_p1 }
  0xde   :  { %9598 = shalt.err (!%p9595_p5)
}
  0xdf   :  { %143 = dma.hbm_to_vmem [thread:$0]  %s14402_s10, 16, %s141_s17, [#allocation20]  }
  0xe0   :  { %s9676_s27 = smov [#allocation24]   ;;  %s9677_s30 = smov [#allocation27]  }
  0xe1   :  { %s160_s19 = sshll.u32 %s9676_s27, 4  ;;  %s182_s9 = sshll.u32 %s9677_s30, 4  ;;  %s161_s19 = int_to_ptr.vmem [resolvable:$true] %s160_s19  ;;  %s183_s9 = int_to_ptr.vmem [resolvable:$true] %s182_s9 }
  0xe2   :  { %s9599_s7 = scalar_lea.hbm %s14404_s12, 16 }
  0xe3   :  { %p9600_p6 = scmp.ne.s32.totalorder %s14404_s12, %s9599_s7  ;;  %p9603_p7 = scmp.lt.u32.totalorder %s9599_s7, %s14404_s12 }
  0xe5   :  { %p9605_p8 = pnand %p9603_p7, %p9600_p6 }
  0xe7   :  { %9608 = shalt.err (!%p9605_p8)
}
  0xe8   :  { %s9609_s10 = scalar_lea.vmem %s161_s19, 16  ;;  %s9613_s17 = scalar_lea.vmem %s161_s19, 32 }
  0xe9   :  { %p9610_p9 = scmp.ne.s32.totalorder %s161_s19, %s9609_s10  ;;  %p9614_p10 = scmp.lt.s32.totalorder %s161_s19, %s161_s19 }
  0xea   :  { %p9615_p11 = scmp.lt.s32.totalorder %s9613_s17, %s9609_s10 }
  0xec   :  { %p9616_p12 = por %p9615_p11, %p9614_p10 }
  0xee   :  { %p9617_p13 = pnand %p9616_p12, %p9610_p9 }
  0xf0   :  { %9620 = shalt.err (!%p9617_p13)
}
  0xf1   :  { %163 = dma.hbm_to_vmem [thread:$0]  %s14404_s12, 16, %s161_s19, [#allocation23]  }
  0xf2   :  { %s9621_s21 = scalar_lea.hbm %s14406_s14, 16 }
  0xf3   :  { %p9622_p0 = scmp.ne.s32.totalorder %s14406_s14, %s9621_s21  ;;  %p9625_p1 = scmp.lt.u32.totalorder %s9621_s21, %s14406_s14 }
  0xf5   :  { %p9627_p2 = pnand %p9625_p1, %p9622_p0 }
  0xf7   :  { %9630 = shalt.err (!%p9627_p2)
}
  0xf8   :  { %s9631_s26 = scalar_lea.vmem %s183_s9, 16  ;;  %s9635_s11 = scalar_lea.vmem %s183_s9, 32 }
  0xf9   :  { %p9632_p3 = scmp.ne.s32.totalorder %s183_s9, %s9631_s26  ;;  %p9636_p4 = scmp.lt.s32.totalorder %s183_s9, %s183_s9 }
  0xfa   :  { %p9637_p5 = scmp.lt.s32.totalorder %s9635_s11, %s9631_s26 }
  0xfc   :  { %p9638_p6 = por %p9637_p5, %p9636_p4 }
  0xfe   :  { %p9639_p7 = pnand %p9638_p6, %p9632_p3 }
 0x100   :  { %9642 = shalt.err (!%p9639_p7)
}
 0x101   :  { %185 = dma.hbm_to_vmem [thread:$0]  %s14406_s14, 16, %s183_s9, [#allocation26]  }
 0x102   :  { %9643 = dma.done.wait [#allocation6], 128  }
 0x103   :  { %9644 = vsyncadd [#allocation6], 4294967168 }
 0x104   :  { %9645 = dma.done.wait [#allocation8], 4224  }
 0x105   :  { %9646 = vsyncadd [#allocation8], 4294963072 }
 0x106   :  { %9647 = dma.done.wait [#allocation11], 256  }
 0x107   :  { %9648 = vsyncadd [#allocation11], 4294967040 }
 0x108   :  { %9649 = dma.done.wait [#allocation14], 1040  }
 0x109   :  { %9650 = vsyncadd [#allocation14], 4294966256 }
 0x10a   :  { %9651 = dma.done.wait [#allocation17], 32  }
 0x10b   :  { %9652 = vsyncadd [#allocation17], 4294967264 }
 0x10c   :  { %9653 = dma.done.wait [#allocation20], 528  }
 0x10d   :  { %9654 = vsyncadd [#allocation20], 4294966768 }
 0x10e   :  { %9655 = dma.done.wait [#allocation23], 32  }
 0x10f   :  { %9656 = vsyncadd [#allocation23], 4294967264 }
 0x110   :  { %9657 = dma.done.wait [#allocation26], 272  }
 0x111   :  { %9658 = vsyncadd [#allocation26], 4294967024  ;;  %v9678_v0 = vmov 0.0   ;;  %v233_v1 = vld [vmem:[#allocation7 + $0x8] sm:$0xff]  ;;  %v235_v3 = vld [vmem:[#allocation7 + $0x18] sm:$0xff]  ;;  %vm306_vm0 = vcmask 261120   ;;  %v266_v56 = vlaneseq }
 0x112   :  { %374 = vmatprep.mubr.f32.mxu0 %v9678_v0  ;;  %445 = vmatprep.mubr.f32.mxu1 %v9678_v0  ;;  %v241_v2 = vld [vmem:[#allocation7 + $0x48] sm:$0xff]  ;;  %v243_v5 = vld [vmem:[#allocation7 + $0x58] sm:$0xff]  ;;  %v232_v6 = vld [vmem:[#allocation7] sm:$0xff]  ;;  %vm871_vm1 = vcmask 523264   ;;  %s9679_s14 = smov 96   ;;  %s9680_s0 = smov 32  }
 0x113   :  { %v8689_v4 = vpack.c.bf16 %v241_v2, %v233_v1  ;;  %v240_v7 = vld [vmem:[#allocation7 + $0x40] sm:$0xff]  ;;  %v8697_v8 = vpack.c.bf16 %v243_v5, %v235_v3  ;;  %v234_v10 = vld [vmem:[#allocation7 + $0x10] sm:$0xff]  ;;  %v249_v12 = vld [vmem:[#allocation7 + $0x88] sm:$0xff]  ;;  %v267_v57 = vshrl.u32 %v266_v56, 7  ;;  %s9682_s8 = smov 80   ;;  %s9683_s4 = smov 48  }
 0x114   :  { %v8691_v9 = vpack.c.bf16 %v240_v7, %v232_v6  ;;  %v242_v11 = vld [vmem:[#allocation7 + $0x50] sm:$0xff]  ;;  %v257_v14 = vld [vmem:[#allocation7 + $0xc8] sm:$0xff]  ;;  %v251_v15 = vld [vmem:[#allocation7 + $0x98] sm:$0xff]  ;;  %s9684_s27 = smov 16   ;;  %vm2942_vm2 = vcmask 130048   ;;  %vm7195_vm3 = vcmask 97280  }
 0x115   :  { %8690 = vmatprep.subr.bf16.mxu0 %v8689_v4  ;;  %v8699_v13 = vpack.c.bf16 %v242_v11, %v234_v10  ;;  %v259_v16 = vld [vmem:[#allocation7 + $0xd8] sm:$0xff]  ;;  %8698 = vmatprep.subr.bf16.mxu1 %v8697_v8  ;;  %v8693_v17 = vpack.c.bf16 %v257_v14, %v249_v12  ;;  %v248_v19 = vld [vmem:[#allocation7 + $0x80] sm:$0xff]  ;;  %v250_v21 = vld [vmem:[#allocation7 + $0x90] sm:$0xff]  ;;  %v9963_v58 = vsub.s32 0, %v267_v57  ;;  %v9967_v60 = vsub.s32 2, %v267_v57  ;;  %s14738_s9 = sld [smem:[#allocation112_spill]] }
 0x116   :  { %8692 = vmatpush1.bf16.msra.mxu0 %v8691_v9  ;;  %v8701_v18 = vpack.c.bf16 %v259_v16, %v251_v15  ;;  %v256_v20 = vld [vmem:[#allocation7 + $0xc0] sm:$0xff]  ;;  %v258_v23 = vld [vmem:[#allocation7 + $0xd0] sm:$0xff]  ;;  %v237_v24 = vld [vmem:[#allocation7 + $0x28] sm:$0xff]  ;;  %v9969_v61 = vsub.s32 1, %v267_v57  ;;  %v9971_v62 = vsub.s32 3, %v267_v57  ;;  %v9987_v10 = vsub.s32 4, %v267_v57 }
 0x117   :  { %8700 = vmatpush1.bf16.msra.mxu1 %v8699_v13  ;;  %v8695_v22 = vpack.c.bf16 %v256_v20, %v248_v19  ;;  %8694 = vmatprep.subr.bf16.mxu0 %v8693_v17  ;;  %v8703_v25 = vpack.c.bf16 %v258_v23, %v250_v21  ;;  %v231_v26 = vld [vmem:[#allocation5] sm:$0xff]  ;;  %v245_v27 = vld [vmem:[#allocation7 + $0x68] sm:$0xff]  ;;  %v236_v32 = vld [vmem:[#allocation7 + $0x20] sm:$0xff]  ;;  %v9989_v11 = vsub.s32 6, %v267_v57  ;;  %v9996_v15 = vsub.s32 5, %v267_v57 }
 0x118   :  { %8702 = vmatprep.subr.bf16.mxu1 %v8701_v18  ;;  %v239_v28 = vld [vmem:[#allocation7 + $0x38] sm:$0xff]  ;;  %v8705_v30 = vpack.c.bf16 %v245_v27, %v237_v24  ;;  %v244_v33 = vld [vmem:[#allocation7 + $0x60] sm:$0xff]  ;;  %v238_v34 = vld [vmem:[#allocation7 + $0x30] sm:$0xff] }
 0x119   :  { %v247_v29 = vld [vmem:[#allocation7 + $0x78] sm:$0xff]  ;;  %v8707_v35 = vpack.c.bf16 %v244_v33, %v236_v32  ;;  %v246_v36 = vld [vmem:[#allocation7 + $0x70] sm:$0xff]  ;;  %v253_v37 = vld [vmem:[#allocation7 + $0xa8] sm:$0xff] }
 0x11a   :  { %v8713_v31 = vpack.c.bf16 %v247_v29, %v239_v28  ;;  %8696 = vmatpush1.bf16.msra.mxu0 %v8695_v22  ;;  %v261_v38 = vld [vmem:[#allocation7 + $0xe8] sm:$0xff]  ;;  %v8715_v39 = vpack.c.bf16 %v246_v36, %v238_v34  ;;  %v255_v41 = vld [vmem:[#allocation7 + $0xb8] sm:$0xff]  ;;  %v252_v43 = vld [vmem:[#allocation7 + $0xa0] sm:$0xff] }
 0x11b   :  { %8704 = vmatpush1.bf16.msra.mxu1 %v8703_v25  ;;  %8706 = vmatprep.subr.bf16.mxu0 %v8705_v30  ;;  %v8709_v40 = vpack.c.bf16 %v261_v38, %v253_v37  ;;  %v263_v42 = vld [vmem:[#allocation7 + $0xf8] sm:$0xff]  ;;  %v260_v45 = vld [vmem:[#allocation7 + $0xe0] sm:$0xff]  ;;  %v254_v46 = vld [vmem:[#allocation7 + $0xb0] sm:$0xff] }
 0x11c   :  { %8714 = vmatprep.subr.bf16.mxu1 %v8713_v31  ;;  %v8717_v44 = vpack.c.bf16 %v263_v42, %v255_v41  ;;  %v262_v47 = vld [vmem:[#allocation7 + $0xf0] sm:$0xff]  ;;  %v8711_v48 = vpack.c.bf16 %v260_v45, %v252_v43  ;;  %v936_v50 = vld [vmem:[#allocation13] sm:$0xff]  ;;  %v937_v51 = vld [vmem:[#allocation13 + $0x8] sm:$0xff]  ;;  %v10017_v42 = vsub.s32 7, %v267_v57 }
 0x11d   :  { %7464 = vmatmul.mubr.msk.f32.vlgmr.msra.gmra.mrb[0].mxu0 %vm306_vm0, %v231_v26  ;;  %v8719_v49 = vpack.c.bf16 %v262_v47, %v254_v46  ;;  %v938_v52 = vld [vmem:[#allocation13 + $0x10] sm:$0xff]  ;;  %v8721_v53 = vpack.c.bf16 %v937_v51, %v936_v50  ;;  %v939_v54 = vld [vmem:[#allocation13 + $0x18] sm:$0xff]  ;;  %v9965_v59 = vld [vmem:[#allocation9] sm:$0xff] }
 0x11e   :  { %7465 = vmatmul.mubr.msk.f32.vlgmr.msra.gmra.mrb[0].mxu1 %vm306_vm0, %v231_v26  ;;  %8708 = vmatpush1.bf16.msra.mxu0 %v8707_v35  ;;  %v8725_v55 = vpack.c.bf16 %v939_v54, %v938_v52  ;;  %v269_v63 = vrot.slane %v9965_v59, %v9963_v58  ;;  %v273_v1 = vrot.slane %v9965_v59, %v9969_v61 }
 0x11f   :  { %8716 = vmatpush1.bf16.msra.mxu1 %v8715_v39  ;;  %8710 = vmatprep.subr.bf16.mxu0 %v8709_v40  ;;  %v281_v2 = vrot.slane %v9965_v59, %v9971_v62  ;;  %v285_v31 = vrot.slane %v9965_v59, %v9987_v10  ;;  %v293_v35 = vrot.slane %v9965_v59, %v9989_v11 }
 0x120   :  { %8718 = vmatprep.subr.bf16.mxu1 %v8717_v44  ;;  %516 = vmatprep.mubr.f32.mxu0 %v9678_v0  ;;  %v289_v36 = vrot.slane %v9965_v59, %v9996_v15 }
 0x121   :  { %587 = vmatprep.mubr.f32.mxu1 %v9678_v0  ;;  %v277_v0 = vrot.slane %v9965_v59, %v9967_v60 }
 0x122   :  { %8712 = vmatpush1.bf16.msra.mxu0 %v8711_v48 }
 0x123   :  { %8720 = vmatpush1.bf16.msra.mxu1 %v8719_v49  ;;  %8722 = vmatprep.subr.bf16.mxu0 %v8721_v53 }
 0x125   :  { %7466 = vmatmul.mubr.msk.f32.vlgmr.msra.gmra.mrb[2].mxu0 %vm306_vm0, %v231_v26 }
 0x126   :  { %7467 = vmatmul.mubr.msk.f32.vlgmr.msra.gmra.mrb[2].mxu1 %vm306_vm0, %v231_v26  ;;  %8724 = vmatpush3.bf16.msra.mxu0 %v8721_v53 }
 0x127   :  { %8726 = vmatprep.subr.bf16.mxu0 %v8725_v55 }
 0x12a   :  { %8728 = vmatpush3.bf16.msra.mxu0 %v8725_v55 }
 0x1f0   :  { %v376_v3 = vpop.f32.mrb[0].mxu0 }
 0x1f1   :  { %v9981_v4 = vadd.f32 %v376_v3, %v269_v63  ;;  %v447_v5 = vpop.f32.mrb[0].mxu1  ;;  %v378_v6 = vpop.f32.mrb[1].mxu0 }
 0x1f2   :  { %v9983_v7 = vadd.f32 %v447_v5, %v277_v0  ;;  %v9985_v8 = vadd.f32 %v378_v6, %v273_v1  ;;  %v449_v9 = vpop.f32.mrb[1].mxu1 }
 0x1f3   :  { %v594_v12 = vrot.slane %v9981_v4, 4  ;;  %v651_v13 = vmul.f32 %v9981_v4, %v9981_v4  ;;  %v9994_v14 = vadd.f32 %v449_v9, %v281_v2 }
 0x1f4   :  { %v606_v16 = vrot.slane %v9983_v7, 4  ;;  %v653_v17 = vmul.f32 %v9983_v7, %v9983_v7  ;;  %v600_v18 = vrot.slane %v9985_v8, 4  ;;  %v652_v19 = vmul.f32 %v9985_v8, %v9985_v8 }
 0x1f5   :  { %v595_v20 = vadd.f32 %v594_v12, %v9981_v4  ;;  %v659_v21 = vrot.slane %v651_v13, 4  ;;  %v612_v22 = vrot.slane %v9994_v14, 4  ;;  %v654_v23 = vmul.f32 %v9994_v14, %v9994_v14 }
 0x1f6   :  { %v607_v24 = vadd.f32 %v606_v16, %v9983_v7  ;;  %v671_v25 = vrot.slane %v653_v17, 4  ;;  %v601_v26 = vadd.f32 %v600_v18, %v9985_v8  ;;  %v665_v27 = vrot.slane %v652_v19, 4 }
 0x1f7   :  { %v660_v28 = vadd.f32 %v659_v21, %v651_v13  ;;  %v613_v29 = vadd.f32 %v612_v22, %v9994_v14  ;;  %v677_v30 = vrot.slane %v654_v23, 4  ;;  %v596_v37 = vrot.slane %v595_v20, 2 }
 0x1f8   :  { %v672_v32 = vadd.f32 %v671_v25, %v653_v17  ;;  %v666_v33 = vadd.f32 %v665_v27, %v652_v19  ;;  %v518_v34 = vpop.f32.mrb[2].mxu0  ;;  %v608_v43 = vrot.slane %v607_v24, 2  ;;  %v602_v45 = vrot.slane %v601_v26, 2 }
 0x1f9   :  { %v661_v38 = vrot.slane %v660_v28, 2  ;;  %v678_v39 = vadd.f32 %v677_v30, %v654_v23  ;;  %v589_v40 = vpop.f32.mrb[2].mxu1  ;;  %v520_v41 = vpop.f32.mrb[3].mxu0  ;;  %v614_v49 = vrot.slane %v613_v29, 2  ;;  %v10019_v51 = vadd.f32 %v518_v34, %v285_v31 }
 0x1fa   :  { %v673_v44 = vrot.slane %v672_v32, 2  ;;  %v667_v46 = vrot.slane %v666_v33, 2  ;;  %v591_v47 = vpop.f32.mrb[3].mxu1  ;;  %v10021_v54 = vadd.f32 %v589_v40, %v293_v35  ;;  %v10023_v55 = vadd.f32 %v520_v41, %v289_v36 }
 0x1fb   :  { %v662_v48 = vadd.f32 %v661_v38, %v660_v28  ;;  %v679_v50 = vrot.slane %v678_v39, 2  ;;  %v618_v57 = vrot.slane %v10019_v51, 4  ;;  %v655_v0 = vmul.f32 %v10019_v51, %v10019_v51 }
 0x1fc   :  { %v674_v52 = vadd.f32 %v673_v44, %v672_v32  ;;  %v668_v53 = vadd.f32 %v667_v46, %v666_v33  ;;  %v630_v3 = vrot.slane %v10021_v54, 4  ;;  %v657_v5 = vmul.f32 %v10021_v54, %v10021_v54 }
 0x1fd   :  { %v663_v56 = vrot.slane %v662_v48, 1  ;;  %v680_v63 = vadd.f32 %v679_v50, %v678_v39  ;;  %v619_v12 = vadd.f32 %v618_v57, %v10019_v51  ;;  %v683_v13 = vrot.slane %v655_v0, 4 }
 0x1fe   :  { %v675_v1 = vrot.slane %v674_v52, 1  ;;  %v669_v2 = vrot.slane %v668_v53, 1  ;;  %v597_v16 = vadd.f32 %v596_v37, %v595_v20  ;;  %v695_v18 = vrot.slane %v657_v5, 4 }
 0x1ff   :  { %v664_v6 = vadd.f32 %v663_v56, %v662_v48  ;;  %v681_v9 = vrot.slane %v680_v63, 1  ;;  %v297_v19 = vrot.slane %v9965_v59, %v10017_v42  ;;  %v609_v21 = vadd.f32 %v608_v43, %v607_v24 }
 0x200   :  { %v676_v17 = vadd.f32 %v675_v1, %v674_v52  ;;  %v603_v22 = vadd.f32 %v602_v45, %v601_v26  ;;  %v615_v23 = vadd.f32 %v614_v49, %v613_v29  ;;  %v684_v25 = vadd.f32 %v683_v13, %v655_v0 }
 0x201   :  { %v707_v27 = vmul.f32 0.125, %v664_v6  ;;  %v670_v28 = vadd.f32 %v669_v2, %v668_v53  ;;  %v631_v30 = vadd.f32 %v630_v3, %v10021_v54  ;;  %v696_v31 = vadd.f32 %v695_v18, %v657_v5 }
 0x202   :  { %v682_v32 = vadd.f32 %v681_v9, %v680_v63  ;;  %v620_v33 = vrot.slane %v619_v12, 2  ;;  %v685_v34 = vrot.slane %v684_v25, 2  ;;  %v624_v35 = vrot.slane %v10023_v55, 4 }
 0x203   :  { %v709_v20 = vmul.f32 0.125, %v676_v17  ;;  %v697_v36 = vrot.slane %v696_v31, 2  ;;  %v656_v37 = vmul.f32 %v10023_v55, %v10023_v55  ;;  %v10038_v59 = vadd.f32 %v591_v47, %v297_v19 }
 0x204   :  { %v686_v24 = vadd.f32 %v685_v34, %v684_v25  ;;  %v625_v26 = vadd.f32 %v624_v35, %v10023_v55  ;;  %v610_v29 = vrot.slane %v609_v21, 1  ;;  %v598_v38 = vrot.slane %v597_v16, 1 }
 0x205   :  { %v698_v39 = vadd.f32 %v697_v36, %v696_v31  ;;  %v689_v40 = vrot.slane %v656_v37, 4  ;;  %v636_v41 = vrot.slane %v10038_v59, 4  ;;  %v658_v43 = vmul.f32 %v10038_v59, %v10038_v59 }
 0x206   :  { %v632_v44 = vrot.slane %v631_v30, 2  ;;  %v626_v45 = vrot.slane %v625_v26, 2  ;;  %v611_v46 = vadd.f32 %v610_v29, %v609_v21  ;;  %v599_v48 = vadd.f32 %v598_v38, %v597_v16 }
 0x207   :  { %v687_v49 = vrot.slane %v686_v24, 1  ;;  %v699_v50 = vrot.slane %v698_v39, 1  ;;  %v690_v47 = vadd.f32 %v689_v40, %v656_v37  ;;  %v701_v52 = vrot.slane %v658_v43, 4 }
 0x208   :  { %v708_v53 = vmul.f32 0.125, %v670_v28  ;;  %v637_v56 = vadd.f32 %v636_v41, %v10038_v59  ;;  %v10045_v63 = vmul.f32 0.125, %v611_v46  ;;  %v10047_v57 = vmul.f32 0.125, %v599_v48 }
 0x209   :  { %v710_v0 = vmul.f32 0.125, %v682_v32  ;;  %v621_v1 = vadd.f32 %v620_v33, %v619_v12  ;;  %v691_v2 = vrot.slane %v690_v47, 2  ;;  %v702_v3 = vadd.f32 %v701_v52, %v658_v43 }
 0x20a   :  { %v633_v5 = vadd.f32 %v632_v44, %v631_v30  ;;  %v627_v6 = vadd.f32 %v626_v45, %v625_v26  ;;  %v717_v9 = vmul.f32 %v10045_v63, %v10045_v63  ;;  %v715_v13 = vmul.f32 %v10047_v57, %v10047_v57 }
 0x20b   :  { %v688_v16 = vadd.f32 %v687_v49, %v686_v24  ;;  %v700_v17 = vadd.f32 %v699_v50, %v698_v39  ;;  %v692_v18 = vadd.f32 %v691_v2, %v690_v47  ;;  %v703_v19 = vrot.slane %v702_v3, 2 }
 0x20c   :  { %v638_v21 = vrot.slane %v637_v56, 2  ;;  %v725_v25 = vsub.f32 %v709_v20, %v717_v9  ;;  %v723_v28 = vsub.f32 %v707_v27, %v715_v13  ;;  %v616_v31 = vrot.slane %v615_v23, 1 }
 0x20d   :  { %v693_v32 = vrot.slane %v692_v18, 1  ;;  %v704_v12 = vadd.f32 %v703_v19, %v702_v3  ;;  %v604_v33 = vrot.slane %v603_v22, 1  ;;  %v622_v34 = vrot.slane %v621_v1, 1 }
 0x20e   :  { %v741_v30 = vadd.f32 1e-05, %v725_v25  ;;  %v739_v35 = vadd.f32 1e-05, %v723_v28  ;;  %v617_v36 = vadd.f32 %v616_v31, %v615_v23  ;;  %v628_v37 = vrot.slane %v627_v6, 1  ;;  %v941_v25 = vld [vmem:[#allocation13 + $0x28] sm:$0xff] }
 0x20f   :  { %v711_v26 = vmul.f32 0.125, %v688_v16  ;;  %v694_v29 = vadd.f32 %v693_v32, %v692_v18  ;;  %v605_v38 = vadd.f32 %v604_v33, %v603_v22  ;;  %v623_v40 = vadd.f32 %v622_v34, %v621_v1  ;;  %v10063_v22 = vld [vmem:[#allocation10] sm:$0xff] }
 0x210   :  { %8777 = vrsqrt.f32 %v741_v30  ;;  %v10053_v24 = vmul.f32 0.125, %v617_v36  ;;  %v629_v39 = vadd.f32 %v628_v37, %v627_v6  ;;  %v634_v41 = vrot.slane %v633_v5, 1 }
 0x211   :  { %v639_v20 = vadd.f32 %v638_v21, %v637_v56  ;;  %v705_v27 = vrot.slane %v704_v12, 1  ;;  %8779 = vrsqrt.f32 %v739_v35  ;;  %v10055_v43 = vmul.f32 0.125, %v605_v38 }
 0x212   :  { %v712_v44 = vmul.f32 0.125, %v694_v29  ;;  %v718_v45 = vmul.f32 %v10053_v24, %v10053_v24  ;;  %v10059_v23 = vmul.f32 0.125, %v623_v40  ;;  %v10061_v46 = vmul.f32 0.125, %v629_v39 }
 0x213   :  { %v716_v48 = vmul.f32 %v10055_v43, %v10055_v43  ;;  %v635_v49 = vadd.f32 %v634_v41, %v633_v5  ;;  %v713_v50 = vmul.f32 0.125, %v700_v17  ;;  %v706_v1 = vadd.f32 %v705_v27, %v704_v12  ;;  %v10077_v5 = vld [vmem:[#allocation12] sm:$0xff] }
 0x214   :  { %v726_v47 = vsub.f32 %v710_v0, %v718_v45  ;;  %v719_v52 = vmul.f32 %v10059_v23, %v10059_v23  ;;  %v720_v56 = vmul.f32 %v10061_v46, %v10061_v46  ;;  %v640_v6 = vrot.slane %v639_v20, 1  ;;  %v943_v27 = vld [vmem:[#allocation13 + $0x38] sm:$0xff] }
 0x215   :  { %v724_v2 = vsub.f32 %v708_v53, %v716_v48  ;;  %v10071_v3 = vmul.f32 0.125, %v635_v49  ;;  %v776_v9 = vrot.slane %v10063_v22, %v9967_v60  ;;  %v733_v0 = vsub.f32 %v9983_v7, %v10045_v63  ;;  %v940_v53 = vld [vmem:[#allocation13 + $0x20] sm:$0xff] }
 0x216   :  { %v742_v13 = vadd.f32 1e-05, %v726_v47  ;;  %v727_v16 = vsub.f32 %v711_v26, %v719_v52  ;;  %v728_v18 = vsub.f32 %v712_v44, %v720_v56  ;;  %v641_v21 = vadd.f32 %v640_v6, %v639_v20  ;;  %v942_v20 = vld [vmem:[#allocation13 + $0x30] sm:$0xff] }
 0x217   :  { %v740_v17 = vadd.f32 1e-05, %v724_v2  ;;  %v721_v19 = vmul.f32 %v10071_v3, %v10071_v3  ;;  %v8729_v32 = vpack.c.bf16 %v941_v25, %v940_v53  ;;  %v714_v12 = vmul.f32 0.125, %v706_v1 }
 0x218   :  { %8781 = vrsqrt.f32 %v742_v13  ;;  %v743_v28 = vadd.f32 1e-05, %v727_v16  ;;  %v744_v31 = vadd.f32 1e-05, %v728_v18  ;;  %v10081_v34 = vmul.f32 0.125, %v641_v21 }
 0x219   :  { %8783 = vrsqrt.f32 %v740_v17  ;;  %v729_v33 = vsub.f32 %v713_v50, %v721_v19  ;;  %v826_v7 = vrot.slane %v10077_v5, %v9967_v60  ;;  %v731_v63 = vsub.f32 %v9981_v4, %v10047_v57  ;;  %8730 = vmatprep.subr.bf16.mxu0 %v8729_v32 }
 0x21a   :  { %v8778_v30 = vpop.eup %8777  ;;  %v768_v35 = vrot.slane %v10063_v22, %v9963_v58  ;;  %8785 = vrsqrt.f32 %v743_v28  ;;  %v722_v29 = vmul.f32 %v10081_v34, %v10081_v34  ;;  %8732 = vmatpush3.bf16.msra.mxu0 %v8729_v32  ;;  %v818_v60 = vrot.slane %v10077_v5, %v9963_v58 }
 0x21b   :  { %v8780_v36 = vpop.eup %8779  ;;  %v757_v37 = vmul.f32 %v8778_v30, %v733_v0  ;;  %8787 = vrsqrt.f32 %v744_v31  ;;  %v745_v26 = vadd.f32 1e-05, %v729_v33  ;;  %v8733_v45 = vpack.c.bf16 %v943_v27, %v942_v20 }
 0x21c   :  { %v755_v38 = vmul.f32 %v8780_v36, %v731_v63  ;;  %v730_v4 = vsub.f32 %v714_v12, %v722_v29  ;;  %v734_v49 = vsub.f32 %v9994_v14, %v10053_v24  ;;  %v780_v50 = vrot.slane %v10063_v22, %v9971_v62 }
 0x21d   :  { %v807_v40 = vmul.f32 %v776_v9, %v757_v37  ;;  %8789 = vrsqrt.f32 %v745_v26  ;;  %v830_v56 = vrot.slane %v10077_v5, %v9971_v62  ;;  %v732_v1 = vsub.f32 %v9985_v8, %v10055_v43  ;;  %8734 = vmatprep.subr.bf16.mxu0 %v8733_v45 }
 0x21e   :  { %v805_v57 = vmul.f32 %v768_v35, %v755_v38  ;;  %v746_v41 = vadd.f32 1e-05, %v730_v4  ;;  %v772_v2 = vrot.slane %v10063_v22, %v9969_v61  ;;  %v735_v24 = vsub.f32 %v10019_v51, %v10059_v23  ;;  %8736 = vmatpush3.bf16.msra.mxu0 %v8733_v45 }
 0x21f   :  { %v857_v39 = vadd.f32 %v826_v7, %v807_v40  ;;  %v784_v9 = vrot.slane %v10063_v22, %v9987_v10  ;;  %v822_v43 = vrot.slane %v10077_v5, %v9969_v61  ;;  %v736_v13 = vsub.f32 %v10023_v55, %v10061_v46 }
 0x220   :  { %v855_v44 = vadd.f32 %v818_v60, %v805_v57  ;;  %8791 = vrsqrt.f32 %v746_v41  ;;  %v788_v16 = vrot.slane %v10063_v22, %v9996_v15  ;;  %v834_v0 = vrot.slane %v10077_v5, %v9987_v10 }
 0x221   :  { %v865_v48 = vmax.f32 %v857_v39, 0.0  ;;  %v792_v17 = vrot.slane %v10063_v22, %v9989_v11  ;;  %v838_v61 = vrot.slane %v10077_v5, %v9996_v15  ;;  %v737_v55 = vsub.f32 %v10021_v54, %v10071_v3 }
 0x222   :  { %v8782_v47 = vpop.eup %8781  ;;  %v863_v52 = vmax.f32 %v855_v44, 0.0  ;;  %v842_v10 = vrot.slane %v10077_v5, %v9989_v11  ;;  %v796_v30 = vrot.slane %v10063_v22, %v10017_v42  ;;  %v738_v54 = vsub.f32 %v10038_v59, %v10081_v34 }
 0x223   :  { %v8784_v6 = vpop.eup %8783  ;;  %886 = vrot.lane.b32.xlu1 %v865_v48, %s9661_s29  ;;  %884 = vst.msk [vmem:[#allocation2 + $0x20] sm:$0xff] %vm871_vm1, %v865_v48  ;;  %v758_v14 = vmul.f32 %v8782_v47, %v734_v49  ;;  %v846_v26 = vrot.slane %v10077_v5, %v10017_v42 }
 0x224   :  { %v8786_v62 = vpop.eup %8785  ;;  %874 = vrot.lane.b32.xlu0 %v863_v52, %s9661_s29  ;;  %872 = vst.msk [vmem:[#allocation2] sm:$0xff] %vm871_vm1, %v863_v52  ;;  %v756_v8 = vmul.f32 %v8784_v6, %v732_v1 }
 0x225   :  { %v8788_v51 = vpop.eup %8787  ;;  %v808_v23 = vmul.f32 %v780_v50, %v758_v14  ;;  %v759_v18 = vmul.f32 %v8786_v62, %v735_v24  ;;  %v10169_v62 = vld [vmem:[#allocation15] ss:$0 sm:$0xff] }
 0x226   :  { %v806_v19 = vmul.f32 %v772_v2, %v756_v8  ;;  %v760_v21 = vmul.f32 %v8788_v51, %v736_v13 }
 0x227   :  { %v8790_v46 = vpop.eup %8789  ;;  %v858_v53 = vadd.f32 %v830_v56, %v808_v23  ;;  %v809_v25 = vmul.f32 %v784_v9, %v759_v18 }
 0x228   :  { %v856_v28 = vadd.f32 %v822_v43, %v806_v19  ;;  %v810_v31 = vmul.f32 %v788_v16, %v760_v21  ;;  %v761_v32 = vmul.f32 %v8790_v46, %v737_v55 }
 0x229   :  { %v866_v12 = vmax.f32 %v858_v53, 0.0  ;;  %v859_v33 = vadd.f32 %v834_v0, %v809_v25 }
 0x22a   :  { %v864_v7 = vmax.f32 %v856_v28, 0.0  ;;  %v860_v63 = vadd.f32 %v838_v61, %v810_v31  ;;  %v811_v15 = vmul.f32 %v792_v17, %v761_v32  ;;  %v8792_v3 = vpop.eup %8791  ;;  %v924_v45 = vld [vmem:[#allocation2 + $0x20] sm:$0xff] }
 0x22b   :  { %890 = vst.msk [vmem:[#allocation2 + $0x30] sm:$0xff] %vm871_vm1, %v866_v12  ;;  %892 = vrot.lane.b32.xlu1 %v866_v12, %s9661_s29  ;;  %v867_v35 = vmax.f32 %v859_v33, 0.0  ;;  %v920_v36 = vld [vmem:[#allocation2] sm:$0xff]  ;;  %v762_v37 = vmul.f32 %v8792_v3, %v738_v54 }
 0x22c   :  { %878 = vst.msk [vmem:[#allocation2 + $0x10] sm:$0xff] %vm871_vm1, %v864_v7  ;;  %880 = vrot.lane.b32.xlu0 %v864_v7, %s9661_s29  ;;  %8173 = vmatprep.mubr.msk.f32.mxu0 %vm871_vm1, %v920_v36  ;;  %v868_v11 = vmax.f32 %v860_v63, 0.0  ;;  %v861_v22 = vadd.f32 %v842_v10, %v811_v15 }
 0x22d   :  { %896 = vst.msk [vmem:[#allocation2 + $0x40] sm:$0xff] %vm871_vm1, %v867_v35  ;;  %v812_v34 = vmul.f32 %v796_v30, %v762_v37 }
 0x22e   :  { %902 = vst.msk [vmem:[#allocation2 + $0x50] sm:$0xff] %vm871_vm1, %v868_v11  ;;  %v869_v59 = vmax.f32 %v861_v22, 0.0 }
 0x22f   :  { %904 = vrot.lane.b32.xlu1 %v868_v11, %s9661_s29  ;;  %v862_v29 = vadd.f32 %v846_v26, %v812_v34 }
 0x230   :  { %898 = vrot.lane.b32.xlu0 %v867_v35, %s9661_s29  ;;  %908 = vst.msk [vmem:[#allocation2 + $0x60] sm:$0xff] %vm871_vm1, %v869_v59 }
 0x231   :  { %v870_v38 = vmax.f32 %v862_v29, 0.0 }
 0x232   :  { %v926_v49 = vld [vmem:[#allocation2 + $0x30] sm:$0xff] }
 0x233   :  { %914 = vst.msk [vmem:[#allocation2 + $0x70] sm:$0xff] %vm871_vm1, %v870_v38  ;;  %916 = vrot.lane.b32.xlu1 %v870_v38, %s9661_s29  ;;  %v922_v57 = vld [vmem:[#allocation2 + $0x10] sm:$0xff] }
 0x234   :  { %910 = vrot.lane.b32.xlu0 %v869_v59, %s9661_s29  ;;  %v928_v47 = vld [vmem:[#allocation2 + $0x40] sm:$0xff] }
 0x235   :  { %v930_v56 = vld [vmem:[#allocation2 + $0x50] sm:$0xff] }
 0x237   :  { %v932_v2 = vld [vmem:[#allocation2 + $0x60] sm:$0xff] }
 0x23a   :  { %v934_v14 = vld [vmem:[#allocation2 + $0x70] sm:$0xff] }
 0x295   :  { %v887_v42 = vpop.permute.xlu1 %886 }
 0x296   :  { %889 = vst.msk [vmem:[#allocation2 + $0x28] sm:$0xff] %vm871_vm1, %v887_v42  ;;  %v875_v5 = vpop.permute.xlu0 %874 }
 0x297   :  { %877 = vst.msk [vmem:[#allocation2 + $0x8] sm:$0xff] %vm871_vm1, %v875_v5 }
 0x29d   :  { %v893_v60 = vpop.permute.xlu1 %892  ;;  %v925_v48 = vld [vmem:[#allocation2 + $0x28] sm:$0xff] }
 0x29e   :  { %895 = vst.msk [vmem:[#allocation2 + $0x38] sm:$0xff] %vm871_vm1, %v893_v60  ;;  %v881_v40 = vpop.permute.xlu0 %880  ;;  %v921_v4 = vld [vmem:[#allocation2 + $0x8] sm:$0xff] }
 0x29f   :  { %883 = vst.msk [vmem:[#allocation2 + $0x18] sm:$0xff] %vm871_vm1, %v881_v40  ;;  %8174 = vmatmul.mubr.msk.f32.vlgmr.msra.gmra.mrb[4].mxu0 %vm871_vm1, %v921_v4 }
 0x2a0   :  { %8176 = vmatprep.mubr.msk.f32.mxu0 %vm871_vm1, %v922_v57 }
 0x2a1   :  { %v905_v39 = vpop.permute.xlu1 %904 }
 0x2a2   :  { %v899_v41 = vpop.permute.xlu0 %898  ;;  %907 = vst.msk [vmem:[#allocation2 + $0x58] sm:$0xff] %vm871_vm1, %v905_v39 }
 0x2a3   :  { %901 = vst.msk [vmem:[#allocation2 + $0x48] sm:$0xff] %vm871_vm1, %v899_v41 }
 0x2a5   :  { %v917_v27 = vpop.permute.xlu1 %916  ;;  %v927_v50 = vld [vmem:[#allocation2 + $0x38] sm:$0xff] }
 0x2a6   :  { %v911_v20 = vpop.permute.xlu0 %910  ;;  %v923_v44 = vld [vmem:[#allocation2 + $0x18] sm:$0xff]  ;;  %919 = vst.msk [vmem:[#allocation2 + $0x78] sm:$0xff] %vm871_vm1, %v917_v27 }
 0x2a7   :  { %913 = vst.msk [vmem:[#allocation2 + $0x68] sm:$0xff] %vm871_vm1, %v911_v20  ;;  %8177 = vmatmul.mubr.msk.f32.gmra.mrb[6].mxu0 %vm871_vm1, %v923_v44 }
 0x2a8   :  { %8179 = vmatprep.mubr.msk.f32.mxu0 %vm871_vm1, %v924_v45 }
 0x2a9   :  { %v931_v1 = vld [vmem:[#allocation2 + $0x58] sm:$0xff] }
 0x2aa   :  { %v929_v52 = vld [vmem:[#allocation2 + $0x48] sm:$0xff] }
 0x2ab   :  { %8180 = vmatmul.mubr.msk.f32.gmra.mrb[8].mxu0 %vm871_vm1, %v925_v48 }
 0x2ac   :  { %8182 = vmatprep.mubr.msk.f32.mxu0 %vm871_vm1, %v926_v49 }
 0x2ad   :  { %v935_v24 = vld [vmem:[#allocation2 + $0x78] sm:$0xff] }
 0x2ae   :  { %v933_v6 = vld [vmem:[#allocation2 + $0x68] sm:$0xff] }
 0x2af   :  { %8183 = vmatmul.mubr.msk.f32.gmra.mrb[10].mxu0 %vm871_vm1, %v927_v50 }
 0x2b0   :  { %8185 = vmatprep.mubr.msk.f32.mxu0 %vm871_vm1, %v928_v47 }
 0x2b3   :  { %8186 = vmatmul.mubr.msk.f32.gmra.mrb[12].mxu0 %vm871_vm1, %v929_v52 }
 0x2b4   :  { %8188 = vmatprep.mubr.msk.f32.mxu0 %vm871_vm1, %v930_v56 }
 0x2b7   :  { %8189 = vmatmul.mubr.msk.f32.gmra.mrb[14].mxu0 %vm871_vm1, %v931_v1 }
 0x2b8   :  { %8191 = vmatprep.mubr.msk.f32.mxu0 %vm871_vm1, %v932_v2 }
 0x2bb   :  { %8192 = vmatmul.mubr.msk.f32.gmra.mrb[16].mxu0 %vm871_vm1, %v933_v6 }
 0x2bc   :  { %8194 = vmatprep.mubr.msk.f32.mxu0 %vm871_vm1, %v934_v14 }
 0x2bf   :  { %8195 = vmatmul.mubr.msk.f32.gmra.mrb[18].mxu0 %vm871_vm1, %v935_v24 }
 0x372   :  { %v8175_v9 = vpop.f32.mrb[4].mxu0 }
 0x373   :  { %v1065_v8 = vpop.f32.mrb[5].mxu0  ;;  %v10172_v43 = vadd.f32 %v8175_v9, %v10169_v62 }
 0x374   :  { %v10175_v13 = vadd.f32 %v10169_v62, %v1065_v8 }
 0x375   :  { %v1168_v16 = vmul.f32 %v10172_v43, %v10172_v43 }
 0x376   :  { %v1167_v51 = vmul.f32 %v10175_v13, %v10175_v13  ;;  %v1146_v0 = vadd.f32 %v10172_v43, %v10175_v13 }
 0x378   :  { %v1183_v21 = vadd.f32 %v1168_v16, %v1167_v51 }
 0x37a   :  { %v8178_v23 = vpop.f32.mrb[6].mxu0 }
 0x37b   :  { %v1075_v18 = vpop.f32.mrb[7].mxu0  ;;  %v10184_v17 = vadd.f32 %v8178_v23, %v10169_v62 }
 0x37c   :  { %v10187_v19 = vadd.f32 %v10169_v62, %v1075_v18 }
 0x37d   :  { %v1170_v28 = vmul.f32 %v10184_v17, %v10184_v17 }
 0x37e   :  { %v1147_v61 = vadd.f32 %v1146_v0, %v10187_v19  ;;  %v1169_v55 = vmul.f32 %v10187_v19, %v10187_v19  ;;  %v8181_v46 = vpop.f32.mrb[8].mxu0 }
 0x37f   :  { %v10193_v53 = vadd.f32 %v8181_v46, %v10169_v62  ;;  %v1085_v25 = vpop.f32.mrb[9].mxu0 }
 0x380   :  { %v1184_v31 = vadd.f32 %v1183_v21, %v1169_v55  ;;  %v10198_v32 = vadd.f32 %v10169_v62, %v1085_v25  ;;  %v1148_v10 = vadd.f32 %v1147_v61, %v10184_v17 }
 0x381   :  { %v1172_v63 = vmul.f32 %v10193_v53, %v10193_v53 }
 0x382   :  { %v1149_v12 = vadd.f32 %v1148_v10, %v10198_v32  ;;  %v1171_v33 = vmul.f32 %v10198_v32, %v10198_v32  ;;  %v1185_v30 = vadd.f32 %v1184_v31, %v1170_v28  ;;  %v8184_v7 = vpop.f32.mrb[10].mxu0 }
 0x383   :  { %v1095_v15 = vpop.f32.mrb[11].mxu0  ;;  %v10207_v3 = vadd.f32 %v8184_v7, %v10169_v62 }
 0x384   :  { %v1186_v54 = vadd.f32 %v1185_v30, %v1171_v33  ;;  %v10210_v35 = vadd.f32 %v10169_v62, %v1095_v15  ;;  %v1150_v36 = vadd.f32 %v1149_v12, %v10193_v53 }
 0x385   :  { %v1174_v29 = vmul.f32 %v10207_v3, %v10207_v3 }
 0x386   :  { %v1151_v11 = vadd.f32 %v1150_v36, %v10210_v35  ;;  %v1173_v22 = vmul.f32 %v10210_v35, %v10210_v35  ;;  %v1187_v37 = vadd.f32 %v1186_v54, %v1172_v63  ;;  %v8187_v26 = vpop.f32.mrb[12].mxu0 }
 0x387   :  { %v10217_v59 = vadd.f32 %v8187_v26, %v10169_v62  ;;  %v1105_v34 = vpop.f32.mrb[13].mxu0 }
 0x388   :  { %v1188_v38 = vadd.f32 %v1187_v37, %v1173_v22  ;;  %v10222_v42 = vadd.f32 %v10169_v62, %v1105_v34  ;;  %v1152_v5 = vadd.f32 %v1151_v11, %v10207_v3  ;;  %v1782_v34 = vld [vmem:[#allocation19] sm:$0xff] }
 0x389   :  { %v1176_v39 = vmul.f32 %v10217_v59, %v10217_v59 }
 0x38a   :  { %v1153_v60 = vadd.f32 %v1152_v5, %v10222_v42  ;;  %v1175_v40 = vmul.f32 %v10222_v42, %v10222_v42  ;;  %v1189_v4 = vadd.f32 %v1188_v38, %v1174_v29  ;;  %v8190_v57 = vpop.f32.mrb[14].mxu0  ;;  %v1783_v29 = vld [vmem:[#allocation19 + $0x8] sm:$0xff]  ;;  %v1784_v5 = vld [vmem:[#allocation19 + $0x10] sm:$0xff] }
 0x38b   :  { %v1115_v41 = vpop.f32.mrb[15].mxu0  ;;  %v10231_v27 = vadd.f32 %v8190_v57, %v10169_v62  ;;  %v8737_v38 = vpack.c.bf16 %v1783_v29, %v1782_v34 }
 0x38c   :  { %v1190_v20 = vadd.f32 %v1189_v4, %v1175_v40  ;;  %v10234_v44 = vadd.f32 %v10169_v62, %v1115_v41  ;;  %v1154_v45 = vadd.f32 %v1153_v60, %v10217_v59  ;;  %v1785_v60 = vld [vmem:[#allocation19 + $0x18] sm:$0xff] }
 0x38d   :  { %v1178_v1 = vmul.f32 %v10231_v27, %v10231_v27  ;;  %8738 = vmatprep.subr.bf16.mxu1 %v8737_v38  ;;  %v8741_v40 = vpack.c.bf16 %v1785_v60, %v1784_v5 }
 0x38e   :  { %v1155_v48 = vadd.f32 %v1154_v45, %v10234_v44  ;;  %v1177_v49 = vmul.f32 %v10234_v44, %v10234_v44  ;;  %v1191_v50 = vadd.f32 %v1190_v20, %v1176_v39  ;;  %v8193_v47 = vpop.f32.mrb[16].mxu0  ;;  %8740 = vmatpush3.bf16.msra.mxu1 %v8737_v38 }
 0x38f   :  { %v10241_v52 = vadd.f32 %v8193_v47, %v10169_v62  ;;  %v1125_v56 = vpop.f32.mrb[17].mxu0  ;;  %8742 = vmatprep.subr.bf16.mxu1 %v8741_v40 }
 0x390   :  { %v1192_v2 = vadd.f32 %v1191_v50, %v1177_v49  ;;  %v10246_v6 = vadd.f32 %v10169_v62, %v1125_v56  ;;  %v1156_v14 = vadd.f32 %v1155_v48, %v10231_v27 }
 0x391   :  { %v1180_v51 = vmul.f32 %v10241_v52, %v10241_v52 }
 0x392   :  { %v1157_v24 = vadd.f32 %v1156_v14, %v10246_v6  ;;  %v1179_v9 = vmul.f32 %v10246_v6, %v10246_v6  ;;  %v8196_v8 = vpop.f32.mrb[18].mxu0  ;;  %v1193_v16 = vadd.f32 %v1192_v2, %v1178_v1  ;;  %8744 = vmatpush3.bf16.msra.mxu1 %v8741_v40 }
 0x393   :  { %v1135_v23 = vpop.f32.mrb[19].mxu0  ;;  %v10255_v18 = vadd.f32 %v8196_v8, %v10169_v62 }
 0x394   :  { %v10258_v0 = vadd.f32 %v10169_v62, %v1135_v23  ;;  %v1158_v21 = vadd.f32 %v1157_v24, %v10241_v52  ;;  %v1194_v61 = vadd.f32 %v1193_v16, %v1179_v9  ;;  %v1144_v16 = vld [vmem:[#allocation16] sm:$0x1] }
 0x395   :  { %v1182_v31 = vmul.f32 %v10255_v18, %v10255_v18 }
 0x396   :  { %v1159_v55 = vadd.f32 %v1158_v21, %v10258_v0  ;;  %v1181_v46 = vmul.f32 %v10258_v0, %v10258_v0  ;;  %v1195_v25 = vadd.f32 %v1194_v61, %v1180_v51  ;;  %v1145_v21 = vld [vmem:[#allocation18] sm:$0x1] }
 0x398   :  { %v1160_v28 = vadd.f32 %v1159_v55, %v10255_v18  ;;  %v1196_v10 = vadd.f32 %v1195_v25, %v1181_v46 }
 0x39a   :  { %v1161_v12 = vrot.slane %v1160_v28, 4  ;;  %v1197_v33 = vadd.f32 %v1196_v10, %v1182_v31 }
 0x39c   :  { %v1162_v30 = vadd.f32 %v1161_v12, %v1160_v28  ;;  %v1198_v62 = vrot.slane %v1197_v33, 4 }
 0x39e   :  { %v1163_v7 = vrot.slane %v1162_v30, 2  ;;  %v1199_v63 = vadd.f32 %v1198_v62, %v1197_v33 }
 0x3a0   :  { %v1164_v15 = vadd.f32 %v1163_v7, %v1162_v30  ;;  %v1200_v54 = vrot.slane %v1199_v63, 2 }
 0x3a2   :  { %v1165_v36 = vrot.slane %v1164_v15, 1  ;;  %v1201_v11 = vadd.f32 %v1200_v54, %v1199_v63 }
 0x3a4   :  { %v1166_v22 = vadd.f32 %v1165_v36, %v1164_v15  ;;  %v1202_v37 = vrot.slane %v1201_v11, 1 }
 0x3a6   :  { %1209 = vrot.lane.b32.xlu1 %v1166_v22, %s9661_s29  ;;  %1205 = vrot.lane.b32.xlu0 %v1166_v22, %s9679_s14  ;;  %v1203_v26 = vadd.f32 %v1202_v37, %v1201_v11 }
 0x3aa   :  { %1213 = vrot.lane.b32.xlu1 %v1166_v22, %s9680_s0  ;;  %1218 = vrot.lane.b32.xlu0 %v1203_v26, %s9679_s14 }
 0x3ae   :  { %1226 = vrot.lane.b32.xlu1 %v1203_v26, %s9680_s0  ;;  %1222 = vrot.lane.b32.xlu0 %v1203_v26, %s9661_s29 }
 0x418   :  { %v1210_v4 = vpop.permute.xlu1 %1209  ;;  %v1206_v57 = vpop.permute.xlu0 %1205 }
 0x419   :  { %v1208_v39 = vadd.f32 %v1206_v57, %v1166_v22 }
 0x41b   :  { %v1212_v41 = vadd.f32 %v1210_v4, %v1208_v39 }
 0x41c   :  { %v1214_v20 = vpop.permute.xlu1 %1213  ;;  %v1219_v45 = vpop.permute.xlu0 %1218 }
 0x41d   :  { %v1216_v48 = vadd.f32 %v1214_v20, %v1212_v41  ;;  %v1221_v49 = vadd.f32 %v1219_v45, %v1203_v26 }
 0x41f   :  { %v1231_v47 = vmul.f32 0.001953125, %v1216_v48 }
 0x420   :  { %v1223_v50 = vpop.permute.xlu0 %1222  ;;  %v1227_v1 = vpop.permute.xlu1 %1226 }
 0x421   :  { %v1225_v56 = vadd.f32 %v1223_v50, %v1221_v49  ;;  %v1233_v14 = vmul.f32 %v1231_v47, %v1231_v47 }
 0x423   :  { %v1229_v2 = vadd.f32 %v1227_v1, %v1225_v56 }
 0x425   :  { %v1232_v24 = vmul.f32 0.001953125, %v1229_v2 }
 0x427   :  { %v1234_v9 = vsub.f32 %v1232_v24, %v1233_v14 }
 0x429   :  { %v1235_v8 = vadd.f32 1e-05, %v1234_v9 }
 0x42b   :  { %8793 = vrsqrt.f32 %v1235_v8 }
 0x435   :  { %v8794_v51 = vpop.eup %8793 }
 0x436   :  { %v1237_v23 = vmul.f32 %v8794_v51, %v1144_v16 }
 0x438   :  { %v1238_v61 = vmul.f32 %v1237_v23, %v1231_v47  ;;  %v1244_v55 = vrot.slane %v1237_v23, %v9963_v58 }
 0x43a   :  { %v1239_v46 = vsub.f32 %v1145_v21, %v1238_v61  ;;  %1316 = vrot.lane.b32.xlu0 %v1244_v55, %s9680_s0  ;;  %v1246_v25 = vmul.f32 %v1244_v55, %v10175_v13  ;;  %v1247_v28 = vmul.f32 %v1244_v55, %v10172_v43  ;;  %v1248_v31 = vmul.f32 %v1244_v55, %v10187_v19 }
 0x43b   :  { %v1249_v10 = vmul.f32 %v1244_v55, %v10184_v17  ;;  %v1250_v12 = vmul.f32 %v1244_v55, %v10198_v32  ;;  %v1251_v33 = vmul.f32 %v1244_v55, %v10193_v53  ;;  %v1252_v30 = vmul.f32 %v1244_v55, %v10210_v35 }
 0x43c   :  { %v10283_v62 = vrot.slane %v1239_v46, %v9963_v58  ;;  %v1253_v7 = vmul.f32 %v1244_v55, %v10207_v3  ;;  %v1254_v63 = vmul.f32 %v1244_v55, %v10222_v42  ;;  %v1255_v15 = vmul.f32 %v1244_v55, %v10217_v59 }
 0x43d   :  { %v1256_v54 = vmul.f32 %v1244_v55, %v10234_v44  ;;  %v1257_v36 = vmul.f32 %v1244_v55, %v10231_v27  ;;  %v1258_v11 = vmul.f32 %v1244_v55, %v10246_v6  ;;  %v1259_v22 = vmul.f32 %v1244_v55, %v10241_v52 }
 0x43e   :  { %1450 = vrot.lane.b32.xlu0 %v1244_v55, %s9661_s29  ;;  %1335 = vrot.lane.b32.xlu1 %v10283_v62, %s9680_s0  ;;  %v1268_v37 = vadd.f32 %v10283_v62, %v1246_v25  ;;  %v1269_v26 = vadd.f32 %v10283_v62, %v1247_v28  ;;  %v1270_v34 = vadd.f32 %v10283_v62, %v1248_v31 }
 0x43f   :  { %v1271_v29 = vadd.f32 %v10283_v62, %v1249_v10  ;;  %v1272_v38 = vadd.f32 %v10283_v62, %v1250_v12  ;;  %v1273_v5 = vadd.f32 %v10283_v62, %v1251_v33  ;;  %v1274_v60 = vadd.f32 %v10283_v62, %v1252_v30 }
 0x440   :  { %v1284_v40 = vmax.f32 %v1268_v37, 0.0  ;;  %v1285_v4 = vmax.f32 %v1269_v26, 0.0  ;;  %v1286_v57 = vmax.f32 %v1270_v34, 0.0  ;;  %v1275_v39 = vadd.f32 %v10283_v62, %v1253_v7 }
 0x441   :  { %v1287_v41 = vmax.f32 %v1271_v29, 0.0  ;;  %v1288_v20 = vmax.f32 %v1272_v38, 0.0  ;;  %v1289_v45 = vmax.f32 %v1273_v5, 0.0  ;;  %v1290_v48 = vmax.f32 %v1274_v60, 0.0 }
 0x442   :  { %1469 = vrot.lane.b32.xlu1 %v10283_v62, %s9661_s29  ;;  %1300 = vst.msk [vmem:[#allocation3] sm:$0xff] %vm306_vm0, %v1284_v40  ;;  %1301 = vst.msk [vmem:[#allocation3 + $0x8] sm:$0xff] %vm306_vm0, %v1285_v4  ;;  %v1291_v49 = vmax.f32 %v1275_v39, 0.0  ;;  %v1276_v50 = vadd.f32 %v10283_v62, %v1254_v63  ;;  %v1277_v47 = vadd.f32 %v10283_v62, %v1255_v15 }
 0x443   :  { %1302 = vst.msk [vmem:[#allocation3 + $0x10] sm:$0xff] %vm306_vm0, %v1286_v57  ;;  %v1278_v56 = vadd.f32 %v10283_v62, %v1256_v54  ;;  %1303 = vst.msk [vmem:[#allocation3 + $0x18] sm:$0xff] %vm306_vm0, %v1287_v41  ;;  %v1279_v1 = vadd.f32 %v10283_v62, %v1257_v36  ;;  %v1280_v2 = vadd.f32 %v10283_v62, %v1258_v11 }
 0x444   :  { %1304 = vst.msk [vmem:[#allocation3 + $0x20] sm:$0xff] %vm306_vm0, %v1288_v20  ;;  %1305 = vst.msk [vmem:[#allocation3 + $0x28] sm:$0xff] %vm306_vm0, %v1289_v45  ;;  %v1281_v14 = vadd.f32 %v10283_v62, %v1259_v22  ;;  %v1260_v24 = vmul.f32 %v1244_v55, %v10258_v0  ;;  %v1292_v9 = vmax.f32 %v1276_v50, 0.0  ;;  %v1293_v8 = vmax.f32 %v1277_v47, 0.0 }
 0x445   :  { %1306 = vst.msk [vmem:[#allocation3 + $0x30] sm:$0xff] %vm306_vm0, %v1290_v48  ;;  %1307 = vst.msk [vmem:[#allocation3 + $0x38] sm:$0xff] %vm306_vm0, %v1291_v49  ;;  %v1294_v16 = vmax.f32 %v1278_v56, 0.0  ;;  %v1261_v51 = vmul.f32 %v1244_v55, %v10255_v18  ;;  %v1295_v23 = vmax.f32 %v1279_v1, 0.0  ;;  %v1296_v21 = vmax.f32 %v1280_v2, 0.0 }
 0x446   :  { %v1297_v61 = vmax.f32 %v1281_v14, 0.0  ;;  %v1282_v46 = vadd.f32 %v10283_v62, %v1260_v24  ;;  %1584 = vrot.lane.b32.xlu1 %v1244_v55, %s9679_s14  ;;  %1308 = vst.msk [vmem:[#allocation3 + $0x40] sm:$0xff] %vm306_vm0, %v1292_v9  ;;  %1309 = vst.msk [vmem:[#allocation3 + $0x48] sm:$0xff] %vm306_vm0, %v1293_v8 }
 0x447   :  { %1310 = vst.msk [vmem:[#allocation3 + $0x50] sm:$0xff] %vm306_vm0, %v1294_v16  ;;  %v1283_v25 = vadd.f32 %v10283_v62, %v1261_v51  ;;  %1311 = vst.msk [vmem:[#allocation3 + $0x58] sm:$0xff] %vm306_vm0, %v1295_v23 }
 0x448   :  { %1312 = vst.msk [vmem:[#allocation3 + $0x60] sm:$0xff] %vm306_vm0, %v1296_v21  ;;  %1313 = vst.msk [vmem:[#allocation3 + $0x68] sm:$0xff] %vm306_vm0, %v1297_v61  ;;  %v1298_v28 = vmax.f32 %v1282_v46, 0.0 }
 0x449   :  { %v1299_v31 = vmax.f32 %v1283_v25, 0.0  ;;  %v1718_v10 = vld [vmem:[#allocation3] sm:$0xff]  ;;  %v1719_v12 = vld [vmem:[#allocation3 + $0x8] sm:$0xff] }
 0x44a   :  { %1314 = vst.msk [vmem:[#allocation3 + $0x70] sm:$0xff] %vm306_vm0, %v1298_v28  ;;  %1603 = vrot.lane.b32.xlu1 %v10283_v62, %s9679_s14  ;;  %8205 = vmatprep.mubr.msk.f32.mxu1 %vm306_vm0, %v1718_v10  ;;  %v1720_v55 = vld [vmem:[#allocation3 + $0x10] sm:$0xff]  ;;  %v1721_v33 = vld [vmem:[#allocation3 + $0x18] sm:$0xff] }
 0x44b   :  { %1315 = vst.msk [vmem:[#allocation3 + $0x78] sm:$0xff] %vm306_vm0, %v1299_v31  ;;  %8206 = vmatmul.mubr.msk.f32.vlgmr.msra.gmra.mrb[4].mxu1 %vm306_vm0, %v1719_v12  ;;  %v1722_v30 = vld [vmem:[#allocation3 + $0x20] sm:$0xff]  ;;  %v1723_v7 = vld [vmem:[#allocation3 + $0x28] sm:$0xff] }
 0x44c   :  { %8208 = vmatprep.mubr.msk.f32.mxu1 %vm306_vm0, %v1720_v55  ;;  %v1724_v63 = vld [vmem:[#allocation3 + $0x30] sm:$0xff]  ;;  %v1725_v62 = vld [vmem:[#allocation3 + $0x38] sm:$0xff] }
 0x44d   :  { %v1726_v15 = vld [vmem:[#allocation3 + $0x40] sm:$0xff]  ;;  %v1727_v54 = vld [vmem:[#allocation3 + $0x48] sm:$0xff] }
 0x44e   :  { %v1728_v36 = vld [vmem:[#allocation3 + $0x50] sm:$0xff]  ;;  %v1729_v11 = vld [vmem:[#allocation3 + $0x58] sm:$0xff] }
 0x44f   :  { %8209 = vmatmul.mubr.msk.f32.gmra.mrb[6].mxu1 %vm306_vm0, %v1721_v33  ;;  %v1730_v22 = vld [vmem:[#allocation3 + $0x60] sm:$0xff]  ;;  %v1731_v37 = vld [vmem:[#allocation3 + $0x68] sm:$0xff] }
 0x450   :  { %8211 = vmatprep.mubr.msk.f32.mxu1 %vm306_vm0, %v1722_v30 }
 0x451   :  { %v1732_v26 = vld [vmem:[#allocation3 + $0x70] sm:$0xff] }
 0x452   :  { %v1733_v34 = vld [vmem:[#allocation3 + $0x78] sm:$0xff] }
 0x453   :  { %8212 = vmatmul.mubr.msk.f32.gmra.mrb[8].mxu1 %vm306_vm0, %v1723_v7 }
 0x454   :  { %8214 = vmatprep.mubr.msk.f32.mxu1 %vm306_vm0, %v1724_v63 }
 0x457   :  { %8215 = vmatmul.mubr.msk.f32.gmra.mrb[10].mxu1 %vm306_vm0, %v1725_v62 }
 0x458   :  { %8217 = vmatprep.mubr.msk.f32.mxu1 %vm306_vm0, %v1726_v15 }
 0x45b   :  { %8218 = vmatmul.mubr.msk.f32.gmra.mrb[12].mxu1 %vm306_vm0, %v1727_v54 }
 0x45c   :  { %8220 = vmatprep.mubr.msk.f32.mxu1 %vm306_vm0, %v1728_v36 }
 0x45f   :  { %8221 = vmatmul.mubr.msk.f32.gmra.mrb[14].mxu1 %vm306_vm0, %v1729_v11 }
 0x460   :  { %8223 = vmatprep.mubr.msk.f32.mxu1 %vm306_vm0, %v1730_v22 }
 0x463   :  { %8224 = vmatmul.mubr.msk.f32.gmra.mrb[16].mxu1 %vm306_vm0, %v1731_v37 }
 0x464   :  { %8226 = vmatprep.mubr.msk.f32.mxu1 %vm306_vm0, %v1732_v26 }
 0x467   :  { %8227 = vmatmul.mubr.msk.f32.gmra.mrb[18].mxu1 %vm306_vm0, %v1733_v34 }
 0x4ac   :  { %v10350_v29 = vpop.permute.xlu0 %1316 }
 0x4ad   :  { %v1322_v38 = vmul.f32 %v10350_v29, %v10184_v17  ;;  %v1319_v5 = vmul.f32 %v10350_v29, %v10175_v13  ;;  %v1324_v57 = vmul.f32 %v10350_v29, %v10193_v53  ;;  %v1320_v39 = vmul.f32 %v10350_v29, %v10172_v43 }
 0x4ae   :  { %v1326_v49 = vmul.f32 %v10350_v29, %v10207_v3  ;;  %v1321_v50 = vmul.f32 %v10350_v29, %v10187_v19  ;;  %v1328_v14 = vmul.f32 %v10350_v29, %v10217_v59  ;;  %v1323_v24 = vmul.f32 %v10350_v29, %v10198_v32 }
 0x4af   :  { %v1330_v23 = vmul.f32 %v10350_v29, %v10231_v27  ;;  %v1325_v21 = vmul.f32 %v10350_v29, %v10210_v35  ;;  %v1332_v31 = vmul.f32 %v10350_v29, %v10241_v52  ;;  %v1327_v10 = vmul.f32 %v10350_v29, %v10222_v42 }
 0x4b0   :  { %v10356_v60 = vpop.permute.xlu1 %1335  ;;  %v1334_v7 = vmul.f32 %v10350_v29, %v10255_v18  ;;  %v1329_v63 = vmul.f32 %v10350_v29, %v10234_v44  ;;  %v10404_v62 = vpop.permute.xlu0 %1450  ;;  %v1331_v37 = vmul.f32 %v10350_v29, %v10246_v6 }
 0x4b1   :  { %v1341_v40 = vadd.f32 %v10356_v60, %v1322_v38  ;;  %v1338_v4 = vadd.f32 %v10356_v60, %v1319_v5  ;;  %v1343_v45 = vadd.f32 %v10356_v60, %v1324_v57  ;;  %v1339_v48 = vadd.f32 %v10356_v60, %v1320_v39 }
 0x4b2   :  { %v1345_v1 = vadd.f32 %v10356_v60, %v1326_v49  ;;  %v1340_v2 = vadd.f32 %v10356_v60, %v1321_v50  ;;  %v1347_v16 = vadd.f32 %v10356_v60, %v1328_v14  ;;  %v1342_v51 = vadd.f32 %v10356_v60, %v1323_v24 }
 0x4b3   :  { %v1357_v41 = vmax.f32 %v1341_v40, 0.0  ;;  %v1354_v20 = vmax.f32 %v1338_v4, 0.0  ;;  %v1359_v47 = vmax.f32 %v1343_v45, 0.0  ;;  %v1355_v56 = vmax.f32 %v1339_v48, 0.0 }
 0x4b4   :  { %v1361_v9 = vmax.f32 %v1345_v1, 0.0  ;;  %v1356_v8 = vmax.f32 %v1340_v2, 0.0  ;;  %v1363_v61 = vmax.f32 %v1347_v16, 0.0  ;;  %v1358_v46 = vmax.f32 %v1342_v51, 0.0  ;;  %v10408_v22 = vpop.permute.xlu1 %1469 }
 0x4b5   :  { %1392 = vrot.lane.b32.xlu1 %v1357_v41, %s9679_s14  ;;  %1386 = vrot.lane.b32.xlu0 %v1354_v20, %s9679_s14  ;;  %v1349_v25 = vadd.f32 %v10356_v60, %v1330_v23  ;;  %v1344_v28 = vadd.f32 %v10356_v60, %v1325_v21  ;;  %v1351_v33 = vadd.f32 %v10356_v60, %v1332_v31 }
 0x4b6   :  { %v1346_v30 = vadd.f32 %v10356_v60, %v1327_v10  ;;  %v1353_v36 = vadd.f32 %v10356_v60, %v1334_v7  ;;  %v1348_v11 = vadd.f32 %v10356_v60, %v1329_v63  ;;  %v1454_v26 = vmul.f32 %v10404_v62, %v10172_v43 }
 0x4b7   :  { %v1365_v12 = vmax.f32 %v1349_v25, 0.0  ;;  %v1360_v55 = vmax.f32 %v1344_v28, 0.0  ;;  %v1367_v15 = vmax.f32 %v1351_v33, 0.0  ;;  %v1350_v5 = vadd.f32 %v10356_v60, %v1331_v37 }
 0x4b8   :  { %v1362_v54 = vmax.f32 %v1346_v30, 0.0  ;;  %v1369_v34 = vmax.f32 %v1353_v36, 0.0  ;;  %v1364_v38 = vmax.f32 %v1348_v11, 0.0  ;;  %v1473_v40 = vadd.f32 %v10408_v22, %v1454_v26  ;;  %v10464_v30 = vpop.permute.xlu1 %1584 }
 0x4b9   :  { %1396 = vrot.lane.b32.xlu1 %v1359_v47, %s9679_s14  ;;  %1388 = vrot.lane.b32.xlu0 %v1355_v56, %s9679_s14  ;;  %v1333_v4 = vmul.f32 %v10350_v29, %v10258_v0  ;;  %v1456_v57 = vmul.f32 %v10404_v62, %v10184_v17  ;;  %v1366_v39 = vmax.f32 %v1350_v5, 0.0  ;;  %v1458_v48 = vmul.f32 %v10404_v62, %v10193_v53 }
 0x4ba   :  { %v1489_v41 = vmax.f32 %v1473_v40, 0.0  ;;  %v1453_v49 = vmul.f32 %v10404_v62, %v10175_v13  ;;  %v1455_v1 = vmul.f32 %v10404_v62, %v10187_v19  ;;  %v1457_v16 = vmul.f32 %v10404_v62, %v10198_v32 }
 0x4bb   :  { %v1352_v20 = vadd.f32 %v10356_v60, %v1333_v4  ;;  %v1475_v45 = vadd.f32 %v10408_v22, %v1456_v57  ;;  %v1477_v47 = vadd.f32 %v10408_v22, %v1458_v48  ;;  %v1460_v60 = vmul.f32 %v10404_v62, %v10207_v3 }
 0x4bc   :  { %v1472_v56 = vadd.f32 %v10408_v22, %v1453_v49  ;;  %v1459_v25 = vmul.f32 %v10404_v62, %v10210_v35  ;;  %v1461_v33 = vmul.f32 %v10404_v62, %v10222_v42  ;;  %v1468_v36 = vmul.f32 %v10404_v62, %v10255_v18  ;;  %v10476_v5 = vpop.permute.xlu1 %1603 }
 0x4bd   :  { %1400 = vrot.lane.b32.xlu1 %v1361_v9, %s9679_s14  ;;  %1390 = vrot.lane.b32.xlu0 %v1356_v8, %s9679_s14  ;;  %v1368_v29 = vmax.f32 %v1352_v20, 0.0  ;;  %v1491_v50 = vmax.f32 %v1475_v45, 0.0  ;;  %v1493_v2 = vmax.f32 %v1477_v47, 0.0  ;;  %v1479_v24 = vadd.f32 %v10408_v22, %v1460_v60 }
 0x4be   :  { %v1488_v14 = vmax.f32 %v1472_v56, 0.0  ;;  %v1474_v9 = vadd.f32 %v10408_v22, %v1455_v1  ;;  %v1462_v8 = vmul.f32 %v10404_v62, %v10217_v59  ;;  %v1463_v11 = vmul.f32 %v10404_v62, %v10234_v44 }
 0x4bf   :  { %v1495_v51 = vmax.f32 %v1479_v24, 0.0  ;;  %v1465_v40 = vmul.f32 %v10404_v62, %v10246_v6  ;;  %v1588_v4 = vmul.f32 %v10464_v30, %v10172_v43  ;;  %v1467_v45 = vmul.f32 %v10404_v62, %v10258_v0 }
 0x4c0   :  { %v1490_v23 = vmax.f32 %v1474_v9, 0.0  ;;  %v1481_v21 = vadd.f32 %v10408_v22, %v1462_v8  ;;  %v1590_v48 = vmul.f32 %v10464_v30, %v10184_v17  ;;  %v1592_v47 = vmul.f32 %v10464_v30, %v10193_v53 }
 0x4c1   :  { %1404 = vrot.lane.b32.xlu1 %v1363_v61, %s9679_s14  ;;  %1394 = vrot.lane.b32.xlu0 %v1358_v46, %s9679_s14  ;;  %v1476_v61 = vadd.f32 %v10408_v22, %v1457_v16  ;;  %v1464_v46 = vmul.f32 %v10404_v62, %v10231_v27  ;;  %v1607_v20 = vadd.f32 %v10476_v5, %v1588_v4 }
 0x4c2   :  { %v1497_v28 = vmax.f32 %v1481_v21, 0.0  ;;  %v1486_v43 = vadd.f32 %v10408_v22, %v1467_v45  ;;  %v1587_v56 = vmul.f32 %v10464_v30, %v10175_v13  ;;  %v1611_v17 = vadd.f32 %v10476_v5, %v1592_v47 }
 0x4c3   :  { %v1492_v31 = vmax.f32 %v1476_v61, 0.0  ;;  %v1483_v10 = vadd.f32 %v10408_v22, %v1464_v46  ;;  %v1596_v9 = vmul.f32 %v10464_v30, %v10217_v59  ;;  %v1591_v8 = vmul.f32 %v10464_v30, %v10198_v32 }
 0x4c4   :  { %v1606_v1 = vadd.f32 %v10476_v5, %v1587_v56  ;;  %v1627_v53 = vmax.f32 %v1611_v17, 0.0  ;;  %v1593_v21 = vmul.f32 %v10464_v30, %v10210_v35 }
 0x4c5   :  { %1408 = vrot.lane.b32.xlu1 %v1365_v12, %s9679_s14  ;;  %1398 = vrot.lane.b32.xlu0 %v1360_v55, %s9679_s14  ;;  %v1478_v12 = vadd.f32 %v10408_v22, %v1459_v25  ;;  %v1466_v55 = vmul.f32 %v10404_v62, %v10241_v52  ;;  %v1499_v7 = vmax.f32 %v1483_v10, 0.0  ;;  %v1502_v62 = vmax.f32 %v1486_v43, 0.0 }
 0x4c6   :  { %v1612_v46 = vadd.f32 %v10476_v5, %v1593_v21  ;;  %v1600_v25 = vmul.f32 %v10464_v30, %v10241_v52 }
 0x4c7   :  { %v1494_v63 = vmax.f32 %v1478_v12, 0.0  ;;  %v1602_v12 = vmul.f32 %v10464_v30, %v10255_v18 }
 0x4c8   :  { %v1619_v35 = vadd.f32 %v10476_v5, %v1600_v25 }
 0x4c9   :  { %1412 = vrot.lane.b32.xlu1 %v1367_v15, %s9679_s14  ;;  %1402 = vrot.lane.b32.xlu0 %v1362_v54, %s9679_s14  ;;  %v1485_v15 = vadd.f32 %v10408_v22, %v1466_v55  ;;  %v1480_v54 = vadd.f32 %v10408_v22, %v1461_v33  ;;  %v1597_v55 = vmul.f32 %v10464_v30, %v10234_v44 }
 0x4ca   :  { %v1635_v52 = vmax.f32 %v1619_v35, 0.0  ;;  %v1601_v44 = vmul.f32 %v10464_v30, %v10258_v0 }
 0x4cb   :  { %v1501_v37 = vmax.f32 %v1485_v15, 0.0  ;;  %v1496_v26 = vmax.f32 %v1480_v54, 0.0 }
 0x4cd   :  { %1416 = vrot.lane.b32.xlu1 %v1369_v34, %s9679_s14  ;;  %1406 = vrot.lane.b32.xlu0 %v1364_v38, %s9679_s14  ;;  %v1487_v34 = vadd.f32 %v10408_v22, %v1468_v36  ;;  %v1482_v38 = vadd.f32 %v10408_v22, %v1463_v11  ;;  %v1620_v11 = vadd.f32 %v10476_v5, %v1601_v44 }
 0x4cf   :  { %v1503_v57 = vmax.f32 %v1487_v34, 0.0 }
 0x4d1   :  { %1410 = vrot.lane.b32.xlu0 %v1366_v39, %s9679_s14  ;;  %1522 = vrot.lane.b32.xlu1 %v1489_v41, %s9661_s29  ;;  %v1498_v39 = vmax.f32 %v1482_v38, 0.0  ;;  %v1484_v41 = vadd.f32 %v10408_v22, %v1465_v40  ;;  %v1594_v22 = vmul.f32 %v10464_v30, %v10207_v3 }
 0x4d3   :  { %v1500_v49 = vmax.f32 %v1484_v41, 0.0  ;;  %v1613_v13 = vadd.f32 %v10476_v5, %v1594_v22 }
 0x4d5   :  { %1414 = vrot.lane.b32.xlu0 %v1368_v29, %s9679_s14  ;;  %1526 = vrot.lane.b32.xlu1 %v1491_v50, %s9661_s29  ;;  %v1623_v29 = vmax.f32 %v1607_v20, 0.0  ;;  %v1609_v50 = vadd.f32 %v10476_v5, %v1590_v48  ;;  %v1629_v3 = vmax.f32 %v1613_v13, 0.0 }
 0x4d7   :  { %v1625_v60 = vmax.f32 %v1609_v50, 0.0 }
 0x4d9   :  { %1530 = vrot.lane.b32.xlu1 %v1493_v2, %s9661_s29  ;;  %1520 = vrot.lane.b32.xlu0 %v1488_v14, %s9661_s29  ;;  %v1589_v2 = vmul.f32 %v10464_v30, %v10187_v19  ;;  %v1622_v14 = vmax.f32 %v1606_v1, 0.0  ;;  %v1615_v19 = vadd.f32 %v10476_v5, %v1596_v9 }
 0x4db   :  { %v1608_v24 = vadd.f32 %v10476_v5, %v1589_v2  ;;  %v1631_v59 = vmax.f32 %v1615_v19, 0.0 }
 0x4dd   :  { %1534 = vrot.lane.b32.xlu1 %v1495_v51, %s9661_s29  ;;  %1524 = vrot.lane.b32.xlu0 %v1490_v23, %s9661_s29  ;;  %v1624_v16 = vmax.f32 %v1608_v24, 0.0  ;;  %v1610_v51 = vadd.f32 %v10476_v5, %v1591_v8  ;;  %v1598_v23 = vmul.f32 %v10464_v30, %v10231_v27 }
 0x4df   :  { %v1626_v61 = vmax.f32 %v1610_v51, 0.0  ;;  %v1617_v32 = vadd.f32 %v10476_v5, %v1598_v23 }
 0x4e1   :  { %1538 = vrot.lane.b32.xlu1 %v1497_v28, %s9661_s29  ;;  %1528 = vrot.lane.b32.xlu0 %v1492_v31, %s9661_s29  ;;  %v1595_v28 = vmul.f32 %v10464_v30, %v10222_v42  ;;  %v1633_v27 = vmax.f32 %v1617_v32, 0.0  ;;  %v1628_v31 = vmax.f32 %v1612_v46, 0.0  ;;  %v1621_v42 = vadd.f32 %v10476_v5, %v1602_v12 }
 0x4e3   :  { %v1614_v10 = vadd.f32 %v10476_v5, %v1595_v28  ;;  %v1637_v15 = vmax.f32 %v1621_v42, 0.0 }
 0x4e5   :  { %1542 = vrot.lane.b32.xlu1 %v1499_v7, %s9661_s29  ;;  %1532 = vrot.lane.b32.xlu0 %v1494_v63, %s9661_s29  ;;  %v1630_v33 = vmax.f32 %v1614_v10, 0.0  ;;  %v1616_v7 = vadd.f32 %v10476_v5, %v1597_v55  ;;  %v1599_v63 = vmul.f32 %v10464_v30, %v10246_v6 }
 0x4e7   :  { %v1632_v54 = vmax.f32 %v1616_v7, 0.0  ;;  %v1618_v18 = vadd.f32 %v10476_v5, %v1599_v63 }
 0x4e9   :  { %1546 = vrot.lane.b32.xlu1 %v1501_v37, %s9661_s29  ;;  %1536 = vrot.lane.b32.xlu0 %v1496_v26, %s9661_s29  ;;  %v1634_v36 = vmax.f32 %v1618_v18, 0.0  ;;  %v1636_v37 = vmax.f32 %v1620_v11, 0.0 }
 0x4ed   :  { %1550 = vrot.lane.b32.xlu1 %v1503_v57, %s9661_s29  ;;  %1540 = vrot.lane.b32.xlu0 %v1498_v39, %s9661_s29 }
 0x4f1   :  { %1544 = vrot.lane.b32.xlu0 %v1500_v49, %s9661_s29  ;;  %1656 = vrot.lane.b32.xlu1 %v1623_v29, %s9680_s0 }
 0x4f5   :  { %1548 = vrot.lane.b32.xlu0 %v1502_v62, %s9661_s29  ;;  %1660 = vrot.lane.b32.xlu1 %v1625_v60, %s9680_s0  ;;  %s9681_s29 = smov 112  }
 0x4f9   :  { %1664 = vrot.lane.b32.xlu1 %v1627_v53, %s9680_s0  ;;  %1654 = vrot.lane.b32.xlu0 %v1622_v14, %s9680_s0 }
 0x4fd   :  { %1668 = vrot.lane.b32.xlu1 %v1629_v3, %s9680_s0  ;;  %1658 = vrot.lane.b32.xlu0 %v1624_v16, %s9680_s0 }
 0x501   :  { %1672 = vrot.lane.b32.xlu1 %v1631_v59, %s9680_s0  ;;  %1662 = vrot.lane.b32.xlu0 %v1626_v61, %s9680_s0 }
 0x505   :  { %1676 = vrot.lane.b32.xlu1 %v1633_v27, %s9680_s0  ;;  %1666 = vrot.lane.b32.xlu0 %v1628_v31, %s9680_s0 }
 0x509   :  { %1680 = vrot.lane.b32.xlu1 %v1635_v52, %s9680_s0  ;;  %1670 = vrot.lane.b32.xlu0 %v1630_v33, %s9680_s0 }
 0x50d   :  { %1684 = vrot.lane.b32.xlu1 %v1637_v15, %s9680_s0  ;;  %1674 = vrot.lane.b32.xlu0 %v1632_v54, %s9680_s0 }
 0x511   :  { %1678 = vrot.lane.b32.xlu0 %v1634_v36, %s9680_s0 }
 0x515   :  { %1682 = vrot.lane.b32.xlu0 %v1636_v37, %s9680_s0 }
 0x51e   :  { %v10554_v6 = vpop.f32.mrb[4].mxu1 }
 0x51f   :  { %v10556_v26 = vpop.f32.mrb[5].mxu1 }
 0x522   :  { %v10558_v34 = vpop.f32.mrb[6].mxu1 }
 0x523   :  { %v10560_v38 = vpop.f32.mrb[7].mxu1 }
 0x526   :  { %v10562_v40 = vpop.f32.mrb[8].mxu1 }
 0x527   :  { %v1387_v4 = vpop.permute.xlu0 %1386  ;;  %v1393_v0 = vpop.permute.xlu1 %1392 }
 0x528   :  { %1434 = vst.msk [vmem:[#allocation3 + $0x80] sm:$0xff] %vm306_vm0, %v1387_v4  ;;  %1437 = vst.msk [vmem:[#allocation3 + $0x98] sm:$0xff] %vm306_vm0, %v1393_v0  ;;  %v10566_v30 = vpop.f32.mrb[9].mxu1 }
 0x52a   :  { %v10568_v5 = vpop.f32.mrb[10].mxu1 }
 0x52b   :  { %v1389_v57 = vpop.permute.xlu0 %1388  ;;  %v1397_v39 = vpop.permute.xlu1 %1396 }
 0x52c   :  { %1435 = vst.msk [vmem:[#allocation3 + $0x88] sm:$0xff] %vm306_vm0, %v1389_v57  ;;  %1439 = vst.msk [vmem:[#allocation3 + $0xa8] sm:$0xff] %vm306_vm0, %v1397_v39  ;;  %v10572_v41 = vpop.f32.mrb[11].mxu1 }
 0x52e   :  { %v10574_v20 = vpop.f32.mrb[12].mxu1 }
 0x52f   :  { %v1391_v45 = vpop.permute.xlu0 %1390  ;;  %v1401_v48 = vpop.permute.xlu1 %1400  ;;  %v1734_v49 = vld [vmem:[#allocation3 + $0x80] sm:$0xff]  ;;  %v1737_v53 = vld [vmem:[#allocation3 + $0x98] sm:$0xff] }
 0x530   :  { %1436 = vst.msk [vmem:[#allocation3 + $0x90] sm:$0xff] %vm306_vm0, %v1391_v45  ;;  %1441 = vst.msk [vmem:[#allocation3 + $0xb8] sm:$0xff] %vm306_vm0, %v1401_v48  ;;  %v10578_v29 = vpop.f32.mrb[13].mxu1  ;;  %8229 = vmatprep.mubr.msk.f32.mxu1 %vm306_vm0, %v1734_v49 }
 0x532   :  { %v10581_v43 = vpop.f32.mrb[14].mxu1 }
 0x533   :  { %v1395_v50 = vpop.permute.xlu0 %1394  ;;  %v1405_v47 = vpop.permute.xlu1 %1404  ;;  %v1735_v56 = vld [vmem:[#allocation3 + $0x88] sm:$0xff] }
 0x534   :  { %1438 = vst.msk [vmem:[#allocation3 + $0xa0] sm:$0xff] %vm306_vm0, %v1395_v50  ;;  %1443 = vst.msk [vmem:[#allocation3 + $0xc8] sm:$0xff] %vm306_vm0, %v1405_v47  ;;  %v10585_v62 = vpop.f32.mrb[15].mxu1  ;;  %8230 = vmatmul.mubr.msk.f32.gmra.mrb[20].mxu1 %vm306_vm0, %v1735_v56  ;;  %v1739_v3 = vld [vmem:[#allocation3 + $0xa8] sm:$0xff] }
 0x536   :  { %v10588_v60 = vpop.f32.mrb[16].mxu1 }
 0x537   :  { %v1399_v17 = vpop.permute.xlu0 %1398  ;;  %v1409_v1 = vpop.permute.xlu1 %1408  ;;  %v1736_v22 = vld [vmem:[#allocation3 + $0x90] sm:$0xff]  ;;  %v1741_v23 = vld [vmem:[#allocation3 + $0xb8] sm:$0xff] }
 0x538   :  { %1440 = vst.msk [vmem:[#allocation3 + $0xb0] sm:$0xff] %vm306_vm0, %v1399_v17  ;;  %1445 = vst.msk [vmem:[#allocation3 + $0xd8] sm:$0xff] %vm306_vm0, %v1409_v1  ;;  %v10592_v2 = vpop.f32.mrb[17].mxu1  ;;  %8232 = vmatprep.mubr.msk.f32.mxu1 %vm306_vm0, %v1736_v22 }
 0x539   :  { %8233 = vmatmul.mubr.msk.f32.gmra.mrb[22].mxu1 %vm306_vm0, %v1737_v53 }
 0x53a   :  { %v10596_v14 = vpop.f32.mrb[18].mxu1 }
 0x53b   :  { %v1403_v13 = vpop.permute.xlu0 %1402  ;;  %v1413_v24 = vpop.permute.xlu1 %1412  ;;  %v1738_v9 = vld [vmem:[#allocation3 + $0xa0] sm:$0xff]  ;;  %v1743_v32 = vld [vmem:[#allocation3 + $0xc8] sm:$0xff] }
 0x53c   :  { %1442 = vst.msk [vmem:[#allocation3 + $0xc0] sm:$0xff] %vm306_vm0, %v1403_v13  ;;  %1447 = vst.msk [vmem:[#allocation3 + $0xe8] sm:$0xff] %vm306_vm0, %v1413_v24  ;;  %v10600_v8 = vpop.f32.mrb[19].mxu1  ;;  %8235 = vmatprep.mubr.msk.f32.mxu1 %vm306_vm0, %v1738_v9 }
 0x53d   :  { %8236 = vmatmul.mubr.msk.f32.gmra.mrb[24].mxu1 %vm306_vm0, %v1739_v3 }
 0x53f   :  { %v1407_v16 = vpop.permute.xlu0 %1406  ;;  %v1417_v19 = vpop.permute.xlu1 %1416  ;;  %v1740_v51 = vld [vmem:[#allocation3 + $0xb0] sm:$0xff]  ;;  %v1745_v27 = vld [vmem:[#allocation3 + $0xd8] sm:$0xff] }
 0x540   :  { %1444 = vst.msk [vmem:[#allocation3 + $0xd0] sm:$0xff] %vm306_vm0, %v1407_v16  ;;  %1449 = vst.msk [vmem:[#allocation3 + $0xf8] sm:$0xff] %vm306_vm0, %v1417_v19  ;;  %8238 = vmatprep.mubr.msk.f32.mxu1 %vm306_vm0, %v1740_v51 }
 0x541   :  { %8239 = vmatmul.mubr.msk.f32.gmra.mrb[26].mxu1 %vm306_vm0, %v1741_v23 }
 0x543   :  { %v1411_v21 = vpop.permute.xlu0 %1410  ;;  %v1523_v59 = vpop.permute.xlu1 %1522  ;;  %v1742_v61 = vld [vmem:[#allocation3 + $0xc0] sm:$0xff]  ;;  %v1747_v12 = vld [vmem:[#allocation3 + $0xe8] sm:$0xff] }
 0x544   :  { %1446 = vst.msk [vmem:[#allocation3 + $0xe0] sm:$0xff] %vm306_vm0, %v1411_v21  ;;  %1569 = vst.msk [vmem:[#allocation3 + $0x108] sm:$0xff] %vm306_vm0, %v1523_v59  ;;  %8241 = vmatprep.mubr.msk.f32.mxu1 %vm306_vm0, %v1742_v61 }
 0x545   :  { %8242 = vmatmul.mubr.msk.f32.gmra.mrb[28].mxu1 %vm306_vm0, %v1743_v32 }
 0x547   :  { %v1415_v46 = vpop.permute.xlu0 %1414  ;;  %v1527_v25 = vpop.permute.xlu1 %1526  ;;  %v1744_v28 = vld [vmem:[#allocation3 + $0xd0] sm:$0xff]  ;;  %v1749_v42 = vld [vmem:[#allocation3 + $0xf8] sm:$0xff] }
 0x548   :  { %1448 = vst.msk [vmem:[#allocation3 + $0xf0] sm:$0xff] %vm306_vm0, %v1415_v46  ;;  %1571 = vst.msk [vmem:[#allocation3 + $0x118] sm:$0xff] %vm306_vm0, %v1527_v25  ;;  %8244 = vmatprep.mubr.msk.f32.mxu1 %vm306_vm0, %v1744_v28 }
 0x549   :  { %8245 = vmatmul.mubr.msk.f32.gmra.mrb[30].mxu1 %vm306_vm0, %v1745_v27 }
 0x54b   :  { %v1521_v31 = vpop.permute.xlu0 %1520  ;;  %v1531_v35 = vpop.permute.xlu1 %1530  ;;  %v1746_v10 = vld [vmem:[#allocation3 + $0xe0] sm:$0xff]  ;;  %v1751_v54 = vld [vmem:[#allocation3 + $0x108] sm:$0xff] }
 0x54c   :  { %1568 = vst.msk [vmem:[#allocation3 + $0x100] sm:$0xff] %vm306_vm0, %v1521_v31  ;;  %1573 = vst.msk [vmem:[#allocation3 + $0x128] sm:$0xff] %vm306_vm0, %v1531_v35  ;;  %8247 = vmatprep.mubr.msk.f32.mxu1 %vm306_vm0, %v1746_v10 }
 0x54d   :  { %8248 = vmatmul.mubr.msk.f32.gmra.mrb[32].mxu1 %vm306_vm0, %v1747_v12 }
 0x54f   :  { %v1525_v55 = vpop.permute.xlu0 %1524  ;;  %v1535_v52 = vpop.permute.xlu1 %1534  ;;  %v1748_v33 = vld [vmem:[#allocation3 + $0xf0] sm:$0xff]  ;;  %v1753_v11 = vld [vmem:[#allocation3 + $0x118] sm:$0xff] }
 0x550   :  { %1570 = vst.msk [vmem:[#allocation3 + $0x110] sm:$0xff] %vm306_vm0, %v1525_v55  ;;  %1575 = vst.msk [vmem:[#allocation3 + $0x138] sm:$0xff] %vm306_vm0, %v1535_v52  ;;  %8250 = vmatprep.mubr.msk.f32.mxu1 %vm306_vm0, %v1748_v33 }
 0x551   :  { %8251 = vmatmul.mubr.msk.f32.gmra.mrb[34].mxu1 %vm306_vm0, %v1749_v42 }
 0x553   :  { %v1529_v7 = vpop.permute.xlu0 %1528  ;;  %v1539_v63 = vpop.permute.xlu1 %1538  ;;  %v1750_v15 = vld [vmem:[#allocation3 + $0x100] sm:$0xff]  ;;  %v1755_v57 = vld [vmem:[#allocation3 + $0x128] sm:$0xff] }
 0x554   :  { %1572 = vst.msk [vmem:[#allocation3 + $0x120] sm:$0xff] %vm306_vm0, %v1529_v7  ;;  %1577 = vst.msk [vmem:[#allocation3 + $0x148] sm:$0xff] %vm306_vm0, %v1539_v63  ;;  %8253 = vmatprep.mubr.msk.f32.mxu1 %vm306_vm0, %v1750_v15 }
 0x555   :  { %8254 = vmatmul.mubr.msk.f32.gmra.mrb[36].mxu1 %vm306_vm0, %v1751_v54 }
 0x557   :  { %v1533_v18 = vpop.permute.xlu0 %1532  ;;  %v1543_v44 = vpop.permute.xlu1 %1542  ;;  %v1752_v36 = vld [vmem:[#allocation3 + $0x110] sm:$0xff]  ;;  %v1757_v49 = vld [vmem:[#allocation3 + $0x138] sm:$0xff] }
 0x558   :  { %1574 = vst.msk [vmem:[#allocation3 + $0x130] sm:$0xff] %vm306_vm0, %v1533_v18  ;;  %1579 = vst.msk [vmem:[#allocation3 + $0x158] sm:$0xff] %vm306_vm0, %v1543_v44  ;;  %8256 = vmatprep.mubr.msk.f32.mxu1 %vm306_vm0, %v1752_v36 }
 0x559   :  { %8257 = vmatmul.mubr.msk.f32.gmra.mrb[38].mxu1 %vm306_vm0, %v1753_v11 }
 0x55b   :  { %v1537_v37 = vpop.permute.xlu0 %1536  ;;  %v1547_v4 = vpop.permute.xlu1 %1546  ;;  %v1754_v0 = vld [vmem:[#allocation3 + $0x120] sm:$0xff]  ;;  %v1759_v17 = vld [vmem:[#allocation3 + $0x148] sm:$0xff] }
 0x55c   :  { %1576 = vst.msk [vmem:[#allocation3 + $0x140] sm:$0xff] %vm306_vm0, %v1537_v37  ;;  %1581 = vst.msk [vmem:[#allocation3 + $0x168] sm:$0xff] %vm306_vm0, %v1547_v4  ;;  %8259 = vmatprep.mubr.msk.f32.mxu1 %vm306_vm0, %v1754_v0 }
 0x55d   :  { %8260 = vmatmul.mubr.msk.f32.gmra.mrb[40].mxu1 %vm306_vm0, %v1755_v57  ;;  %v10682_v57 = vld [vmem:[#allocation21] ss:$0 sm:$0xff] }
 0x55f   :  { %v1541_v39 = vpop.permute.xlu0 %1540  ;;  %v1551_v45 = vpop.permute.xlu1 %1550  ;;  %v1756_v48 = vld [vmem:[#allocation3 + $0x130] sm:$0xff]  ;;  %v1761_v13 = vld [vmem:[#allocation3 + $0x158] sm:$0xff] }
 0x560   :  { %1578 = vst.msk [vmem:[#allocation3 + $0x150] sm:$0xff] %vm306_vm0, %v1541_v39  ;;  %1583 = vst.msk [vmem:[#allocation3 + $0x178] sm:$0xff] %vm306_vm0, %v1551_v45  ;;  %8262 = vmatprep.mubr.msk.f32.mxu1 %vm306_vm0, %v1756_v48  ;;  %v10686_v39 = vadd.f32 %v10554_v6, %v10682_v57  ;;  %v10690_v45 = vadd.f32 %v10682_v57, %v10556_v26  ;;  %v10694_v48 = vadd.f32 %v10682_v57, %v10560_v38 }
 0x561   :  { %8263 = vmatmul.mubr.msk.f32.gmra.mrb[42].mxu1 %vm306_vm0, %v1757_v49 }
 0x562   :  { %14548 = vst [vmem:[#allocation36_spill] sm:$0xff] %v10686_v39  ;;  %14549 = vst [vmem:[#allocation37_spill] sm:$0xff] %v10690_v45  ;;  %v2506_v49 = vmul.f32 %v10686_v39, %v10686_v39  ;;  %v2372_v6 = vsel %vm871_vm1, %v10690_v45, 0.0  ;;  %v2507_v26 = vmul.f32 %v10694_v48, %v10694_v48 }
 0x563   :  { %v1545_v50 = vpop.permute.xlu0 %1544  ;;  %v1657_v47 = vpop.permute.xlu1 %1656  ;;  %v1758_v56 = vld [vmem:[#allocation3 + $0x140] sm:$0xff]  ;;  %v1763_v16 = vld [vmem:[#allocation3 + $0x168] sm:$0xff]  ;;  %14550 = vst [vmem:[#allocation38_spill] sm:$0xff] %v10694_v48 }
 0x564   :  { %1580 = vst.msk [vmem:[#allocation3 + $0x160] sm:$0xff] %vm306_vm0, %v1545_v50  ;;  %1703 = vst.msk [vmem:[#allocation3 + $0x188] sm:$0xff] %vm306_vm0, %v1657_v47  ;;  %8265 = vmatprep.mubr.msk.f32.mxu1 %vm306_vm0, %v1758_v56  ;;  %v2505_v50 = vmul.f32 %v10690_v45, %v10690_v45  ;;  %v2373_v47 = vsel %vm871_vm1, %v10686_v39, 0.0  ;;  %v2570_v56 = vsel %vm871_vm1, %v2506_v49, 0.0 }
 0x565   :  { %8266 = vmatmul.mubr.msk.f32.gmra.mrb[44].mxu1 %vm306_vm0, %v1759_v17  ;;  %v10710_v17 = vadd.f32 %v10558_v34, %v10682_v57 }
 0x566   :  { %v2569_v38 = vsel %vm871_vm1, %v2505_v50, 0.0 }
 0x567   :  { %v1549_v1 = vpop.permute.xlu0 %1548  ;;  %v1661_v22 = vpop.permute.xlu1 %1660  ;;  %v1760_v53 = vld [vmem:[#allocation3 + $0x150] sm:$0xff]  ;;  %v1765_v21 = vld [vmem:[#allocation3 + $0x178] sm:$0xff]  ;;  %14551 = vst [vmem:[#allocation39_spill] sm:$0xff] %v10710_v17  ;;  %v2377_v34 = vsel %vm871_vm1, %v10710_v17, 0.0 }
 0x568   :  { %1582 = vst.msk [vmem:[#allocation3 + $0x170] sm:$0xff] %vm306_vm0, %v1549_v1  ;;  %1705 = vst.msk [vmem:[#allocation3 + $0x198] sm:$0xff] %vm306_vm0, %v1661_v22  ;;  %8268 = vmatprep.mubr.msk.f32.mxu1 %vm306_vm0, %v1760_v53  ;;  %v2375_v1 = vsel %vm871_vm1, %v10694_v48, 0.0  ;;  %v2374_v22 = vadd.f32 %v2373_v47, %v2372_v6  ;;  %v2572_v53 = vsel %vm871_vm1, %v2507_v26, 0.0  ;;  %v10782_v6 = vadd.f32 %v10581_v43, %v10682_v57 }
 0x569   :  { %8269 = vmatmul.mubr.msk.f32.gmra.mrb[46].mxu1 %vm306_vm0, %v1761_v13  ;;  %v10717_v13 = vadd.f32 %v10682_v57, %v10566_v30 }
 0x56a   :  { %14559 = vst [vmem:[#allocation47_spill] sm:$0xff] %v10782_v6 }
 0x56b   :  { %v1655_v24 = vpop.permute.xlu0 %1654  ;;  %v1665_v9 = vpop.permute.xlu1 %1664  ;;  %v1762_v3 = vld [vmem:[#allocation3 + $0x160] sm:$0xff]  ;;  %v1767_v46 = vld [vmem:[#allocation3 + $0x188] sm:$0xff]  ;;  %14552 = vst [vmem:[#allocation40_spill] sm:$0xff] %v10717_v13  ;;  %v2379_v30 = vsel %vm871_vm1, %v10717_v13, 0.0 }
 0x56c   :  { %1702 = vst.msk [vmem:[#allocation3 + $0x180] sm:$0xff] %vm306_vm0, %v1655_v24  ;;  %1707 = vst.msk [vmem:[#allocation3 + $0x1a8] sm:$0xff] %vm306_vm0, %v1665_v9  ;;  %8271 = vmatprep.mubr.msk.f32.mxu1 %vm306_vm0, %v1762_v3  ;;  %v2571_v24 = vadd.f32 %v2570_v56, %v2569_v38  ;;  %v2376_v9 = vadd.f32 %v2375_v1, %v2374_v22  ;;  %v2508_v3 = vmul.f32 %v10710_v17, %v10710_v17 }
 0x56d   :  { %8272 = vmatmul.mubr.msk.f32.gmra.mrb[48].mxu1 %vm306_vm0, %v1763_v16  ;;  %v10789_v38 = vadd.f32 %v10682_v57, %v10592_v2  ;;  %v2516_v22 = vmul.f32 %v10782_v6, %v10782_v6 }
 0x56e   :  { %v2573_v16 = vadd.f32 %v2572_v53, %v2571_v24  ;;  %v2393_v24 = vsel %vm871_vm1, %v10782_v6, 0.0 }
 0x56f   :  { %v1659_v19 = vpop.permute.xlu0 %1658  ;;  %v1669_v51 = vpop.permute.xlu1 %1668  ;;  %v1764_v23 = vld [vmem:[#allocation3 + $0x170] sm:$0xff]  ;;  %v1769_v31 = vld [vmem:[#allocation3 + $0x198] sm:$0xff]  ;;  %14560 = vst [vmem:[#allocation48_spill] sm:$0xff] %v10789_v38  ;;  %v2517_v43 = vmul.f32 %v10789_v38, %v10789_v38  ;;  %v2395_v2 = vsel %vm871_vm1, %v10789_v38, 0.0 }
 0x570   :  { %1704 = vst.msk [vmem:[#allocation3 + $0x190] sm:$0xff] %vm306_vm0, %v1659_v19  ;;  %1709 = vst.msk [vmem:[#allocation3 + $0x1b8] sm:$0xff] %vm306_vm0, %v1669_v51  ;;  %8274 = vmatprep.mubr.msk.f32.mxu1 %vm306_vm0, %v1764_v23  ;;  %v2509_v19 = vmul.f32 %v10717_v13, %v10717_v13  ;;  %v2378_v51 = vadd.f32 %v2377_v34, %v2376_v9  ;;  %v2574_v23 = vsel %vm871_vm1, %v2508_v3, 0.0  ;;  %v2590_v3 = vsel %vm871_vm1, %v2516_v22, 0.0 }
 0x571   :  { %8275 = vmatmul.mubr.msk.f32.gmra.mrb[50].mxu1 %vm306_vm0, %v1765_v21  ;;  %v10728_v21 = vadd.f32 %v10562_v40, %v10682_v57 }
 0x573   :  { %v1663_v59 = vpop.permute.xlu0 %1662  ;;  %v1673_v61 = vpop.permute.xlu1 %1672  ;;  %v1766_v32 = vld [vmem:[#allocation3 + $0x180] sm:$0xff]  ;;  %v1771_v55 = vld [vmem:[#allocation3 + $0x1a8] sm:$0xff]  ;;  %14553 = vst [vmem:[#allocation41_spill] sm:$0xff] %v10728_v21 }
 0x574   :  { %1706 = vst.msk [vmem:[#allocation3 + $0x1a0] sm:$0xff] %vm306_vm0, %v1663_v59  ;;  %1711 = vst.msk [vmem:[#allocation3 + $0x1c8] sm:$0xff] %vm306_vm0, %v1673_v61  ;;  %8277 = vmatprep.mubr.msk.f32.mxu1 %vm306_vm0, %v1766_v32  ;;  %v2575_v59 = vadd.f32 %v2574_v23, %v2573_v16  ;;  %v2576_v61 = vsel %vm871_vm1, %v2509_v19, 0.0  ;;  %v10735_v32 = vadd.f32 %v10682_v57, %v10572_v41  ;;  %v2592_v19 = vsel %vm871_vm1, %v2517_v43, 0.0 }
 0x575   :  { %8278 = vmatmul.mubr.msk.f32.gmra.mrb[52].mxu1 %vm306_vm0, %v1767_v46  ;;  %v2380_v46 = vadd.f32 %v2379_v30, %v2378_v51  ;;  %v10800_v16 = vadd.f32 %v10588_v60, %v10682_v57  ;;  %v10807_v51 = vadd.f32 %v10682_v57, %v10600_v8 }
 0x576   :  { %14554 = vst [vmem:[#allocation42_spill] sm:$0xff] %v10735_v32  ;;  %v2511_v40 = vmul.f32 %v10735_v32, %v10735_v32  ;;  %v2383_v41 = vsel %vm871_vm1, %v10735_v32, 0.0 }
 0x577   :  { %v1667_v25 = vpop.permute.xlu0 %1666  ;;  %v1677_v28 = vpop.permute.xlu1 %1676  ;;  %v1768_v27 = vld [vmem:[#allocation3 + $0x190] sm:$0xff]  ;;  %v1773_v7 = vld [vmem:[#allocation3 + $0x1b8] sm:$0xff]  ;;  %14561 = vst [vmem:[#allocation49_spill] sm:$0xff] %v10800_v16  ;;  %14562 = vst [vmem:[#allocation50_spill] sm:$0xff] %v10807_v51  ;;  %v2518_v30 = vmul.f32 %v10800_v16, %v10800_v16  ;;  %v2519_v60 = vmul.f32 %v10807_v51, %v10807_v51  ;;  %v2399_v8 = vsel %vm871_vm1, %v10807_v51, 0.0 }
 0x578   :  { %1708 = vst.msk [vmem:[#allocation3 + $0x1b0] sm:$0xff] %vm306_vm0, %v1667_v25  ;;  %1713 = vst.msk [vmem:[#allocation3 + $0x1d8] sm:$0xff] %vm306_vm0, %v1677_v28  ;;  %8280 = vmatprep.mubr.msk.f32.mxu1 %vm306_vm0, %v1768_v27  ;;  %v2510_v25 = vmul.f32 %v10728_v21, %v10728_v21  ;;  %v2577_v28 = vadd.f32 %v2576_v61, %v2575_v59  ;;  %v2381_v27 = vsel %vm871_vm1, %v10728_v21, 0.0  ;;  %v2397_v61 = vsel %vm871_vm1, %v10800_v16, 0.0 }
 0x579   :  { %8281 = vmatmul.mubr.msk.f32.gmra.mrb[54].mxu1 %vm306_vm0, %v1769_v31  ;;  %v2382_v31 = vadd.f32 %v2381_v27, %v2380_v46 }
 0x57b   :  { %v1671_v35 = vpop.permute.xlu0 %1670  ;;  %v1681_v10 = vpop.permute.xlu1 %1680  ;;  %v1770_v12 = vld [vmem:[#allocation3 + $0x1a0] sm:$0xff]  ;;  %v1775_v54 = vld [vmem:[#allocation3 + $0x1c8] sm:$0xff] }
 0x57c   :  { %1710 = vst.msk [vmem:[#allocation3 + $0x1c0] sm:$0xff] %vm306_vm0, %v1671_v35  ;;  %1715 = vst.msk [vmem:[#allocation3 + $0x1e8] sm:$0xff] %vm306_vm0, %v1681_v10  ;;  %8283 = vmatprep.mubr.msk.f32.mxu1 %vm306_vm0, %v1770_v12  ;;  %v2578_v35 = vsel %vm871_vm1, %v2510_v25, 0.0  ;;  %v10746_v10 = vadd.f32 %v10568_v5, %v10682_v57  ;;  %v2594_v25 = vsel %vm871_vm1, %v2518_v30, 0.0 }
 0x57d   :  { %8284 = vmatmul.mubr.msk.f32.gmra.mrb[56].mxu1 %vm306_vm0, %v1771_v55  ;;  %v2579_v12 = vadd.f32 %v2578_v35, %v2577_v28  ;;  %v2580_v55 = vsel %vm871_vm1, %v2511_v40, 0.0  ;;  %v10818_v28 = vadd.f32 %v10596_v14, %v10682_v57  ;;  %v2596_v40 = vsel %vm871_vm1, %v2519_v60, 0.0 }
 0x57e   :  { %14555 = vst [vmem:[#allocation43_spill] sm:$0xff] %v10746_v10 }
 0x57f   :  { %v1675_v52 = vpop.permute.xlu0 %1674  ;;  %v1685_v33 = vpop.permute.xlu1 %1684  ;;  %v1772_v42 = vld [vmem:[#allocation3 + $0x1b0] sm:$0xff]  ;;  %v1777_v36 = vld [vmem:[#allocation3 + $0x1d8] sm:$0xff]  ;;  %14563 = vst [vmem:[#allocation51_spill] sm:$0xff] %v10818_v28  ;;  %v2520_v35 = vmul.f32 %v10818_v28, %v10818_v28  ;;  %v2401_v14 = vsel %vm871_vm1, %v10818_v28, 0.0 }
 0x580   :  { %1712 = vst.msk [vmem:[#allocation3 + $0x1d0] sm:$0xff] %vm306_vm0, %v1675_v52  ;;  %1717 = vst.msk [vmem:[#allocation3 + $0x1f8] sm:$0xff] %vm306_vm0, %v1685_v33  ;;  %8286 = vmatprep.mubr.msk.f32.mxu1 %vm306_vm0, %v1772_v42  ;;  %v10753_v52 = vadd.f32 %v10682_v57, %v10578_v29  ;;  %v2384_v33 = vadd.f32 %v2383_v41, %v2382_v31  ;;  %v2512_v42 = vmul.f32 %v10746_v10, %v10746_v10 }
 0x581   :  { %8287 = vmatmul.mubr.msk.f32.gmra.mrb[58].mxu1 %vm306_vm0, %v1773_v7  ;;  %v2581_v7 = vadd.f32 %v2580_v55, %v2579_v12 }
 0x582   :  { %14556 = vst [vmem:[#allocation44_spill] sm:$0xff] %v10753_v52  ;;  %v2513_v5 = vmul.f32 %v10753_v52, %v10753_v52  ;;  %v2387_v29 = vsel %vm871_vm1, %v10753_v52, 0.0 }
 0x583   :  { %v1679_v63 = vpop.permute.xlu0 %1678  ;;  %v1774_v15 = vld [vmem:[#allocation3 + $0x1c0] sm:$0xff]  ;;  %v1779_v37 = vld [vmem:[#allocation3 + $0x1e8] sm:$0xff] }
 0x584   :  { %1714 = vst.msk [vmem:[#allocation3 + $0x1e0] sm:$0xff] %vm306_vm0, %v1679_v63  ;;  %8289 = vmatprep.mubr.msk.f32.mxu1 %vm306_vm0, %v1774_v15  ;;  %v2385_v63 = vsel %vm871_vm1, %v10746_v10, 0.0 }
 0x585   :  { %8290 = vmatmul.mubr.msk.f32.gmra.mrb[60].mxu1 %vm306_vm0, %v1775_v54  ;;  %v2386_v15 = vadd.f32 %v2385_v63, %v2384_v33  ;;  %v2582_v54 = vsel %vm871_vm1, %v2512_v42, 0.0  ;;  %v2598_v63 = vsel %vm871_vm1, %v2520_v35, 0.0 }
 0x587   :  { %v1683_v18 = vpop.permute.xlu0 %1682  ;;  %v1776_v44 = vld [vmem:[#allocation3 + $0x1d0] sm:$0xff]  ;;  %v1781_v0 = vld [vmem:[#allocation3 + $0x1f8] sm:$0xff] }
 0x588   :  { %1716 = vst.msk [vmem:[#allocation3 + $0x1f0] sm:$0xff] %vm306_vm0, %v1683_v18  ;;  %8292 = vmatprep.mubr.msk.f32.mxu1 %vm306_vm0, %v1776_v44  ;;  %v10764_v18 = vadd.f32 %v10574_v20, %v10682_v57  ;;  %v2583_v44 = vadd.f32 %v2582_v54, %v2581_v7 }
 0x589   :  { %8293 = vmatmul.mubr.msk.f32.gmra.mrb[62].mxu1 %vm306_vm0, %v1777_v36  ;;  %v2584_v36 = vsel %vm871_vm1, %v2513_v5, 0.0 }
 0x58a   :  { %14557 = vst [vmem:[#allocation45_spill] sm:$0xff] %v10764_v18  ;;  %v2389_v49 = vsel %vm871_vm1, %v10764_v18, 0.0 }
 0x58b   :  { %v1778_v11 = vld [vmem:[#allocation3 + $0x1e0] sm:$0xff] }
 0x58c   :  { %8295 = vmatprep.mubr.msk.f32.mxu1 %vm306_vm0, %v1778_v11  ;;  %v10771_v11 = vadd.f32 %v10682_v57, %v10585_v62 }
 0x58d   :  { %8296 = vmatmul.mubr.msk.f32.gmra.mrb[64].mxu1 %vm306_vm0, %v1779_v37  ;;  %v2388_v37 = vadd.f32 %v2387_v29, %v2386_v15 }
 0x58e   :  { %14558 = vst [vmem:[#allocation46_spill] sm:$0xff] %v10771_v11  ;;  %v2515_v20 = vmul.f32 %v10771_v11, %v10771_v11  ;;  %v2391_v62 = vsel %vm871_vm1, %v10771_v11, 0.0 }
 0x58f   :  { %v1780_v4 = vld [vmem:[#allocation3 + $0x1f0] sm:$0xff]  ;;  %v2390_v50 = vadd.f32 %v2389_v49, %v2388_v37 }
 0x590   :  { %8298 = vmatprep.mubr.msk.f32.mxu1 %vm306_vm0, %v1780_v4  ;;  %v2514_v4 = vmul.f32 %v10764_v18, %v10764_v18  ;;  %v2588_v56 = vsel %vm871_vm1, %v2515_v20, 0.0 }
 0x591   :  { %8299 = vmatmul.mubr.msk.f32.gmra.mrb[66].mxu1 %vm306_vm0, %v1781_v0  ;;  %v2585_v0 = vadd.f32 %v2584_v36, %v2583_v44  ;;  %v2392_v1 = vadd.f32 %v2391_v62, %v2390_v50 }
 0x592   :  { %v2586_v47 = vsel %vm871_vm1, %v2514_v4, 0.0 }
 0x593   :  { %v2587_v26 = vadd.f32 %v2586_v47, %v2585_v0  ;;  %v2394_v9 = vadd.f32 %v2393_v24, %v2392_v1 }
 0x595   :  { %v2589_v53 = vadd.f32 %v2588_v56, %v2587_v26  ;;  %v2396_v23 = vadd.f32 %v2395_v2, %v2394_v9 }
 0x597   :  { %v2591_v34 = vadd.f32 %v2590_v3, %v2589_v53  ;;  %v2398_v46 = vadd.f32 %v2397_v61, %v2396_v23 }
 0x599   :  { %v2593_v59 = vadd.f32 %v2592_v19, %v2591_v34  ;;  %v2400_v31 = vadd.f32 %v2399_v8, %v2398_v46 }
 0x59b   :  { %v2595_v27 = vadd.f32 %v2594_v25, %v2593_v59  ;;  %v2402_v7 = vadd.f32 %v2401_v14, %v2400_v31 }
 0x59d   :  { %v2597_v12 = vadd.f32 %v2596_v40, %v2595_v27 }
 0x59f   :  { %v2599_v44 = vadd.f32 %v2598_v63, %v2597_v12 }
 0x607   :  { %v8231_v41 = vpop.f32.mrb[20].mxu1 }
 0x608   :  { %v10826_v55 = vadd.f32 %v8231_v41, %v10682_v57  ;;  %v2131_v33 = vpop.f32.mrb[21].mxu1 }
 0x609   :  { %v10831_v42 = vadd.f32 %v10682_v57, %v2131_v33 }
 0x60a   :  { %14564 = vst [vmem:[#allocation52_spill] sm:$0xff] %v10826_v55  ;;  %v2522_v5 = vmul.f32 %v10826_v55, %v10826_v55  ;;  %v2405_v37 = vsel %vm871_vm1, %v10826_v55, 0.0 }
 0x60b   :  { %14565 = vst [vmem:[#allocation53_spill] sm:$0xff] %v10831_v42  ;;  %v2403_v15 = vsel %vm871_vm1, %v10831_v42, 0.0  ;;  %v2521_v54 = vmul.f32 %v10831_v42, %v10831_v42 }
 0x60c   :  { %v2404_v29 = vadd.f32 %v2403_v15, %v2402_v7  ;;  %v8234_v36 = vpop.f32.mrb[22].mxu1  ;;  %v2602_v62 = vsel %vm871_vm1, %v2522_v5, 0.0 }
 0x60d   :  { %v2600_v4 = vsel %vm871_vm1, %v2521_v54, 0.0  ;;  %v10844_v0 = vadd.f32 %v8234_v36, %v10682_v57  ;;  %v2141_v49 = vpop.f32.mrb[23].mxu1 }
 0x60e   :  { %v2601_v20 = vadd.f32 %v2600_v4, %v2599_v44  ;;  %v10847_v50 = vadd.f32 %v10682_v57, %v2141_v49  ;;  %v2406_v47 = vadd.f32 %v2405_v37, %v2404_v29 }
 0x60f   :  { %14566 = vst [vmem:[#allocation54_spill] sm:$0xff] %v10844_v0  ;;  %v2524_v26 = vmul.f32 %v10844_v0, %v10844_v0  ;;  %v2409_v3 = vsel %vm871_vm1, %v10844_v0, 0.0 }
 0x610   :  { %14567 = vst [vmem:[#allocation55_spill] sm:$0xff] %v10847_v50  ;;  %v2407_v56 = vsel %vm871_vm1, %v10847_v50, 0.0  ;;  %v2523_v1 = vmul.f32 %v10847_v50, %v10847_v50  ;;  %v2603_v22 = vadd.f32 %v2602_v62, %v2601_v20  ;;  %v8237_v53 = vpop.f32.mrb[24].mxu1 }
 0x611   :  { %v2408_v24 = vadd.f32 %v2407_v56, %v2406_v47  ;;  %v10857_v43 = vadd.f32 %v8237_v53, %v10682_v57  ;;  %v2151_v9 = vpop.f32.mrb[25].mxu1  ;;  %v2606_v30 = vsel %vm871_vm1, %v2524_v26, 0.0 }
 0x612   :  { %v2604_v2 = vsel %vm871_vm1, %v2523_v1, 0.0  ;;  %v10863_v34 = vadd.f32 %v10682_v57, %v2151_v9 }
 0x613   :  { %14568 = vst [vmem:[#allocation56_spill] sm:$0xff] %v10857_v43  ;;  %v2605_v19 = vadd.f32 %v2604_v2, %v2603_v22  ;;  %v2410_v23 = vadd.f32 %v2409_v3, %v2408_v24  ;;  %v2526_v59 = vmul.f32 %v10857_v43, %v10857_v43  ;;  %v2413_v31 = vsel %vm871_vm1, %v10857_v43, 0.0 }
 0x614   :  { %14569 = vst [vmem:[#allocation57_spill] sm:$0xff] %v10863_v34  ;;  %v2411_v61 = vsel %vm871_vm1, %v10863_v34, 0.0  ;;  %v2525_v60 = vmul.f32 %v10863_v34, %v10863_v34  ;;  %v8240_v46 = vpop.f32.mrb[26].mxu1 }
 0x615   :  { %v2412_v25 = vadd.f32 %v2411_v61, %v2410_v23  ;;  %v2607_v8 = vadd.f32 %v2606_v30, %v2605_v19  ;;  %v10873_v27 = vadd.f32 %v8240_v46, %v10682_v57  ;;  %v2161_v40 = vpop.f32.mrb[27].mxu1  ;;  %v2610_v14 = vsel %vm871_vm1, %v2526_v59, 0.0 }
 0x616   :  { %v2608_v35 = vsel %vm871_vm1, %v2525_v60, 0.0  ;;  %v10879_v41 = vadd.f32 %v10682_v57, %v2161_v40 }
 0x617   :  { %14570 = vst [vmem:[#allocation58_spill] sm:$0xff] %v10873_v27  ;;  %v2609_v12 = vadd.f32 %v2608_v35, %v2607_v8  ;;  %v2414_v33 = vadd.f32 %v2413_v31, %v2412_v25  ;;  %v2528_v7 = vmul.f32 %v10873_v27, %v10873_v27  ;;  %v2417_v37 = vsel %vm871_vm1, %v10873_v27, 0.0 }
 0x618   :  { %14571 = vst [vmem:[#allocation59_spill] sm:$0xff] %v10879_v41  ;;  %v2415_v63 = vsel %vm871_vm1, %v10879_v41, 0.0  ;;  %v2527_v5 = vmul.f32 %v10879_v41, %v10879_v41  ;;  %v8243_v15 = vpop.f32.mrb[28].mxu1 }
 0x619   :  { %v2416_v54 = vadd.f32 %v2415_v63, %v2414_v33  ;;  %v2611_v29 = vadd.f32 %v2610_v14, %v2609_v12  ;;  %v10889_v44 = vadd.f32 %v8243_v15, %v10682_v57  ;;  %v2171_v36 = vpop.f32.mrb[29].mxu1  ;;  %v2614_v62 = vsel %vm871_vm1, %v2528_v7, 0.0 }
 0x61a   :  { %v2612_v4 = vsel %vm871_vm1, %v2527_v5, 0.0  ;;  %v10895_v49 = vadd.f32 %v10682_v57, %v2171_v36 }
 0x61b   :  { %14572 = vst [vmem:[#allocation60_spill] sm:$0xff] %v10889_v44  ;;  %v2613_v20 = vadd.f32 %v2612_v4, %v2611_v29  ;;  %v2418_v47 = vadd.f32 %v2417_v37, %v2416_v54  ;;  %v2530_v26 = vmul.f32 %v10889_v44, %v10889_v44  ;;  %v2421_v2 = vsel %vm871_vm1, %v10889_v44, 0.0 }
 0x61c   :  { %14573 = vst [vmem:[#allocation61_spill] sm:$0xff] %v10895_v49  ;;  %v2419_v56 = vsel %vm871_vm1, %v10895_v49, 0.0  ;;  %v2529_v1 = vmul.f32 %v10895_v49, %v10895_v49  ;;  %v8246_v22 = vpop.f32.mrb[30].mxu1 }
 0x61d   :  { %v2420_v53 = vadd.f32 %v2419_v56, %v2418_v47  ;;  %v2615_v24 = vadd.f32 %v2614_v62, %v2613_v20  ;;  %v10905_v9 = vadd.f32 %v8246_v22, %v10682_v57  ;;  %v2181_v3 = vpop.f32.mrb[31].mxu1  ;;  %v2618_v61 = vsel %vm871_vm1, %v2530_v26, 0.0 }
 0x61e   :  { %v2616_v19 = vsel %vm871_vm1, %v2529_v1, 0.0  ;;  %v10911_v23 = vadd.f32 %v10682_v57, %v2181_v3 }
 0x61f   :  { %14574 = vst [vmem:[#allocation62_spill] sm:$0xff] %v10905_v9  ;;  %v2617_v30 = vadd.f32 %v2616_v19, %v2615_v24  ;;  %v2422_v59 = vadd.f32 %v2421_v2, %v2420_v53  ;;  %v2532_v60 = vmul.f32 %v10905_v9, %v10905_v9  ;;  %v2425_v33 = vsel %vm871_vm1, %v10905_v9, 0.0 }
 0x620   :  { %14575 = vst [vmem:[#allocation63_spill] sm:$0xff] %v10911_v23  ;;  %v2423_v46 = vsel %vm871_vm1, %v10911_v23, 0.0  ;;  %v2531_v25 = vmul.f32 %v10911_v23, %v10911_v23  ;;  %v8249_v8 = vpop.f32.mrb[32].mxu1 }
 0x621   :  { %v2424_v40 = vadd.f32 %v2423_v46, %v2422_v59  ;;  %v2619_v31 = vadd.f32 %v2618_v61, %v2617_v30  ;;  %v10921_v35 = vadd.f32 %v8249_v8, %v10682_v57  ;;  %v2191_v12 = vpop.f32.mrb[33].mxu1  ;;  %v2622_v15 = vsel %vm871_vm1, %v2532_v60, 0.0 }
 0x622   :  { %v2620_v14 = vsel %vm871_vm1, %v2531_v25, 0.0  ;;  %v10927_v7 = vadd.f32 %v10682_v57, %v2191_v12 }
 0x623   :  { %14576 = vst [vmem:[#allocation64_spill] sm:$0xff] %v10921_v35  ;;  %v2621_v63 = vadd.f32 %v2620_v14, %v2619_v31  ;;  %v2426_v5 = vadd.f32 %v2425_v33, %v2424_v40  ;;  %v2534_v54 = vmul.f32 %v10921_v35, %v10921_v35  ;;  %v2429_v26 = vsel %vm871_vm1, %v10921_v35, 0.0 }
 0x624   :  { %14577 = vst [vmem:[#allocation65_spill] sm:$0xff] %v10927_v7  ;;  %v2427_v29 = vsel %vm871_vm1, %v10927_v7, 0.0  ;;  %v2533_v36 = vmul.f32 %v10927_v7, %v10927_v7  ;;  %v8252_v37 = vpop.f32.mrb[34].mxu1 }
 0x625   :  { %v2428_v4 = vadd.f32 %v2427_v29, %v2426_v5  ;;  %v2623_v20 = vadd.f32 %v2622_v15, %v2621_v63  ;;  %v10937_v47 = vadd.f32 %v8252_v37, %v10682_v57  ;;  %v2201_v62 = vpop.f32.mrb[35].mxu1  ;;  %v2626_v24 = vsel %vm871_vm1, %v2534_v54, 0.0 }
 0x626   :  { %v2624_v56 = vsel %vm871_vm1, %v2533_v36, 0.0  ;;  %v10943_v1 = vadd.f32 %v10682_v57, %v2201_v62 }
 0x627   :  { %14578 = vst [vmem:[#allocation66_spill] sm:$0xff] %v10937_v47  ;;  %v2625_v22 = vadd.f32 %v2624_v56, %v2623_v20  ;;  %v2430_v53 = vadd.f32 %v2429_v26, %v2428_v4  ;;  %v2536_v3 = vmul.f32 %v10937_v47, %v10937_v47  ;;  %v2433_v25 = vsel %vm871_vm1, %v10937_v47, 0.0 }
 0x628   :  { %14579 = vst [vmem:[#allocation67_spill] sm:$0xff] %v10943_v1  ;;  %v2431_v2 = vsel %vm871_vm1, %v10943_v1, 0.0  ;;  %v2535_v19 = vmul.f32 %v10943_v1, %v10943_v1  ;;  %v8255_v30 = vpop.f32.mrb[36].mxu1 }
 0x629   :  { %v2432_v59 = vadd.f32 %v2431_v2, %v2430_v53  ;;  %v2627_v61 = vadd.f32 %v2626_v24, %v2625_v22  ;;  %v10953_v60 = vadd.f32 %v8255_v30, %v10682_v57  ;;  %v2211_v46 = vpop.f32.mrb[37].mxu1  ;;  %v2630_v33 = vsel %vm871_vm1, %v2536_v3, 0.0 }
 0x62a   :  { %v2628_v8 = vsel %vm871_vm1, %v2535_v19, 0.0  ;;  %v10959_v40 = vadd.f32 %v10682_v57, %v2211_v46 }
 0x62b   :  { %14580 = vst [vmem:[#allocation68_spill] sm:$0xff] %v10953_v60  ;;  %v2629_v31 = vadd.f32 %v2628_v8, %v2627_v61  ;;  %v2434_v12 = vadd.f32 %v2433_v25, %v2432_v59  ;;  %v2538_v14 = vmul.f32 %v10953_v60, %v10953_v60  ;;  %v2437_v4 = vsel %vm871_vm1, %v10953_v60, 0.0 }
 0x62c   :  { %14581 = vst [vmem:[#allocation69_spill] sm:$0xff] %v10959_v40  ;;  %v2435_v63 = vsel %vm871_vm1, %v10959_v40, 0.0  ;;  %v2537_v5 = vmul.f32 %v10959_v40, %v10959_v40  ;;  %v8258_v15 = vpop.f32.mrb[38].mxu1 }
 0x62d   :  { %v2436_v54 = vadd.f32 %v2435_v63, %v2434_v12  ;;  %v2631_v29 = vadd.f32 %v2630_v33, %v2629_v31  ;;  %v10969_v36 = vadd.f32 %v8258_v15, %v10682_v57  ;;  %v2221_v37 = vpop.f32.mrb[39].mxu1  ;;  %v2634_v22 = vsel %vm871_vm1, %v2538_v14, 0.0 }
 0x62e   :  { %v2632_v20 = vsel %vm871_vm1, %v2537_v5, 0.0  ;;  %v10975_v62 = vadd.f32 %v10682_v57, %v2221_v37 }
 0x62f   :  { %14582 = vst [vmem:[#allocation70_spill] sm:$0xff] %v10969_v36  ;;  %v2633_v26 = vadd.f32 %v2632_v20, %v2631_v29  ;;  %v2438_v56 = vadd.f32 %v2437_v4, %v2436_v54  ;;  %v2540_v53 = vmul.f32 %v10969_v36, %v10969_v36  ;;  %v2441_v46 = vsel %vm871_vm1, %v10969_v36, 0.0 }
 0x630   :  { %14583 = vst [vmem:[#allocation71_spill] sm:$0xff] %v10975_v62  ;;  %v2439_v24 = vsel %vm871_vm1, %v10975_v62, 0.0  ;;  %v2539_v3 = vmul.f32 %v10975_v62, %v10975_v62  ;;  %v8261_v2 = vpop.f32.mrb[40].mxu1 }
 0x631   :  { %v2440_v19 = vadd.f32 %v2439_v24, %v2438_v56  ;;  %v2635_v30 = vadd.f32 %v2634_v22, %v2633_v26  ;;  %v10985_v59 = vadd.f32 %v8261_v2, %v10682_v57  ;;  %v2231_v61 = vpop.f32.mrb[41].mxu1  ;;  %v2638_v33 = vsel %vm871_vm1, %v2540_v53, 0.0 }
 0x632   :  { %v2636_v25 = vsel %vm871_vm1, %v2539_v3, 0.0  ;;  %v10991_v8 = vadd.f32 %v10682_v57, %v2231_v61 }
 0x633   :  { %14584 = vst [vmem:[#allocation72_spill] sm:$0xff] %v10985_v59  ;;  %v2637_v31 = vadd.f32 %v2636_v25, %v2635_v30  ;;  %v2442_v12 = vadd.f32 %v2441_v46, %v2440_v19  ;;  %v2542_v14 = vmul.f32 %v10985_v59, %v10985_v59  ;;  %v2445_v20 = vsel %vm871_vm1, %v10985_v59, 0.0 }
 0x634   :  { %14585 = vst [vmem:[#allocation73_spill] sm:$0xff] %v10991_v8  ;;  %v2443_v63 = vsel %vm871_vm1, %v10991_v8, 0.0  ;;  %v2541_v5 = vmul.f32 %v10991_v8, %v10991_v8  ;;  %v8264_v15 = vpop.f32.mrb[42].mxu1 }
 0x635   :  { %v2444_v54 = vadd.f32 %v2443_v63, %v2442_v12  ;;  %v2639_v29 = vadd.f32 %v2638_v33, %v2637_v31  ;;  %v11001_v37 = vadd.f32 %v8264_v15, %v10682_v57  ;;  %v2241_v4 = vpop.f32.mrb[43].mxu1  ;;  %v2642_v24 = vsel %vm871_vm1, %v2542_v14, 0.0 }
 0x636   :  { %v2640_v26 = vsel %vm871_vm1, %v2541_v5, 0.0  ;;  %v11007_v56 = vadd.f32 %v10682_v57, %v2241_v4 }
 0x637   :  { %14586 = vst [vmem:[#allocation74_spill] sm:$0xff] %v11001_v37  ;;  %v2641_v22 = vadd.f32 %v2640_v26, %v2639_v29  ;;  %v2446_v53 = vadd.f32 %v2445_v20, %v2444_v54  ;;  %v2544_v3 = vmul.f32 %v11001_v37, %v11001_v37  ;;  %v2449_v12 = vsel %vm871_vm1, %v11001_v37, 0.0 }
 0x638   :  { %14587 = vst [vmem:[#allocation75_spill] sm:$0xff] %v11007_v56  ;;  %v2447_v2 = vsel %vm871_vm1, %v11007_v56, 0.0  ;;  %v2543_v19 = vmul.f32 %v11007_v56, %v11007_v56  ;;  %v8267_v30 = vpop.f32.mrb[44].mxu1 }
 0x639   :  { %v2448_v61 = vadd.f32 %v2447_v2, %v2446_v53  ;;  %v2643_v46 = vadd.f32 %v2642_v24, %v2641_v22  ;;  %v11017_v25 = vadd.f32 %v8267_v30, %v10682_v57  ;;  %v2251_v31 = vpop.f32.mrb[45].mxu1  ;;  %v2646_v15 = vsel %vm871_vm1, %v2544_v3, 0.0 }
 0x63a   :  { %v2644_v33 = vsel %vm871_vm1, %v2543_v19, 0.0  ;;  %v11023_v14 = vadd.f32 %v10682_v57, %v2251_v31 }
 0x63b   :  { %14588 = vst [vmem:[#allocation76_spill] sm:$0xff] %v11017_v25  ;;  %v2645_v63 = vadd.f32 %v2644_v33, %v2643_v46  ;;  %v2450_v5 = vadd.f32 %v2449_v12, %v2448_v61  ;;  %v2546_v54 = vmul.f32 %v11017_v25, %v11017_v25  ;;  %v2453_v2 = vsel %vm871_vm1, %v11017_v25, 0.0 }
 0x63c   :  { %14589 = vst [vmem:[#allocation77_spill] sm:$0xff] %v11023_v14  ;;  %v2451_v29 = vsel %vm871_vm1, %v11023_v14, 0.0  ;;  %v2545_v4 = vmul.f32 %v11023_v14, %v11023_v14  ;;  %v8270_v20 = vpop.f32.mrb[46].mxu1 }
 0x63d   :  { %v2452_v26 = vadd.f32 %v2451_v29, %v2450_v5  ;;  %v2647_v22 = vadd.f32 %v2646_v15, %v2645_v63  ;;  %v11033_v53 = vadd.f32 %v8270_v20, %v10682_v57  ;;  %v2261_v24 = vpop.f32.mrb[47].mxu1  ;;  %v2650_v46 = vsel %vm871_vm1, %v2546_v54, 0.0 }
 0x63e   :  { %v2648_v3 = vsel %vm871_vm1, %v2545_v4, 0.0  ;;  %v11039_v19 = vadd.f32 %v10682_v57, %v2261_v24 }
 0x63f   :  { %14590 = vst [vmem:[#allocation78_spill] sm:$0xff] %v11033_v53  ;;  %v2649_v30 = vadd.f32 %v2648_v3, %v2647_v22  ;;  %v2454_v61 = vadd.f32 %v2453_v2, %v2452_v26  ;;  %v2548_v31 = vmul.f32 %v11033_v53, %v11033_v53  ;;  %v2457_v20 = vsel %vm871_vm1, %v11033_v53, 0.0 }
 0x640   :  { %14591 = vst [vmem:[#allocation79_spill] sm:$0xff] %v11039_v19  ;;  %v2455_v12 = vsel %vm871_vm1, %v11039_v19, 0.0  ;;  %v2547_v33 = vmul.f32 %v11039_v19, %v11039_v19  ;;  %v8273_v63 = vpop.f32.mrb[48].mxu1 }
 0x641   :  { %v2456_v5 = vadd.f32 %v2455_v12, %v2454_v61  ;;  %v2651_v15 = vadd.f32 %v2650_v46, %v2649_v30  ;;  %v11049_v29 = vadd.f32 %v8273_v63, %v10682_v57  ;;  %v2271_v4 = vpop.f32.mrb[49].mxu1  ;;  %v2654_v2 = vsel %vm871_vm1, %v2548_v31, 0.0 }
 0x642   :  { %v2652_v54 = vsel %vm871_vm1, %v2547_v33, 0.0  ;;  %v11055_v26 = vadd.f32 %v10682_v57, %v2271_v4 }
 0x643   :  { %14592 = vst [vmem:[#allocation80_spill] sm:$0xff] %v11049_v29  ;;  %v2653_v22 = vadd.f32 %v2652_v54, %v2651_v15  ;;  %v2458_v24 = vadd.f32 %v2457_v20, %v2456_v5  ;;  %v2550_v3 = vmul.f32 %v11049_v29, %v11049_v29  ;;  %v2461_v5 = vsel %vm871_vm1, %v11049_v29, 0.0 }
 0x644   :  { %14593 = vst [vmem:[#allocation81_spill] sm:$0xff] %v11055_v26  ;;  %v2459_v30 = vsel %vm871_vm1, %v11055_v26, 0.0  ;;  %v2549_v61 = vmul.f32 %v11055_v26, %v11055_v26  ;;  %v8276_v46 = vpop.f32.mrb[50].mxu1 }
 0x645   :  { %v2460_v12 = vadd.f32 %v2459_v30, %v2458_v24  ;;  %v2655_v63 = vadd.f32 %v2654_v2, %v2653_v22  ;;  %v11065_v33 = vadd.f32 %v8276_v46, %v10682_v57  ;;  %v2281_v4 = vpop.f32.mrb[51].mxu1  ;;  %v2658_v53 = vsel %vm871_vm1, %v2550_v3, 0.0 }
 0x646   :  { %v2656_v31 = vsel %vm871_vm1, %v2549_v61, 0.0  ;;  %v11071_v15 = vadd.f32 %v10682_v57, %v2281_v4 }
 0x647   :  { %14594 = vst [vmem:[#allocation82_spill] sm:$0xff] %v11065_v33  ;;  %v2657_v20 = vadd.f32 %v2656_v31, %v2655_v63  ;;  %v2462_v54 = vadd.f32 %v2461_v5, %v2460_v12  ;;  %v2552_v24 = vmul.f32 %v11065_v33, %v11065_v33  ;;  %v2465_v12 = vsel %vm871_vm1, %v11065_v33, 0.0 }
 0x648   :  { %14595 = vst [vmem:[#allocation83_spill] sm:$0xff] %v11071_v15  ;;  %v2463_v22 = vsel %vm871_vm1, %v11071_v15, 0.0  ;;  %v2551_v2 = vmul.f32 %v11071_v15, %v11071_v15  ;;  %v8279_v30 = vpop.f32.mrb[52].mxu1 }
 0x649   :  { %v2464_v46 = vadd.f32 %v2463_v22, %v2462_v54  ;;  %v2659_v29 = vadd.f32 %v2658_v53, %v2657_v20  ;;  %v11081_v61 = vadd.f32 %v8279_v30, %v10682_v57  ;;  %v2291_v4 = vpop.f32.mrb[53].mxu1  ;;  %v2662_v26 = vsel %vm871_vm1, %v2552_v24, 0.0 }
 0x64a   :  { %v2660_v3 = vsel %vm871_vm1, %v2551_v2, 0.0  ;;  %v11087_v63 = vadd.f32 %v10682_v57, %v2291_v4 }
 0x64b   :  { %14596 = vst [vmem:[#allocation84_spill] sm:$0xff] %v11081_v61  ;;  %v2661_v5 = vadd.f32 %v2660_v3, %v2659_v29  ;;  %v2466_v31 = vadd.f32 %v2465_v12, %v2464_v46  ;;  %v2554_v54 = vmul.f32 %v11081_v61, %v11081_v61  ;;  %v2469_v29 = vsel %vm871_vm1, %v11081_v61, 0.0 }
 0x64c   :  { %14597 = vst [vmem:[#allocation85_spill] sm:$0xff] %v11087_v63  ;;  %v2467_v53 = vsel %vm871_vm1, %v11087_v63, 0.0  ;;  %v2553_v20 = vmul.f32 %v11087_v63, %v11087_v63  ;;  %v8282_v22 = vpop.f32.mrb[54].mxu1 }
 0x64d   :  { %v2468_v30 = vadd.f32 %v2467_v53, %v2466_v31  ;;  %v2663_v33 = vadd.f32 %v2662_v26, %v2661_v5  ;;  %v11097_v2 = vadd.f32 %v8282_v22, %v10682_v57  ;;  %v2301_v4 = vpop.f32.mrb[55].mxu1  ;;  %v2666_v15 = vsel %vm871_vm1, %v2554_v54, 0.0 }
 0x64e   :  { %v2664_v24 = vsel %vm871_vm1, %v2553_v20, 0.0  ;;  %v11103_v46 = vadd.f32 %v10682_v57, %v2301_v4 }
 0x64f   :  { %14598 = vst [vmem:[#allocation86_spill] sm:$0xff] %v11097_v2  ;;  %v2665_v12 = vadd.f32 %v2664_v24, %v2663_v33  ;;  %v2470_v3 = vadd.f32 %v2469_v29, %v2468_v30  ;;  %v2556_v31 = vmul.f32 %v11097_v2, %v11097_v2  ;;  %v2473_v33 = vsel %vm871_vm1, %v11097_v2, 0.0 }
 0x650   :  { %14599 = vst [vmem:[#allocation87_spill] sm:$0xff] %v11103_v46  ;;  %v2471_v26 = vsel %vm871_vm1, %v11103_v46, 0.0  ;;  %v2555_v5 = vmul.f32 %v11103_v46, %v11103_v46  ;;  %v8285_v53 = vpop.f32.mrb[56].mxu1 }
 0x651   :  { %v2472_v22 = vadd.f32 %v2471_v26, %v2470_v3  ;;  %v2667_v61 = vadd.f32 %v2666_v15, %v2665_v12  ;;  %v11113_v20 = vadd.f32 %v8285_v53, %v10682_v57  ;;  %v2311_v4 = vpop.f32.mrb[57].mxu1  ;;  %v2670_v63 = vsel %vm871_vm1, %v2556_v31, 0.0 }
 0x652   :  { %v2668_v54 = vsel %vm871_vm1, %v2555_v5, 0.0  ;;  %v11119_v30 = vadd.f32 %v10682_v57, %v2311_v4 }
 0x653   :  { %14600 = vst [vmem:[#allocation88_spill] sm:$0xff] %v11113_v20  ;;  %v2669_v29 = vadd.f32 %v2668_v54, %v2667_v61  ;;  %v2474_v24 = vadd.f32 %v2473_v33, %v2472_v22  ;;  %v2558_v3 = vmul.f32 %v11113_v20, %v11113_v20  ;;  %v2477_v61 = vsel %vm871_vm1, %v11113_v20, 0.0 }
 0x654   :  { %14601 = vst [vmem:[#allocation89_spill] sm:$0xff] %v11119_v30  ;;  %v2475_v15 = vsel %vm871_vm1, %v11119_v30, 0.0  ;;  %v2557_v12 = vmul.f32 %v11119_v30, %v11119_v30  ;;  %v8288_v26 = vpop.f32.mrb[58].mxu1 }
 0x655   :  { %v2476_v53 = vadd.f32 %v2475_v15, %v2474_v24  ;;  %v2671_v2 = vadd.f32 %v2670_v63, %v2669_v29  ;;  %v11129_v5 = vadd.f32 %v8288_v26, %v10682_v57  ;;  %v2321_v4 = vpop.f32.mrb[59].mxu1  ;;  %v2674_v46 = vsel %vm871_vm1, %v2558_v3, 0.0 }
 0x656   :  { %v2672_v31 = vsel %vm871_vm1, %v2557_v12, 0.0  ;;  %v11135_v22 = vadd.f32 %v10682_v57, %v2321_v4 }
 0x657   :  { %14602 = vst [vmem:[#allocation90_spill] sm:$0xff] %v11129_v5  ;;  %v2673_v33 = vadd.f32 %v2672_v31, %v2671_v2  ;;  %v2478_v54 = vadd.f32 %v2477_v61, %v2476_v53  ;;  %v2560_v24 = vmul.f32 %v11129_v5, %v11129_v5  ;;  %v2481_v2 = vsel %vm871_vm1, %v11129_v5, 0.0 }
 0x658   :  { %14603 = vst [vmem:[#allocation91_spill] sm:$0xff] %v11135_v22  ;;  %v2479_v63 = vsel %vm871_vm1, %v11135_v22, 0.0  ;;  %v2559_v29 = vmul.f32 %v11135_v22, %v11135_v22  ;;  %v8291_v15 = vpop.f32.mrb[60].mxu1 }
 0x659   :  { %v2480_v26 = vadd.f32 %v2479_v63, %v2478_v54  ;;  %v2675_v20 = vadd.f32 %v2674_v46, %v2673_v33  ;;  %v11145_v12 = vadd.f32 %v8291_v15, %v10682_v57  ;;  %v2331_v4 = vpop.f32.mrb[61].mxu1  ;;  %v2678_v30 = vsel %vm871_vm1, %v2560_v24, 0.0 }
 0x65a   :  { %v2676_v3 = vsel %vm871_vm1, %v2559_v29, 0.0  ;;  %v11151_v53 = vadd.f32 %v10682_v57, %v2331_v4 }
 0x65b   :  { %14604 = vst [vmem:[#allocation92_spill] sm:$0xff] %v11145_v12  ;;  %v2677_v61 = vadd.f32 %v2676_v3, %v2675_v20  ;;  %v2482_v31 = vadd.f32 %v2481_v2, %v2480_v26  ;;  %v2562_v54 = vmul.f32 %v11145_v12, %v11145_v12  ;;  %v2485_v20 = vsel %vm871_vm1, %v11145_v12, 0.0 }
 0x65c   :  { %14605 = vst [vmem:[#allocation93_spill] sm:$0xff] %v11151_v53  ;;  %v2483_v46 = vsel %vm871_vm1, %v11151_v53, 0.0  ;;  %v2561_v33 = vmul.f32 %v11151_v53, %v11151_v53  ;;  %v8294_v63 = vpop.f32.mrb[62].mxu1 }
 0x65d   :  { %v2484_v15 = vadd.f32 %v2483_v46, %v2482_v31  ;;  %v2679_v5 = vadd.f32 %v2678_v30, %v2677_v61  ;;  %v11161_v29 = vadd.f32 %v8294_v63, %v10682_v57  ;;  %v2341_v4 = vpop.f32.mrb[63].mxu1  ;;  %v2682_v22 = vsel %vm871_vm1, %v2562_v54, 0.0 }
 0x65e   :  { %v2680_v24 = vsel %vm871_vm1, %v2561_v33, 0.0  ;;  %v11167_v26 = vadd.f32 %v10682_v57, %v2341_v4 }
 0x65f   :  { %14606 = vst [vmem:[#allocation94_spill] sm:$0xff] %v11161_v29  ;;  %v2681_v2 = vadd.f32 %v2680_v24, %v2679_v5  ;;  %v2486_v3 = vadd.f32 %v2485_v20, %v2484_v15  ;;  %v2564_v31 = vmul.f32 %v11161_v29, %v11161_v29  ;;  %v2489_v5 = vsel %vm871_vm1, %v11161_v29, 0.0 }
 0x660   :  { %14607 = vst [vmem:[#allocation95_spill] sm:$0xff] %v11167_v26  ;;  %v2487_v30 = vsel %vm871_vm1, %v11167_v26, 0.0  ;;  %v2563_v61 = vmul.f32 %v11167_v26, %v11167_v26  ;;  %v8297_v46 = vpop.f32.mrb[64].mxu1 }
 0x661   :  { %v2488_v63 = vadd.f32 %v2487_v30, %v2486_v3  ;;  %v2683_v12 = vadd.f32 %v2682_v22, %v2681_v2  ;;  %v11177_v33 = vadd.f32 %v8297_v46, %v10682_v57  ;;  %v2351_v4 = vpop.f32.mrb[65].mxu1  ;;  %v2686_v53 = vsel %vm871_vm1, %v2564_v31, 0.0 }
 0x662   :  { %v2684_v54 = vsel %vm871_vm1, %v2563_v61, 0.0  ;;  %v11183_v15 = vadd.f32 %v10682_v57, %v2351_v4 }
 0x663   :  { %14608 = vst [vmem:[#allocation96_spill] sm:$0xff] %v11177_v33  ;;  %v2685_v20 = vadd.f32 %v2684_v54, %v2683_v12  ;;  %v2490_v24 = vadd.f32 %v2489_v5, %v2488_v63  ;;  %v2566_v3 = vmul.f32 %v11177_v33, %v11177_v33  ;;  %v2493_v31 = vsel %vm871_vm1, %v11177_v33, 0.0 }
 0x664   :  { %14609 = vst [vmem:[#allocation97_spill] sm:$0xff] %v11183_v15  ;;  %v2491_v22 = vsel %vm871_vm1, %v11183_v15, 0.0  ;;  %v2565_v2 = vmul.f32 %v11183_v15, %v11183_v15  ;;  %v8300_v30 = vpop.f32.mrb[66].mxu1 }
 0x665   :  { %v11193_v46 = vadd.f32 %v8300_v30, %v10682_v57  ;;  %v2361_v61 = vpop.f32.mrb[67].mxu1  ;;  %v2492_v4 = vadd.f32 %v2491_v22, %v2490_v24  ;;  %v2687_v29 = vadd.f32 %v2686_v53, %v2685_v20  ;;  %v2690_v53 = vsel %vm871_vm1, %v2566_v3, 0.0 }
 0x666   :  { %v11196_v12 = vadd.f32 %v10682_v57, %v2361_v61  ;;  %v2688_v63 = vsel %vm871_vm1, %v2565_v2, 0.0 }
 0x667   :  { %14610 = vst [vmem:[#allocation98_spill] sm:$0xff] %v11193_v46  ;;  %v2494_v5 = vadd.f32 %v2493_v31, %v2492_v4  ;;  %v2689_v54 = vadd.f32 %v2688_v63, %v2687_v29  ;;  %v2568_v24 = vmul.f32 %v11193_v46, %v11193_v46  ;;  %v2497_v22 = vsel %vm871_vm1, %v11193_v46, 0.0  ;;  %v2371_v46 = vld [vmem:[#allocation24] sm:$0x1] }
 0x668   :  { %14611 = vst [vmem:[#allocation99_spill] sm:$0xff] %v11196_v12  ;;  %v2495_v15 = vsel %vm871_vm1, %v11196_v12, 0.0  ;;  %v2567_v30 = vmul.f32 %v11196_v12, %v11196_v12 }
 0x669   :  { %v2496_v57 = vadd.f32 %v2495_v15, %v2494_v5  ;;  %v2691_v20 = vadd.f32 %v2690_v53, %v2689_v54  ;;  %v2694_v4 = vsel %vm871_vm1, %v2568_v24, 0.0 }
 0x66a   :  { %v2692_v2 = vsel %vm871_vm1, %v2567_v30, 0.0 }
 0x66b   :  { %v2498_v61 = vadd.f32 %v2497_v22, %v2496_v57  ;;  %v2693_v29 = vadd.f32 %v2692_v2, %v2691_v20 }
 0x66d   :  { %v2499_v31 = vrot.slane %v2498_v61, 4  ;;  %v2695_v63 = vadd.f32 %v2694_v4, %v2693_v29 }
 0x66f   :  { %v2500_v33 = vadd.f32 %v2499_v31, %v2498_v61  ;;  %v2696_v12 = vrot.slane %v2695_v63, 4 }
 0x671   :  { %v2501_v26 = vrot.slane %v2500_v33, 2  ;;  %v2697_v19 = vadd.f32 %v2696_v12, %v2695_v63 }
 0x673   :  { %v2502_v25 = vadd.f32 %v2501_v26, %v2500_v33  ;;  %v2698_v14 = vrot.slane %v2697_v19, 2  ;;  %v4817_v26 = vld [vmem:[#allocation25] sm:$0xff]  ;;  %v4818_v33 = vld [vmem:[#allocation25 + $0x8] sm:$0xff] }
 0x675   :  { %v2503_v3 = vrot.slane %v2502_v25, 1  ;;  %v2699_v15 = vadd.f32 %v2698_v14, %v2697_v19  ;;  %v8745_v14 = vpack.c.bf16 %v4818_v33, %v4817_v26  ;;  %v2370_v26 = vld [vmem:[#allocation22] sm:$0x1] }
 0x677   :  { %v2504_v5 = vadd.f32 %v2503_v3, %v2502_v25  ;;  %v2700_v54 = vrot.slane %v2699_v15, 1  ;;  %8746 = vmatprep.subr.bf16.mxu0 %v8745_v14  ;;  %8749 = vmatprep.subr.bf16.mxu1 %v8745_v14 }
 0x678   :  { %8748 = vmatpush3.bf16.msra.mxu0 %v8745_v14  ;;  %8750 = vmatpush3.bf16.msra.mxu1 %v8745_v14 }
 0x679   :  { %2707 = vrot.lane.b32.xlu1 %v2504_v5, %s9679_s14  ;;  %2703 = vrot.lane.b32.xlu0 %v2504_v5, %s9681_s29  ;;  %v2701_v30 = vadd.f32 %v2700_v54, %v2699_v15 }
 0x67d   :  { %2711 = vrot.lane.b32.xlu1 %v2504_v5, %s9682_s8  ;;  %2716 = vrot.lane.b32.xlu0 %v2701_v30, %s9681_s29 }
 0x681   :  { %2724 = vrot.lane.b32.xlu1 %v2701_v30, %s9682_s8  ;;  %2720 = vrot.lane.b32.xlu0 %v2701_v30, %s9679_s14 }
 0x6eb   :  { %v2708_v25 = vpop.permute.xlu1 %2707  ;;  %v2704_v19 = vpop.permute.xlu0 %2703 }
 0x6ec   :  { %v2706_v12 = vadd.f32 %v2704_v19, %v2504_v5 }
 0x6ee   :  { %v2710_v24 = vadd.f32 %v2708_v25, %v2706_v12 }
 0x6ef   :  { %v2712_v53 = vpop.permute.xlu1 %2711  ;;  %v2717_v57 = vpop.permute.xlu0 %2716 }
 0x6f0   :  { %v2714_v20 = vadd.f32 %v2712_v53, %v2710_v24  ;;  %v2719_v22 = vadd.f32 %v2717_v57, %v2701_v30 }
 0x6f2   :  { %v2729_v61 = vmul.f32 0.00048828125, %v2714_v20 }
 0x6f3   :  { %v2721_v2 = vpop.permute.xlu0 %2720  ;;  %v2725_v4 = vpop.permute.xlu1 %2724 }
 0x6f4   :  { %v2723_v29 = vadd.f32 %v2721_v2, %v2719_v22  ;;  %v2731_v63 = vmul.f32 %v2729_v61, %v2729_v61 }
 0x6f6   :  { %v2727_v31 = vadd.f32 %v2725_v4, %v2723_v29 }
 0x6f8   :  { %v2730_v3 = vmul.f32 0.00048828125, %v2727_v31 }
 0x6fa   :  { %v2732_v15 = vsub.f32 %v2730_v3, %v2731_v63 }
 0x6fc   :  { %v2733_v54 = vadd.f32 1e-05, %v2732_v15 }
 0x6fe   :  { %8795 = vrsqrt.f32 %v2733_v54 }
 0x708   :  { %v8796_v33 = vpop.eup %8795 }
 0x709   :  { %v2735_v14 = vmul.f32 %v8796_v33, %v2370_v26 }
 0x70b   :  { %v2736_v5 = vmul.f32 %v2735_v14, %v2729_v61  ;;  %v11219_v25 = vrot.slane %v2735_v14, %v9963_v58 }
 0x70d   :  { %v2737_v19 = vsub.f32 %v2371_v46, %v2736_v5  ;;  %v11223_v30 = vmul.f32 %v11219_v25, %v10690_v45  ;;  %v11227_v12 = vmul.f32 %v11219_v25, %v10686_v39  ;;  %v11231_v24 = vmul.f32 %v11219_v25, %v10694_v48  ;;  %4043 = vrot.lane.b32.xlu1 %v11219_v25, %s9683_s4  ;;  %v14613_v39 = vld [vmem:[#allocation76_spill] sm:$0xff] }
 0x70e   :  { %v11237_v53 = vmul.f32 %v11219_v25, %v10710_v17  ;;  %v11241_v46 = vmul.f32 %v11219_v25, %v10717_v13  ;;  %v11245_v57 = vmul.f32 %v11219_v25, %v10728_v21  ;;  %v11249_v20 = vmul.f32 %v11219_v25, %v10735_v32  ;;  %3525 = vrot.lane.b32.xlu0 %v11219_v25, %s9680_s0  ;;  %v14612_v17 = vld [vmem:[#allocation77_spill] sm:$0xff] }
 0x70f   :  { %v11254_v22 = vrot.slane %v2737_v19, %v9963_v58  ;;  %v11258_v2 = vmul.f32 %v11219_v25, %v10746_v10  ;;  %v11262_v61 = vmul.f32 %v11219_v25, %v10753_v52  ;;  %v11266_v29 = vmul.f32 %v11219_v25, %v10764_v18 }
 0x710   :  { %v11270_v4 = vmul.f32 %v11219_v25, %v10771_v11  ;;  %v11274_v58 = vmul.f32 %v11219_v25, %v10782_v6  ;;  %v11278_v31 = vmul.f32 %v11219_v25, %v10789_v38  ;;  %v11282_v63 = vmul.f32 %v11219_v25, %v10800_v16 }
 0x711   :  { %v11286_v3 = vmul.f32 %v11219_v25, %v10807_v51  ;;  %v11290_v15 = vmul.f32 %v11219_v25, %v10818_v28  ;;  %v11294_v54 = vmul.f32 %v11219_v25, %v10831_v42  ;;  %v11298_v26 = vmul.f32 %v11219_v25, %v10826_v55  ;;  %3592 = vrot.lane.b32.xlu1 %v11254_v22, %s9680_s0 }
 0x712   :  { %v11304_v33 = vmul.f32 %v11219_v25, %v10847_v50  ;;  %v11308_v14 = vmul.f32 %v11219_v25, %v10844_v0  ;;  %v11312_v5 = vmul.f32 %v11219_v25, %v10863_v34  ;;  %v11316_v19 = vmul.f32 %v11219_v25, %v10857_v43  ;;  %3007 = vrot.lane.b32.xlu0 %v11219_v25, %s9684_s27 }
 0x713   :  { %v11321_v55 = vmul.f32 %v11219_v25, %v10879_v41  ;;  %v11325_v50 = vmul.f32 %v11219_v25, %v10873_v27  ;;  %v11329_v0 = vmul.f32 %v11219_v25, %v10895_v49  ;;  %v11333_v34 = vmul.f32 %v11219_v25, %v10889_v44  ;;  %v14631_v41 = vld [vmem:[#allocation90_spill] sm:$0xff]  ;;  %v14633_v27 = vld [vmem:[#allocation93_spill] sm:$0xff] }
 0x714   :  { %v11337_v43 = vmul.f32 %v11219_v25, %v10911_v23  ;;  %v11341_v42 = vmul.f32 %v11219_v25, %v10905_v9  ;;  %v11345_v28 = vmul.f32 %v11219_v25, %v10927_v7  ;;  %v11349_v51 = vmul.f32 %v11219_v25, %v10921_v35  ;;  %v14621_v7 = vld [vmem:[#allocation84_spill] sm:$0xff] }
 0x715   :  { %v11353_v16 = vmul.f32 %v11219_v25, %v10943_v1  ;;  %v11357_v38 = vmul.f32 %v11219_v25, %v10937_v47  ;;  %v11361_v6 = vmul.f32 %v11219_v25, %v10959_v40  ;;  %v11365_v11 = vmul.f32 %v11219_v25, %v10953_v60  ;;  %3074 = vrot.lane.b32.xlu1 %v11254_v22, %s9684_s27  ;;  %v14615_v60 = vld [vmem:[#allocation78_spill] sm:$0xff]  ;;  %v14617_v40 = vld [vmem:[#allocation80_spill] sm:$0xff]  ;;  %v14620_v47 = vld [vmem:[#allocation85_spill] sm:$0xff] }
 0x716   :  { %v11370_v18 = vmul.f32 %v11219_v25, %v10975_v62  ;;  %v11374_v52 = vmul.f32 %v11219_v25, %v10969_v36  ;;  %v11378_v10 = vmul.f32 %v11219_v25, %v10991_v8  ;;  %v11382_v32 = vmul.f32 %v11219_v25, %v10985_v59  ;;  %v14614_v8 = vld [vmem:[#allocation79_spill] sm:$0xff]  ;;  %v14616_v59 = vld [vmem:[#allocation81_spill] sm:$0xff]  ;;  %v14619_v1 = vld [vmem:[#allocation82_spill] sm:$0xff] }
 0x717   :  { %v11386_v21 = vmul.f32 %v11219_v25, %v11007_v56  ;;  %v11390_v13 = vmul.f32 %v11219_v25, %v11001_v37  ;;  %v11394_v48 = vmul.f32 %v11219_v25, %v14612_v17  ;;  %v11398_v45 = vmul.f32 %v11219_v25, %v14613_v39  ;;  %v14618_v36 = vld [vmem:[#allocation83_spill] sm:$0xff] }
 0x718   :  { %v11402_v62 = vmul.f32 %v11219_v25, %v14614_v8  ;;  %v11406_v56 = vmul.f32 %v11219_v25, %v14615_v60  ;;  %v11410_v37 = vmul.f32 %v11219_v25, %v14616_v59  ;;  %v11414_v17 = vmul.f32 %v11219_v25, %v14617_v40  ;;  %v14622_v40 = vld [vmem:[#allocation87_spill] sm:$0xff] }
 0x719   :  { %v11418_v39 = vmul.f32 %v11219_v25, %v14618_v36  ;;  %v11422_v8 = vmul.f32 %v11219_v25, %v14619_v1  ;;  %v11426_v60 = vmul.f32 %v11219_v25, %v14620_v47  ;;  %v11430_v59 = vmul.f32 %v11219_v25, %v14621_v7  ;;  %4110 = vrot.lane.b32.xlu1 %v11254_v22, %s9683_s4  ;;  %v14623_v36 = vld [vmem:[#allocation86_spill] sm:$0xff]  ;;  %v14625_v1 = vld [vmem:[#allocation89_spill] sm:$0xff]  ;;  %v14627_v47 = vld [vmem:[#allocation88_spill] sm:$0xff] }
 0x71a   :  { %v11436_v35 = vmul.f32 %v11219_v25, %v14622_v40  ;;  %v11440_v23 = vmul.f32 %v11219_v25, %v14623_v36  ;;  %v11444_v9 = vmul.f32 %v11219_v25, %v14625_v1  ;;  %v11448_v49 = vmul.f32 %v11219_v25, %v14627_v47  ;;  %v14629_v7 = vld [vmem:[#allocation91_spill] sm:$0xff] }
 0x71b   :  { %v11452_v44 = vmul.f32 %v11219_v25, %v14629_v7  ;;  %v11456_v40 = vmul.f32 %v11219_v25, %v14631_v41  ;;  %v11460_v36 = vmul.f32 %v11219_v25, %v14633_v27 }
 0x71c   :  { %14624 = vst [vmem:[#allocation100_spill] sm:$0xff] %v11440_v23  ;;  %14626 = vst [vmem:[#allocation101_spill] sm:$0xff] %v11444_v9  ;;  %v14635_v23 = vld [vmem:[#allocation92_spill] sm:$0xff]  ;;  %v14637_v9 = vld [vmem:[#allocation95_spill] sm:$0xff] }
 0x71d   :  { %14628 = vst [vmem:[#allocation102_spill] sm:$0xff] %v11448_v49  ;;  %14630 = vst [vmem:[#allocation103_spill] sm:$0xff] %v11452_v44  ;;  %v11464_v1 = vmul.f32 %v11219_v25, %v14635_v23  ;;  %v11468_v47 = vmul.f32 %v11219_v25, %v14637_v9  ;;  %v14638_v49 = vld [vmem:[#allocation94_spill] sm:$0xff]  ;;  %v14639_v44 = vld [vmem:[#allocation97_spill] sm:$0xff] }
 0x71e   :  { %14632 = vst [vmem:[#allocation104_spill] sm:$0xff] %v11456_v40  ;;  %14634 = vst [vmem:[#allocation105_spill] sm:$0xff] %v11460_v36  ;;  %v11472_v7 = vmul.f32 %v11219_v25, %v14638_v49  ;;  %v11476_v41 = vmul.f32 %v11219_v25, %v14639_v44  ;;  %v14640_v40 = vld [vmem:[#allocation96_spill] sm:$0xff]  ;;  %v14641_v36 = vld [vmem:[#allocation99_spill] sm:$0xff]  ;;  %v11492_v49 = vadd.f32 %v11254_v22, %v11223_v30 }
 0x71f   :  { %14636 = vst [vmem:[#allocation106_spill] sm:$0xff] %v11464_v1  ;;  %v11480_v27 = vmul.f32 %v11219_v25, %v14640_v40  ;;  %v11484_v23 = vmul.f32 %v11219_v25, %v14641_v36  ;;  %v14642_v1 = vld [vmem:[#allocation98_spill] sm:$0xff]  ;;  %v11496_v44 = vadd.f32 %v11254_v22, %v11227_v12  ;;  %v11500_v40 = vadd.f32 %v11254_v22, %v11231_v24 }
 0x720   :  { %v11488_v9 = vmul.f32 %v11219_v25, %v14642_v1  ;;  %v11504_v36 = vadd.f32 %v11254_v22, %v11237_v53  ;;  %v11508_v25 = vadd.f32 %v11254_v22, %v11241_v46  ;;  %v11512_v30 = vadd.f32 %v11254_v22, %v11245_v57 }
 0x721   :  { %v11516_v12 = vadd.f32 %v11254_v22, %v11249_v20  ;;  %v11520_v24 = vadd.f32 %v11254_v22, %v11258_v2  ;;  %v11524_v53 = vadd.f32 %v11254_v22, %v11262_v61  ;;  %v11528_v46 = vadd.f32 %v11254_v22, %v11266_v29 }
 0x722   :  { %v11532_v57 = vadd.f32 %v11254_v22, %v11270_v4  ;;  %v11536_v20 = vadd.f32 %v11254_v22, %v11274_v58  ;;  %v11540_v2 = vadd.f32 %v11254_v22, %v11278_v31  ;;  %v11544_v61 = vadd.f32 %v11254_v22, %v11282_v63 }
 0x723   :  { %v11548_v29 = vadd.f32 %v11254_v22, %v11286_v3  ;;  %v11552_v4 = vadd.f32 %v11254_v22, %v11290_v15  ;;  %v11556_v58 = vadd.f32 %v11254_v22, %v11294_v54  ;;  %v11560_v31 = vadd.f32 %v11254_v22, %v11298_v26  ;;  %v14648_v1 = vld [vmem:[#allocation100_spill] sm:$0xff] }
 0x724   :  { %v11564_v63 = vadd.f32 %v11254_v22, %v11304_v33  ;;  %v11568_v3 = vadd.f32 %v11254_v22, %v11308_v14  ;;  %v11572_v15 = vadd.f32 %v11254_v22, %v11312_v5  ;;  %v11576_v54 = vadd.f32 %v11254_v22, %v11316_v19 }
 0x725   :  { %v11580_v26 = vadd.f32 %v11254_v22, %v11321_v55  ;;  %v11584_v33 = vadd.f32 %v11254_v22, %v11325_v50  ;;  %v11588_v14 = vadd.f32 %v11254_v22, %v11329_v0  ;;  %v11592_v5 = vadd.f32 %v11254_v22, %v11333_v34 }
 0x726   :  { %v11596_v19 = vadd.f32 %v11254_v22, %v11337_v43  ;;  %v11600_v55 = vadd.f32 %v11254_v22, %v11341_v42  ;;  %v11604_v50 = vadd.f32 %v11254_v22, %v11345_v28  ;;  %v11608_v0 = vadd.f32 %v11254_v22, %v11349_v51 }
 0x727   :  { %v11612_v34 = vadd.f32 %v11254_v22, %v11353_v16  ;;  %v11616_v43 = vadd.f32 %v11254_v22, %v11357_v38  ;;  %v11620_v42 = vadd.f32 %v11254_v22, %v11361_v6  ;;  %v11624_v28 = vadd.f32 %v11254_v22, %v11365_v11 }
 0x728   :  { %v11628_v51 = vadd.f32 %v11254_v22, %v11370_v18  ;;  %v11632_v16 = vadd.f32 %v11254_v22, %v11374_v52  ;;  %v11636_v38 = vadd.f32 %v11254_v22, %v11378_v10  ;;  %v11640_v6 = vadd.f32 %v11254_v22, %v11382_v32 }
 0x729   :  { %v11644_v11 = vadd.f32 %v11254_v22, %v11386_v21  ;;  %v11648_v18 = vadd.f32 %v11254_v22, %v11390_v13  ;;  %v11652_v52 = vadd.f32 %v11254_v22, %v11394_v48  ;;  %v11656_v10 = vadd.f32 %v11254_v22, %v11398_v45 }
 0x72a   :  { %v11660_v32 = vadd.f32 %v11254_v22, %v11402_v62  ;;  %v11664_v21 = vadd.f32 %v11254_v22, %v11406_v56  ;;  %v11668_v13 = vadd.f32 %v11254_v22, %v11410_v37  ;;  %v11672_v48 = vadd.f32 %v11254_v22, %v11414_v17 }
 0x72b   :  { %v11676_v45 = vadd.f32 %v11254_v22, %v11418_v39  ;;  %v11680_v62 = vadd.f32 %v11254_v22, %v11422_v8  ;;  %v11684_v56 = vadd.f32 %v11254_v22, %v11426_v60  ;;  %v11688_v37 = vadd.f32 %v11254_v22, %v11430_v59 }
 0x72c   :  { %v11692_v17 = vadd.f32 %v11254_v22, %v11436_v35  ;;  %v11696_v39 = vadd.f32 %v11254_v22, %v14648_v1 }
 0x72d   :  { %14643 = vst [vmem:[#allocation107_spill] sm:$0xff] %v11676_v45  ;;  %14644 = vst [vmem:[#allocation108_spill] sm:$0xff] %v11680_v62  ;;  %v14650_v45 = vld [vmem:[#allocation101_spill] sm:$0xff]  ;;  %v14651_v62 = vld [vmem:[#allocation102_spill] sm:$0xff] }
 0x72e   :  { %14645 = vst [vmem:[#allocation109_spill] sm:$0xff] %v11684_v56  ;;  %14646 = vst [vmem:[#allocation110_spill] sm:$0xff] %v11688_v37  ;;  %v11700_v8 = vadd.f32 %v11254_v22, %v14650_v45  ;;  %v11704_v60 = vadd.f32 %v11254_v22, %v14651_v62  ;;  %v14652_v56 = vld [vmem:[#allocation103_spill] sm:$0xff]  ;;  %v14653_v37 = vld [vmem:[#allocation104_spill] sm:$0xff]  ;;  %v11724_v62 = vadd.f32 %v11254_v22, %v11468_v47 }
 0x72f   :  { %14647 = vst [vmem:[#allocation111_spill] sm:$0xff] %v11692_v17  ;;  %14649 = vst [vmem:[#allocation100_spill] sm:$0xff] %v11696_v39  ;;  %v11708_v59 = vadd.f32 %v11254_v22, %v14652_v56  ;;  %v11712_v35 = vadd.f32 %v11254_v22, %v14653_v37  ;;  %v14654_v17 = vld [vmem:[#allocation105_spill] sm:$0xff]  ;;  %v14655_v39 = vld [vmem:[#allocation106_spill] sm:$0xff]  ;;  %v11728_v56 = vadd.f32 %v11254_v22, %v11472_v7  ;;  %v2879_v7 = vmax.f32 %v11496_v44, 0.0 }
 0x730   :  { %v11716_v1 = vadd.f32 %v11254_v22, %v14654_v17  ;;  %v11720_v45 = vadd.f32 %v11254_v22, %v14655_v39  ;;  %14656 = vst [vmem:[#allocation101_spill] sm:$0xff] %v11724_v62  ;;  %v11732_v37 = vadd.f32 %v11254_v22, %v11476_v41  ;;  %v11736_v17 = vadd.f32 %v11254_v22, %v11480_v27 }
 0x731   :  { %14657 = vst [vmem:[#allocation102_spill] sm:$0xff] %v11728_v56  ;;  %v11740_v39 = vadd.f32 %v11254_v22, %v11484_v23  ;;  %v11744_v47 = vadd.f32 %v11254_v22, %v11488_v9  ;;  %v2878_v62 = vmax.f32 %v11492_v49, 0.0  ;;  %v2880_v56 = vmax.f32 %v11500_v40, 0.0  ;;  %2944 = vst.msk [vmem:[#allocation4 + $0x8] sm:$0xff] %vm2942_vm2, %v2879_v7 }
 0x732   :  { %14658 = vst [vmem:[#allocation103_spill] sm:$0xff] %v11732_v37  ;;  %14659 = vst [vmem:[#allocation104_spill] sm:$0xff] %v11736_v17  ;;  %v2881_v41 = vmax.f32 %v11504_v36, 0.0  ;;  %v2882_v37 = vmax.f32 %v11508_v25, 0.0  ;;  %v2883_v27 = vmax.f32 %v11512_v30, 0.0  ;;  %v2884_v17 = vmax.f32 %v11516_v12, 0.0 }
 0x733   :  { %14660 = vst [vmem:[#allocation105_spill] sm:$0xff] %v11740_v39  ;;  %v2885_v23 = vmax.f32 %v11520_v24, 0.0  ;;  %v2886_v39 = vmax.f32 %v11524_v53, 0.0  ;;  %v2887_v9 = vmax.f32 %v11528_v46, 0.0  ;;  %2943 = vst.msk [vmem:[#allocation4] sm:$0xff] %vm2942_vm2, %v2878_v62  ;;  %v2888_v44 = vmax.f32 %v11532_v57, 0.0 }
 0x734   :  { %v2889_v49 = vmax.f32 %v11536_v20, 0.0  ;;  %v2890_v40 = vmax.f32 %v11540_v2, 0.0  ;;  %v2891_v36 = vmax.f32 %v11544_v61, 0.0  ;;  %2945 = vst.msk [vmem:[#allocation4 + $0x10] sm:$0xff] %vm2942_vm2, %v2880_v56  ;;  %2946 = vst.msk [vmem:[#allocation4 + $0x18] sm:$0xff] %vm2942_vm2, %v2881_v41  ;;  %v2892_v22 = vmax.f32 %v11548_v29, 0.0 }
 0x735   :  { %2947 = vst.msk [vmem:[#allocation4 + $0x20] sm:$0xff] %vm2942_vm2, %v2882_v37  ;;  %2948 = vst.msk [vmem:[#allocation4 + $0x28] sm:$0xff] %vm2942_vm2, %v2883_v27  ;;  %v2893_v25 = vmax.f32 %v11552_v4, 0.0  ;;  %v2894_v30 = vmax.f32 %v11556_v58, 0.0  ;;  %v2895_v12 = vmax.f32 %v11560_v31, 0.0  ;;  %v2896_v24 = vmax.f32 %v11564_v63, 0.0 }
 0x736   :  { %2949 = vst.msk [vmem:[#allocation4 + $0x30] sm:$0xff] %vm2942_vm2, %v2884_v17  ;;  %2950 = vst.msk [vmem:[#allocation4 + $0x38] sm:$0xff] %vm2942_vm2, %v2885_v23  ;;  %v2897_v53 = vmax.f32 %v11568_v3, 0.0  ;;  %v2898_v46 = vmax.f32 %v11572_v15, 0.0  ;;  %v2899_v57 = vmax.f32 %v11576_v54, 0.0  ;;  %v2900_v20 = vmax.f32 %v11580_v26, 0.0 }
 0x737   :  { %2951 = vst.msk [vmem:[#allocation4 + $0x40] sm:$0xff] %vm2942_vm2, %v2886_v39  ;;  %2952 = vst.msk [vmem:[#allocation4 + $0x48] sm:$0xff] %vm2942_vm2, %v2887_v9  ;;  %v2901_v2 = vmax.f32 %v11584_v33, 0.0  ;;  %v2902_v61 = vmax.f32 %v11588_v14, 0.0  ;;  %v2903_v29 = vmax.f32 %v11592_v5, 0.0  ;;  %v2904_v4 = vmax.f32 %v11596_v19, 0.0 }
 0x738   :  { %2953 = vst.msk [vmem:[#allocation4 + $0x50] sm:$0xff] %vm2942_vm2, %v2888_v44  ;;  %2954 = vst.msk [vmem:[#allocation4 + $0x58] sm:$0xff] %vm2942_vm2, %v2889_v49  ;;  %v2905_v58 = vmax.f32 %v11600_v55, 0.0  ;;  %v2906_v31 = vmax.f32 %v11604_v50, 0.0  ;;  %v2907_v63 = vmax.f32 %v11608_v0, 0.0  ;;  %v2908_v3 = vmax.f32 %v11612_v34, 0.0 }
 0x739   :  { %2955 = vst.msk [vmem:[#allocation4 + $0x60] sm:$0xff] %vm2942_vm2, %v2890_v40  ;;  %2956 = vst.msk [vmem:[#allocation4 + $0x68] sm:$0xff] %vm2942_vm2, %v2891_v36  ;;  %v2909_v15 = vmax.f32 %v11616_v43, 0.0  ;;  %v2910_v54 = vmax.f32 %v11620_v42, 0.0  ;;  %v2911_v26 = vmax.f32 %v11624_v28, 0.0  ;;  %v2912_v33 = vmax.f32 %v11628_v51, 0.0 }
 0x73a   :  { %2957 = vst.msk [vmem:[#allocation4 + $0x70] sm:$0xff] %vm2942_vm2, %v2892_v22  ;;  %2958 = vst.msk [vmem:[#allocation4 + $0x78] sm:$0xff] %vm2942_vm2, %v2893_v25  ;;  %v2913_v14 = vmax.f32 %v11632_v16, 0.0  ;;  %v2914_v5 = vmax.f32 %v11636_v38, 0.0  ;;  %v2915_v19 = vmax.f32 %v11640_v6, 0.0  ;;  %v4561_v55 = vld [vmem:[#allocation4] sm:$0xff] }
 0x73b   :  { %2959 = vst.msk [vmem:[#allocation4 + $0x80] sm:$0xff] %vm2942_vm2, %v2894_v30  ;;  %2960 = vst.msk [vmem:[#allocation4 + $0x88] sm:$0xff] %vm2942_vm2, %v2895_v12  ;;  %v4562_v50 = vld [vmem:[#allocation4 + $0x8] sm:$0xff]  ;;  %v2916_v0 = vmax.f32 %v11644_v11, 0.0  ;;  %v2917_v34 = vmax.f32 %v11648_v18, 0.0  ;;  %v2918_v43 = vmax.f32 %v11652_v52, 0.0  ;;  %8305 = vmatprep.mubr.msk.f32.mxu0 %vm2942_vm2, %v4561_v55 }
 0x73c   :  { %2961 = vst.msk [vmem:[#allocation4 + $0x90] sm:$0xff] %vm2942_vm2, %v2896_v24  ;;  %2962 = vst.msk [vmem:[#allocation4 + $0x98] sm:$0xff] %vm2942_vm2, %v2897_v53  ;;  %v2919_v42 = vmax.f32 %v11656_v10, 0.0  ;;  %v2920_v28 = vmax.f32 %v11660_v32, 0.0  ;;  %v2921_v51 = vmax.f32 %v11664_v21, 0.0  ;;  %v2922_v16 = vmax.f32 %v11668_v13, 0.0  ;;  %8306 = vmatmul.mubr.msk.f32.vlgmr.msra.gmra.mrb[20].mxu0 %vm2942_vm2, %v4562_v50 }
 0x73d   :  { %2963 = vst.msk [vmem:[#allocation4 + $0xa0] sm:$0xff] %vm2942_vm2, %v2898_v46  ;;  %2964 = vst.msk [vmem:[#allocation4 + $0xa8] sm:$0xff] %vm2942_vm2, %v2899_v57  ;;  %v2923_v38 = vmax.f32 %v11672_v48, 0.0  ;;  %v4563_v6 = vld [vmem:[#allocation4 + $0x10] sm:$0xff]  ;;  %v14662_v52 = vld [vmem:[#allocation108_spill] sm:$0xff]  ;;  %v2930_v39 = vmax.f32 %v11700_v8, 0.0 }
 0x73e   :  { %2965 = vst.msk [vmem:[#allocation4 + $0xb0] sm:$0xff] %vm2942_vm2, %v2900_v20  ;;  %2966 = vst.msk [vmem:[#allocation4 + $0xb8] sm:$0xff] %vm2942_vm2, %v2901_v2  ;;  %v14661_v11 = vld [vmem:[#allocation107_spill] sm:$0xff]  ;;  %v2925_v10 = vmax.f32 %v14662_v52, 0.0  ;;  %v14663_v32 = vld [vmem:[#allocation109_spill] sm:$0xff]  ;;  %8308 = vmatprep.mubr.msk.f32.mxu0 %vm2942_vm2, %v4563_v6  ;;  %v2931_v7 = vmax.f32 %v11704_v60, 0.0 }
 0x73f   :  { %2967 = vst.msk [vmem:[#allocation4 + $0xc0] sm:$0xff] %vm2942_vm2, %v2902_v61  ;;  %2968 = vst.msk [vmem:[#allocation4 + $0xc8] sm:$0xff] %vm2942_vm2, %v2903_v29  ;;  %v2924_v18 = vmax.f32 %v14661_v11, 0.0  ;;  %v2926_v21 = vmax.f32 %v14663_v32, 0.0  ;;  %v14664_v13 = vld [vmem:[#allocation110_spill] sm:$0xff]  ;;  %v14665_v48 = vld [vmem:[#allocation111_spill] sm:$0xff] }
 0x740   :  { %2969 = vst.msk [vmem:[#allocation4 + $0xd0] sm:$0xff] %vm2942_vm2, %v2904_v4  ;;  %2970 = vst.msk [vmem:[#allocation4 + $0xd8] sm:$0xff] %vm2942_vm2, %v2905_v58  ;;  %v2927_v62 = vmax.f32 %v14664_v13, 0.0  ;;  %v2928_v56 = vmax.f32 %v14665_v48, 0.0  ;;  %v14666_v37 = vld [vmem:[#allocation100_spill] sm:$0xff]  ;;  %v2932_v41 = vmax.f32 %v11708_v59, 0.0 }
 0x741   :  { %2971 = vst.msk [vmem:[#allocation4 + $0xe0] sm:$0xff] %vm2942_vm2, %v2906_v31  ;;  %2972 = vst.msk [vmem:[#allocation4 + $0xe8] sm:$0xff] %vm2942_vm2, %v2907_v63  ;;  %v2929_v17 = vmax.f32 %v14666_v37, 0.0  ;;  %v2933_v27 = vmax.f32 %v11712_v35, 0.0  ;;  %v2934_v23 = vmax.f32 %v11716_v1, 0.0  ;;  %v2935_v9 = vmax.f32 %v11720_v45, 0.0 }
 0x742   :  { %2973 = vst.msk [vmem:[#allocation4 + $0xf0] sm:$0xff] %vm2942_vm2, %v2908_v3  ;;  %2974 = vst.msk [vmem:[#allocation4 + $0xf8] sm:$0xff] %vm2942_vm2, %v2909_v15  ;;  %v4564_v8 = vld [vmem:[#allocation4 + $0x18] sm:$0xff]  ;;  %v14667_v60 = vld [vmem:[#allocation101_spill] sm:$0xff]  ;;  %v2941_v30 = vmax.f32 %v11744_v47, 0.0 }
 0x743   :  { %2975 = vst.msk [vmem:[#allocation4 + $0x100] sm:$0xff] %vm2942_vm2, %v2910_v54  ;;  %2976 = vst.msk [vmem:[#allocation4 + $0x108] sm:$0xff] %vm2942_vm2, %v2911_v26  ;;  %v2936_v44 = vmax.f32 %v14667_v60, 0.0  ;;  %v14668_v49 = vld [vmem:[#allocation102_spill] sm:$0xff]  ;;  %v14669_v59 = vld [vmem:[#allocation103_spill] sm:$0xff]  ;;  %8309 = vmatmul.mubr.msk.f32.gmra.mrb[22].mxu0 %vm2942_vm2, %v4564_v8 }
 0x744   :  { %2977 = vst.msk [vmem:[#allocation4 + $0x110] sm:$0xff] %vm2942_vm2, %v2912_v33  ;;  %2978 = vst.msk [vmem:[#allocation4 + $0x118] sm:$0xff] %vm2942_vm2, %v2913_v14  ;;  %v2937_v40 = vmax.f32 %v14668_v49, 0.0  ;;  %v2938_v36 = vmax.f32 %v14669_v59, 0.0  ;;  %v14670_v35 = vld [vmem:[#allocation104_spill] sm:$0xff]  ;;  %v14671_v45 = vld [vmem:[#allocation105_spill] sm:$0xff] }
 0x745   :  { %2979 = vst.msk [vmem:[#allocation4 + $0x120] sm:$0xff] %vm2942_vm2, %v2914_v5  ;;  %2980 = vst.msk [vmem:[#allocation4 + $0x128] sm:$0xff] %vm2942_vm2, %v2915_v19  ;;  %v2939_v22 = vmax.f32 %v14670_v35, 0.0  ;;  %v4565_v1 = vld [vmem:[#allocation4 + $0x20] sm:$0xff]  ;;  %v2940_v25 = vmax.f32 %v14671_v45, 0.0  ;;  %v4566_v47 = vld [vmem:[#allocation4 + $0x28] sm:$0xff] }
 0x746   :  { %2981 = vst.msk [vmem:[#allocation4 + $0x130] sm:$0xff] %vm2942_vm2, %v2916_v0  ;;  %2982 = vst.msk [vmem:[#allocation4 + $0x138] sm:$0xff] %vm2942_vm2, %v2917_v34  ;;  %8311 = vmatprep.mubr.msk.f32.mxu0 %vm2942_vm2, %v4565_v1  ;;  %v4567_v12 = vld [vmem:[#allocation4 + $0x30] sm:$0xff]  ;;  %v4568_v24 = vld [vmem:[#allocation4 + $0x38] sm:$0xff] }
 0x747   :  { %2983 = vst.msk [vmem:[#allocation4 + $0x140] sm:$0xff] %vm2942_vm2, %v2918_v43  ;;  %2984 = vst.msk [vmem:[#allocation4 + $0x148] sm:$0xff] %vm2942_vm2, %v2919_v42  ;;  %8312 = vmatmul.mubr.msk.f32.gmra.mrb[24].mxu0 %vm2942_vm2, %v4566_v47  ;;  %v4569_v53 = vld [vmem:[#allocation4 + $0x40] sm:$0xff]  ;;  %v4570_v46 = vld [vmem:[#allocation4 + $0x48] sm:$0xff] }
 0x748   :  { %2985 = vst.msk [vmem:[#allocation4 + $0x150] sm:$0xff] %vm2942_vm2, %v2920_v28  ;;  %2986 = vst.msk [vmem:[#allocation4 + $0x158] sm:$0xff] %vm2942_vm2, %v2921_v51  ;;  %8314 = vmatprep.mubr.msk.f32.mxu0 %vm2942_vm2, %v4567_v12  ;;  %v4571_v57 = vld [vmem:[#allocation4 + $0x50] sm:$0xff]  ;;  %v4572_v20 = vld [vmem:[#allocation4 + $0x58] sm:$0xff] }
 0x749   :  { %2987 = vst.msk [vmem:[#allocation4 + $0x160] sm:$0xff] %vm2942_vm2, %v2922_v16  ;;  %2988 = vst.msk [vmem:[#allocation4 + $0x168] sm:$0xff] %vm2942_vm2, %v2923_v38  ;;  %v4573_v2 = vld [vmem:[#allocation4 + $0x60] sm:$0xff]  ;;  %v4574_v61 = vld [vmem:[#allocation4 + $0x68] sm:$0xff] }
 0x74a   :  { %2989 = vst.msk [vmem:[#allocation4 + $0x170] sm:$0xff] %vm2942_vm2, %v2924_v18  ;;  %2990 = vst.msk [vmem:[#allocation4 + $0x178] sm:$0xff] %vm2942_vm2, %v2925_v10  ;;  %v4575_v29 = vld [vmem:[#allocation4 + $0x70] sm:$0xff]  ;;  %v4576_v4 = vld [vmem:[#allocation4 + $0x78] sm:$0xff] }
 0x74b   :  { %2991 = vst.msk [vmem:[#allocation4 + $0x180] sm:$0xff] %vm2942_vm2, %v2926_v21  ;;  %2992 = vst.msk [vmem:[#allocation4 + $0x188] sm:$0xff] %vm2942_vm2, %v2927_v62  ;;  %8315 = vmatmul.mubr.msk.f32.gmra.mrb[26].mxu0 %vm2942_vm2, %v4568_v24  ;;  %v4577_v58 = vld [vmem:[#allocation4 + $0x80] sm:$0xff]  ;;  %v4578_v31 = vld [vmem:[#allocation4 + $0x88] sm:$0xff] }
 0x74c   :  { %2993 = vst.msk [vmem:[#allocation4 + $0x190] sm:$0xff] %vm2942_vm2, %v2928_v56  ;;  %2994 = vst.msk [vmem:[#allocation4 + $0x198] sm:$0xff] %vm2942_vm2, %v2929_v17  ;;  %8317 = vmatprep.mubr.msk.f32.mxu0 %vm2942_vm2, %v4569_v53  ;;  %v4579_v63 = vld [vmem:[#allocation4 + $0x90] sm:$0xff]  ;;  %v4580_v3 = vld [vmem:[#allocation4 + $0x98] sm:$0xff] }
 0x74d   :  { %2995 = vst.msk [vmem:[#allocation4 + $0x1a0] sm:$0xff] %vm2942_vm2, %v2930_v39  ;;  %2996 = vst.msk [vmem:[#allocation4 + $0x1a8] sm:$0xff] %vm2942_vm2, %v2931_v7  ;;  %v4581_v15 = vld [vmem:[#allocation4 + $0xa0] sm:$0xff]  ;;  %v4582_v54 = vld [vmem:[#allocation4 + $0xa8] sm:$0xff] }
 0x74e   :  { %2997 = vst.msk [vmem:[#allocation4 + $0x1b0] sm:$0xff] %vm2942_vm2, %v2932_v41  ;;  %2998 = vst.msk [vmem:[#allocation4 + $0x1b8] sm:$0xff] %vm2942_vm2, %v2933_v27  ;;  %v4583_v26 = vld [vmem:[#allocation4 + $0xb0] sm:$0xff]  ;;  %v4584_v33 = vld [vmem:[#allocation4 + $0xb8] sm:$0xff] }
 0x74f   :  { %2999 = vst.msk [vmem:[#allocation4 + $0x1c0] sm:$0xff] %vm2942_vm2, %v2934_v23  ;;  %3000 = vst.msk [vmem:[#allocation4 + $0x1c8] sm:$0xff] %vm2942_vm2, %v2935_v9  ;;  %8318 = vmatmul.mubr.msk.f32.gmra.mrb[28].mxu0 %vm2942_vm2, %v4570_v46  ;;  %v4585_v14 = vld [vmem:[#allocation4 + $0xc0] sm:$0xff]  ;;  %v4586_v5 = vld [vmem:[#allocation4 + $0xc8] sm:$0xff] }
 0x750   :  { %3001 = vst.msk [vmem:[#allocation4 + $0x1d0] sm:$0xff] %vm2942_vm2, %v2936_v44  ;;  %3002 = vst.msk [vmem:[#allocation4 + $0x1d8] sm:$0xff] %vm2942_vm2, %v2937_v40  ;;  %8320 = vmatprep.mubr.msk.f32.mxu0 %vm2942_vm2, %v4571_v57  ;;  %v4587_v19 = vld [vmem:[#allocation4 + $0xd0] sm:$0xff]  ;;  %v4588_v55 = vld [vmem:[#allocation4 + $0xd8] sm:$0xff] }
 0x751   :  { %3003 = vst.msk [vmem:[#allocation4 + $0x1e0] sm:$0xff] %vm2942_vm2, %v2938_v36  ;;  %3004 = vst.msk [vmem:[#allocation4 + $0x1e8] sm:$0xff] %vm2942_vm2, %v2939_v22  ;;  %v4589_v50 = vld [vmem:[#allocation4 + $0xe0] sm:$0xff]  ;;  %v4590_v0 = vld [vmem:[#allocation4 + $0xe8] sm:$0xff] }
 0x752   :  { %3005 = vst.msk [vmem:[#allocation4 + $0x1f0] sm:$0xff] %vm2942_vm2, %v2940_v25  ;;  %3006 = vst.msk [vmem:[#allocation4 + $0x1f8] sm:$0xff] %vm2942_vm2, %v2941_v30  ;;  %v4591_v34 = vld [vmem:[#allocation4 + $0xf0] sm:$0xff]  ;;  %v4592_v43 = vld [vmem:[#allocation4 + $0xf8] sm:$0xff] }
 0x753   :  { %8321 = vmatmul.mubr.msk.f32.gmra.mrb[30].mxu0 %vm2942_vm2, %v4572_v20  ;;  %v4593_v42 = vld [vmem:[#allocation4 + $0x100] sm:$0xff]  ;;  %v4594_v28 = vld [vmem:[#allocation4 + $0x108] sm:$0xff]  ;;  %v4595_v51 = vld [vmem:[#allocation4 + $0x110] sm:$0xff] }
 0x754   :  { %8323 = vmatprep.mubr.msk.f32.mxu0 %vm2942_vm2, %v4573_v2  ;;  %v4596_v16 = vld [vmem:[#allocation4 + $0x118] sm:$0xff]  ;;  %v4597_v38 = vld [vmem:[#allocation4 + $0x120] sm:$0xff]  ;;  %v4598_v6 = vld [vmem:[#allocation4 + $0x128] sm:$0xff] }
 0x755   :  { %v4599_v18 = vld [vmem:[#allocation4 + $0x130] sm:$0xff]  ;;  %v4600_v62 = vld [vmem:[#allocation4 + $0x138] sm:$0xff]  ;;  %v4601_v56 = vld [vmem:[#allocation4 + $0x140] sm:$0xff] }
 0x756   :  { %v14673_v10 = vld [vmem:[#allocation58_spill] sm:$0xff]  ;;  %v14674_v21 = vld [vmem:[#allocation59_spill] sm:$0xff]  ;;  %v14676_v39 = vld [vmem:[#allocation60_spill] sm:$0xff] }
 0x757   :  { %8324 = vmatmul.mubr.msk.f32.gmra.mrb[32].mxu0 %vm2942_vm2, %v4574_v61  ;;  %v14677_v41 = vld [vmem:[#allocation61_spill] sm:$0xff]  ;;  %v4603_v49 = vld [vmem:[#allocation4 + $0x150] sm:$0xff]  ;;  %v4604_v45 = vld [vmem:[#allocation4 + $0x158] sm:$0xff] }
 0x758   :  { %8326 = vmatprep.mubr.msk.f32.mxu0 %vm2942_vm2, %v4575_v29  ;;  %v4602_v60 = vld [vmem:[#allocation4 + $0x148] sm:$0xff]  ;;  %v14679_v36 = vld [vmem:[#allocation63_spill] sm:$0xff]  ;;  %v4605_v47 = vld [vmem:[#allocation4 + $0x160] sm:$0xff] }
 0x759   :  { %v14678_v40 = vld [vmem:[#allocation62_spill] sm:$0xff]  ;;  %v14680_v12 = vld [vmem:[#allocation64_spill] sm:$0xff]  ;;  %v14681_v53 = vld [vmem:[#allocation65_spill] sm:$0xff] }
 0x75a   :  { %v4606_v2 = vld [vmem:[#allocation4 + $0x168] sm:$0xff] }
 0x75b   :  { %8327 = vmatmul.mubr.msk.f32.gmra.mrb[34].mxu0 %vm2942_vm2, %v4576_v4  ;;  %v4607_v4 = vld [vmem:[#allocation4 + $0x170] sm:$0xff] }
 0x75c   :  { %8329 = vmatprep.mubr.msk.f32.mxu0 %vm2942_vm2, %v4577_v58  ;;  %v14682_v58 = vld [vmem:[#allocation66_spill] sm:$0xff] }
 0x75f   :  { %8330 = vmatmul.mubr.msk.f32.gmra.mrb[36].mxu0 %vm2942_vm2, %v4578_v31 }
 0x760   :  { %8332 = vmatprep.mubr.msk.f32.mxu0 %vm2942_vm2, %v4579_v63  ;;  %v14683_v63 = vld [vmem:[#allocation67_spill] sm:$0xff] }
 0x763   :  { %8333 = vmatmul.mubr.msk.f32.gmra.mrb[38].mxu0 %vm2942_vm2, %v4580_v3 }
 0x764   :  { %8335 = vmatprep.mubr.msk.f32.mxu0 %vm2942_vm2, %v4581_v15 }
 0x767   :  { %8336 = vmatmul.mubr.msk.f32.gmra.mrb[40].mxu0 %vm2942_vm2, %v4582_v54 }
 0x768   :  { %8338 = vmatprep.mubr.msk.f32.mxu0 %vm2942_vm2, %v4583_v26  ;;  %v4608_v26 = vld [vmem:[#allocation4 + $0x178] sm:$0xff] }
 0x76b   :  { %8339 = vmatmul.mubr.msk.f32.gmra.mrb[42].mxu0 %vm2942_vm2, %v4584_v33 }
 0x76c   :  { %8341 = vmatprep.mubr.msk.f32.mxu0 %vm2942_vm2, %v4585_v14 }
 0x76f   :  { %8342 = vmatmul.mubr.msk.f32.gmra.mrb[44].mxu0 %vm2942_vm2, %v4586_v5  ;;  %v4609_v5 = vld [vmem:[#allocation4 + $0x180] sm:$0xff] }
 0x770   :  { %8344 = vmatprep.mubr.msk.f32.mxu0 %vm2942_vm2, %v4587_v19  ;;  %v14684_v19 = vld [vmem:[#allocation70_spill] sm:$0xff] }
 0x773   :  { %8345 = vmatmul.mubr.msk.f32.gmra.mrb[46].mxu0 %vm2942_vm2, %v4588_v55 }
 0x774   :  { %8347 = vmatprep.mubr.msk.f32.mxu0 %vm2942_vm2, %v4589_v50  ;;  %v14685_v50 = vld [vmem:[#allocation69_spill] sm:$0xff] }
 0x777   :  { %8348 = vmatmul.mubr.msk.f32.gmra.mrb[48].mxu0 %vm2942_vm2, %v4590_v0 }
 0x778   :  { %8350 = vmatprep.mubr.msk.f32.mxu0 %vm2942_vm2, %v4591_v34 }
 0x77b   :  { %8351 = vmatmul.mubr.msk.f32.gmra.mrb[50].mxu0 %vm2942_vm2, %v4592_v43 }
 0x77c   :  { %8353 = vmatprep.mubr.msk.f32.mxu0 %vm2942_vm2, %v4593_v42  ;;  %v4610_v42 = vld [vmem:[#allocation4 + $0x188] sm:$0xff] }
 0x77f   :  { %8354 = vmatmul.mubr.msk.f32.gmra.mrb[52].mxu0 %vm2942_vm2, %v4594_v28  ;;  %v11911_v11 = vpop.permute.xlu1 %4043 }
 0x780   :  { %8356 = vmatprep.mubr.msk.f32.mxu0 %vm2942_vm2, %v4595_v51  ;;  %v11914_v52 = vpop.permute.xlu0 %3525 }
 0x781   :  { %14672 = vst [vmem:[#allocation106_spill] sm:$0xff] %v11914_v52  ;;  %v3551_v32 = vmul.f32 %v11914_v52, %v14673_v10  ;;  %v3550_v13 = vmul.f32 %v11914_v52, %v14674_v21  ;;  %v3553_v7 = vmul.f32 %v11914_v52, %v14676_v39  ;;  %v3552_v27 = vmul.f32 %v11914_v52, %v14677_v41 }
 0x782   :  { %v3555_v59 = vmul.f32 %v11914_v52, %v14678_v40  ;;  %v3554_v35 = vmul.f32 %v11914_v52, %v14679_v36  ;;  %v3557_v24 = vmul.f32 %v11914_v52, %v14680_v12  ;;  %v3556_v46 = vmul.f32 %v11914_v52, %v14681_v53 }
 0x783   :  { %8357 = vmatmul.mubr.msk.f32.gmra.mrb[54].mxu0 %vm2942_vm2, %v4596_v16  ;;  %v11921_v48 = vpop.permute.xlu1 %3592  ;;  %v3559_v31 = vmul.f32 %v11914_v52, %v14682_v58  ;;  %v3558_v3 = vmul.f32 %v11914_v52, %v14683_v63  ;;  %v3563_v55 = vmul.f32 %v11914_v52, %v14684_v19  ;;  %v3560_v0 = vmul.f32 %v11914_v52, %v14685_v50  ;;  %v4611_v16 = vld [vmem:[#allocation4 + $0x190] sm:$0xff] }
 0x784   :  { %8359 = vmatprep.mubr.msk.f32.mxu0 %vm2942_vm2, %v4597_v38  ;;  %14675 = vst [vmem:[#allocation107_spill] sm:$0xff] %v11921_v48  ;;  %v3618_v37 = vadd.f32 %v11921_v48, %v3551_v32  ;;  %v3617_v17 = vadd.f32 %v11921_v48, %v3550_v13  ;;  %v3620_v8 = vadd.f32 %v11921_v48, %v3553_v7  ;;  %v14686_v38 = vld [vmem:[#allocation72_spill] sm:$0xff] }
 0x785   :  { %v3619_v44 = vadd.f32 %v11921_v48, %v3552_v27  ;;  %v3622_v1 = vadd.f32 %v11921_v48, %v3555_v59  ;;  %v3621_v30 = vadd.f32 %v11921_v48, %v3554_v35  ;;  %v3624_v20 = vadd.f32 %v11921_v48, %v3557_v24  ;;  %v4613_v7 = vld [vmem:[#allocation4 + $0x1a0] sm:$0xff]  ;;  %v14688_v27 = vld [vmem:[#allocation74_spill] sm:$0xff] }
 0x786   :  { %v3682_v23 = vmax.f32 %v3618_v37, 0.0  ;;  %v3681_v9 = vmax.f32 %v3617_v17, 0.0  ;;  %v3684_v22 = vmax.f32 %v3620_v8, 0.0  ;;  %v3623_v29 = vadd.f32 %v11921_v48, %v3556_v46  ;;  %v4616_v46 = vld [vmem:[#allocation4 + $0x1b8] sm:$0xff] }
 0x787   :  { %8360 = vmatmul.mubr.msk.f32.gmra.mrb[56].mxu0 %vm2942_vm2, %v4598_v6  ;;  %v3683_v25 = vmax.f32 %v3619_v44, 0.0  ;;  %v3686_v57 = vmax.f32 %v3622_v1, 0.0  ;;  %v3685_v61 = vmax.f32 %v3621_v30, 0.0  ;;  %v3688_v15 = vmax.f32 %v3624_v20, 0.0  ;;  %v14690_v1 = vld [vmem:[#allocation76_spill] sm:$0xff] }
 0x788   :  { %8362 = vmatprep.mubr.msk.f32.mxu0 %vm2942_vm2, %v4599_v18  ;;  %3833 = vrot.lane.b32.xlu1 %v3682_v23, %s9679_s14  ;;  %v3626_v54 = vadd.f32 %v11921_v48, %v3559_v31  ;;  %v3687_v33 = vmax.f32 %v3623_v29, 0.0  ;;  %v3625_v14 = vadd.f32 %v11921_v48, %v3558_v3  ;;  %v3630_v43 = vadd.f32 %v11921_v48, %v3563_v55  ;;  %v14687_v18 = vld [vmem:[#allocation68_spill] sm:$0xff] }
 0x789   :  { %3831 = vrot.lane.b32.xlu0 %v3681_v9, %s9679_s14  ;;  %v3627_v51 = vadd.f32 %v11921_v48, %v3560_v0  ;;  %v3565_v6 = vmul.f32 %v11914_v52, %v14686_v38  ;;  %v3561_v32 = vmul.f32 %v11914_v52, %v14687_v18  ;;  %v3567_v23 = vmul.f32 %v11914_v52, %v14688_v27  ;;  %v14689_v9 = vld [vmem:[#allocation71_spill] sm:$0xff]  ;;  %v14695_v0 = vld [vmem:[#allocation77_spill] sm:$0xff] }
 0x78a   :  { %v3690_v34 = vmax.f32 %v3626_v54, 0.0  ;;  %v3689_v28 = vmax.f32 %v3625_v14, 0.0  ;;  %v3694_v13 = vmax.f32 %v3630_v43, 0.0  ;;  %v3562_v8 = vmul.f32 %v11914_v52, %v14689_v9  ;;  %v4618_v54 = vld [vmem:[#allocation4 + $0x1c8] sm:$0xff]  ;;  %v4619_v14 = vld [vmem:[#allocation4 + $0x1d0] sm:$0xff]  ;;  %v12021_v43 = vpop.permute.xlu0 %3007 }
 0x78b   :  { %8363 = vmatmul.mubr.msk.f32.gmra.mrb[58].mxu0 %vm2942_vm2, %v4600_v62  ;;  %v3632_v62 = vadd.f32 %v11921_v48, %v3565_v6  ;;  %v3691_v37 = vmax.f32 %v3627_v51, 0.0  ;;  %v3628_v17 = vadd.f32 %v11921_v48, %v3561_v32  ;;  %v3634_v44 = vadd.f32 %v11921_v48, %v3567_v23  ;;  %v4620_v51 = vld [vmem:[#allocation4 + $0x1d8] sm:$0xff]  ;;  %v12025_v32 = vpop.permute.xlu1 %3074 }
 0x78c   :  { %8365 = vmatprep.mubr.msk.f32.mxu0 %vm2942_vm2, %v4601_v56  ;;  %3837 = vrot.lane.b32.xlu1 %v3684_v22, %s9679_s14  ;;  %v4612_v56 = vld [vmem:[#allocation4 + $0x198] sm:$0xff]  ;;  %v3629_v35 = vadd.f32 %v11921_v48, %v3562_v8  ;;  %v4615_v22 = vld [vmem:[#allocation4 + $0x1b0] sm:$0xff]  ;;  %v4622_v8 = vld [vmem:[#allocation4 + $0x1e8] sm:$0xff] }
 0x78d   :  { %3835 = vrot.lane.b32.xlu0 %v3683_v25, %s9679_s14  ;;  %v3692_v59 = vmax.f32 %v3628_v17, 0.0  ;;  %v14691_v25 = vld [vmem:[#allocation73_spill] sm:$0xff] }
 0x78e   :  { %v3564_v30 = vmul.f32 %v11914_v52, %v14691_v25 }
 0x78f   :  { %8366 = vmatmul.mubr.msk.f32.gmra.mrb[60].mxu0 %vm2942_vm2, %v4602_v60  ;;  %v3696_v60 = vmax.f32 %v3632_v62, 0.0  ;;  %v14696_v62 = vld [vmem:[#allocation81_spill] sm:$0xff] }
 0x790   :  { %8368 = vmatprep.mubr.msk.f32.mxu0 %vm2942_vm2, %v4603_v49  ;;  %3841 = vrot.lane.b32.xlu1 %v3686_v57, %s9679_s14  ;;  %v4614_v49 = vld [vmem:[#allocation4 + $0x1a8] sm:$0xff]  ;;  %v3693_v57 = vmax.f32 %v3629_v35, 0.0  ;;  %v3631_v20 = vadd.f32 %v11921_v48, %v3564_v30 }
 0x791   :  { %3839 = vrot.lane.b32.xlu0 %v3685_v61, %s9679_s14  ;;  %v14692_v61 = vld [vmem:[#allocation79_spill] sm:$0xff] }
 0x792   :  { %v3570_v29 = vmul.f32 %v11914_v52, %v14692_v61 }
 0x793   :  { %8369 = vmatmul.mubr.msk.f32.gmra.mrb[62].mxu0 %vm2942_vm2, %v4604_v45  ;;  %v3569_v45 = vmul.f32 %v11914_v52, %v14690_v1 }
 0x794   :  { %8371 = vmatprep.mubr.msk.f32.mxu0 %vm2942_vm2, %v4605_v47  ;;  %3845 = vrot.lane.b32.xlu1 %v3688_v15, %s9679_s14  ;;  %v3698_v47 = vmax.f32 %v3634_v44, 0.0  ;;  %v3637_v15 = vadd.f32 %v11921_v48, %v3570_v29  ;;  %v14701_v29 = vld [vmem:[#allocation38_spill] sm:$0xff] }
 0x795   :  { %3843 = vrot.lane.b32.xlu0 %v3687_v33, %s9679_s14  ;;  %v3636_v24 = vadd.f32 %v11921_v48, %v3569_v45 }
 0x797   :  { %8372 = vmatmul.mubr.msk.f32.gmra.mrb[64].mxu0 %vm2942_vm2, %v4606_v2  ;;  %v4617_v2 = vld [vmem:[#allocation4 + $0x1c0] sm:$0xff]  ;;  %v3700_v3 = vmax.f32 %v3636_v24, 0.0  ;;  %v4624_v24 = vld [vmem:[#allocation4 + $0x1f8] sm:$0xff] }
 0x798   :  { %8374 = vmatprep.mubr.msk.f32.mxu0 %vm2942_vm2, %v4607_v4  ;;  %3849 = vrot.lane.b32.xlu1 %v3690_v34, %s9679_s14  ;;  %v14693_v4 = vld [vmem:[#allocation75_spill] sm:$0xff]  ;;  %v3568_v34 = vmul.f32 %v11914_v52, %v14695_v0 }
 0x799   :  { %3847 = vrot.lane.b32.xlu0 %v3689_v28, %s9679_s14  ;;  %v3566_v31 = vmul.f32 %v11914_v52, %v14693_v4 }
 0x79a   :  { %v3635_v6 = vadd.f32 %v11921_v48, %v3568_v34 }
 0x79b   :  { %8375 = vmatmul.mubr.msk.f32.gmra.mrb[66].mxu0 %vm2942_vm2, %v4608_v26  ;;  %v3695_v26 = vmax.f32 %v3631_v20, 0.0  ;;  %v3633_v33 = vadd.f32 %v11921_v48, %v3566_v31  ;;  %v14700_v20 = vld [vmem:[#allocation83_spill] sm:$0xff]  ;;  %v3012_v31 = vmul.f32 %v12021_v43, %v14701_v29 }
 0x79c   :  { %8377 = vmatprep.mubr.msk.f32.mxu0 %vm2942_vm2, %v4609_v5  ;;  %3857 = vrot.lane.b32.xlu1 %v3694_v13, %s9679_s14  ;;  %v14694_v5 = vld [vmem:[#allocation78_spill] sm:$0xff]  ;;  %v4621_v13 = vld [vmem:[#allocation4 + $0x1e0] sm:$0xff] }
 0x79d   :  { %3851 = vrot.lane.b32.xlu0 %v3691_v37, %s9679_s14  ;;  %v3571_v55 = vmul.f32 %v11914_v52, %v14694_v5  ;;  %v14697_v37 = vld [vmem:[#allocation37_spill] sm:$0xff] }
 0x79e   :  { %v3010_v17 = vmul.f32 %v12021_v43, %v14697_v37 }
 0x79f   :  { %8378 = vmatmul.mubr.msk.f32.gmra.mrb[68].mxu0 %vm2942_vm2, %v4610_v42  ;;  %v3701_v42 = vmax.f32 %v3637_v15, 0.0  ;;  %v3638_v28 = vadd.f32 %v11921_v48, %v3571_v55  ;;  %v14703_v55 = vld [vmem:[#allocation39_spill] sm:$0xff] }
 0x7a0   :  { %8380 = vmatprep.mubr.msk.f32.mxu0 %vm2942_vm2, %v4611_v16  ;;  %3861 = vrot.lane.b32.xlu1 %v3696_v60, %s9679_s14  ;;  %v3697_v16 = vmax.f32 %v3633_v33, 0.0  ;;  %v3699_v60 = vmax.f32 %v3635_v6, 0.0  ;;  %v3077_v44 = vadd.f32 %v12025_v32, %v3010_v17  ;;  %v14702_v33 = vld [vmem:[#allocation82_spill] sm:$0xff]  ;;  %v3013_v34 = vmul.f32 %v12021_v43, %v14703_v55  ;;  %v14704_v6 = vld [vmem:[#allocation85_spill] sm:$0xff] }
 0x7a1   :  { %3853 = vrot.lane.b32.xlu0 %v3692_v59, %s9679_s14  ;;  %v14698_v59 = vld [vmem:[#allocation80_spill] sm:$0xff] }
 0x7a2   :  { %v3573_v35 = vmul.f32 %v11914_v52, %v14698_v59 }
 0x7a3   :  { %8381 = vmatmul.mubr.msk.f32.gmra.mrb[70].mxu0 %vm2942_vm2, %v4612_v56  ;;  %v3572_v56 = vmul.f32 %v11914_v52, %v14696_v62 }
 0x7a4   :  { %8383 = vmatprep.mubr.msk.f32.mxu0 %vm2942_vm2, %v4613_v7  ;;  %3865 = vrot.lane.b32.xlu1 %v3698_v47, %s9679_s14  ;;  %v3702_v7 = vmax.f32 %v3638_v28, 0.0  ;;  %v3640_v47 = vadd.f32 %v11921_v48, %v3573_v35  ;;  %v14707_v35 = vld [vmem:[#allocation41_spill] sm:$0xff] }
 0x7a5   :  { %3855 = vrot.lane.b32.xlu0 %v3693_v57, %s9679_s14  ;;  %v3639_v23 = vadd.f32 %v11921_v48, %v3572_v56  ;;  %v14705_v56 = vld [vmem:[#allocation40_spill] sm:$0xff] }
 0x7a6   :  { %v3014_v17 = vmul.f32 %v12021_v43, %v14705_v56 }
 0x7a7   :  { %8384 = vmatmul.mubr.msk.f32.gmra.mrb[72].mxu0 %vm2942_vm2, %v4614_v49  ;;  %v4623_v49 = vld [vmem:[#allocation4 + $0x1f0] sm:$0xff]  ;;  %v3703_v30 = vmax.f32 %v3639_v23, 0.0 }
 0x7a8   :  { %8386 = vmatprep.mubr.msk.f32.mxu0 %vm2942_vm2, %v4615_v22  ;;  %3869 = vrot.lane.b32.xlu1 %v3700_v3, %s9679_s14  ;;  %v14699_v22 = vld [vmem:[#allocation36_spill] sm:$0xff]  ;;  %v3704_v3 = vmax.f32 %v3640_v47, 0.0 }
 0x7a9   :  { %3859 = vrot.lane.b32.xlu0 %v3695_v26, %s9679_s14  ;;  %v3011_v45 = vmul.f32 %v12021_v43, %v14699_v22  ;;  %v3079_v26 = vadd.f32 %v12025_v32, %v3012_v31  ;;  %v14709_v31 = vld [vmem:[#allocation42_spill] sm:$0xff] }
 0x7ab   :  { %8387 = vmatmul.mubr.msk.f32.gmra.mrb[74].mxu0 %vm2942_vm2, %v4616_v46  ;;  %v3141_v46 = vmax.f32 %v3077_v44, 0.0  ;;  %v3078_v57 = vadd.f32 %v12025_v32, %v3011_v45  ;;  %v14706_v44 = vld [vmem:[#allocation84_spill] sm:$0xff]  ;;  %v3015_v45 = vmul.f32 %v12021_v43, %v14707_v35 }
 0x7ac   :  { %8389 = vmatprep.mubr.msk.f32.mxu0 %vm2942_vm2, %v4617_v2  ;;  %3871 = vrot.lane.b32.xlu1 %v3701_v42, %s9679_s14  ;;  %v3574_v2 = vmul.f32 %v11914_v52, %v14700_v20 }
 0x7ad   :  { %3863 = vrot.lane.b32.xlu0 %v3697_v16, %s9679_s14  ;;  %v3080_v16 = vadd.f32 %v12025_v32, %v3013_v34  ;;  %v14710_v34 = vld [vmem:[#allocation86_spill] sm:$0xff] }
 0x7ae   :  { %v3641_v15 = vadd.f32 %v11921_v48, %v3574_v2 }
 0x7af   :  { %8390 = vmatmul.mubr.msk.f32.gmra.mrb[76].mxu0 %vm2942_vm2, %v4618_v54  ;;  %v3142_v54 = vmax.f32 %v3078_v57, 0.0  ;;  %v14708_v57 = vld [vmem:[#allocation87_spill] sm:$0xff] }
 0x7b0   :  { %8392 = vmatprep.mubr.msk.f32.mxu0 %vm2942_vm2, %v4619_v14  ;;  %3873 = vrot.lane.b32.xlu1 %v3702_v7, %s9679_s14  ;;  %v3575_v14 = vmul.f32 %v11914_v52, %v14702_v33  ;;  %v3705_v42 = vmax.f32 %v3641_v15, 0.0  ;;  %v3578_v2 = vmul.f32 %v11914_v52, %v14708_v57 }
 0x7b1   :  { %3867 = vrot.lane.b32.xlu0 %v3699_v60, %s9679_s14  ;;  %v3081_v60 = vadd.f32 %v12025_v32, %v3014_v17 }
 0x7b2   :  { %v3642_v28 = vadd.f32 %v11921_v48, %v3575_v14 }
 0x7b3   :  { %8393 = vmatmul.mubr.msk.f32.gmra.mrb[78].mxu0 %vm2942_vm2, %v4620_v51  ;;  %v3143_v51 = vmax.f32 %v3079_v26, 0.0 }
 0x7b4   :  { %8395 = vmatprep.mubr.msk.f32.mxu0 %vm2942_vm2, %v4621_v13  ;;  %3875 = vrot.lane.b32.xlu1 %v3703_v30, %s9679_s14  ;;  %v3576_v13 = vmul.f32 %v11914_v52, %v14704_v6  ;;  %v3706_v7 = vmax.f32 %v3642_v28, 0.0  ;;  %v14711_v28 = vld [vmem:[#allocation43_spill] sm:$0xff] }
 0x7b5   :  { %3269 = vrot.lane.b32.xlu0 %v3141_v46, %s9681_s29  ;;  %v3082_v46 = vadd.f32 %v12025_v32, %v3015_v45 }
 0x7b6   :  { %v3643_v23 = vadd.f32 %v11921_v48, %v3576_v13 }
 0x7b7   :  { %8396 = vmatmul.mubr.msk.f32.gmra.mrb[80].mxu0 %vm2942_vm2, %v4622_v8  ;;  %v3144_v8 = vmax.f32 %v3080_v16, 0.0  ;;  %v3146_v26 = vmax.f32 %v3082_v46, 0.0  ;;  %v14714_v46 = vld [vmem:[#allocation88_spill] sm:$0xff] }
 0x7b8   :  { %8398 = vmatprep.mubr.msk.f32.mxu0 %vm2942_vm2, %v4623_v49  ;;  %3877 = vrot.lane.b32.xlu1 %v3704_v3, %s9679_s14  ;;  %v3577_v49 = vmul.f32 %v11914_v52, %v14706_v44  ;;  %v3707_v30 = vmax.f32 %v3643_v23, 0.0  ;;  %v3016_v3 = vmul.f32 %v12021_v43, %v14709_v31  ;;  %v14712_v23 = vld [vmem:[#allocation89_spill] sm:$0xff] }
 0x7b9   :  { %3271 = vrot.lane.b32.xlu0 %v3142_v54, %s9681_s29  ;;  %v3645_v54 = vadd.f32 %v11921_v48, %v3578_v2  ;;  %v3581_v2 = vmul.f32 %v11914_v52, %v14714_v46 }
 0x7ba   :  { %v3644_v47 = vadd.f32 %v11921_v48, %v3577_v49  ;;  %v3083_v14 = vadd.f32 %v12025_v32, %v3016_v3  ;;  %v14715_v3 = vld [vmem:[#allocation45_spill] sm:$0xff] }
 0x7bb   :  { %8399 = vmatmul.mubr.msk.f32.gmra.mrb[82].mxu0 %vm2942_vm2, %v4624_v24  ;;  %v3145_v24 = vmax.f32 %v3081_v60, 0.0  ;;  %v3709_v16 = vmax.f32 %v3645_v54, 0.0  ;;  %v14713_v60 = vld [vmem:[#allocation44_spill] sm:$0xff] }
 0x7bc   :  { %3879 = vrot.lane.b32.xlu1 %v3705_v42, %s9679_s14  ;;  %v3708_v15 = vmax.f32 %v3644_v47, 0.0  ;;  %v3579_v42 = vmul.f32 %v11914_v52, %v14710_v34  ;;  %v3147_v17 = vmax.f32 %v3083_v14, 0.0  ;;  %v3018_v49 = vmul.f32 %v12021_v43, %v14713_v60 }
 0x7bd   :  { %3273 = vrot.lane.b32.xlu0 %v3143_v51, %s9681_s29  ;;  %v3017_v51 = vmul.f32 %v12021_v43, %v14711_v28 }
 0x7be   :  { %v3646_v13 = vadd.f32 %v11921_v48, %v3579_v42 }
 0x7c0   :  { %3881 = vrot.lane.b32.xlu1 %v3706_v7, %s9679_s14  ;;  %v3084_v7 = vadd.f32 %v12025_v32, %v3017_v51  ;;  %v3710_v45 = vmax.f32 %v3646_v13, 0.0  ;;  %v14716_v51 = vld [vmem:[#allocation91_spill] sm:$0xff]  ;;  %v14717_v13 = vld [vmem:[#allocation46_spill] sm:$0xff] }
 0x7c1   :  { %3275 = vrot.lane.b32.xlu0 %v3144_v8, %s9681_s29  ;;  %v3580_v8 = vmul.f32 %v11914_v52, %v14712_v23 }
 0x7c2   :  { %v3148_v47 = vmax.f32 %v3084_v7, 0.0 }
 0x7c4   :  { %3883 = vrot.lane.b32.xlu1 %v3707_v30, %s9679_s14  ;;  %v3647_v30 = vadd.f32 %v11921_v48, %v3580_v8 }
 0x7c5   :  { %3277 = vrot.lane.b32.xlu0 %v3145_v24, %s9681_s29  ;;  %v3085_v24 = vadd.f32 %v12025_v32, %v3018_v49 }
 0x7c6   :  { %v3711_v54 = vmax.f32 %v3647_v30, 0.0  ;;  %v14718_v30 = vld [vmem:[#allocation90_spill] sm:$0xff] }
 0x7c7   :  { %v3149_v14 = vmax.f32 %v3085_v24, 0.0  ;;  %v14719_v24 = vld [vmem:[#allocation47_spill] sm:$0xff] }
 0x7c8   :  { %3885 = vrot.lane.b32.xlu1 %v3708_v15, %s9679_s14  ;;  %v3019_v15 = vmul.f32 %v12021_v43, %v14715_v3 }
 0x7c9   :  { %3279 = vrot.lane.b32.xlu0 %v3146_v26, %s9681_s29  ;;  %v3648_v26 = vadd.f32 %v11921_v48, %v3581_v2  ;;  %v3021_v2 = vmul.f32 %v12021_v43, %v14719_v24 }
 0x7ca   :  { %v3086_v42 = vadd.f32 %v12025_v32, %v3019_v15 }
 0x7cb   :  { %v3712_v7 = vmax.f32 %v3648_v26, 0.0  ;;  %v3088_v26 = vadd.f32 %v12025_v32, %v3021_v2  ;;  %v14723_v2 = vld [vmem:[#allocation49_spill] sm:$0xff] }
 0x7cc   :  { %3887 = vrot.lane.b32.xlu1 %v3709_v16, %s9679_s14  ;;  %v3582_v16 = vmul.f32 %v11914_v52, %v14716_v51  ;;  %v3150_v49 = vmax.f32 %v3086_v42, 0.0  ;;  %v14720_v42 = vld [vmem:[#allocation93_spill] sm:$0xff] }
 0x7cd   :  { %3281 = vrot.lane.b32.xlu0 %v3147_v17, %s9681_s29  ;;  %v3020_v17 = vmul.f32 %v12021_v43, %v14717_v13  ;;  %v3152_v51 = vmax.f32 %v3088_v26, 0.0  ;;  %v14724_v26 = vld [vmem:[#allocation95_spill] sm:$0xff] }
 0x7ce   :  { %v3649_v8 = vadd.f32 %v11921_v48, %v3582_v16  ;;  %v3584_v16 = vmul.f32 %v11914_v52, %v14720_v42 }
 0x7d0   :  { %3889 = vrot.lane.b32.xlu1 %v3710_v45, %s9679_s14  ;;  %v3087_v45 = vadd.f32 %v12025_v32, %v3020_v17  ;;  %v3713_v15 = vmax.f32 %v3649_v8, 0.0  ;;  %v14721_v17 = vld [vmem:[#allocation48_spill] sm:$0xff] }
 0x7d1   :  { %3283 = vrot.lane.b32.xlu0 %v3148_v47, %s9681_s29  ;;  %v3583_v47 = vmul.f32 %v11914_v52, %v14718_v30  ;;  %v3651_v30 = vadd.f32 %v11921_v48, %v3584_v16  ;;  %v3586_v16 = vmul.f32 %v11914_v52, %v14724_v26 }
 0x7d4   :  { %3891 = vrot.lane.b32.xlu1 %v3711_v54, %s9679_s14  ;;  %v3650_v54 = vadd.f32 %v11921_v48, %v3583_v47 }
 0x7d5   :  { %3285 = vrot.lane.b32.xlu0 %v3149_v14, %s9681_s29  ;;  %v3151_v14 = vmax.f32 %v3087_v45, 0.0  ;;  %v14722_v45 = vld [vmem:[#allocation92_spill] sm:$0xff] }
 0x7d6   :  { %v3585_v47 = vmul.f32 %v11914_v52, %v14722_v45  ;;  %v3653_v45 = vadd.f32 %v11921_v48, %v3586_v16 }
 0x7d8   :  { %3893 = vrot.lane.b32.xlu1 %v3712_v7, %s9679_s14  ;;  %v3022_v7 = vmul.f32 %v12021_v43, %v14721_v17  ;;  %v3652_v42 = vadd.f32 %v11921_v48, %v3585_v47 }
 0x7d9   :  { %3287 = vrot.lane.b32.xlu0 %v3150_v49, %s9681_s29  ;;  %v3714_v49 = vmax.f32 %v3650_v54, 0.0 }
 0x7da   :  { %v3089_v8 = vadd.f32 %v12025_v32, %v3022_v7  ;;  %v14725_v7 = vld [vmem:[#allocation50_spill] sm:$0xff] }
 0x7dc   :  { %3895 = vrot.lane.b32.xlu1 %v3713_v15, %s9679_s14  ;;  %v3023_v15 = vmul.f32 %v12021_v43, %v14723_v2  ;;  %v3153_v46 = vmax.f32 %v3089_v8, 0.0  ;;  %v14726_v8 = vld [vmem:[#allocation94_spill] sm:$0xff] }
 0x7dd   :  { %3289 = vrot.lane.b32.xlu0 %v3151_v14, %s9681_s29  ;;  %v3715_v14 = vmax.f32 %v3651_v30, 0.0  ;;  %v3587_v47 = vmul.f32 %v11914_v52, %v14726_v8 }
 0x7de   :  { %v3090_v54 = vadd.f32 %v12025_v32, %v3023_v15  ;;  %v14727_v15 = vld [vmem:[#allocation51_spill] sm:$0xff] }
 0x7df   :  { %v3654_v26 = vadd.f32 %v11921_v48, %v3587_v47 }
 0x7e0   :  { %3897 = vrot.lane.b32.xlu1 %v3714_v49, %s9679_s14  ;;  %v3024_v49 = vmul.f32 %v12021_v43, %v14725_v7  ;;  %v3154_v23 = vmax.f32 %v3090_v54, 0.0  ;;  %v14728_v54 = vld [vmem:[#allocation97_spill] sm:$0xff] }
 0x7e1   :  { %3291 = vrot.lane.b32.xlu0 %v3152_v51, %s9681_s29  ;;  %v3716_v51 = vmax.f32 %v3652_v42, 0.0  ;;  %v3588_v16 = vmul.f32 %v11914_v52, %v14728_v54 }
 0x7e2   :  { %v3091_v30 = vadd.f32 %v12025_v32, %v3024_v49  ;;  %v14729_v49 = vld [vmem:[#allocation53_spill] sm:$0xff] }
 0x7e3   :  { %v3655_v8 = vadd.f32 %v11921_v48, %v3588_v16 }
 0x7e4   :  { %3899 = vrot.lane.b32.xlu1 %v3715_v14, %s9679_s14  ;;  %v3025_v14 = vmul.f32 %v12021_v43, %v14727_v15  ;;  %v3155_v34 = vmax.f32 %v3091_v30, 0.0  ;;  %v14730_v30 = vld [vmem:[#allocation96_spill] sm:$0xff] }
 0x7e5   :  { %3293 = vrot.lane.b32.xlu0 %v3153_v46, %s9681_s29  ;;  %v3717_v46 = vmax.f32 %v3653_v45, 0.0  ;;  %v3589_v47 = vmul.f32 %v11914_v52, %v14730_v30 }
 0x7e6   :  { %v3092_v42 = vadd.f32 %v12025_v32, %v3025_v14  ;;  %v14731_v14 = vld [vmem:[#allocation52_spill] sm:$0xff] }
 0x7e7   :  { %v3656_v54 = vadd.f32 %v11921_v48, %v3589_v47  ;;  %v14734_v47 = vld [vmem:[#allocation98_spill] sm:$0xff] }
 0x7e8   :  { %3901 = vrot.lane.b32.xlu1 %v3716_v51, %s9679_s14  ;;  %v3026_v51 = vmul.f32 %v12021_v43, %v14729_v49  ;;  %v3156_v57 = vmax.f32 %v3092_v42, 0.0  ;;  %v14732_v42 = vld [vmem:[#allocation99_spill] sm:$0xff] }
 0x7e9   :  { %3295 = vrot.lane.b32.xlu0 %v3154_v23, %s9681_s29  ;;  %v3718_v23 = vmax.f32 %v3654_v26, 0.0  ;;  %v3590_v16 = vmul.f32 %v11914_v52, %v14732_v42  ;;  %v3720_v30 = vmax.f32 %v3656_v54, 0.0 }
 0x7ea   :  { %v3093_v45 = vadd.f32 %v12025_v32, %v3026_v51  ;;  %v14733_v51 = vld [vmem:[#allocation55_spill] sm:$0xff] }
 0x7ec   :  { %3903 = vrot.lane.b32.xlu1 %v3717_v46, %s9679_s14  ;;  %v3027_v46 = vmul.f32 %v12021_v43, %v14731_v14  ;;  %v3157_v44 = vmax.f32 %v3093_v45, 0.0 }
 0x7ed   :  { %3297 = vrot.lane.b32.xlu0 %v3155_v34, %s9681_s29  ;;  %v3719_v34 = vmax.f32 %v3655_v8, 0.0  ;;  %v3657_v8 = vadd.f32 %v11921_v48, %v3590_v16 }
 0x7ee   :  { %v3094_v26 = vadd.f32 %v12025_v32, %v3027_v46  ;;  %v3591_v46 = vmul.f32 %v11914_v52, %v14734_v47 }
 0x7ef   :  { %v3721_v33 = vmax.f32 %v3657_v8, 0.0 }
 0x7f0   :  { %3905 = vrot.lane.b32.xlu1 %v3718_v23, %s9679_s14  ;;  %v3028_v23 = vmul.f32 %v12021_v43, %v14733_v51  ;;  %v3158_v6 = vmax.f32 %v3094_v26, 0.0  ;;  %v3658_v20 = vadd.f32 %v11921_v48, %v3591_v46 }
 0x7f1   :  { %3299 = vrot.lane.b32.xlu0 %v3156_v57, %s9681_s29  ;;  %v12182_v57 = vpop.permute.xlu1 %4110 }
 0x7f2   :  { %v3095_v45 = vadd.f32 %v12025_v32, %v3028_v23  ;;  %v3722_v46 = vmax.f32 %v3658_v20, 0.0 }
 0x7f4   :  { %3907 = vrot.lane.b32.xlu1 %v3719_v34, %s9679_s14  ;;  %v14735_v34 = vld [vmem:[#allocation54_spill] sm:$0xff]  ;;  %v3159_v26 = vmax.f32 %v3095_v45, 0.0 }
 0x7f5   :  { %3301 = vrot.lane.b32.xlu0 %v3157_v44, %s9681_s29  ;;  %v3029_v44 = vmul.f32 %v12021_v43, %v14735_v34 }
 0x7f7   :  { %v3096_v16 = vadd.f32 %v12025_v32, %v3029_v44 }
 0x7f8   :  { %3909 = vrot.lane.b32.xlu1 %v3720_v30, %s9679_s14  ;;  %v14736_v30 = vld [vmem:[#allocation57_spill] sm:$0xff] }
 0x7f9   :  { %3303 = vrot.lane.b32.xlu0 %v3158_v6, %s9681_s29  ;;  %v4046_v6 = vmul.f32 %v11911_v11, %v14697_v37  ;;  %v3030_v23 = vmul.f32 %v12021_v43, %v14736_v30  ;;  %v3160_v45 = vmax.f32 %v3096_v16, 0.0 }
 0x7fa   :  { %v3834_v42 = vpop.permute.xlu1 %3833 }
 0x7fb   :  { %v3832_v54 = vpop.permute.xlu0 %3831  ;;  %4002 = vst.msk [vmem:[#allocation4 + $0x4b8] sm:$0xff] %vm2942_vm2, %v3834_v42  ;;  %v4113_v48 = vadd.f32 %v12182_v57, %v4046_v6  ;;  %v3097_v44 = vadd.f32 %v12025_v32, %v3030_v23 }
 0x7fc   :  { %4001 = vst.msk [vmem:[#allocation4 + $0x4b0] sm:$0xff] %vm2942_vm2, %v3832_v54  ;;  %3911 = vrot.lane.b32.xlu1 %v3721_v33, %s9679_s14  ;;  %v4047_v33 = vmul.f32 %v11911_v11, %v14699_v22  ;;  %v14737_v54 = vld [vmem:[#allocation56_spill] sm:$0xff] }
 0x7fd   :  { %3305 = vrot.lane.b32.xlu0 %v3159_v26, %s9681_s29  ;;  %v3031_v20 = vmul.f32 %v12021_v43, %v14737_v54  ;;  %v4177_v6 = vmax.f32 %v4113_v48, 0.0  ;;  %v3032_v48 = vmul.f32 %v12021_v43, %v14674_v21 }
 0x7fe   :  { %v3838_v8 = vpop.permute.xlu1 %3837 }
 0x7ff   :  { %v3836_v42 = vpop.permute.xlu0 %3835  ;;  %4004 = vst.msk [vmem:[#allocation4 + $0x4c8] sm:$0xff] %vm2942_vm2, %v3838_v8  ;;  %v4114_v8 = vadd.f32 %v12182_v57, %v4047_v33  ;;  %v3099_v22 = vadd.f32 %v12025_v32, %v3032_v48 }
 0x800   :  { %4003 = vst.msk [vmem:[#allocation4 + $0x4c0] sm:$0xff] %vm2942_vm2, %v3836_v42  ;;  %3913 = vrot.lane.b32.xlu1 %v3722_v46, %s9679_s14  ;;  %v3161_v42 = vmax.f32 %v3097_v44, 0.0  ;;  %v3098_v46 = vadd.f32 %v12025_v32, %v3031_v20 }
 0x801   :  { %3307 = vrot.lane.b32.xlu0 %v3160_v45, %s9681_s29  ;;  %v4048_v45 = vmul.f32 %v11911_v11, %v14701_v29  ;;  %v4178_v44 = vmax.f32 %v4114_v8, 0.0  ;;  %v12232_v8 = vld [vmem:[#allocation27] ss:$0 sm:$0xff] }
 0x802   :  { %v3842_v26 = vpop.permute.xlu1 %3841  ;;  %v4712_v52 = vld [vmem:[#allocation4 + $0x4b8] sm:$0xff] }
 0x803   :  { %v3840_v16 = vpop.permute.xlu0 %3839  ;;  %4006 = vst.msk [vmem:[#allocation4 + $0x4d8] sm:$0xff] %vm2942_vm2, %v3842_v26  ;;  %v4711_v23 = vld [vmem:[#allocation4 + $0x4b0] sm:$0xff]  ;;  %v4115_v20 = vadd.f32 %v12182_v57, %v4048_v45 }
 0x804   :  { %4005 = vst.msk [vmem:[#allocation4 + $0x4d0] sm:$0xff] %vm2942_vm2, %v3840_v16  ;;  %8530 = vmatprep.mubr.msk.f32.mxu1 %vm2942_vm2, %v4711_v23  ;;  %4305 = vrot.lane.b32.xlu1 %v4177_v6, %s9682_s8  ;;  %v3162_v6 = vmax.f32 %v3098_v46, 0.0 }
 0x805   :  { %3309 = vrot.lane.b32.xlu0 %v3161_v42, %s9681_s29  ;;  %8531 = vmatmul.mubr.msk.f32.vlgmr.msra.gmra.mrb[68].mxu1 %vm2942_vm2, %v4712_v52  ;;  %v4049_v52 = vmul.f32 %v11911_v11, %v14703_v55  ;;  %v3033_v42 = vmul.f32 %v12021_v43, %v14673_v10  ;;  %v4179_v45 = vmax.f32 %v4115_v20, 0.0  ;;  %v3163_v55 = vmax.f32 %v3099_v22, 0.0 }
 0x806   :  { %v3846_v33 = vpop.permute.xlu1 %3845  ;;  %v4714_v26 = vld [vmem:[#allocation4 + $0x4c8] sm:$0xff]  ;;  %v3034_v22 = vmul.f32 %v12021_v43, %v14677_v41 }
 0x807   :  { %v3844_v16 = vpop.permute.xlu0 %3843  ;;  %4008 = vst.msk [vmem:[#allocation4 + $0x4e8] sm:$0xff] %vm2942_vm2, %v3846_v33  ;;  %v4713_v23 = vld [vmem:[#allocation4 + $0x4c0] sm:$0xff]  ;;  %v4116_v33 = vadd.f32 %v12182_v57, %v4049_v52  ;;  %v3100_v29 = vadd.f32 %v12025_v32, %v3033_v42 }
 0x808   :  { %4007 = vst.msk [vmem:[#allocation4 + $0x4e0] sm:$0xff] %vm2942_vm2, %v3844_v16  ;;  %8533 = vmatprep.mubr.msk.f32.mxu1 %vm2942_vm2, %v4713_v23  ;;  %4307 = vrot.lane.b32.xlu1 %v4178_v44, %s9682_s8 }
 0x809   :  { %3311 = vrot.lane.b32.xlu0 %v3162_v6, %s9681_s29  ;;  %8534 = vmatmul.mubr.msk.f32.gmra.mrb[70].mxu1 %vm2942_vm2, %v4714_v26  ;;  %v4050_v26 = vmul.f32 %v11911_v11, %v14705_v56  ;;  %v4180_v42 = vmax.f32 %v4116_v33, 0.0  ;;  %v4051_v33 = vmul.f32 %v11911_v11, %v14707_v35 }
 0x80a   :  { %v3850_v46 = vpop.permute.xlu1 %3849  ;;  %v4716_v48 = vld [vmem:[#allocation4 + $0x4d8] sm:$0xff] }
 0x80b   :  { %v3848_v23 = vpop.permute.xlu0 %3847  ;;  %4010 = vst.msk [vmem:[#allocation4 + $0x4f8] sm:$0xff] %vm2942_vm2, %v3850_v46  ;;  %v4715_v44 = vld [vmem:[#allocation4 + $0x4d0] sm:$0xff] }
 0x80c   :  { %4009 = vst.msk [vmem:[#allocation4 + $0x4f0] sm:$0xff] %vm2942_vm2, %v3848_v23  ;;  %8536 = vmatprep.mubr.msk.f32.mxu1 %vm2942_vm2, %v4715_v44  ;;  %4309 = vrot.lane.b32.xlu1 %v4179_v45, %s9682_s8 }
 0x80d   :  { %3313 = vrot.lane.b32.xlu0 %v3163_v55, %s9681_s29  ;;  %8537 = vmatmul.mubr.msk.f32.gmra.mrb[72].mxu1 %vm2942_vm2, %v4716_v48  ;;  %v3101_v55 = vadd.f32 %v12025_v32, %v3034_v22 }
 0x80e   :  { %v3858_v52 = vpop.permute.xlu1 %3857  ;;  %v4718_v46 = vld [vmem:[#allocation4 + $0x4e8] sm:$0xff] }
 0x80f   :  { %v8307_v16 = vpop.f32.mrb[20].mxu0  ;;  %v3852_v23 = vpop.permute.xlu0 %3851  ;;  %4014 = vst.msk [vmem:[#allocation4 + $0x518] sm:$0xff] %vm2942_vm2, %v3858_v52  ;;  %v4717_v44 = vld [vmem:[#allocation4 + $0x4e0] sm:$0xff]  ;;  %v4118_v52 = vadd.f32 %v12182_v57, %v4051_v33 }
 0x810   :  { %v5666_v6 = vadd.f32 %v8307_v16, %v12232_v8  ;;  %v5660_v37 = vpop.f32.mrb[21].mxu0  ;;  %v4117_v16 = vadd.f32 %v12182_v57, %v4050_v26  ;;  %4011 = vst.msk [vmem:[#allocation4 + $0x500] sm:$0xff] %vm2942_vm2, %v3852_v23  ;;  %8539 = vmatprep.mubr.msk.f32.mxu1 %vm2942_vm2, %v4717_v44  ;;  %4311 = vrot.lane.b32.xlu1 %v4180_v42, %s9682_s8 }
 0x811   :  { %v5661_v20 = vadd.f32 %v12232_v8, %v5660_v37  ;;  %v3164_v37 = vmax.f32 %v3100_v29, 0.0  ;;  %8540 = vmatmul.mubr.msk.f32.gmra.mrb[74].mxu1 %vm2942_vm2, %v4718_v46  ;;  %v3035_v29 = vmul.f32 %v12021_v43, %v14676_v39 }
 0x812   :  { %8797 = vtanh.f32 %v5666_v6  ;;  %v3862_v26 = vpop.permute.xlu1 %3861  ;;  %v4720_v22 = vld [vmem:[#allocation4 + $0x4f8] sm:$0xff] }
 0x813   :  { %8799 = vtanh.f32 %v5661_v20  ;;  %3315 = vrot.lane.b32.xlu0 %v3164_v37, %s9681_s29  ;;  %v4181_v20 = vmax.f32 %v4117_v16, 0.0  ;;  %4016 = vst.msk [vmem:[#allocation4 + $0x528] sm:$0xff] %vm2942_vm2, %v3862_v26  ;;  %v4719_v23 = vld [vmem:[#allocation4 + $0x4f0] sm:$0xff]  ;;  %v3102_v44 = vadd.f32 %v12025_v32, %v3035_v29  ;;  %v4052_v16 = vmul.f32 %v11911_v11, %v14709_v31 }
 0x814   :  { %8542 = vmatprep.mubr.msk.f32.mxu1 %vm2942_vm2, %v4719_v23 }
 0x815   :  { %4313 = vrot.lane.b32.xlu1 %v4181_v20, %s9682_s8  ;;  %8543 = vmatmul.mubr.msk.f32.gmra.mrb[76].mxu1 %vm2942_vm2, %v4720_v22  ;;  %v4119_v29 = vadd.f32 %v12182_v57, %v4052_v16  ;;  %v3037_v16 = vmul.f32 %v12021_v43, %v14678_v40 }
 0x816   :  { %v8310_v45 = vpop.f32.mrb[22].mxu0  ;;  %v3866_v33 = vpop.permute.xlu1 %3865 }
 0x817   :  { %v5676_v48 = vadd.f32 %v8310_v45, %v12232_v8  ;;  %v5670_v56 = vpop.f32.mrb[23].mxu0  ;;  %v3854_v45 = vpop.permute.xlu0 %3853  ;;  %4018 = vst.msk [vmem:[#allocation4 + $0x538] sm:$0xff] %vm2942_vm2, %v3866_v33 }
 0x818   :  { %v5671_v6 = vadd.f32 %v12232_v8, %v5670_v56  ;;  %v3165_v56 = vmax.f32 %v3101_v55, 0.0  ;;  %4012 = vst.msk [vmem:[#allocation4 + $0x508] sm:$0xff] %vm2942_vm2, %v3854_v45  ;;  %v3036_v55 = vmul.f32 %v12021_v43, %v14679_v36  ;;  %v3166_v45 = vmax.f32 %v3102_v44, 0.0 }
 0x819   :  { %8801 = vtanh.f32 %v5676_v48 }
 0x81a   :  { %8803 = vtanh.f32 %v5671_v6  ;;  %v8313_v42 = vpop.f32.mrb[24].mxu0  ;;  %3317 = vrot.lane.b32.xlu0 %v3165_v56, %s9681_s29  ;;  %v4182_v6 = vmax.f32 %v4118_v52, 0.0  ;;  %v3103_v23 = vadd.f32 %v12025_v32, %v3036_v55  ;;  %v4053_v52 = vmul.f32 %v11911_v11, %v14711_v28 }
 0x81b   :  { %v5686_v46 = vadd.f32 %v8313_v42, %v12232_v8  ;;  %v5680_v37 = vpop.f32.mrb[25].mxu0  ;;  %v3856_v20 = vpop.permute.xlu0 %3855  ;;  %v4721_v42 = vld [vmem:[#allocation4 + $0x500] sm:$0xff]  ;;  %v4183_v55 = vmax.f32 %v4119_v29, 0.0  ;;  %v4054_v29 = vmul.f32 %v11911_v11, %v14713_v60 }
 0x81c   :  { %v5681_v48 = vadd.f32 %v12232_v8, %v5680_v37  ;;  %v8798_v56 = vpop.eup %8797  ;;  %4013 = vst.msk [vmem:[#allocation4 + $0x510] sm:$0xff] %vm2942_vm2, %v3856_v20  ;;  %8545 = vmatprep.mubr.msk.f32.mxu1 %vm2942_vm2, %v4721_v42  ;;  %4315 = vrot.lane.b32.xlu1 %v4182_v6, %s9682_s8  ;;  %v4120_v33 = vadd.f32 %v12182_v57, %v4053_v52  ;;  %v3167_v42 = vmax.f32 %v3103_v23, 0.0 }
 0x81d   :  { %8805 = vtanh.f32 %v5686_v46  ;;  %v8800_v46 = vpop.eup %8799  ;;  %7197 = vst.msk [vmem:[%s14738_s9 + $0x8] sm:$0xff] %vm7195_vm3, %v8798_v56  ;;  %v3038_v52 = vmul.f32 %v12021_v43, %v14681_v53 }
 0x81e   :  { %8807 = vtanh.f32 %v5681_v48  ;;  %v8316_v26 = vpop.f32.mrb[26].mxu0  ;;  %3319 = vrot.lane.b32.xlu0 %v3166_v45, %s9681_s29  ;;  %7196 = vst.msk [vmem:[%s14738_s9] sm:$0xff] %vm7195_vm3, %v8800_v46  ;;  %v3870_v48 = vpop.permute.xlu1 %3869  ;;  %v3104_v45 = vadd.f32 %v12025_v32, %v3037_v16  ;;  %v4121_v16 = vadd.f32 %v12182_v57, %v4054_v29 }
 0x81f   :  { %v5696_v22 = vadd.f32 %v8316_v26, %v12232_v8  ;;  %v5690_v37 = vpop.f32.mrb[27].mxu0  ;;  %v3860_v26 = vpop.permute.xlu0 %3859  ;;  %4020 = vst.msk [vmem:[#allocation4 + $0x548] sm:$0xff] %vm2942_vm2, %v3870_v48  ;;  %v4722_v20 = vld [vmem:[#allocation4 + $0x508] sm:$0xff] }
 0x820   :  { %v5691_v44 = vadd.f32 %v12232_v8, %v5690_v37  ;;  %4015 = vst.msk [vmem:[#allocation4 + $0x520] sm:$0xff] %vm2942_vm2, %v3860_v26  ;;  %8546 = vmatmul.mubr.msk.f32.gmra.mrb[78].mxu1 %vm2942_vm2, %v4722_v20  ;;  %4317 = vrot.lane.b32.xlu1 %v4183_v55, %s9682_s8  ;;  %v3105_v26 = vadd.f32 %v12025_v32, %v3038_v52  ;;  %v4185_v52 = vmax.f32 %v4121_v16, 0.0  ;;  %v4726_v16 = vld [vmem:[#allocation4 + $0x528] sm:$0xff] }
 0x821   :  { %8809 = vtanh.f32 %v5696_v22 }
 0x822   :  { %8811 = vtanh.f32 %v5691_v44  ;;  %v8319_v6 = vpop.f32.mrb[28].mxu0  ;;  %3321 = vrot.lane.b32.xlu0 %v3167_v42, %s9681_s29  ;;  %v3872_v46 = vpop.permute.xlu1 %3871  ;;  %v4184_v44 = vmax.f32 %v4120_v33, 0.0  ;;  %v4724_v33 = vld [vmem:[#allocation4 + $0x518] sm:$0xff] }
 0x823   :  { %v8802_v56 = vpop.eup %8801  ;;  %v5706_v37 = vadd.f32 %v8319_v6, %v12232_v8  ;;  %v5700_v28 = vpop.f32.mrb[29].mxu0  ;;  %4021 = vst.msk [vmem:[#allocation4 + $0x550] sm:$0xff] %vm2942_vm2, %v3872_v46  ;;  %v3168_v6 = vmax.f32 %v3104_v45, 0.0 }
 0x824   :  { %v8804_v22 = vpop.eup %8803  ;;  %7199 = vst.msk [vmem:[%s14738_s9 + $0x18] sm:$0xff] %vm7195_vm3, %v8802_v56  ;;  %v5701_v23 = vadd.f32 %v12232_v8, %v5700_v28  ;;  %v3864_v55 = vpop.permute.xlu0 %3863  ;;  %v4723_v28 = vld [vmem:[#allocation4 + $0x510] sm:$0xff]  ;;  %4319 = vrot.lane.b32.xlu1 %v4184_v44, %s9682_s8 }
 0x825   :  { %7198 = vst.msk [vmem:[%s14738_s9 + $0x10] sm:$0xff] %vm7195_vm3, %v8804_v22  ;;  %8813 = vtanh.f32 %v5706_v37  ;;  %8548 = vmatprep.mubr.msk.f32.mxu1 %vm2942_vm2, %v4723_v28  ;;  %v4055_v37 = vmul.f32 %v11911_v11, %v14715_v3  ;;  %v3039_v22 = vmul.f32 %v12021_v43, %v14680_v12  ;;  %v3169_v28 = vmax.f32 %v3105_v26, 0.0 }
 0x826   :  { %8815 = vtanh.f32 %v5701_v23  ;;  %v8322_v48 = vpop.f32.mrb[30].mxu0  ;;  %4017 = vst.msk [vmem:[#allocation4 + $0x530] sm:$0xff] %vm2942_vm2, %v3864_v55  ;;  %3323 = vrot.lane.b32.xlu0 %v3168_v6, %s9681_s29  ;;  %8549 = vmatmul.mubr.msk.f32.gmra.mrb[80].mxu1 %vm2942_vm2, %v4724_v33  ;;  %v3874_v23 = vpop.permute.xlu1 %3873 }
 0x827   :  { %v8806_v20 = vpop.eup %8805  ;;  %v5716_v42 = vadd.f32 %v8322_v48, %v12232_v8  ;;  %v5710_v56 = vpop.f32.mrb[31].mxu0  ;;  %v4122_v46 = vadd.f32 %v12182_v57, %v4055_v37  ;;  %4022 = vst.msk [vmem:[#allocation4 + $0x558] sm:$0xff] %vm2942_vm2, %v3874_v23  ;;  %v4725_v55 = vld [vmem:[#allocation4 + $0x520] sm:$0xff]  ;;  %v3106_v6 = vadd.f32 %v12025_v32, %v3039_v22 }
 0x828   :  { %v8808_v29 = vpop.eup %8807  ;;  %7201 = vst.msk [vmem:[%s14738_s9 + $0x28] sm:$0xff] %vm7195_vm3, %v8806_v20  ;;  %v5711_v45 = vadd.f32 %v12232_v8, %v5710_v56  ;;  %v3868_v48 = vpop.permute.xlu0 %3867  ;;  %8551 = vmatprep.mubr.msk.f32.mxu1 %vm2942_vm2, %v4725_v55  ;;  %4321 = vrot.lane.b32.xlu1 %v4185_v52, %s9682_s8 }
 0x829   :  { %7200 = vst.msk [vmem:[%s14738_s9 + $0x20] sm:$0xff] %vm7195_vm3, %v8808_v29  ;;  %8817 = vtanh.f32 %v5716_v42  ;;  %v4056_v42 = vmul.f32 %v11911_v11, %v14717_v13  ;;  %v3040_v29 = vmul.f32 %v12021_v43, %v14683_v63  ;;  %v4186_v22 = vmax.f32 %v4122_v46, 0.0  ;;  %v4728_v46 = vld [vmem:[#allocation4 + $0x538] sm:$0xff] }
 0x82a   :  { %8819 = vtanh.f32 %v5711_v45  ;;  %v8325_v44 = vpop.f32.mrb[32].mxu0  ;;  %4019 = vst.msk [vmem:[#allocation4 + $0x540] sm:$0xff] %vm2942_vm2, %v3868_v48  ;;  %3325 = vrot.lane.b32.xlu0 %v3169_v28, %s9681_s29  ;;  %8552 = vmatmul.mubr.msk.f32.gmra.mrb[82].mxu1 %vm2942_vm2, %v4726_v16  ;;  %v3876_v45 = vpop.permute.xlu1 %3875  ;;  %v3170_v55 = vmax.f32 %v3106_v6, 0.0 }
 0x82b   :  { %v8810_v20 = vpop.eup %8809  ;;  %v5726_v56 = vadd.f32 %v8325_v44, %v12232_v8  ;;  %v5720_v33 = vpop.f32.mrb[33].mxu0  ;;  %v4123_v23 = vadd.f32 %v12182_v57, %v4056_v42  ;;  %4023 = vst.msk [vmem:[#allocation4 + $0x560] sm:$0xff] %vm2942_vm2, %v3876_v45  ;;  %v3107_v28 = vadd.f32 %v12025_v32, %v3040_v29 }
 0x82c   :  { %v8812_v37 = vpop.eup %8811  ;;  %7203 = vst.msk [vmem:[%s14738_s9 + $0x38] sm:$0xff] %vm7195_vm3, %v8810_v20  ;;  %v5721_v26 = vadd.f32 %v12232_v8, %v5720_v33  ;;  %v3270_v44 = vpop.permute.xlu0 %3269  ;;  %4323 = vrot.lane.b32.xlu1 %v4186_v22, %s9682_s8 }
 0x82d   :  { %7202 = vst.msk [vmem:[%s14738_s9 + $0x30] sm:$0xff] %vm7195_vm3, %v8812_v37  ;;  %8821 = vtanh.f32 %v5726_v56  ;;  %v4727_v48 = vld [vmem:[#allocation4 + $0x530] sm:$0xff]  ;;  %v4057_v56 = vmul.f32 %v11911_v11, %v14719_v24  ;;  %v3041_v37 = vmul.f32 %v12021_v43, %v14682_v58  ;;  %v4187_v29 = vmax.f32 %v4123_v23, 0.0  ;;  %v4730_v23 = vld [vmem:[#allocation4 + $0x548] sm:$0xff] }
 0x82e   :  { %8823 = vtanh.f32 %v5721_v26  ;;  %v8328_v52 = vpop.f32.mrb[34].mxu0  ;;  %3461 = vst.msk [vmem:[#allocation4 + $0x200] sm:$0xff] %vm2942_vm2, %v3270_v44  ;;  %8554 = vmatprep.mubr.msk.f32.mxu1 %vm2942_vm2, %v4727_v48  ;;  %3327 = vrot.lane.b32.xlu0 %v3170_v55, %s9681_s29  ;;  %v3878_v26 = vpop.permute.xlu1 %3877  ;;  %v3171_v48 = vmax.f32 %v3107_v28, 0.0 }
 0x82f   :  { %v8814_v20 = vpop.eup %8813  ;;  %v5736_v33 = vadd.f32 %v8328_v52, %v12232_v8  ;;  %v5730_v16 = vpop.f32.mrb[35].mxu0  ;;  %8555 = vmatmul.mubr.msk.f32.gmra.mrb[84].mxu1 %vm2942_vm2, %v4728_v46  ;;  %v4124_v45 = vadd.f32 %v12182_v57, %v4057_v56  ;;  %4024 = vst.msk [vmem:[#allocation4 + $0x568] sm:$0xff] %vm2942_vm2, %v3878_v26  ;;  %v3108_v55 = vadd.f32 %v12025_v32, %v3041_v37 }
 0x830   :  { %v8816_v42 = vpop.eup %8815  ;;  %7205 = vst.msk [vmem:[%s14738_s9 + $0x48] sm:$0xff] %vm7195_vm3, %v8814_v20  ;;  %v5731_v6 = vadd.f32 %v12232_v8, %v5730_v16  ;;  %v3272_v52 = vpop.permute.xlu0 %3271  ;;  %4325 = vrot.lane.b32.xlu1 %v4187_v29, %s9682_s8 }
 0x831   :  { %7204 = vst.msk [vmem:[%s14738_s9 + $0x40] sm:$0xff] %vm7195_vm3, %v8816_v42  ;;  %8825 = vtanh.f32 %v5736_v33  ;;  %v4729_v44 = vld [vmem:[#allocation4 + $0x540] sm:$0xff]  ;;  %v4058_v33 = vmul.f32 %v11911_v11, %v14721_v17  ;;  %v4731_v42 = vld [vmem:[#allocation4 + $0x550] sm:$0xff]  ;;  %v4188_v26 = vmax.f32 %v4124_v45, 0.0  ;;  %v4732_v45 = vld [vmem:[#allocation4 + $0x558] sm:$0xff] }
 0x832   :  { %8827 = vtanh.f32 %v5731_v6  ;;  %v8331_v22 = vpop.f32.mrb[36].mxu0  ;;  %3462 = vst.msk [vmem:[#allocation4 + $0x208] sm:$0xff] %vm2942_vm2, %v3272_v52  ;;  %8557 = vmatprep.mubr.msk.f32.mxu1 %vm2942_vm2, %v4729_v44  ;;  %3329 = vrot.lane.b32.xlu0 %v3171_v48, %s9681_s29  ;;  %v3042_v6 = vmul.f32 %v12021_v43, %v14685_v50  ;;  %v3880_v37 = vpop.permute.xlu1 %3879  ;;  %v3172_v48 = vmax.f32 %v3108_v55, 0.0 }
 0x833   :  { %v8818_v20 = vpop.eup %8817  ;;  %v5746_v16 = vadd.f32 %v8331_v22, %v12232_v8  ;;  %v5740_v46 = vpop.f32.mrb[37].mxu0  ;;  %8558 = vmatmul.mubr.msk.f32.gmra.mrb[86].mxu1 %vm2942_vm2, %v4730_v23  ;;  %v4125_v29 = vadd.f32 %v12182_v57, %v4058_v33  ;;  %4025 = vst.msk [vmem:[#allocation4 + $0x570] sm:$0xff] %vm2942_vm2, %v3880_v37 }
 0x834   :  { %v8820_v56 = vpop.eup %8819  ;;  %7207 = vst.msk [vmem:[%s14738_s9 + $0x58] sm:$0xff] %vm7195_vm3, %v8818_v20  ;;  %v5741_v28 = vadd.f32 %v12232_v8, %v5740_v46  ;;  %8560 = vmatprep.mubr.msk.f32.mxu1 %vm2942_vm2, %v4731_v42  ;;  %v3274_v52 = vpop.permute.xlu0 %3273  ;;  %v3109_v20 = vadd.f32 %v12025_v32, %v3042_v6  ;;  %4327 = vrot.lane.b32.xlu1 %v4188_v26, %s9682_s8 }
 0x835   :  { %7206 = vst.msk [vmem:[%s14738_s9 + $0x50] sm:$0xff] %vm7195_vm3, %v8820_v56  ;;  %8829 = vtanh.f32 %v5746_v16  ;;  %v4625_v44 = vld [vmem:[#allocation4 + $0x200] sm:$0xff]  ;;  %v4059_v16 = vmul.f32 %v11911_v11, %v14723_v2  ;;  %v3043_v42 = vmul.f32 %v12021_v43, %v14687_v18  ;;  %v4189_v37 = vmax.f32 %v4125_v29, 0.0 }
 0x836   :  { %8831 = vtanh.f32 %v5741_v28  ;;  %v8334_v22 = vpop.f32.mrb[38].mxu0  ;;  %3463 = vst.msk [vmem:[#allocation4 + $0x210] sm:$0xff] %vm2942_vm2, %v3274_v52  ;;  %8401 = vmatprep.mubr.msk.f32.mxu0 %vm2942_vm2, %v4625_v44  ;;  %3331 = vrot.lane.b32.xlu0 %v3172_v48, %s9681_s29  ;;  %v4733_v28 = vld [vmem:[#allocation4 + $0x560] sm:$0xff]  ;;  %v3882_v6 = vpop.permute.xlu1 %3881  ;;  %v4734_v26 = vld [vmem:[#allocation4 + $0x568] sm:$0xff]  ;;  %v4060_v29 = vmul.f32 %v11911_v11, %v14725_v7 }
 0x837   :  { %v8822_v46 = vpop.eup %8821  ;;  %v5756_v23 = vadd.f32 %v8334_v22, %v12232_v8  ;;  %v5750_v56 = vpop.f32.mrb[39].mxu0  ;;  %8561 = vmatmul.mubr.msk.f32.gmra.mrb[88].mxu1 %vm2942_vm2, %v4732_v45  ;;  %v4126_v22 = vadd.f32 %v12182_v57, %v4059_v16  ;;  %4026 = vst.msk [vmem:[#allocation4 + $0x578] sm:$0xff] %vm2942_vm2, %v3882_v6 }
 0x838   :  { %v8824_v33 = vpop.eup %8823  ;;  %7209 = vst.msk [vmem:[%s14738_s9 + $0x68] sm:$0xff] %vm7195_vm3, %v8822_v46  ;;  %v5751_v55 = vadd.f32 %v12232_v8, %v5750_v56  ;;  %8563 = vmatprep.mubr.msk.f32.mxu1 %vm2942_vm2, %v4733_v28  ;;  %v3276_v44 = vpop.permute.xlu0 %3275  ;;  %v3173_v46 = vmax.f32 %v3109_v20, 0.0  ;;  %v3110_v56 = vadd.f32 %v12025_v32, %v3043_v42  ;;  %4329 = vrot.lane.b32.xlu1 %v4189_v37, %s9682_s8 }
 0x839   :  { %7208 = vst.msk [vmem:[%s14738_s9 + $0x60] sm:$0xff] %vm7195_vm3, %v8824_v33  ;;  %8833 = vtanh.f32 %v5756_v23  ;;  %v4626_v48 = vld [vmem:[#allocation4 + $0x208] sm:$0xff]  ;;  %v4190_v6 = vmax.f32 %v4126_v22, 0.0  ;;  %v4127_v37 = vadd.f32 %v12182_v57, %v4060_v29  ;;  %v4061_v22 = vmul.f32 %v11911_v11, %v14727_v15 }
 0x83a   :  { %8835 = vtanh.f32 %v5751_v55  ;;  %v8337_v52 = vpop.f32.mrb[40].mxu0  ;;  %3464 = vst.msk [vmem:[#allocation4 + $0x218] sm:$0xff] %vm2942_vm2, %v3276_v44  ;;  %8402 = vmatmul.mubr.msk.f32.gmra.mrb[84].mxu0 %vm2942_vm2, %v4626_v48  ;;  %3333 = vrot.lane.b32.xlu0 %v3173_v46, %s9681_s29  ;;  %v3044_v55 = vmul.f32 %v12021_v43, %v14689_v9  ;;  %v3884_v28 = vpop.permute.xlu1 %3883  ;;  %v4735_v42 = vld [vmem:[#allocation4 + $0x570] sm:$0xff]  ;;  %v3174_v48 = vmax.f32 %v3110_v56, 0.0 }
 0x83b   :  { %v8826_v45 = vpop.eup %8825  ;;  %v5766_v33 = vadd.f32 %v8337_v52, %v12232_v8  ;;  %v5760_v23 = vpop.f32.mrb[41].mxu0  ;;  %8564 = vmatmul.mubr.msk.f32.gmra.mrb[90].mxu1 %vm2942_vm2, %v4734_v26  ;;  %4027 = vst.msk [vmem:[#allocation4 + $0x580] sm:$0xff] %vm2942_vm2, %v3884_v28  ;;  %v4191_v28 = vmax.f32 %v4127_v37, 0.0  ;;  %v4062_v37 = vmul.f32 %v11911_v11, %v14729_v49 }
 0x83c   :  { %v8828_v16 = vpop.eup %8827  ;;  %7211 = vst.msk [vmem:[%s14738_s9 + $0x78] sm:$0xff] %vm7195_vm3, %v8826_v45  ;;  %v5761_v20 = vadd.f32 %v12232_v8, %v5760_v23  ;;  %v3278_v44 = vpop.permute.xlu0 %3277  ;;  %8566 = vmatprep.mubr.msk.f32.mxu1 %vm2942_vm2, %v4735_v42  ;;  %v3111_v46 = vadd.f32 %v12025_v32, %v3044_v55  ;;  %4331 = vrot.lane.b32.xlu1 %v4190_v6, %s9682_s8 }
 0x83d   :  { %7210 = vst.msk [vmem:[%s14738_s9 + $0x70] sm:$0xff] %vm7195_vm3, %v8828_v16  ;;  %8837 = vtanh.f32 %v5766_v33  ;;  %v4627_v26 = vld [vmem:[#allocation4 + $0x210] sm:$0xff]  ;;  %v3045_v16 = vmul.f32 %v12021_v43, %v14684_v19  ;;  %v4128_v42 = vadd.f32 %v12182_v57, %v4061_v22 }
 0x83e   :  { %8839 = vtanh.f32 %v5761_v20  ;;  %v8340_v52 = vpop.f32.mrb[42].mxu0  ;;  %3465 = vst.msk [vmem:[#allocation4 + $0x220] sm:$0xff] %vm2942_vm2, %v3278_v44  ;;  %8404 = vmatprep.mubr.msk.f32.mxu0 %vm2942_vm2, %v4627_v26  ;;  %3335 = vrot.lane.b32.xlu0 %v3174_v48, %s9681_s29  ;;  %v3886_v20 = vpop.permute.xlu1 %3885  ;;  %v4736_v55 = vld [vmem:[#allocation4 + $0x578] sm:$0xff]  ;;  %v3175_v26 = vmax.f32 %v3111_v46, 0.0 }
 0x83f   :  { %v8830_v45 = vpop.eup %8829  ;;  %v5776_v23 = vadd.f32 %v8340_v52, %v12232_v8  ;;  %v5770_v33 = vpop.f32.mrb[43].mxu0  ;;  %4028 = vst.msk [vmem:[#allocation4 + $0x588] sm:$0xff] %vm2942_vm2, %v3886_v20  ;;  %8567 = vmatmul.mubr.msk.f32.gmra.mrb[92].mxu1 %vm2942_vm2, %v4736_v55  ;;  %v3112_v48 = vadd.f32 %v12025_v32, %v3045_v16  ;;  %v4192_v20 = vmax.f32 %v4128_v42, 0.0  ;;  %v4129_v55 = vadd.f32 %v12182_v57, %v4062_v37 }
 0x840   :  { %v8832_v29 = vpop.eup %8831  ;;  %7213 = vst.msk [vmem:[%s14738_s9 + $0x88] sm:$0xff] %vm7195_vm3, %v8830_v45  ;;  %v5771_v56 = vadd.f32 %v12232_v8, %v5770_v33  ;;  %v3280_v52 = vpop.permute.xlu0 %3279  ;;  %4333 = vrot.lane.b32.xlu1 %v4191_v28, %s9682_s8  ;;  %v4063_v42 = vmul.f32 %v11911_v11, %v14731_v14 }
 0x841   :  { %7212 = vst.msk [vmem:[%s14738_s9 + $0x80] sm:$0xff] %vm7195_vm3, %v8832_v29  ;;  %8841 = vtanh.f32 %v5776_v23  ;;  %v4628_v44 = vld [vmem:[#allocation4 + $0x218] sm:$0xff]  ;;  %v3046_v29 = vmul.f32 %v12021_v43, %v14691_v25 }
 0x842   :  { %8843 = vtanh.f32 %v5771_v56  ;;  %v8343_v6 = vpop.f32.mrb[44].mxu0  ;;  %3466 = vst.msk [vmem:[#allocation4 + $0x228] sm:$0xff] %vm2942_vm2, %v3280_v52  ;;  %8405 = vmatmul.mubr.msk.f32.gmra.mrb[86].mxu0 %vm2942_vm2, %v4628_v44  ;;  %3337 = vrot.lane.b32.xlu0 %v3175_v26, %s9681_s29  ;;  %v3888_v56 = vpop.permute.xlu1 %3887  ;;  %v4737_v16 = vld [vmem:[#allocation4 + $0x580] sm:$0xff]  ;;  %v3176_v44 = vmax.f32 %v3112_v48, 0.0 }
 0x843   :  { %v8834_v45 = vpop.eup %8833  ;;  %v5786_v33 = vadd.f32 %v8343_v6, %v12232_v8  ;;  %v5780_v23 = vpop.f32.mrb[45].mxu0  ;;  %4029 = vst.msk [vmem:[#allocation4 + $0x590] sm:$0xff] %vm2942_vm2, %v3888_v56  ;;  %8569 = vmatprep.mubr.msk.f32.mxu1 %vm2942_vm2, %v4737_v16  ;;  %v3113_v26 = vadd.f32 %v12025_v32, %v3046_v29  ;;  %v4193_v56 = vmax.f32 %v4129_v55, 0.0  ;;  %v4130_v16 = vadd.f32 %v12182_v57, %v4063_v42 }
 0x844   :  { %v8836_v22 = vpop.eup %8835  ;;  %7215 = vst.msk [vmem:[%s14738_s9 + $0x98] sm:$0xff] %vm7195_vm3, %v8834_v45  ;;  %v5781_v46 = vadd.f32 %v12232_v8, %v5780_v23  ;;  %v3282_v6 = vpop.permute.xlu0 %3281  ;;  %4335 = vrot.lane.b32.xlu1 %v4192_v20, %s9682_s8  ;;  %v4064_v55 = vmul.f32 %v11911_v11, %v14733_v51 }
 0x845   :  { %7214 = vst.msk [vmem:[%s14738_s9 + $0x90] sm:$0xff] %vm7195_vm3, %v8836_v22  ;;  %8845 = vtanh.f32 %v5786_v33  ;;  %v4629_v52 = vld [vmem:[#allocation4 + $0x220] sm:$0xff]  ;;  %v3047_v22 = vmul.f32 %v12021_v43, %v14686_v38 }
 0x846   :  { %8847 = vtanh.f32 %v5781_v46  ;;  %v8346_v28 = vpop.f32.mrb[46].mxu0  ;;  %3467 = vst.msk [vmem:[#allocation4 + $0x230] sm:$0xff] %vm2942_vm2, %v3282_v6  ;;  %8407 = vmatprep.mubr.msk.f32.mxu0 %vm2942_vm2, %v4629_v52  ;;  %3339 = vrot.lane.b32.xlu0 %v3176_v44, %s9681_s29  ;;  %v3890_v46 = vpop.permute.xlu1 %3889  ;;  %v4738_v29 = vld [vmem:[#allocation4 + $0x588] sm:$0xff]  ;;  %v3177_v52 = vmax.f32 %v3113_v26, 0.0 }
 0x847   :  { %v8838_v45 = vpop.eup %8837  ;;  %v5796_v23 = vadd.f32 %v8346_v28, %v12232_v8  ;;  %v5790_v33 = vpop.f32.mrb[47].mxu0  ;;  %4030 = vst.msk [vmem:[#allocation4 + $0x598] sm:$0xff] %vm2942_vm2, %v3890_v46  ;;  %8570 = vmatmul.mubr.msk.f32.gmra.mrb[94].mxu1 %vm2942_vm2, %v4738_v29  ;;  %v3114_v44 = vadd.f32 %v12025_v32, %v3047_v22  ;;  %v4194_v46 = vmax.f32 %v4130_v16, 0.0  ;;  %v4131_v29 = vadd.f32 %v12182_v57, %v4064_v55 }
 0x848   :  { %v8840_v37 = vpop.eup %8839  ;;  %7217 = vst.msk [vmem:[%s14738_s9 + $0xa8] sm:$0xff] %vm7195_vm3, %v8838_v45  ;;  %v5791_v48 = vadd.f32 %v12232_v8, %v5790_v33  ;;  %v3284_v28 = vpop.permute.xlu0 %3283  ;;  %4337 = vrot.lane.b32.xlu1 %v4193_v56, %s9682_s8  ;;  %v4065_v16 = vmul.f32 %v11911_v11, %v14735_v34 }
 0x849   :  { %7216 = vst.msk [vmem:[%s14738_s9 + $0xa0] sm:$0xff] %vm7195_vm3, %v8840_v37  ;;  %8849 = vtanh.f32 %v5796_v23  ;;  %v4630_v6 = vld [vmem:[#allocation4 + $0x228] sm:$0xff]  ;;  %v3048_v37 = vmul.f32 %v12021_v43, %v14693_v4 }
 0x84a   :  { %8851 = vtanh.f32 %v5791_v48  ;;  %v8349_v20 = vpop.f32.mrb[48].mxu0  ;;  %3468 = vst.msk [vmem:[#allocation4 + $0x238] sm:$0xff] %vm2942_vm2, %v3284_v28  ;;  %8408 = vmatmul.mubr.msk.f32.gmra.mrb[88].mxu0 %vm2942_vm2, %v4630_v6  ;;  %3341 = vrot.lane.b32.xlu0 %v3177_v52, %s9681_s29  ;;  %v3892_v48 = vpop.permute.xlu1 %3891  ;;  %v4739_v22 = vld [vmem:[#allocation4 + $0x590] sm:$0xff]  ;;  %v3178_v6 = vmax.f32 %v3114_v44, 0.0 }
 0x84b   :  { %v8842_v45 = vpop.eup %8841  ;;  %v5806_v33 = vadd.f32 %v8349_v20, %v12232_v8  ;;  %v5800_v23 = vpop.f32.mrb[49].mxu0  ;;  %4031 = vst.msk [vmem:[#allocation4 + $0x5a0] sm:$0xff] %vm2942_vm2, %v3892_v48  ;;  %8572 = vmatprep.mubr.msk.f32.mxu1 %vm2942_vm2, %v4739_v22  ;;  %v3115_v52 = vadd.f32 %v12025_v32, %v3048_v37  ;;  %v4195_v48 = vmax.f32 %v4131_v29, 0.0  ;;  %v4132_v22 = vadd.f32 %v12182_v57, %v4065_v16 }
 0x84c   :  { %v8844_v42 = vpop.eup %8843  ;;  %7219 = vst.msk [vmem:[%s14738_s9 + $0xb8] sm:$0xff] %vm7195_vm3, %v8842_v45  ;;  %v5801_v26 = vadd.f32 %v12232_v8, %v5800_v23  ;;  %v3286_v20 = vpop.permute.xlu0 %3285  ;;  %4339 = vrot.lane.b32.xlu1 %v4194_v46, %s9682_s8  ;;  %v4066_v29 = vmul.f32 %v11911_v11, %v14736_v30 }
 0x84d   :  { %7218 = vst.msk [vmem:[%s14738_s9 + $0xb0] sm:$0xff] %vm7195_vm3, %v8844_v42  ;;  %8853 = vtanh.f32 %v5806_v33  ;;  %v4631_v28 = vld [vmem:[#allocation4 + $0x230] sm:$0xff]  ;;  %v3049_v42 = vmul.f32 %v12021_v43, %v14688_v27 }
 0x84e   :  { %8855 = vtanh.f32 %v5801_v26  ;;  %v8352_v56 = vpop.f32.mrb[50].mxu0  ;;  %3469 = vst.msk [vmem:[#allocation4 + $0x240] sm:$0xff] %vm2942_vm2, %v3286_v20  ;;  %8410 = vmatprep.mubr.msk.f32.mxu0 %vm2942_vm2, %v4631_v28  ;;  %3343 = vrot.lane.b32.xlu0 %v3178_v6, %s9681_s29  ;;  %v3894_v26 = vpop.permute.xlu1 %3893  ;;  %v4740_v37 = vld [vmem:[#allocation4 + $0x598] sm:$0xff]  ;;  %v3179_v28 = vmax.f32 %v3115_v52, 0.0 }
 0x84f   :  { %v8846_v45 = vpop.eup %8845  ;;  %v5816_v23 = vadd.f32 %v8352_v56, %v12232_v8  ;;  %v5810_v33 = vpop.f32.mrb[51].mxu0  ;;  %4032 = vst.msk [vmem:[#allocation4 + $0x5a8] sm:$0xff] %vm2942_vm2, %v3894_v26  ;;  %8573 = vmatmul.mubr.msk.f32.gmra.mrb[96].mxu1 %vm2942_vm2, %v4740_v37  ;;  %v3116_v6 = vadd.f32 %v12025_v32, %v3049_v42  ;;  %v4196_v26 = vmax.f32 %v4132_v22, 0.0  ;;  %v4133_v37 = vadd.f32 %v12182_v57, %v4066_v29 }
 0x850   :  { %v8848_v55 = vpop.eup %8847  ;;  %7221 = vst.msk [vmem:[%s14738_s9 + $0xc8] sm:$0xff] %vm7195_vm3, %v8846_v45  ;;  %v5811_v44 = vadd.f32 %v12232_v8, %v5810_v33  ;;  %v3288_v56 = vpop.permute.xlu0 %3287  ;;  %4341 = vrot.lane.b32.xlu1 %v4195_v48, %s9682_s8  ;;  %v4067_v22 = vmul.f32 %v11911_v11, %v14737_v54 }
 0x851   :  { %7220 = vst.msk [vmem:[%s14738_s9 + $0xc0] sm:$0xff] %vm7195_vm3, %v8848_v55  ;;  %8857 = vtanh.f32 %v5816_v23  ;;  %v4632_v20 = vld [vmem:[#allocation4 + $0x238] sm:$0xff]  ;;  %v3050_v55 = vmul.f32 %v12021_v43, %v14695_v0 }
 0x852   :  { %8859 = vtanh.f32 %v5811_v44  ;;  %v8355_v46 = vpop.f32.mrb[52].mxu0  ;;  %3470 = vst.msk [vmem:[#allocation4 + $0x248] sm:$0xff] %vm2942_vm2, %v3288_v56  ;;  %8411 = vmatmul.mubr.msk.f32.gmra.mrb[90].mxu0 %vm2942_vm2, %v4632_v20  ;;  %3345 = vrot.lane.b32.xlu0 %v3179_v28, %s9681_s29  ;;  %v3896_v44 = vpop.permute.xlu1 %3895  ;;  %v4741_v42 = vld [vmem:[#allocation4 + $0x5a0] sm:$0xff]  ;;  %v3180_v20 = vmax.f32 %v3116_v6, 0.0 }
 0x853   :  { %v8850_v45 = vpop.eup %8849  ;;  %v5826_v33 = vadd.f32 %v8355_v46, %v12232_v8  ;;  %v5820_v23 = vpop.f32.mrb[53].mxu0  ;;  %4033 = vst.msk [vmem:[#allocation4 + $0x5b0] sm:$0xff] %vm2942_vm2, %v3896_v44  ;;  %8575 = vmatprep.mubr.msk.f32.mxu1 %vm2942_vm2, %v4741_v42  ;;  %v3117_v28 = vadd.f32 %v12025_v32, %v3050_v55  ;;  %v4197_v44 = vmax.f32 %v4133_v37, 0.0  ;;  %v4134_v42 = vadd.f32 %v12182_v57, %v4067_v22 }
 0x854   :  { %v8852_v16 = vpop.eup %8851  ;;  %7223 = vst.msk [vmem:[%s14738_s9 + $0xd8] sm:$0xff] %vm7195_vm3, %v8850_v45  ;;  %v5821_v52 = vadd.f32 %v12232_v8, %v5820_v23  ;;  %v3290_v46 = vpop.permute.xlu0 %3289  ;;  %4343 = vrot.lane.b32.xlu1 %v4196_v26, %s9682_s8  ;;  %v4068_v37 = vmul.f32 %v11911_v11, %v14674_v21 }
 0x855   :  { %7222 = vst.msk [vmem:[%s14738_s9 + $0xd0] sm:$0xff] %vm7195_vm3, %v8852_v16  ;;  %8861 = vtanh.f32 %v5826_v33  ;;  %v4633_v56 = vld [vmem:[#allocation4 + $0x240] sm:$0xff]  ;;  %v3051_v16 = vmul.f32 %v12021_v43, %v14690_v1 }
 0x856   :  { %8863 = vtanh.f32 %v5821_v52  ;;  %v8358_v48 = vpop.f32.mrb[54].mxu0  ;;  %3471 = vst.msk [vmem:[#allocation4 + $0x250] sm:$0xff] %vm2942_vm2, %v3290_v46  ;;  %8413 = vmatprep.mubr.msk.f32.mxu0 %vm2942_vm2, %v4633_v56  ;;  %3347 = vrot.lane.b32.xlu0 %v3180_v20, %s9681_s29  ;;  %v3898_v52 = vpop.permute.xlu1 %3897  ;;  %v4742_v55 = vld [vmem:[#allocation4 + $0x5a8] sm:$0xff]  ;;  %v3181_v56 = vmax.f32 %v3117_v28, 0.0 }
 0x857   :  { %v8854_v45 = vpop.eup %8853  ;;  %v5836_v23 = vadd.f32 %v8358_v48, %v12232_v8  ;;  %v5830_v33 = vpop.f32.mrb[55].mxu0  ;;  %4034 = vst.msk [vmem:[#allocation4 + $0x5b8] sm:$0xff] %vm2942_vm2, %v3898_v52  ;;  %8576 = vmatmul.mubr.msk.f32.gmra.mrb[98].mxu1 %vm2942_vm2, %v4742_v55  ;;  %v3118_v20 = vadd.f32 %v12025_v32, %v3051_v16  ;;  %v4198_v16 = vmax.f32 %v4134_v42, 0.0  ;;  %v4135_v52 = vadd.f32 %v12182_v57, %v4068_v37 }
 0x858   :  { %v8856_v29 = vpop.eup %8855  ;;  %7225 = vst.msk [vmem:[%s14738_s9 + $0xe8] sm:$0xff] %vm7195_vm3, %v8854_v45  ;;  %v5831_v6 = vadd.f32 %v12232_v8, %v5830_v33  ;;  %v3292_v48 = vpop.permute.xlu0 %3291  ;;  %4345 = vrot.lane.b32.xlu1 %v4197_v44, %s9682_s8  ;;  %v4069_v42 = vmul.f32 %v11911_v11, %v14673_v10  ;;  %v3053_v37 = vmul.f32 %v12021_v43, %v14694_v5 }
 0x859   :  { %7224 = vst.msk [vmem:[%s14738_s9 + $0xe0] sm:$0xff] %vm7195_vm3, %v8856_v29  ;;  %8865 = vtanh.f32 %v5836_v23  ;;  %v4634_v46 = vld [vmem:[#allocation4 + $0x248] sm:$0xff]  ;;  %v3052_v29 = vmul.f32 %v12021_v43, %v14692_v61 }
 0x85a   :  { %8867 = vtanh.f32 %v5831_v6  ;;  %v8361_v26 = vpop.f32.mrb[56].mxu0  ;;  %3472 = vst.msk [vmem:[#allocation4 + $0x258] sm:$0xff] %vm2942_vm2, %v3292_v48  ;;  %8414 = vmatmul.mubr.msk.f32.gmra.mrb[92].mxu0 %vm2942_vm2, %v4634_v46  ;;  %3349 = vrot.lane.b32.xlu0 %v3181_v56, %s9681_s29  ;;  %v3900_v21 = vpop.permute.xlu1 %3899  ;;  %v4743_v6 = vld [vmem:[#allocation4 + $0x5b0] sm:$0xff]  ;;  %v3182_v48 = vmax.f32 %v3118_v20, 0.0 }
 0x85b   :  { %v8858_v45 = vpop.eup %8857  ;;  %v5846_v33 = vadd.f32 %v8361_v26, %v12232_v8  ;;  %v5840_v23 = vpop.f32.mrb[57].mxu0  ;;  %4035 = vst.msk [vmem:[#allocation4 + $0x5c0] sm:$0xff] %vm2942_vm2, %v3900_v21  ;;  %8578 = vmatprep.mubr.msk.f32.mxu1 %vm2942_vm2, %v4743_v6  ;;  %v3119_v46 = vadd.f32 %v12025_v32, %v3052_v29  ;;  %v4136_v29 = vadd.f32 %v12182_v57, %v4069_v42 }
 0x85c   :  { %v8860_v22 = vpop.eup %8859  ;;  %7227 = vst.msk [vmem:[%s14738_s9 + $0xf8] sm:$0xff] %vm7195_vm3, %v8858_v45  ;;  %v5841_v28 = vadd.f32 %v12232_v8, %v5840_v23  ;;  %v3294_v44 = vpop.permute.xlu0 %3293  ;;  %4347 = vrot.lane.b32.xlu1 %v4198_v16, %s9682_s8 }
 0x85d   :  { %7226 = vst.msk [vmem:[%s14738_s9 + $0xf0] sm:$0xff] %vm7195_vm3, %v8860_v22  ;;  %8869 = vtanh.f32 %v5846_v33  ;;  %v4635_v26 = vld [vmem:[#allocation4 + $0x250] sm:$0xff]  ;;  %v3183_v16 = vmax.f32 %v3119_v46, 0.0 }
 0x85e   :  { %8871 = vtanh.f32 %v5841_v28  ;;  %v8364_v55 = vpop.f32.mrb[58].mxu0  ;;  %3473 = vst.msk [vmem:[#allocation4 + $0x260] sm:$0xff] %vm2942_vm2, %v3294_v44  ;;  %8416 = vmatprep.mubr.msk.f32.mxu0 %vm2942_vm2, %v4635_v26  ;;  %3351 = vrot.lane.b32.xlu0 %v3182_v48, %s9681_s29  ;;  %v3902_v10 = vpop.permute.xlu1 %3901  ;;  %v4744_v22 = vld [vmem:[#allocation4 + $0x5b8] sm:$0xff]  ;;  %v4199_v28 = vmax.f32 %v4135_v52, 0.0  ;;  %v4070_v52 = vmul.f32 %v11911_v11, %v14677_v41 }
 0x85f   :  { %v8862_v56 = vpop.eup %8861  ;;  %v5856_v45 = vadd.f32 %v8364_v55, %v12232_v8  ;;  %v5850_v33 = vpop.f32.mrb[59].mxu0  ;;  %4036 = vst.msk [vmem:[#allocation4 + $0x5c8] sm:$0xff] %vm2942_vm2, %v3902_v10  ;;  %8579 = vmatmul.mubr.msk.f32.gmra.mrb[100].mxu1 %vm2942_vm2, %v4744_v22  ;;  %v3120_v55 = vadd.f32 %v12025_v32, %v3053_v37  ;;  %v12658_v26 = vld [vmem:[#allocation27] ss:$0 sm:$0xff] }
 0x860   :  { %v8864_v23 = vpop.eup %8863  ;;  %7229 = vst.msk [vmem:[%s14738_s9 + $0x108] sm:$0xff] %vm7195_vm3, %v8862_v56  ;;  %v5851_v20 = vadd.f32 %v12232_v8, %v5850_v33  ;;  %v3296_v6 = vpop.permute.xlu0 %3295  ;;  %4349 = vrot.lane.b32.xlu1 %v4199_v28, %s9682_s8  ;;  %v3054_v33 = vmul.f32 %v12021_v43, %v14696_v62 }
 0x861   :  { %7228 = vst.msk [vmem:[%s14738_s9 + $0x100] sm:$0xff] %vm7195_vm3, %v8864_v23  ;;  %8873 = vtanh.f32 %v5856_v45  ;;  %v4636_v8 = vld [vmem:[#allocation4 + $0x258] sm:$0xff]  ;;  %v4200_v23 = vmax.f32 %v4136_v29, 0.0  ;;  %v3184_v28 = vmax.f32 %v3120_v55, 0.0  ;;  %v4071_v29 = vmul.f32 %v11911_v11, %v14676_v39 }
 0x862   :  { %8875 = vtanh.f32 %v5851_v20  ;;  %v8367_v21 = vpop.f32.mrb[60].mxu0  ;;  %3474 = vst.msk [vmem:[#allocation4 + $0x268] sm:$0xff] %vm2942_vm2, %v3296_v6  ;;  %8417 = vmatmul.mubr.msk.f32.gmra.mrb[94].mxu0 %vm2942_vm2, %v4636_v8  ;;  %3353 = vrot.lane.b32.xlu0 %v3183_v16, %s9681_s29  ;;  %v3904_v41 = vpop.permute.xlu1 %3903  ;;  %v4745_v42 = vld [vmem:[#allocation4 + $0x5c0] sm:$0xff]  ;;  %v4137_v20 = vadd.f32 %v12182_v57, %v4070_v52 }
 0x863   :  { %v8866_v44 = vpop.eup %8865  ;;  %v5866_v48 = vadd.f32 %v12658_v26, %v8367_v21  ;;  %v5860_v56 = vpop.f32.mrb[61].mxu0  ;;  %4037 = vst.msk [vmem:[#allocation4 + $0x5d0] sm:$0xff] %vm2942_vm2, %v3904_v41  ;;  %8581 = vmatprep.mubr.msk.f32.mxu1 %vm2942_vm2, %v4745_v42  ;;  %v3121_v21 = vadd.f32 %v12025_v32, %v3054_v33 }
 0x864   :  { %v8868_v45 = vpop.eup %8867  ;;  %7231 = vst.msk [vmem:[%s14738_s9 + $0x118] sm:$0xff] %vm7195_vm3, %v8866_v44  ;;  %v5861_v46 = vadd.f32 %v12658_v26, %v5860_v56  ;;  %v3298_v10 = vpop.permute.xlu0 %3297  ;;  %4351 = vrot.lane.b32.xlu1 %v4200_v23, %s9682_s8  ;;  %v4201_v52 = vmax.f32 %v4137_v20, 0.0  ;;  %v4072_v20 = vmul.f32 %v11911_v11, %v14679_v36 }
 0x865   :  { %7230 = vst.msk [vmem:[%s14738_s9 + $0x110] sm:$0xff] %vm7195_vm3, %v8868_v45  ;;  %8877 = vtanh.f32 %v5866_v48  ;;  %v4637_v22 = vld [vmem:[#allocation4 + $0x260] sm:$0xff]  ;;  %v3055_v48 = vmul.f32 %v12021_v43, %v14698_v59  ;;  %v4138_v45 = vadd.f32 %v12182_v57, %v4071_v29  ;;  %v3185_v42 = vmax.f32 %v3121_v21, 0.0 }
 0x866   :  { %8879 = vtanh.f32 %v5861_v46  ;;  %v8370_v37 = vpop.f32.mrb[62].mxu0  ;;  %3475 = vst.msk [vmem:[#allocation4 + $0x270] sm:$0xff] %vm2942_vm2, %v3298_v10  ;;  %8419 = vmatprep.mubr.msk.f32.mxu0 %vm2942_vm2, %v4637_v22  ;;  %3355 = vrot.lane.b32.xlu0 %v3184_v28, %s9681_s29  ;;  %v3906_v39 = vpop.permute.xlu1 %3905  ;;  %v4746_v56 = vld [vmem:[#allocation4 + $0x5c8] sm:$0xff] }
 0x867   :  { %v8870_v6 = vpop.eup %8869  ;;  %v5876_v8 = vadd.f32 %v12658_v26, %v8370_v37  ;;  %v5870_v16 = vpop.f32.mrb[63].mxu0  ;;  %4038 = vst.msk [vmem:[#allocation4 + $0x5d8] sm:$0xff] %vm2942_vm2, %v3906_v39  ;;  %8582 = vmatmul.mubr.msk.f32.gmra.mrb[102].mxu1 %vm2942_vm2, %v4746_v56  ;;  %v3122_v23 = vadd.f32 %v12025_v32, %v3055_v48  ;;  %v4202_v29 = vmax.f32 %v4138_v45, 0.0  ;;  %v4073_v45 = vmul.f32 %v11911_v11, %v14678_v40 }
 0x868   :  { %v8872_v44 = vpop.eup %8871  ;;  %7233 = vst.msk [vmem:[%s14738_s9 + $0x128] sm:$0xff] %vm7195_vm3, %v8870_v6  ;;  %v5871_v55 = vadd.f32 %v12658_v26, %v5870_v16  ;;  %v3300_v33 = vpop.permute.xlu0 %3299  ;;  %4353 = vrot.lane.b32.xlu1 %v4201_v52, %s9682_s8  ;;  %v14739_v6 = vld [vmem:[#allocation83_spill] sm:$0xff] }
 0x869   :  { %7232 = vst.msk [vmem:[%s14738_s9 + $0x120] sm:$0xff] %vm7195_vm3, %v8872_v44  ;;  %8881 = vtanh.f32 %v5876_v8  ;;  %v4638_v41 = vld [vmem:[#allocation4 + $0x268] sm:$0xff]  ;;  %v3056_v8 = vmul.f32 %v12021_v43, %v14739_v6  ;;  %v4139_v44 = vadd.f32 %v12182_v57, %v4072_v20  ;;  %v3186_v56 = vmax.f32 %v3122_v23, 0.0 }
 0x86a   :  { %8883 = vtanh.f32 %v5871_v55  ;;  %v8373_v46 = vpop.f32.mrb[64].mxu0  ;;  %3476 = vst.msk [vmem:[#allocation4 + $0x278] sm:$0xff] %vm2942_vm2, %v3300_v33  ;;  %8420 = vmatmul.mubr.msk.f32.gmra.mrb[96].mxu0 %vm2942_vm2, %v4638_v41  ;;  %3357 = vrot.lane.b32.xlu0 %v3185_v42, %s9681_s29  ;;  %v3908_v36 = vpop.permute.xlu1 %3907  ;;  %v4747_v16 = vld [vmem:[#allocation4 + $0x5d0] sm:$0xff] }
 0x86b   :  { %v8874_v37 = vpop.eup %8873  ;;  %v5886_v10 = vadd.f32 %v12658_v26, %v8373_v46  ;;  %v5880_v22 = vpop.f32.mrb[65].mxu0  ;;  %4039 = vst.msk [vmem:[#allocation4 + $0x5e0] sm:$0xff] %vm2942_vm2, %v3908_v36  ;;  %8584 = vmatprep.mubr.msk.f32.mxu1 %vm2942_vm2, %v4747_v16  ;;  %v3123_v52 = vadd.f32 %v12025_v32, %v3056_v8  ;;  %v4203_v20 = vmax.f32 %v4139_v44, 0.0  ;;  %v4074_v44 = vmul.f32 %v11911_v11, %v14681_v53 }
 0x86c   :  { %v8876_v28 = vpop.eup %8875  ;;  %7235 = vst.msk [vmem:[%s14738_s9 + $0x138] sm:$0xff] %vm7195_vm3, %v8874_v37  ;;  %v5881_v21 = vadd.f32 %v12658_v26, %v5880_v22  ;;  %v3302_v48 = vpop.permute.xlu0 %3301  ;;  %4355 = vrot.lane.b32.xlu1 %v4202_v29, %s9682_s8  ;;  %v14740_v37 = vld [vmem:[#allocation82_spill] sm:$0xff] }
 0x86d   :  { %7234 = vst.msk [vmem:[%s14738_s9 + $0x130] sm:$0xff] %vm7195_vm3, %v8876_v28  ;;  %8885 = vtanh.f32 %v5886_v10  ;;  %v4639_v39 = vld [vmem:[#allocation4 + $0x270] sm:$0xff]  ;;  %v3057_v10 = vmul.f32 %v12021_v43, %v14740_v37  ;;  %v4140_v28 = vadd.f32 %v12182_v57, %v4073_v45  ;;  %v3187_v16 = vmax.f32 %v3123_v52, 0.0 }
 0x86e   :  { %8887 = vtanh.f32 %v5881_v21  ;;  %v8376_v55 = vpop.f32.mrb[66].mxu0  ;;  %3477 = vst.msk [vmem:[#allocation4 + $0x280] sm:$0xff] %vm2942_vm2, %v3302_v48  ;;  %8422 = vmatprep.mubr.msk.f32.mxu0 %vm2942_vm2, %v4639_v39  ;;  %3359 = vrot.lane.b32.xlu0 %v3186_v56, %s9681_s29  ;;  %v3910_v40 = vpop.permute.xlu1 %3909  ;;  %v4748_v22 = vld [vmem:[#allocation4 + $0x5d8] sm:$0xff] }
 0x86f   :  { %v8878_v46 = vpop.eup %8877  ;;  %v5896_v33 = vadd.f32 %v12658_v26, %v8376_v55  ;;  %v5890_v41 = vpop.f32.mrb[67].mxu0  ;;  %4040 = vst.msk [vmem:[#allocation4 + $0x5e8] sm:$0xff] %vm2942_vm2, %v3910_v40  ;;  %8585 = vmatmul.mubr.msk.f32.gmra.mrb[104].mxu1 %vm2942_vm2, %v4748_v22  ;;  %v3124_v29 = vadd.f32 %v12025_v32, %v3057_v10  ;;  %v4204_v45 = vmax.f32 %v4140_v28, 0.0  ;;  %v4075_v28 = vmul.f32 %v11911_v11, %v14680_v12 }
 0x870   :  { %v8880_v42 = vpop.eup %8879  ;;  %7237 = vst.msk [vmem:[%s14738_s9 + $0x148] sm:$0xff] %vm7195_vm3, %v8878_v46  ;;  %v5891_v23 = vadd.f32 %v12658_v26, %v5890_v41  ;;  %v3304_v8 = vpop.permute.xlu0 %3303  ;;  %4357 = vrot.lane.b32.xlu1 %v4203_v20, %s9682_s8  ;;  %v14741_v46 = vld [vmem:[#allocation85_spill] sm:$0xff] }
 0x871   :  { %7236 = vst.msk [vmem:[%s14738_s9 + $0x140] sm:$0xff] %vm7195_vm3, %v8880_v42  ;;  %8889 = vtanh.f32 %v5896_v33  ;;  %v4640_v36 = vld [vmem:[#allocation4 + $0x278] sm:$0xff]  ;;  %v3058_v33 = vmul.f32 %v12021_v43, %v14741_v46  ;;  %v4141_v42 = vadd.f32 %v12182_v57, %v4074_v44  ;;  %v3188_v22 = vmax.f32 %v3124_v29, 0.0 }
 0x872   :  { %8891 = vtanh.f32 %v5891_v23  ;;  %v8379_v21 = vpop.f32.mrb[68].mxu0  ;;  %3478 = vst.msk [vmem:[#allocation4 + $0x288] sm:$0xff] %vm2942_vm2, %v3304_v8  ;;  %8423 = vmatmul.mubr.msk.f32.gmra.mrb[98].mxu0 %vm2942_vm2, %v4640_v36  ;;  %3361 = vrot.lane.b32.xlu0 %v3187_v16, %s9681_s29  ;;  %v3912_v53 = vpop.permute.xlu1 %3911  ;;  %v4749_v41 = vld [vmem:[#allocation4 + $0x5e0] sm:$0xff] }
 0x873   :  { %v8882_v55 = vpop.eup %8881  ;;  %v5906_v48 = vadd.f32 %v12658_v26, %v8379_v21  ;;  %v5900_v39 = vpop.f32.mrb[69].mxu0  ;;  %4041 = vst.msk [vmem:[#allocation4 + $0x5f0] sm:$0xff] %vm2942_vm2, %v3912_v53  ;;  %8587 = vmatprep.mubr.msk.f32.mxu1 %vm2942_vm2, %v4749_v41  ;;  %v3125_v20 = vadd.f32 %v12025_v32, %v3058_v33  ;;  %v4205_v44 = vmax.f32 %v4141_v42, 0.0  ;;  %v4076_v42 = vmul.f32 %v11911_v11, %v14683_v63 }
 0x874   :  { %v8884_v56 = vpop.eup %8883  ;;  %7239 = vst.msk [vmem:[%s14738_s9 + $0x158] sm:$0xff] %vm7195_vm3, %v8882_v55  ;;  %v5901_v52 = vadd.f32 %v12658_v26, %v5900_v39  ;;  %v3306_v10 = vpop.permute.xlu0 %3305  ;;  %4359 = vrot.lane.b32.xlu1 %v4204_v45, %s9682_s8  ;;  %v14742_v55 = vld [vmem:[#allocation84_spill] sm:$0xff] }
 0x875   :  { %7238 = vst.msk [vmem:[%s14738_s9 + $0x150] sm:$0xff] %vm7195_vm3, %v8884_v56  ;;  %8893 = vtanh.f32 %v5906_v48  ;;  %v4641_v40 = vld [vmem:[#allocation4 + $0x280] sm:$0xff]  ;;  %v3059_v48 = vmul.f32 %v12021_v43, %v14742_v55  ;;  %v4142_v56 = vadd.f32 %v12182_v57, %v4075_v28  ;;  %v3189_v41 = vmax.f32 %v3125_v20, 0.0 }
 0x876   :  { %8895 = vtanh.f32 %v5901_v52  ;;  %v8382_v23 = vpop.f32.mrb[70].mxu0  ;;  %3479 = vst.msk [vmem:[#allocation4 + $0x290] sm:$0xff] %vm2942_vm2, %v3306_v10  ;;  %8425 = vmatprep.mubr.msk.f32.mxu0 %vm2942_vm2, %v4641_v40  ;;  %3363 = vrot.lane.b32.xlu0 %v3188_v22, %s9681_s29  ;;  %v3914_v12 = vpop.permute.xlu1 %3913  ;;  %v4750_v39 = vld [vmem:[#allocation4 + $0x5e8] sm:$0xff] }
 0x877   :  { %v8886_v21 = vpop.eup %8885  ;;  %v5916_v8 = vadd.f32 %v12658_v26, %v8382_v23  ;;  %v5910_v36 = vpop.f32.mrb[71].mxu0  ;;  %4042 = vst.msk [vmem:[#allocation4 + $0x5f8] sm:$0xff] %vm2942_vm2, %v3914_v12  ;;  %8588 = vmatmul.mubr.msk.f32.gmra.mrb[106].mxu1 %vm2942_vm2, %v4750_v39  ;;  %v3126_v45 = vadd.f32 %v12025_v32, %v3059_v48  ;;  %v4206_v28 = vmax.f32 %v4142_v56, 0.0  ;;  %v4077_v56 = vmul.f32 %v11911_v11, %v14682_v58 }
 0x878   :  { %v8888_v16 = vpop.eup %8887  ;;  %7241 = vst.msk [vmem:[%s14738_s9 + $0x168] sm:$0xff] %vm7195_vm3, %v8886_v21  ;;  %v5911_v29 = vadd.f32 %v12658_v26, %v5910_v36  ;;  %v3308_v33 = vpop.permute.xlu0 %3307  ;;  %4361 = vrot.lane.b32.xlu1 %v4205_v44, %s9682_s8  ;;  %v14743_v21 = vld [vmem:[#allocation87_spill] sm:$0xff] }
 0x879   :  { %7240 = vst.msk [vmem:[%s14738_s9 + $0x160] sm:$0xff] %vm7195_vm3, %v8888_v16  ;;  %8897 = vtanh.f32 %v5916_v8  ;;  %v4642_v53 = vld [vmem:[#allocation4 + $0x288] sm:$0xff]  ;;  %v3060_v8 = vmul.f32 %v12021_v43, %v14743_v21  ;;  %v4143_v16 = vadd.f32 %v12182_v57, %v4076_v42  ;;  %v3190_v39 = vmax.f32 %v3126_v45, 0.0 }
 0x87a   :  { %8899 = vtanh.f32 %v5911_v29  ;;  %v8385_v52 = vpop.f32.mrb[72].mxu0  ;;  %3480 = vst.msk [vmem:[#allocation4 + $0x298] sm:$0xff] %vm2942_vm2, %v3308_v33  ;;  %8426 = vmatmul.mubr.msk.f32.gmra.mrb[100].mxu0 %vm2942_vm2, %v4642_v53  ;;  %3365 = vrot.lane.b32.xlu0 %v3189_v41, %s9681_s29  ;;  %v4306_v63 = vpop.permute.xlu1 %4305  ;;  %v4751_v36 = vld [vmem:[#allocation4 + $0x5f0] sm:$0xff] }
 0x87b   :  { %v8890_v23 = vpop.eup %8889  ;;  %v5926_v10 = vadd.f32 %v12658_v26, %v8385_v52  ;;  %v5920_v40 = vpop.f32.mrb[73].mxu0  ;;  %4497 = vst.msk [vmem:[#allocation4 + $0x600] sm:$0xff] %vm2942_vm2, %v4306_v63  ;;  %8590 = vmatprep.mubr.msk.f32.mxu1 %vm2942_vm2, %v4751_v36  ;;  %v3127_v44 = vadd.f32 %v12025_v32, %v3060_v8  ;;  %v4207_v42 = vmax.f32 %v4143_v16, 0.0  ;;  %v4078_v16 = vmul.f32 %v11911_v11, %v14685_v50 }
 0x87c   :  { %v8892_v22 = vpop.eup %8891  ;;  %7243 = vst.msk [vmem:[%s14738_s9 + $0x178] sm:$0xff] %vm7195_vm3, %v8890_v23  ;;  %v5921_v20 = vadd.f32 %v12658_v26, %v5920_v40  ;;  %v3310_v48 = vpop.permute.xlu0 %3309  ;;  %4363 = vrot.lane.b32.xlu1 %v4206_v28, %s9682_s8  ;;  %v14744_v23 = vld [vmem:[#allocation86_spill] sm:$0xff] }
 0x87d   :  { %7242 = vst.msk [vmem:[%s14738_s9 + $0x170] sm:$0xff] %vm7195_vm3, %v8892_v22  ;;  %8901 = vtanh.f32 %v5926_v10  ;;  %v4643_v12 = vld [vmem:[#allocation4 + $0x290] sm:$0xff]  ;;  %v3061_v10 = vmul.f32 %v12021_v43, %v14744_v23  ;;  %v4144_v22 = vadd.f32 %v12182_v57, %v4077_v56  ;;  %v3191_v36 = vmax.f32 %v3127_v44, 0.0 }
 0x87e   :  { %8903 = vtanh.f32 %v5921_v20  ;;  %v8388_v29 = vpop.f32.mrb[74].mxu0  ;;  %3481 = vst.msk [vmem:[#allocation4 + $0x2a0] sm:$0xff] %vm2942_vm2, %v3310_v48  ;;  %8428 = vmatprep.mubr.msk.f32.mxu0 %vm2942_vm2, %v4643_v12  ;;  %3367 = vrot.lane.b32.xlu0 %v3190_v39, %s9681_s29  ;;  %v4308_v58 = vpop.permute.xlu1 %4307  ;;  %v4752_v40 = vld [vmem:[#allocation4 + $0x5f8] sm:$0xff] }
 0x87f   :  { %v8894_v52 = vpop.eup %8893  ;;  %v5936_v33 = vadd.f32 %v12658_v26, %v8388_v29  ;;  %v5930_v53 = vpop.f32.mrb[75].mxu0  ;;  %4498 = vst.msk [vmem:[#allocation4 + $0x608] sm:$0xff] %vm2942_vm2, %v4308_v58  ;;  %8591 = vmatmul.mubr.msk.f32.gmra.mrb[108].mxu1 %vm2942_vm2, %v4752_v40  ;;  %v3128_v28 = vadd.f32 %v12025_v32, %v3061_v10  ;;  %v4208_v56 = vmax.f32 %v4144_v22, 0.0  ;;  %v4079_v22 = vmul.f32 %v11911_v11, %v14687_v18 }
 0x880   :  { %v8896_v41 = vpop.eup %8895  ;;  %7245 = vst.msk [vmem:[%s14738_s9 + $0x188] sm:$0xff] %vm7195_vm3, %v8894_v52  ;;  %v5931_v45 = vadd.f32 %v12658_v26, %v5930_v53  ;;  %v3312_v8 = vpop.permute.xlu0 %3311  ;;  %4365 = vrot.lane.b32.xlu1 %v4207_v42, %s9682_s8  ;;  %v14745_v52 = vld [vmem:[#allocation89_spill] sm:$0xff] }
 0x881   :  { %7244 = vst.msk [vmem:[%s14738_s9 + $0x180] sm:$0xff] %vm7195_vm3, %v8896_v41  ;;  %8905 = vtanh.f32 %v5936_v33  ;;  %v4644_v63 = vld [vmem:[#allocation4 + $0x298] sm:$0xff]  ;;  %v3062_v33 = vmul.f32 %v12021_v43, %v14745_v52  ;;  %v4145_v41 = vadd.f32 %v12182_v57, %v4078_v16  ;;  %v3192_v40 = vmax.f32 %v3128_v28, 0.0 }
 0x882   :  { %8907 = vtanh.f32 %v5931_v45  ;;  %v8391_v20 = vpop.f32.mrb[76].mxu0  ;;  %3482 = vst.msk [vmem:[#allocation4 + $0x2a8] sm:$0xff] %vm2942_vm2, %v3312_v8  ;;  %8429 = vmatmul.mubr.msk.f32.gmra.mrb[102].mxu0 %vm2942_vm2, %v4644_v63  ;;  %3369 = vrot.lane.b32.xlu0 %v3191_v36, %s9681_s29  ;;  %v4310_v50 = vpop.permute.xlu1 %4309  ;;  %v4753_v53 = vld [vmem:[#allocation4 + $0x600] sm:$0xff] }
 0x883   :  { %v8898_v29 = vpop.eup %8897  ;;  %v5946_v48 = vadd.f32 %v12658_v26, %v8391_v20  ;;  %v5940_v12 = vpop.f32.mrb[77].mxu0  ;;  %4499 = vst.msk [vmem:[#allocation4 + $0x610] sm:$0xff] %vm2942_vm2, %v4310_v50  ;;  %8593 = vmatprep.mubr.msk.f32.mxu1 %vm2942_vm2, %v4753_v53  ;;  %v3129_v42 = vadd.f32 %v12025_v32, %v3062_v33  ;;  %v4209_v16 = vmax.f32 %v4145_v41, 0.0  ;;  %v4080_v41 = vmul.f32 %v11911_v11, %v14689_v9 }
 0x884   :  { %v8900_v39 = vpop.eup %8899  ;;  %7247 = vst.msk [vmem:[%s14738_s9 + $0x198] sm:$0xff] %vm7195_vm3, %v8898_v29  ;;  %v5941_v44 = vadd.f32 %v12658_v26, %v5940_v12  ;;  %v3314_v10 = vpop.permute.xlu0 %3313  ;;  %4367 = vrot.lane.b32.xlu1 %v4208_v56, %s9682_s8  ;;  %v14746_v29 = vld [vmem:[#allocation88_spill] sm:$0xff] }
 0x885   :  { %7246 = vst.msk [vmem:[%s14738_s9 + $0x190] sm:$0xff] %vm7195_vm3, %v8900_v39  ;;  %8909 = vtanh.f32 %v5946_v48  ;;  %v4645_v58 = vld [vmem:[#allocation4 + $0x2a0] sm:$0xff]  ;;  %v3063_v48 = vmul.f32 %v12021_v43, %v14746_v29  ;;  %v4146_v39 = vadd.f32 %v12182_v57, %v4079_v22  ;;  %v3193_v53 = vmax.f32 %v3129_v42, 0.0 }
 0x886   :  { %8911 = vtanh.f32 %v5941_v44  ;;  %v8394_v45 = vpop.f32.mrb[78].mxu0  ;;  %3483 = vst.msk [vmem:[#allocation4 + $0x2b0] sm:$0xff] %vm2942_vm2, %v3314_v10  ;;  %8431 = vmatprep.mubr.msk.f32.mxu0 %vm2942_vm2, %v4645_v58  ;;  %3371 = vrot.lane.b32.xlu0 %v3192_v40, %s9681_s29  ;;  %v4312_v18 = vpop.permute.xlu1 %4311  ;;  %v4754_v12 = vld [vmem:[#allocation4 + $0x608] sm:$0xff] }
 0x887   :  { %v8902_v20 = vpop.eup %8901  ;;  %v5956_v8 = vadd.f32 %v12658_v26, %v8394_v45  ;;  %v5950_v63 = vpop.f32.mrb[79].mxu0  ;;  %4500 = vst.msk [vmem:[#allocation4 + $0x618] sm:$0xff] %vm2942_vm2, %v4312_v18  ;;  %8594 = vmatmul.mubr.msk.f32.gmra.mrb[110].mxu1 %vm2942_vm2, %v4754_v12  ;;  %v3130_v56 = vadd.f32 %v12025_v32, %v3063_v48  ;;  %v4210_v22 = vmax.f32 %v4146_v39, 0.0  ;;  %v4081_v39 = vmul.f32 %v11911_v11, %v14684_v19 }
 0x888   :  { %v8904_v36 = vpop.eup %8903  ;;  %7249 = vst.msk [vmem:[%s14738_s9 + $0x1a8] sm:$0xff] %vm7195_vm3, %v8902_v20  ;;  %v5951_v28 = vadd.f32 %v12658_v26, %v5950_v63  ;;  %v3316_v33 = vpop.permute.xlu0 %3315  ;;  %4369 = vrot.lane.b32.xlu1 %v4209_v16, %s9682_s8  ;;  %v14747_v20 = vld [vmem:[#allocation91_spill] sm:$0xff] }
 0x889   :  { %7248 = vst.msk [vmem:[%s14738_s9 + $0x1a0] sm:$0xff] %vm7195_vm3, %v8904_v36  ;;  %8913 = vtanh.f32 %v5956_v8  ;;  %v4646_v50 = vld [vmem:[#allocation4 + $0x2a8] sm:$0xff]  ;;  %v3064_v8 = vmul.f32 %v12021_v43, %v14747_v20  ;;  %v4147_v36 = vadd.f32 %v12182_v57, %v4080_v41  ;;  %v3194_v12 = vmax.f32 %v3130_v56, 0.0 }
 0x88a   :  { %8915 = vtanh.f32 %v5951_v28  ;;  %v8397_v44 = vpop.f32.mrb[80].mxu0  ;;  %3484 = vst.msk [vmem:[#allocation4 + $0x2b8] sm:$0xff] %vm2942_vm2, %v3316_v33  ;;  %8432 = vmatmul.mubr.msk.f32.gmra.mrb[104].mxu0 %vm2942_vm2, %v4646_v50  ;;  %3373 = vrot.lane.b32.xlu0 %v3193_v53, %s9681_s29  ;;  %v4314_v9 = vpop.permute.xlu1 %4313  ;;  %v4755_v63 = vld [vmem:[#allocation4 + $0x610] sm:$0xff] }
 0x88b   :  { %v8906_v45 = vpop.eup %8905  ;;  %v5966_v10 = vadd.f32 %v12658_v26, %v8397_v44  ;;  %v5960_v58 = vpop.f32.mrb[81].mxu0  ;;  %4501 = vst.msk [vmem:[#allocation4 + $0x620] sm:$0xff] %vm2942_vm2, %v4314_v9  ;;  %8596 = vmatprep.mubr.msk.f32.mxu1 %vm2942_vm2, %v4755_v63  ;;  %v3131_v16 = vadd.f32 %v12025_v32, %v3064_v8  ;;  %v4211_v41 = vmax.f32 %v4147_v36, 0.0 }
 0x88c   :  { %v8908_v40 = vpop.eup %8907  ;;  %7251 = vst.msk [vmem:[%s14738_s9 + $0x1b8] sm:$0xff] %vm7195_vm3, %v8906_v45  ;;  %v5961_v42 = vadd.f32 %v12658_v26, %v5960_v58  ;;  %v3318_v48 = vpop.permute.xlu0 %3317  ;;  %4371 = vrot.lane.b32.xlu1 %v4210_v22, %s9682_s8  ;;  %v14748_v45 = vld [vmem:[#allocation90_spill] sm:$0xff]  ;;  %v4082_v22 = vmul.f32 %v11911_v11, %v14691_v25 }
 0x88d   :  { %7250 = vst.msk [vmem:[%s14738_s9 + $0x1b0] sm:$0xff] %vm7195_vm3, %v8908_v40  ;;  %8917 = vtanh.f32 %v5966_v10  ;;  %v4647_v18 = vld [vmem:[#allocation4 + $0x2b0] sm:$0xff]  ;;  %v3065_v10 = vmul.f32 %v12021_v43, %v14748_v45  ;;  %v4148_v40 = vadd.f32 %v12182_v57, %v4081_v39  ;;  %v3195_v8 = vmax.f32 %v3131_v16, 0.0 }
 0x88e   :  { %8919 = vtanh.f32 %v5961_v42  ;;  %v8400_v28 = vpop.f32.mrb[82].mxu0  ;;  %3485 = vst.msk [vmem:[#allocation4 + $0x2c0] sm:$0xff] %vm2942_vm2, %v3318_v48  ;;  %8434 = vmatprep.mubr.msk.f32.mxu0 %vm2942_vm2, %v4647_v18  ;;  %3375 = vrot.lane.b32.xlu0 %v3194_v12, %s9681_s29  ;;  %v4316_v19 = vpop.permute.xlu1 %4315  ;;  %v4756_v58 = vld [vmem:[#allocation4 + $0x618] sm:$0xff]  ;;  %v4149_v25 = vadd.f32 %v12182_v57, %v4082_v22 }
 0x88f   :  { %v8910_v44 = vpop.eup %8909  ;;  %v5976_v33 = vadd.f32 %v12658_v26, %v8400_v28  ;;  %v5970_v50 = vpop.f32.mrb[83].mxu0  ;;  %4502 = vst.msk [vmem:[#allocation4 + $0x628] sm:$0xff] %vm2942_vm2, %v4316_v19  ;;  %8597 = vmatmul.mubr.msk.f32.gmra.mrb[112].mxu1 %vm2942_vm2, %v4756_v58  ;;  %v3132_v9 = vadd.f32 %v12025_v32, %v3065_v10  ;;  %v14749_v28 = vld [vmem:[#allocation93_spill] sm:$0xff]  ;;  %v4212_v16 = vmax.f32 %v4148_v40, 0.0  ;;  %v14750_v19 = vld [vmem:[#allocation92_spill] sm:$0xff] }
 0x890   :  { %v8912_v53 = vpop.eup %8911  ;;  %7253 = vst.msk [vmem:[%s14738_s9 + $0x1c8] sm:$0xff] %vm7195_vm3, %v8910_v44  ;;  %v5971_v56 = vadd.f32 %v12658_v26, %v5970_v50  ;;  %v3320_v42 = vpop.permute.xlu0 %3319  ;;  %4373 = vrot.lane.b32.xlu1 %v4211_v41, %s9682_s8  ;;  %v3066_v48 = vmul.f32 %v12021_v43, %v14749_v28  ;;  %v3067_v58 = vmul.f32 %v12021_v43, %v14750_v19 }
 0x891   :  { %7252 = vst.msk [vmem:[%s14738_s9 + $0x1c0] sm:$0xff] %vm7195_vm3, %v8912_v53  ;;  %8921 = vtanh.f32 %v5976_v33  ;;  %v4648_v26 = vld [vmem:[#allocation4 + $0x2b8] sm:$0xff]  ;;  %v3196_v50 = vmax.f32 %v3132_v9, 0.0 }
 0x892   :  { %8923 = vtanh.f32 %v5971_v56  ;;  %3486 = vst.msk [vmem:[#allocation4 + $0x2c8] sm:$0xff] %vm2942_vm2, %v3320_v42  ;;  %8435 = vmatmul.mubr.msk.f32.gmra.mrb[106].mxu0 %vm2942_vm2, %v4648_v26  ;;  %3377 = vrot.lane.b32.xlu0 %v3195_v8, %s9681_s29  ;;  %v4318_v18 = vpop.permute.xlu1 %4317  ;;  %v4757_v12 = vld [vmem:[#allocation4 + $0x620] sm:$0xff]  ;;  %v3133_v39 = vadd.f32 %v12025_v32, %v3066_v48  ;;  %v4083_v56 = vmul.f32 %v11911_v11, %v14686_v38  ;;  %v4213_v42 = vmax.f32 %v4149_v25, 0.0 }
 0x893   :  { %v8914_v63 = vpop.eup %8913  ;;  %4503 = vst.msk [vmem:[#allocation4 + $0x630] sm:$0xff] %vm2942_vm2, %v4318_v18  ;;  %8599 = vmatprep.mubr.msk.f32.mxu1 %vm2942_vm2, %v4757_v12  ;;  %v14751_v18 = vld [vmem:[#allocation95_spill] sm:$0xff] }
 0x894   :  { %v8916_v36 = vpop.eup %8915  ;;  %7255 = vst.msk [vmem:[%s14738_s9 + $0x1d8] sm:$0xff] %vm7195_vm3, %v8914_v63  ;;  %v3322_v44 = vpop.permute.xlu0 %3321  ;;  %4375 = vrot.lane.b32.xlu1 %v4212_v16, %s9682_s8  ;;  %v4150_v38 = vadd.f32 %v12182_v57, %v4083_v56  ;;  %v3197_v9 = vmax.f32 %v3133_v39, 0.0  ;;  %v3134_v63 = vadd.f32 %v12025_v32, %v3067_v58  ;;  %v3068_v12 = vmul.f32 %v12021_v43, %v14751_v18 }
 0x895   :  { %7254 = vst.msk [vmem:[%s14738_s9 + $0x1d0] sm:$0xff] %vm7195_vm3, %v8916_v36  ;;  %v4649_v33 = vld [vmem:[#allocation4 + $0x2c0] sm:$0xff]  ;;  %v4084_v36 = vmul.f32 %v11911_v11, %v14693_v4  ;;  %v4085_v56 = vmul.f32 %v11911_v11, %v14688_v27  ;;  %v4086_v27 = vmul.f32 %v11911_v11, %v14695_v0  ;;  %v4087_v0 = vmul.f32 %v11911_v11, %v14690_v1 }
 0x896   :  { %3487 = vst.msk [vmem:[#allocation4 + $0x2d0] sm:$0xff] %vm2942_vm2, %v3322_v44  ;;  %8437 = vmatprep.mubr.msk.f32.mxu0 %vm2942_vm2, %v4649_v33  ;;  %3379 = vrot.lane.b32.xlu0 %v3196_v50, %s9681_s29  ;;  %v4320_v41 = vpop.permute.xlu1 %4319  ;;  %v4758_v40 = vld [vmem:[#allocation4 + $0x628] sm:$0xff]  ;;  %v4214_v44 = vmax.f32 %v4150_v38, 0.0  ;;  %v3198_v39 = vmax.f32 %v3134_v63, 0.0  ;;  %v4088_v1 = vmul.f32 %v11911_v11, %v14692_v61  ;;  %v4089_v61 = vmul.f32 %v11911_v11, %v14694_v5 }
 0x897   :  { %v8918_v53 = vpop.eup %8917  ;;  %4504 = vst.msk [vmem:[#allocation4 + $0x638] sm:$0xff] %vm2942_vm2, %v4320_v41  ;;  %8600 = vmatmul.mubr.msk.f32.gmra.mrb[114].mxu1 %vm2942_vm2, %v4758_v40  ;;  %v4151_v4 = vadd.f32 %v12182_v57, %v4084_v36  ;;  %v4152_v38 = vadd.f32 %v12182_v57, %v4085_v56  ;;  %v4090_v5 = vmul.f32 %v11911_v11, %v14696_v62 }
 0x898   :  { %v8920_v10 = vpop.eup %8919  ;;  %7257 = vst.msk [vmem:[%s14738_s9 + $0x1e8] sm:$0xff] %vm7195_vm3, %v8918_v53  ;;  %v3324_v26 = vpop.permute.xlu0 %3323  ;;  %4377 = vrot.lane.b32.xlu1 %v4213_v42, %s9682_s8  ;;  %v3135_v53 = vadd.f32 %v12025_v32, %v3068_v12  ;;  %v4091_v62 = vmul.f32 %v11911_v11, %v14698_v59  ;;  %v4092_v59 = vmul.f32 %v11911_v11, %v14739_v6 }
 0x899   :  { %7256 = vst.msk [vmem:[%s14738_s9 + $0x1e0] sm:$0xff] %vm7195_vm3, %v8920_v10  ;;  %v4650_v8 = vld [vmem:[#allocation4 + $0x2c8] sm:$0xff]  ;;  %v4215_v42 = vmax.f32 %v4151_v4, 0.0  ;;  %v4093_v6 = vmul.f32 %v11911_v11, %v14740_v37  ;;  %v4094_v37 = vmul.f32 %v11911_v11, %v14741_v46  ;;  %v4095_v46 = vmul.f32 %v11911_v11, %v14742_v55 }
 0x89a   :  { %3488 = vst.msk [vmem:[#allocation4 + $0x2d8] sm:$0xff] %vm2942_vm2, %v3324_v26  ;;  %8438 = vmatmul.mubr.msk.f32.gmra.mrb[108].mxu0 %vm2942_vm2, %v4650_v8  ;;  %3381 = vrot.lane.b32.xlu0 %v3197_v9, %s9681_s29  ;;  %v4322_v16 = vpop.permute.xlu1 %4321  ;;  %v4759_v25 = vld [vmem:[#allocation4 + $0x630] sm:$0xff]  ;;  %v3199_v9 = vmax.f32 %v3135_v53, 0.0 }
 0x89b   :  { %v8922_v22 = vpop.eup %8921  ;;  %4505 = vst.msk [vmem:[#allocation4 + $0x640] sm:$0xff] %vm2942_vm2, %v4322_v16  ;;  %8602 = vmatprep.mubr.msk.f32.mxu1 %vm2942_vm2, %v4759_v25  ;;  %v14752_v10 = vld [vmem:[#allocation94_spill] sm:$0xff]  ;;  %v4216_v16 = vmax.f32 %v4152_v38, 0.0  ;;  %v4153_v25 = vadd.f32 %v12182_v57, %v4086_v27 }
 0x89c   :  { %v8924_v48 = vpop.eup %8923  ;;  %7259 = vst.msk [vmem:[%s14738_s9 + $0x1f8] sm:$0xff] %vm7195_vm3, %v8922_v22  ;;  %v3326_v33 = vpop.permute.xlu0 %3325  ;;  %4379 = vrot.lane.b32.xlu1 %v4214_v44, %s9682_s8  ;;  %v3069_v58 = vmul.f32 %v12021_v43, %v14752_v10  ;;  %v14753_v22 = vld [vmem:[#allocation97_spill] sm:$0xff] }
 0x89d   :  { %7258 = vst.msk [vmem:[%s14738_s9 + $0x1f0] sm:$0xff] %vm7195_vm3, %v8924_v48  ;;  %v4651_v50 = vld [vmem:[#allocation4 + $0x2d0] sm:$0xff]  ;;  %v3070_v36 = vmul.f32 %v12021_v43, %v14753_v22 }
 0x89e   :  { %3489 = vst.msk [vmem:[#allocation4 + $0x2e0] sm:$0xff] %vm2942_vm2, %v3326_v33  ;;  %8440 = vmatprep.mubr.msk.f32.mxu0 %vm2942_vm2, %v4651_v50  ;;  %3383 = vrot.lane.b32.xlu0 %v3198_v39, %s9681_s29  ;;  %v4324_v41 = vpop.permute.xlu1 %4323  ;;  %v4760_v40 = vld [vmem:[#allocation4 + $0x638] sm:$0xff]  ;;  %v3136_v63 = vadd.f32 %v12025_v32, %v3069_v58 }
 0x89f   :  { %4506 = vst.msk [vmem:[#allocation4 + $0x648] sm:$0xff] %vm2942_vm2, %v4324_v41  ;;  %8603 = vmatmul.mubr.msk.f32.gmra.mrb[116].mxu1 %vm2942_vm2, %v4760_v40  ;;  %v3137_v50 = vadd.f32 %v12025_v32, %v3070_v36  ;;  %v14754_v39 = vld [vmem:[#allocation96_spill] sm:$0xff]  ;;  %v4217_v41 = vmax.f32 %v4153_v25, 0.0  ;;  %v4154_v40 = vadd.f32 %v12182_v57, %v4087_v0 }
 0x8a0   :  { %v3328_v26 = vpop.permute.xlu0 %3327  ;;  %4381 = vrot.lane.b32.xlu1 %v4215_v42, %s9682_s8  ;;  %v3200_v33 = vmax.f32 %v3136_v63, 0.0  ;;  %v3071_v53 = vmul.f32 %v12021_v43, %v14754_v39 }
 0x8a1   :  { %v4652_v8 = vld [vmem:[#allocation4 + $0x2d8] sm:$0xff]  ;;  %3490 = vst.msk [vmem:[#allocation4 + $0x2e8] sm:$0xff] %vm2942_vm2, %v3328_v26  ;;  %v3201_v26 = vmax.f32 %v3137_v50, 0.0 }
 0x8a2   :  { %8441 = vmatmul.mubr.msk.f32.gmra.mrb[110].mxu0 %vm2942_vm2, %v4652_v8  ;;  %3385 = vrot.lane.b32.xlu0 %v3199_v9, %s9681_s29  ;;  %v4326_v48 = vpop.permute.xlu1 %4325  ;;  %v4761_v12 = vld [vmem:[#allocation4 + $0x640] sm:$0xff]  ;;  %v3138_v8 = vadd.f32 %v12025_v32, %v3071_v53  ;;  %v14755_v9 = vld [vmem:[#allocation99_spill] sm:$0xff] }
 0x8a3   :  { %4507 = vst.msk [vmem:[#allocation4 + $0x650] sm:$0xff] %vm2942_vm2, %v4326_v48  ;;  %8605 = vmatprep.mubr.msk.f32.mxu1 %vm2942_vm2, %v4761_v12  ;;  %v3072_v63 = vmul.f32 %v12021_v43, %v14755_v9  ;;  %v4218_v48 = vmax.f32 %v4154_v40, 0.0  ;;  %v4155_v12 = vadd.f32 %v12182_v57, %v4088_v1 }
 0x8a4   :  { %v3330_v44 = vpop.permute.xlu0 %3329  ;;  %4383 = vrot.lane.b32.xlu1 %v4216_v16, %s9682_s8 }
 0x8a5   :  { %v4653_v4 = vld [vmem:[#allocation4 + $0x2e0] sm:$0xff]  ;;  %3491 = vst.msk [vmem:[#allocation4 + $0x2f0] sm:$0xff] %vm2942_vm2, %v3330_v44  ;;  %v3202_v44 = vmax.f32 %v3138_v8, 0.0  ;;  %v4219_v53 = vmax.f32 %v4155_v12, 0.0  ;;  %v14758_v12 = vld [vmem:[#allocation107_spill] sm:$0xff] }
 0x8a6   :  { %8443 = vmatprep.mubr.msk.f32.mxu0 %vm2942_vm2, %v4653_v4  ;;  %3387 = vrot.lane.b32.xlu0 %v3200_v33, %s9681_s29  ;;  %v4328_v56 = vpop.permute.xlu1 %4327  ;;  %v4762_v58 = vld [vmem:[#allocation4 + $0x648] sm:$0xff]  ;;  %v3139_v4 = vadd.f32 %v12025_v32, %v3072_v63  ;;  %v3073_v33 = vmul.f32 %v12021_v43, %v14734_v47 }
 0x8a7   :  { %4508 = vst.msk [vmem:[#allocation4 + $0x658] sm:$0xff] %vm2942_vm2, %v4328_v56  ;;  %8606 = vmatmul.mubr.msk.f32.gmra.mrb[118].mxu1 %vm2942_vm2, %v4762_v58  ;;  %v4156_v56 = vadd.f32 %v12182_v57, %v4089_v61  ;;  %v14756_v43 = vld [vmem:[#allocation37_spill] sm:$0xff] }
 0x8a8   :  { %v3332_v42 = vpop.permute.xlu0 %3331  ;;  %v4654_v38 = vld [vmem:[#allocation4 + $0x2e8] sm:$0xff]  ;;  %4385 = vrot.lane.b32.xlu1 %v4217_v41, %s9682_s8  ;;  %v3203_v40 = vmax.f32 %v3139_v4, 0.0 }
 0x8a9   :  { %3492 = vst.msk [vmem:[#allocation4 + $0x2f8] sm:$0xff] %vm2942_vm2, %v3332_v42  ;;  %8444 = vmatmul.mubr.msk.f32.gmra.mrb[112].mxu0 %vm2942_vm2, %v4654_v38  ;;  %v3140_v42 = vadd.f32 %v12025_v32, %v3073_v33  ;;  %v14757_v38 = vld [vmem:[#allocation106_spill] sm:$0xff]  ;;  %v4220_v63 = vmax.f32 %v4156_v56, 0.0 }
 0x8aa   :  { %3389 = vrot.lane.b32.xlu0 %v3201_v26, %s9681_s29  ;;  %v4330_v27 = vpop.permute.xlu1 %4329  ;;  %v4763_v36 = vld [vmem:[#allocation4 + $0x650] sm:$0xff]  ;;  %v3528_v26 = vmul.f32 %v14757_v38, %v14756_v43  ;;  %v3534_v55 = vmul.f32 %v14757_v38, %v14709_v31  ;;  %v4097_v31 = vmul.f32 %v11911_v11, %v14744_v23  ;;  %v4098_v23 = vmul.f32 %v11911_v11, %v14745_v52 }
 0x8ab   :  { %4509 = vst.msk [vmem:[#allocation4 + $0x660] sm:$0xff] %vm2942_vm2, %v4330_v27  ;;  %8608 = vmatprep.mubr.msk.f32.mxu1 %vm2942_vm2, %v4763_v36  ;;  %v4157_v27 = vadd.f32 %v12182_v57, %v4090_v5  ;;  %v3537_v52 = vmul.f32 %v14757_v38, %v14715_v3  ;;  %v4100_v3 = vmul.f32 %v11911_v11, %v14747_v20 }
 0x8ac   :  { %v3334_v16 = vpop.permute.xlu0 %3333  ;;  %v4655_v25 = vld [vmem:[#allocation4 + $0x2f0] sm:$0xff]  ;;  %4387 = vrot.lane.b32.xlu1 %v4218_v48, %s9682_s8  ;;  %v3204_v48 = vmax.f32 %v3140_v42, 0.0 }
 0x8ad   :  { %3493 = vst.msk [vmem:[#allocation4 + $0x300] sm:$0xff] %vm2942_vm2, %v3334_v16  ;;  %8446 = vmatprep.mubr.msk.f32.mxu0 %vm2942_vm2, %v4655_v25  ;;  %v3595_v16 = vadd.f32 %v14758_v12, %v3528_v26  ;;  %v14759_v25 = vld [vmem:[#allocation36_spill] sm:$0xff]  ;;  %v4221_v33 = vmax.f32 %v4157_v27, 0.0  ;;  %v4159_v26 = vadd.f32 %v12182_v57, %v4092_v59  ;;  %v4161_v59 = vadd.f32 %v12182_v57, %v4094_v37 }
 0x8ae   :  { %3391 = vrot.lane.b32.xlu0 %v3202_v44, %s9681_s29  ;;  %v4332_v50 = vpop.permute.xlu1 %4331  ;;  %v4764_v0 = vld [vmem:[#allocation4 + $0x658] sm:$0xff]  ;;  %v3529_v44 = vmul.f32 %v14757_v38, %v14759_v25  ;;  %v4160_v25 = vadd.f32 %v12182_v57, %v4093_v6 }
 0x8af   :  { %4510 = vst.msk [vmem:[#allocation4 + $0x668] sm:$0xff] %vm2942_vm2, %v4332_v50  ;;  %8609 = vmatmul.mubr.msk.f32.gmra.mrb[120].mxu1 %vm2942_vm2, %v4764_v0  ;;  %v4158_v50 = vadd.f32 %v12182_v57, %v4091_v62  ;;  %v3659_v56 = vmax.f32 %v3595_v16, 0.0  ;;  %v4223_v62 = vmax.f32 %v4159_v26, 0.0 }
 0x8b0   :  { %v3336_v58 = vpop.permute.xlu0 %3335  ;;  %v4656_v41 = vld [vmem:[#allocation4 + $0x2f8] sm:$0xff]  ;;  %4389 = vrot.lane.b32.xlu1 %v4219_v53, %s9682_s8 }
 0x8b1   :  { %3494 = vst.msk [vmem:[#allocation4 + $0x308] sm:$0xff] %vm2942_vm2, %v3336_v58  ;;  %8447 = vmatmul.mubr.msk.f32.gmra.mrb[114].mxu0 %vm2942_vm2, %v4656_v41  ;;  %v3596_v58 = vadd.f32 %v14758_v12, %v3529_v44  ;;  %v14760_v41 = vld [vmem:[#allocation38_spill] sm:$0xff]  ;;  %v4222_v43 = vmax.f32 %v4158_v50, 0.0  ;;  %v14762_v50 = vld [vmem:[#allocation40_spill] sm:$0xff] }
 0x8b2   :  { %3393 = vrot.lane.b32.xlu0 %v3203_v40, %s9681_s29  ;;  %v4334_v8 = vpop.permute.xlu1 %4333  ;;  %v4765_v1 = vld [vmem:[#allocation4 + $0x660] sm:$0xff]  ;;  %v3530_v40 = vmul.f32 %v14757_v38, %v14760_v41 }
 0x8b3   :  { %4511 = vst.msk [vmem:[#allocation4 + $0x670] sm:$0xff] %vm2942_vm2, %v4334_v8  ;;  %8611 = vmatprep.mubr.msk.f32.mxu1 %vm2942_vm2, %v4765_v1 }
 0x8b4   :  { %v3338_v32 = vpop.permute.xlu0 %3337  ;;  %v4657_v36 = vld [vmem:[#allocation4 + $0x300] sm:$0xff]  ;;  %4391 = vrot.lane.b32.xlu1 %v4220_v63, %s9682_s8  ;;  %v3660_v63 = vmax.f32 %v3596_v58, 0.0  ;;  %v3597_v27 = vadd.f32 %v14758_v12, %v3530_v40  ;;  %v4224_v58 = vmax.f32 %v4160_v25, 0.0 }
 0x8b5   :  { %3495 = vst.msk [vmem:[#allocation4 + $0x310] sm:$0xff] %vm2942_vm2, %v3338_v32  ;;  %8449 = vmatprep.mubr.msk.f32.mxu0 %vm2942_vm2, %v4657_v36  ;;  %v14761_v32 = vld [vmem:[#allocation39_spill] sm:$0xff] }
 0x8b6   :  { %3395 = vrot.lane.b32.xlu0 %v3204_v48, %s9681_s29  ;;  %v4336_v4 = vpop.permute.xlu1 %4335  ;;  %v4766_v61 = vld [vmem:[#allocation4 + $0x668] sm:$0xff]  ;;  %v3531_v36 = vmul.f32 %v14757_v38, %v14761_v32 }
 0x8b7   :  { %4512 = vst.msk [vmem:[#allocation4 + $0x678] sm:$0xff] %vm2942_vm2, %v4336_v4  ;;  %8612 = vmatmul.mubr.msk.f32.gmra.mrb[122].mxu1 %vm2942_vm2, %v4766_v61  ;;  %v3661_v61 = vmax.f32 %v3597_v27, 0.0 }
 0x8b8   :  { %v3340_v0 = vpop.permute.xlu0 %3339  ;;  %v4658_v53 = vld [vmem:[#allocation4 + $0x308] sm:$0xff]  ;;  %4393 = vrot.lane.b32.xlu1 %v4221_v33, %s9682_s8  ;;  %v3598_v33 = vadd.f32 %v14758_v12, %v3531_v36 }
 0x8b9   :  { %3496 = vst.msk [vmem:[#allocation4 + $0x318] sm:$0xff] %vm2942_vm2, %v3340_v0  ;;  %8450 = vmatmul.mubr.msk.f32.gmra.mrb[116].mxu0 %vm2942_vm2, %v4658_v53  ;;  %v3532_v0 = vmul.f32 %v14757_v38, %v14762_v50 }
 0x8ba   :  { %3787 = vrot.lane.b32.xlu0 %v3659_v56, %s9679_s14  ;;  %v4338_v42 = vpop.permute.xlu1 %4337  ;;  %v4767_v5 = vld [vmem:[#allocation4 + $0x670] sm:$0xff] }
 0x8bb   :  { %4513 = vst.msk [vmem:[#allocation4 + $0x680] sm:$0xff] %vm2942_vm2, %v4338_v42  ;;  %8614 = vmatprep.mubr.msk.f32.mxu1 %vm2942_vm2, %v4767_v5  ;;  %v3662_v42 = vmax.f32 %v3598_v33, 0.0  ;;  %v3599_v5 = vadd.f32 %v14758_v12, %v3532_v0  ;;  %v3601_v33 = vadd.f32 %v14758_v12, %v3534_v55 }
 0x8bc   :  { %v3342_v8 = vpop.permute.xlu0 %3341  ;;  %v4659_v1 = vld [vmem:[#allocation4 + $0x310] sm:$0xff]  ;;  %4395 = vrot.lane.b32.xlu1 %v4222_v43, %s9682_s8  ;;  %v3533_v43 = vmul.f32 %v14757_v38, %v14707_v35  ;;  %v4096_v35 = vmul.f32 %v11911_v11, %v14743_v21 }
 0x8bd   :  { %3497 = vst.msk [vmem:[#allocation4 + $0x320] sm:$0xff] %vm2942_vm2, %v3342_v8  ;;  %8452 = vmatprep.mubr.msk.f32.mxu0 %vm2942_vm2, %v4659_v1  ;;  %v4225_v1 = vmax.f32 %v4161_v59, 0.0  ;;  %v3663_v32 = vmax.f32 %v3599_v5, 0.0  ;;  %v14763_v21 = vld [vmem:[#allocation43_spill] sm:$0xff] }
 0x8be   :  { %3789 = vrot.lane.b32.xlu0 %v3660_v63, %s9679_s14  ;;  %v4340_v48 = vpop.permute.xlu1 %4339  ;;  %v4768_v16 = vld [vmem:[#allocation4 + $0x678] sm:$0xff]  ;;  %v4162_v63 = vadd.f32 %v12182_v57, %v4095_v46  ;;  %v3600_v36 = vadd.f32 %v14758_v12, %v3533_v43  ;;  %v4163_v25 = vadd.f32 %v12182_v57, %v4096_v35  ;;  %v3535_v37 = vmul.f32 %v14757_v38, %v14763_v21 }
 0x8bf   :  { %4514 = vst.msk [vmem:[#allocation4 + $0x688] sm:$0xff] %vm2942_vm2, %v4340_v48  ;;  %8615 = vmatmul.mubr.msk.f32.gmra.mrb[124].mxu1 %vm2942_vm2, %v4768_v16 }
 0x8c0   :  { %v3344_v44 = vpop.permute.xlu0 %3343  ;;  %v4660_v4 = vld [vmem:[#allocation4 + $0x318] sm:$0xff]  ;;  %4397 = vrot.lane.b32.xlu1 %v4223_v62, %s9682_s8  ;;  %v4226_v62 = vmax.f32 %v4162_v63, 0.0 }
 0x8c1   :  { %3498 = vst.msk [vmem:[#allocation4 + $0x328] sm:$0xff] %vm2942_vm2, %v3344_v44  ;;  %8453 = vmatmul.mubr.msk.f32.gmra.mrb[118].mxu0 %vm2942_vm2, %v4660_v4 }
 0x8c2   :  { %3791 = vrot.lane.b32.xlu0 %v3661_v61, %s9679_s14  ;;  %v4342_v53 = vpop.permute.xlu1 %4341  ;;  %v4769_v56 = vld [vmem:[#allocation4 + $0x680] sm:$0xff]  ;;  %v3664_v61 = vmax.f32 %v3600_v36, 0.0 }
 0x8c3   :  { %4515 = vst.msk [vmem:[#allocation4 + $0x690] sm:$0xff] %vm2942_vm2, %v4342_v53  ;;  %8617 = vmatprep.mubr.msk.f32.mxu1 %vm2942_vm2, %v4769_v56  ;;  %v4227_v53 = vmax.f32 %v4163_v25, 0.0  ;;  %v4164_v56 = vadd.f32 %v12182_v57, %v4097_v31 }
 0x8c4   :  { %v3346_v41 = vpop.permute.xlu0 %3345  ;;  %v4661_v40 = vld [vmem:[#allocation4 + $0x320] sm:$0xff]  ;;  %4399 = vrot.lane.b32.xlu1 %v4224_v58, %s9682_s8 }
 0x8c5   :  { %3499 = vst.msk [vmem:[#allocation4 + $0x330] sm:$0xff] %vm2942_vm2, %v3346_v41  ;;  %8455 = vmatprep.mubr.msk.f32.mxu0 %vm2942_vm2, %v4661_v40  ;;  %v3665_v41 = vmax.f32 %v3601_v33, 0.0  ;;  %v3602_v40 = vadd.f32 %v14758_v12, %v3535_v37  ;;  %v4228_v43 = vmax.f32 %v4164_v56, 0.0  ;;  %v3539_v56 = vmul.f32 %v14757_v38, %v14719_v24 }
 0x8c6   :  { %3793 = vrot.lane.b32.xlu0 %v3662_v42, %s9679_s14  ;;  %v4344_v26 = vpop.permute.xlu1 %4343  ;;  %v4770_v8 = vld [vmem:[#allocation4 + $0x688] sm:$0xff]  ;;  %v3536_v42 = vmul.f32 %v14757_v38, %v14713_v60  ;;  %v4099_v60 = vmul.f32 %v11911_v11, %v14746_v29  ;;  %v3538_v29 = vmul.f32 %v14757_v38, %v14717_v13  ;;  %v4101_v13 = vmul.f32 %v11911_v11, %v14748_v45 }
 0x8c7   :  { %4516 = vst.msk [vmem:[#allocation4 + $0x698] sm:$0xff] %vm2942_vm2, %v4344_v26  ;;  %8618 = vmatmul.mubr.msk.f32.gmra.mrb[126].mxu1 %vm2942_vm2, %v4770_v8  ;;  %v4165_v26 = vadd.f32 %v12182_v57, %v4098_v23  ;;  %v3666_v63 = vmax.f32 %v3602_v40, 0.0 }
 0x8c8   :  { %v3348_v27 = vpop.permute.xlu0 %3347  ;;  %v4662_v6 = vld [vmem:[#allocation4 + $0x328] sm:$0xff]  ;;  %4401 = vrot.lane.b32.xlu1 %v4225_v1, %s9682_s8  ;;  %v4166_v35 = vadd.f32 %v12182_v57, %v4099_v60  ;;  %v3605_v37 = vadd.f32 %v14758_v12, %v3538_v29  ;;  %v4168_v23 = vadd.f32 %v12182_v57, %v4101_v13 }
 0x8c9   :  { %3500 = vst.msk [vmem:[#allocation4 + $0x338] sm:$0xff] %vm2942_vm2, %v3348_v27  ;;  %8456 = vmatmul.mubr.msk.f32.gmra.mrb[120].mxu0 %vm2942_vm2, %v4662_v6  ;;  %v3603_v27 = vadd.f32 %v14758_v12, %v3536_v42  ;;  %v4229_v36 = vmax.f32 %v4165_v26, 0.0 }
 0x8ca   :  { %3795 = vrot.lane.b32.xlu0 %v3663_v32, %s9679_s14  ;;  %v4346_v48 = vpop.permute.xlu1 %4345  ;;  %v4771_v16 = vld [vmem:[#allocation4 + $0x690] sm:$0xff] }
 0x8cb   :  { %4517 = vst.msk [vmem:[#allocation4 + $0x6a0] sm:$0xff] %vm2942_vm2, %v4346_v48  ;;  %8620 = vmatprep.mubr.msk.f32.mxu1 %vm2942_vm2, %v4771_v16  ;;  %v3667_v16 = vmax.f32 %v3603_v27, 0.0 }
 0x8cc   :  { %v3350_v44 = vpop.permute.xlu0 %3349  ;;  %v4663_v4 = vld [vmem:[#allocation4 + $0x330] sm:$0xff]  ;;  %4403 = vrot.lane.b32.xlu1 %v4226_v62, %s9682_s8  ;;  %v3604_v62 = vadd.f32 %v14758_v12, %v3537_v52  ;;  %v4232_v52 = vmax.f32 %v4168_v23, 0.0 }
 0x8cd   :  { %3501 = vst.msk [vmem:[#allocation4 + $0x340] sm:$0xff] %vm2942_vm2, %v3350_v44  ;;  %8458 = vmatprep.mubr.msk.f32.mxu0 %vm2942_vm2, %v4663_v4  ;;  %v4230_v4 = vmax.f32 %v4166_v35, 0.0 }
 0x8ce   :  { %3797 = vrot.lane.b32.xlu0 %v3664_v61, %s9679_s14  ;;  %v4348_v50 = vpop.permute.xlu1 %4347  ;;  %v4772_v0 = vld [vmem:[#allocation4 + $0x698] sm:$0xff]  ;;  %v4167_v61 = vadd.f32 %v12182_v57, %v4100_v3  ;;  %v3668_v21 = vmax.f32 %v3604_v62, 0.0  ;;  %v3541_v62 = vmul.f32 %v14757_v38, %v14723_v2 }
 0x8cf   :  { %4518 = vst.msk [vmem:[#allocation4 + $0x6a8] sm:$0xff] %vm2942_vm2, %v4348_v50  ;;  %8621 = vmatmul.mubr.msk.f32.gmra.mrb[128].mxu1 %vm2942_vm2, %v4772_v0  ;;  %v13181_v50 = vld [vmem:[#allocation27] ss:$0 sm:$0xff] }
 0x8d0   :  { %v3352_v58 = vpop.permute.xlu0 %3351  ;;  %v4664_v59 = vld [vmem:[#allocation4 + $0x338] sm:$0xff]  ;;  %4405 = vrot.lane.b32.xlu1 %v4227_v53, %s9682_s8  ;;  %v4231_v40 = vmax.f32 %v4167_v61, 0.0 }
 0x8d1   :  { %3502 = vst.msk [vmem:[#allocation4 + $0x348] sm:$0xff] %vm2942_vm2, %v3352_v58  ;;  %8459 = vmatmul.mubr.msk.f32.gmra.mrb[122].mxu0 %vm2942_vm2, %v4664_v59 }
 0x8d2   :  { %3799 = vrot.lane.b32.xlu0 %v3665_v41, %s9679_s14  ;;  %v4350_v5 = vpop.permute.xlu1 %4349  ;;  %v4773_v46 = vld [vmem:[#allocation4 + $0x6a0] sm:$0xff] }
 0x8d3   :  { %4519 = vst.msk [vmem:[#allocation4 + $0x6b0] sm:$0xff] %vm2942_vm2, %v4350_v5  ;;  %8623 = vmatprep.mubr.msk.f32.mxu1 %vm2942_vm2, %v4773_v46  ;;  %v3669_v5 = vmax.f32 %v3605_v37, 0.0  ;;  %v3606_v46 = vadd.f32 %v14758_v12, %v3539_v56 }
 0x8d4   :  { %v3354_v8 = vpop.permute.xlu0 %3353  ;;  %v4665_v1 = vld [vmem:[#allocation4 + $0x340] sm:$0xff]  ;;  %4407 = vrot.lane.b32.xlu1 %v4228_v43, %s9682_s8  ;;  %v4102_v43 = vmul.f32 %v11911_v11, %v14749_v28 }
 0x8d5   :  { %3503 = vst.msk [vmem:[#allocation4 + $0x350] sm:$0xff] %vm2942_vm2, %v3354_v8  ;;  %8461 = vmatprep.mubr.msk.f32.mxu0 %vm2942_vm2, %v4665_v1  ;;  %v3540_v1 = vmul.f32 %v14757_v38, %v14721_v17 }
 0x8d6   :  { %3801 = vrot.lane.b32.xlu0 %v3666_v63, %s9679_s14  ;;  %v4352_v6 = vpop.permute.xlu1 %4351  ;;  %v4774_v32 = vld [vmem:[#allocation4 + $0x6a8] sm:$0xff] }
 0x8d7   :  { %4520 = vst.msk [vmem:[#allocation4 + $0x6b8] sm:$0xff] %vm2942_vm2, %v4352_v6  ;;  %8624 = vmatmul.mubr.msk.f32.gmra.mrb[130].mxu1 %vm2942_vm2, %v4774_v32  ;;  %v4169_v6 = vadd.f32 %v12182_v57, %v4102_v43  ;;  %v3607_v35 = vadd.f32 %v14758_v12, %v3540_v1 }
 0x8d8   :  { %v3356_v55 = vpop.permute.xlu0 %3355  ;;  %v4666_v48 = vld [vmem:[#allocation4 + $0x348] sm:$0xff]  ;;  %4409 = vrot.lane.b32.xlu1 %v4229_v36, %s9682_s8  ;;  %v8532_v20 = vpop.f32.mrb[68].mxu1  ;;  %v3670_v36 = vmax.f32 %v3606_v46, 0.0 }
 0x8d9   :  { %3504 = vst.msk [vmem:[#allocation4 + $0x358] sm:$0xff] %vm2942_vm2, %v3356_v55  ;;  %8462 = vmatmul.mubr.msk.f32.gmra.mrb[124].mxu0 %vm2942_vm2, %v4666_v48  ;;  %v6416_v0 = vadd.f32 %v13181_v50, %v8532_v20  ;;  %v6410_v53 = vpop.f32.mrb[69].mxu1  ;;  %v4103_v55 = vmul.f32 %v11911_v11, %v14750_v19 }
 0x8da   :  { %3803 = vrot.lane.b32.xlu0 %v3667_v16, %s9679_s14  ;;  %v4354_v25 = vpop.permute.xlu1 %4353  ;;  %v4775_v44 = vld [vmem:[#allocation4 + $0x6b0] sm:$0xff]  ;;  %v6411_v58 = vadd.f32 %v13181_v50, %v6410_v53 }
 0x8db   :  { %4521 = vst.msk [vmem:[#allocation4 + $0x6c0] sm:$0xff] %vm2942_vm2, %v4354_v25  ;;  %8626 = vmatprep.mubr.msk.f32.mxu1 %vm2942_vm2, %v4775_v44  ;;  %8925 = vtanh.f32 %v6416_v0  ;;  %v4233_v44 = vmax.f32 %v4169_v6, 0.0  ;;  %v3542_v0 = vmul.f32 %v14757_v38, %v14725_v7 }
 0x8dc   :  { %v3358_v33 = vpop.permute.xlu0 %3357  ;;  %v4667_v31 = vld [vmem:[#allocation4 + $0x350] sm:$0xff]  ;;  %4411 = vrot.lane.b32.xlu1 %v4230_v4, %s9682_s8  ;;  %8927 = vtanh.f32 %v6411_v58  ;;  %v8535_v24 = vpop.f32.mrb[70].mxu1  ;;  %v4170_v4 = vadd.f32 %v12182_v57, %v4103_v55 }
 0x8dd   :  { %3505 = vst.msk [vmem:[#allocation4 + $0x360] sm:$0xff] %vm2942_vm2, %v3358_v33  ;;  %8464 = vmatprep.mubr.msk.f32.mxu0 %vm2942_vm2, %v4667_v31  ;;  %v6426_v26 = vadd.f32 %v13181_v50, %v8535_v24  ;;  %v6420_v8 = vpop.f32.mrb[71].mxu1  ;;  %v3671_v33 = vmax.f32 %v3607_v35, 0.0  ;;  %v3608_v31 = vadd.f32 %v14758_v12, %v3541_v62  ;;  %v3544_v35 = vmul.f32 %v14757_v38, %v14729_v49 }
 0x8de   :  { %3805 = vrot.lane.b32.xlu0 %v3668_v21, %s9679_s14  ;;  %v4356_v59 = vpop.permute.xlu1 %4355  ;;  %v4776_v41 = vld [vmem:[#allocation4 + $0x6b8] sm:$0xff]  ;;  %v6421_v63 = vadd.f32 %v13181_v50, %v6420_v8  ;;  %v4104_v21 = vmul.f32 %v11911_v11, %v14751_v18  ;;  %v4234_v18 = vmax.f32 %v4170_v4, 0.0 }
 0x8df   :  { %4522 = vst.msk [vmem:[#allocation4 + $0x6c8] sm:$0xff] %vm2942_vm2, %v4356_v59  ;;  %8627 = vmatmul.mubr.msk.f32.gmra.mrb[132].mxu1 %vm2942_vm2, %v4776_v41  ;;  %8929 = vtanh.f32 %v6426_v26  ;;  %v3672_v23 = vmax.f32 %v3608_v31, 0.0  ;;  %v3543_v26 = vmul.f32 %v14757_v38, %v14727_v15  ;;  %v3545_v31 = vmul.f32 %v14757_v38, %v14731_v14 }
 0x8e0   :  { %v3360_v42 = vpop.permute.xlu0 %3359  ;;  %v4668_v45 = vld [vmem:[#allocation4 + $0x358] sm:$0xff]  ;;  %4413 = vrot.lane.b32.xlu1 %v4231_v40, %s9682_s8  ;;  %8931 = vtanh.f32 %v6421_v63  ;;  %v8538_v17 = vpop.f32.mrb[72].mxu1  ;;  %v4171_v41 = vadd.f32 %v12182_v57, %v4104_v21 }
 0x8e1   :  { %3506 = vst.msk [vmem:[#allocation4 + $0x368] sm:$0xff] %vm2942_vm2, %v3360_v42  ;;  %8465 = vmatmul.mubr.msk.f32.gmra.mrb[126].mxu0 %vm2942_vm2, %v4668_v45  ;;  %v6436_v48 = vadd.f32 %v13181_v50, %v8538_v17  ;;  %v6430_v16 = vpop.f32.mrb[73].mxu1  ;;  %v3609_v42 = vadd.f32 %v14758_v12, %v3542_v0 }
 0x8e2   :  { %3807 = vrot.lane.b32.xlu0 %v3669_v5, %s9679_s14  ;;  %v4358_v27 = vpop.permute.xlu1 %4357  ;;  %v4777_v60 = vld [vmem:[#allocation4 + $0x6c0] sm:$0xff]  ;;  %v6431_v3 = vadd.f32 %v13181_v50, %v6430_v16  ;;  %v4105_v5 = vmul.f32 %v11911_v11, %v14752_v10  ;;  %v4235_v10 = vmax.f32 %v4171_v41, 0.0 }
 0x8e3   :  { %4523 = vst.msk [vmem:[#allocation4 + $0x6d0] sm:$0xff] %vm2942_vm2, %v4358_v27  ;;  %8629 = vmatprep.mubr.msk.f32.mxu1 %vm2942_vm2, %v4777_v60  ;;  %8933 = vtanh.f32 %v6436_v48  ;;  %v3673_v6 = vmax.f32 %v3609_v42, 0.0 }
 0x8e4   :  { %v3362_v32 = vpop.permute.xlu0 %3361  ;;  %v4669_v28 = vld [vmem:[#allocation4 + $0x360] sm:$0xff]  ;;  %4415 = vrot.lane.b32.xlu1 %v4232_v52, %s9682_s8  ;;  %8935 = vtanh.f32 %v6431_v3  ;;  %v8541_v2 = vpop.f32.mrb[74].mxu1  ;;  %v4172_v60 = vadd.f32 %v12182_v57, %v4105_v5 }
 0x8e5   :  { %3507 = vst.msk [vmem:[#allocation4 + $0x370] sm:$0xff] %vm2942_vm2, %v3362_v32  ;;  %8467 = vmatprep.mubr.msk.f32.mxu0 %vm2942_vm2, %v4669_v28  ;;  %v8926_v37 = vpop.eup %8925  ;;  %v6446_v20 = vadd.f32 %v13181_v50, %v8541_v2  ;;  %v6440_v13 = vpop.f32.mrb[75].mxu1  ;;  %v3610_v32 = vadd.f32 %v14758_v12, %v3543_v26  ;;  %v4106_v28 = vmul.f32 %v11911_v11, %v14753_v22 }
 0x8e6   :  { %3809 = vrot.lane.b32.xlu0 %v3670_v36, %s9679_s14  ;;  %v4360_v29 = vpop.permute.xlu1 %4359  ;;  %v4778_v25 = vld [vmem:[#allocation4 + $0x6c8] sm:$0xff]  ;;  %v8928_v53 = vpop.eup %8927  ;;  %7347 = vst.msk [vmem:[%s14738_s9 + $0x4b8] sm:$0xff] %vm7195_vm3, %v8926_v37  ;;  %v6441_v56 = vadd.f32 %v13181_v50, %v6440_v13  ;;  %v4236_v16 = vmax.f32 %v4172_v60, 0.0 }
 0x8e7   :  { %4524 = vst.msk [vmem:[#allocation4 + $0x6d8] sm:$0xff] %vm2942_vm2, %v4360_v29  ;;  %8630 = vmatmul.mubr.msk.f32.gmra.mrb[134].mxu1 %vm2942_vm2, %v4778_v25  ;;  %8937 = vtanh.f32 %v6446_v20  ;;  %v4173_v62 = vadd.f32 %v12182_v57, %v4106_v28  ;;  %v3674_v29 = vmax.f32 %v3610_v32, 0.0  ;;  %v3611_v25 = vadd.f32 %v14758_v12, %v3544_v35 }
 0x8e8   :  { %v3364_v61 = vpop.permute.xlu0 %3363  ;;  %v4670_v19 = vld [vmem:[#allocation4 + $0x368] sm:$0xff]  ;;  %4417 = vrot.lane.b32.xlu1 %v4233_v44, %s9682_s8  ;;  %7346 = vst.msk [vmem:[%s14738_s9 + $0x4b0] sm:$0xff] %vm7195_vm3, %v8928_v53  ;;  %8939 = vtanh.f32 %v6441_v56  ;;  %v8544_v45 = vpop.f32.mrb[76].mxu1  ;;  %v3612_v53 = vadd.f32 %v14758_v12, %v3545_v31 }
 0x8e9   :  { %3508 = vst.msk [vmem:[#allocation4 + $0x378] sm:$0xff] %vm2942_vm2, %v3364_v61  ;;  %8468 = vmatmul.mubr.msk.f32.gmra.mrb[128].mxu0 %vm2942_vm2, %v4670_v19  ;;  %v8930_v46 = vpop.eup %8929  ;;  %v6456_v24 = vadd.f32 %v13181_v50, %v8544_v45  ;;  %v6450_v43 = vpop.f32.mrb[77].mxu1  ;;  %v4107_v61 = vmul.f32 %v11911_v11, %v14754_v39  ;;  %v4237_v20 = vmax.f32 %v4173_v62, 0.0  ;;  %v3675_v0 = vmax.f32 %v3611_v25, 0.0 }
 0x8ea   :  { %3811 = vrot.lane.b32.xlu0 %v3671_v33, %s9679_s14  ;;  %v4362_v58 = vpop.permute.xlu1 %4361  ;;  %v4779_v59 = vld [vmem:[#allocation4 + $0x6d0] sm:$0xff]  ;;  %v8932_v8 = vpop.eup %8931  ;;  %7349 = vst.msk [vmem:[%s14738_s9 + $0x4c8] sm:$0xff] %vm7195_vm3, %v8930_v46  ;;  %v6451_v1 = vadd.f32 %v13181_v50, %v6450_v43 }
 0x8eb   :  { %4525 = vst.msk [vmem:[#allocation4 + $0x6e0] sm:$0xff] %vm2942_vm2, %v4362_v58  ;;  %8632 = vmatprep.mubr.msk.f32.mxu1 %vm2942_vm2, %v4779_v59  ;;  %8941 = vtanh.f32 %v6456_v24  ;;  %v4174_v39 = vadd.f32 %v12182_v57, %v4107_v61  ;;  %v4108_v58 = vmul.f32 %v11911_v11, %v14755_v9  ;;  %v3676_v24 = vmax.f32 %v3612_v53, 0.0 }
 0x8ec   :  { %v3366_v7 = vpop.permute.xlu0 %3365  ;;  %v4671_v40 = vld [vmem:[#allocation4 + $0x370] sm:$0xff]  ;;  %4419 = vrot.lane.b32.xlu1 %v4234_v18, %s9682_s8  ;;  %7348 = vst.msk [vmem:[%s14738_s9 + $0x4c0] sm:$0xff] %vm7195_vm3, %v8932_v8  ;;  %8943 = vtanh.f32 %v6451_v1  ;;  %v4109_v8 = vmul.f32 %v11911_v11, %v14734_v47 }
 0x8ed   :  { %3509 = vst.msk [vmem:[#allocation4 + $0x380] sm:$0xff] %vm2942_vm2, %v3366_v7  ;;  %8470 = vmatprep.mubr.msk.f32.mxu0 %vm2942_vm2, %v4671_v40  ;;  %v8934_v36 = vpop.eup %8933  ;;  %v3546_v7 = vmul.f32 %v14757_v38, %v14733_v51  ;;  %v4238_v9 = vmax.f32 %v4174_v39, 0.0  ;;  %v4175_v5 = vadd.f32 %v12182_v57, %v4108_v58 }
 0x8ee   :  { %3813 = vrot.lane.b32.xlu0 %v3672_v23, %s9679_s14  ;;  %v4364_v63 = vpop.permute.xlu1 %4363  ;;  %v4780_v27 = vld [vmem:[#allocation4 + $0x6d8] sm:$0xff]  ;;  %v8936_v17 = vpop.eup %8935  ;;  %7351 = vst.msk [vmem:[%s14738_s9 + $0x4d8] sm:$0xff] %vm7195_vm3, %v8934_v36 }
 0x8ef   :  { %4526 = vst.msk [vmem:[#allocation4 + $0x6e8] sm:$0xff] %vm2942_vm2, %v4364_v63  ;;  %8633 = vmatmul.mubr.msk.f32.gmra.mrb[136].mxu1 %vm2942_vm2, %v4780_v27  ;;  %v3613_v43 = vadd.f32 %v14758_v12, %v3546_v7  ;;  %v3547_v27 = vmul.f32 %v14757_v38, %v14735_v34 }
 0x8f0   :  { %v3368_v15 = vpop.permute.xlu0 %3367  ;;  %v4672_v52 = vld [vmem:[#allocation4 + $0x378] sm:$0xff]  ;;  %4421 = vrot.lane.b32.xlu1 %v4235_v10, %s9682_s8  ;;  %7350 = vst.msk [vmem:[%s14738_s9 + $0x4d0] sm:$0xff] %vm7195_vm3, %v8936_v17 }
 0x8f1   :  { %3510 = vst.msk [vmem:[#allocation4 + $0x388] sm:$0xff] %vm2942_vm2, %v3368_v15  ;;  %8471 = vmatmul.mubr.msk.f32.gmra.mrb[130].mxu0 %vm2942_vm2, %v4672_v52  ;;  %v8938_v19 = vpop.eup %8937  ;;  %v4239_v52 = vmax.f32 %v4175_v5, 0.0  ;;  %v3677_v47 = vmax.f32 %v3613_v43, 0.0  ;;  %v3614_v28 = vadd.f32 %v14758_v12, %v3547_v27 }
 0x8f2   :  { %3815 = vrot.lane.b32.xlu0 %v3673_v6, %s9679_s14  ;;  %v4366_v55 = vpop.permute.xlu1 %4365  ;;  %v4781_v48 = vld [vmem:[#allocation4 + $0x6e0] sm:$0xff]  ;;  %v8940_v2 = vpop.eup %8939  ;;  %7353 = vst.msk [vmem:[%s14738_s9 + $0x4e8] sm:$0xff] %vm7195_vm3, %v8938_v19  ;;  %v4176_v6 = vadd.f32 %v12182_v57, %v4109_v8  ;;  %v3549_v19 = vmul.f32 %v14757_v38, %v14737_v54 }
 0x8f3   :  { %v8547_v3 = vpop.f32.mrb[78].mxu1  ;;  %4527 = vst.msk [vmem:[#allocation4 + $0x6f0] sm:$0xff] %vm2942_vm2, %v4366_v55  ;;  %8635 = vmatprep.mubr.msk.f32.mxu1 %vm2942_vm2, %v4781_v48  ;;  %v3548_v55 = vmul.f32 %v14757_v38, %v14736_v30 }
 0x8f4   :  { %v3370_v22 = vpop.permute.xlu0 %3369  ;;  %v4673_v49 = vld [vmem:[#allocation4 + $0x380] sm:$0xff]  ;;  %v6466_v44 = vadd.f32 %v13181_v50, %v8547_v3  ;;  %v6460_v4 = vpop.f32.mrb[79].mxu1  ;;  %4423 = vrot.lane.b32.xlu1 %v4236_v16, %s9682_s8  ;;  %7352 = vst.msk [vmem:[%s14738_s9 + $0x4e0] sm:$0xff] %vm7195_vm3, %v8940_v2 }
 0x8f5   :  { %3511 = vst.msk [vmem:[#allocation4 + $0x390] sm:$0xff] %vm2942_vm2, %v3370_v22  ;;  %8473 = vmatprep.mubr.msk.f32.mxu0 %vm2942_vm2, %v4673_v49  ;;  %v6461_v33 = vadd.f32 %v13181_v50, %v6460_v4  ;;  %v8942_v59 = vpop.eup %8941  ;;  %v4240_v22 = vmax.f32 %v4176_v6, 0.0  ;;  %v3615_v30 = vadd.f32 %v14758_v12, %v3548_v55 }
 0x8f6   :  { %3817 = vrot.lane.b32.xlu0 %v3674_v29, %s9679_s14  ;;  %8945 = vtanh.f32 %v6466_v44  ;;  %v4368_v21 = vpop.permute.xlu1 %4367  ;;  %v4782_v37 = vld [vmem:[#allocation4 + $0x6e8] sm:$0xff]  ;;  %v8944_v40 = vpop.eup %8943  ;;  %7355 = vst.msk [vmem:[%s14738_s9 + $0x4f8] sm:$0xff] %vm7195_vm3, %v8942_v59  ;;  %v3678_v29 = vmax.f32 %v3614_v28, 0.0 }
 0x8f7   :  { %8947 = vtanh.f32 %v6461_v33  ;;  %4528 = vst.msk [vmem:[#allocation4 + $0x6f8] sm:$0xff] %vm2942_vm2, %v4368_v21  ;;  %8636 = vmatmul.mubr.msk.f32.gmra.mrb[138].mxu1 %vm2942_vm2, %v4782_v37  ;;  %v3679_v38 = vmax.f32 %v3615_v30, 0.0 }
 0x8f8   :  { %v3372_v13 = vpop.permute.xlu0 %3371  ;;  %v4674_v14 = vld [vmem:[#allocation4 + $0x388] sm:$0xff]  ;;  %4425 = vrot.lane.b32.xlu1 %v4237_v20, %s9682_s8  ;;  %7354 = vst.msk [vmem:[%s14738_s9 + $0x4f0] sm:$0xff] %vm7195_vm3, %v8944_v40  ;;  %v3616_v20 = vadd.f32 %v14758_v12, %v3549_v19 }
 0x8f9   :  { %3512 = vst.msk [vmem:[#allocation4 + $0x398] sm:$0xff] %vm2942_vm2, %v3372_v13  ;;  %8474 = vmatmul.mubr.msk.f32.gmra.mrb[132].mxu0 %vm2942_vm2, %v4674_v14  ;;  %v8550_v56 = vpop.f32.mrb[80].mxu1 }
 0x8fa   :  { %v6476_v18 = vadd.f32 %v13181_v50, %v8550_v56  ;;  %3819 = vrot.lane.b32.xlu0 %v3675_v0, %s9679_s14  ;;  %v6470_v41 = vpop.f32.mrb[81].mxu1  ;;  %v4370_v42 = vpop.permute.xlu1 %4369  ;;  %v4783_v45 = vld [vmem:[#allocation4 + $0x6f0] sm:$0xff]  ;;  %v3680_v7 = vmax.f32 %v3616_v20, 0.0 }
 0x8fb   :  { %v6471_v23 = vadd.f32 %v13181_v50, %v6470_v41  ;;  %4529 = vst.msk [vmem:[#allocation4 + $0x700] sm:$0xff] %vm2942_vm2, %v4370_v42  ;;  %8638 = vmatprep.mubr.msk.f32.mxu1 %vm2942_vm2, %v4783_v45 }
 0x8fc   :  { %8949 = vtanh.f32 %v6476_v18  ;;  %v3374_v51 = vpop.permute.xlu0 %3373  ;;  %v4675_v46 = vld [vmem:[#allocation4 + $0x390] sm:$0xff]  ;;  %4427 = vrot.lane.b32.xlu1 %v4238_v9, %s9682_s8 }
 0x8fd   :  { %8951 = vtanh.f32 %v6471_v23  ;;  %3513 = vst.msk [vmem:[#allocation4 + $0x3a0] sm:$0xff] %vm2942_vm2, %v3374_v51  ;;  %8476 = vmatprep.mubr.msk.f32.mxu0 %vm2942_vm2, %v4675_v46  ;;  %v8553_v26 = vpop.f32.mrb[82].mxu1 }
 0x8fe   :  { %v6486_v1 = vadd.f32 %v13181_v50, %v8553_v26  ;;  %3821 = vrot.lane.b32.xlu0 %v3676_v24, %s9679_s14  ;;  %v6480_v63 = vpop.f32.mrb[83].mxu1  ;;  %v4372_v60 = vpop.permute.xlu1 %4371  ;;  %v4784_v15 = vld [vmem:[#allocation4 + $0x6f8] sm:$0xff] }
 0x8ff   :  { %v6481_v10 = vadd.f32 %v13181_v50, %v6480_v63  ;;  %4530 = vst.msk [vmem:[#allocation4 + $0x708] sm:$0xff] %vm2942_vm2, %v4372_v60  ;;  %8639 = vmatmul.mubr.msk.f32.gmra.mrb[140].mxu1 %vm2942_vm2, %v4784_v15 }
 0x900   :  { %8953 = vtanh.f32 %v6486_v1  ;;  %v3376_v32 = vpop.permute.xlu0 %3375  ;;  %v4676_v11 = vld [vmem:[#allocation4 + $0x398] sm:$0xff]  ;;  %v8946_v36 = vpop.eup %8945  ;;  %4429 = vrot.lane.b32.xlu1 %v4239_v52, %s9682_s8 }
 0x901   :  { %8955 = vtanh.f32 %v6481_v10  ;;  %3514 = vst.msk [vmem:[#allocation4 + $0x3a8] sm:$0xff] %vm2942_vm2, %v3376_v32  ;;  %8477 = vmatmul.mubr.msk.f32.gmra.mrb[134].mxu0 %vm2942_vm2, %v4676_v11  ;;  %v8948_v57 = vpop.eup %8947 }
 0x902   :  { %v8556_v34 = vpop.f32.mrb[84].mxu1  ;;  %7357 = vst.msk [vmem:[%s14738_s9 + $0x508] sm:$0xff] %vm7195_vm3, %v8946_v36  ;;  %3823 = vrot.lane.b32.xlu0 %v3677_v47, %s9679_s14  ;;  %7356 = vst.msk [vmem:[%s14738_s9 + $0x500] sm:$0xff] %vm7195_vm3, %v8948_v57  ;;  %v4374_v16 = vpop.permute.xlu1 %4373  ;;  %v4785_v62 = vld [vmem:[#allocation4 + $0x700] sm:$0xff] }
 0x903   :  { %v6496_v35 = vadd.f32 %v13181_v50, %v8556_v34  ;;  %v6490_v17 = vpop.f32.mrb[85].mxu1  ;;  %4531 = vst.msk [vmem:[#allocation4 + $0x710] sm:$0xff] %vm2942_vm2, %v4374_v16  ;;  %8641 = vmatprep.mubr.msk.f32.mxu1 %vm2942_vm2, %v4785_v62 }
 0x904   :  { %v6491_v48 = vadd.f32 %v13181_v50, %v6490_v17  ;;  %v3378_v3 = vpop.permute.xlu0 %3377  ;;  %v4677_v49 = vld [vmem:[#allocation4 + $0x3a0] sm:$0xff]  ;;  %4431 = vrot.lane.b32.xlu1 %v4240_v22, %s9682_s8 }
 0x905   :  { %8957 = vtanh.f32 %v6496_v35  ;;  %3515 = vst.msk [vmem:[#allocation4 + $0x3b0] sm:$0xff] %vm2942_vm2, %v3378_v3  ;;  %8479 = vmatprep.mubr.msk.f32.mxu0 %vm2942_vm2, %v4677_v49 }
 0x906   :  { %8959 = vtanh.f32 %v6491_v48  ;;  %v8559_v25 = vpop.f32.mrb[86].mxu1  ;;  %v8950_v44 = vpop.eup %8949  ;;  %3825 = vrot.lane.b32.xlu0 %v3678_v29, %s9679_s14  ;;  %v4786_v21 = vld [vmem:[#allocation4 + $0x708] sm:$0xff] }
 0x907   :  { %v6506_v4 = vadd.f32 %v13181_v50, %v8559_v25  ;;  %v6500_v61 = vpop.f32.mrb[87].mxu1  ;;  %v8952_v33 = vpop.eup %8951  ;;  %7359 = vst.msk [vmem:[%s14738_s9 + $0x518] sm:$0xff] %vm7195_vm3, %v8950_v44  ;;  %8642 = vmatmul.mubr.msk.f32.gmra.mrb[142].mxu1 %vm2942_vm2, %v4786_v21 }
 0x908   :  { %v6501_v31 = vadd.f32 %v13181_v50, %v6500_v61  ;;  %v4376_v2 = vpop.permute.xlu1 %4375  ;;  %7358 = vst.msk [vmem:[%s14738_s9 + $0x510] sm:$0xff] %vm7195_vm3, %v8952_v33  ;;  %v3380_v37 = vpop.permute.xlu0 %3379  ;;  %v4678_v54 = vld [vmem:[#allocation4 + $0x3a8] sm:$0xff] }
 0x909   :  { %8961 = vtanh.f32 %v6506_v4  ;;  %4532 = vst.msk [vmem:[#allocation4 + $0x718] sm:$0xff] %vm2942_vm2, %v4376_v2  ;;  %3516 = vst.msk [vmem:[#allocation4 + $0x3b8] sm:$0xff] %vm2942_vm2, %v3380_v37  ;;  %8480 = vmatmul.mubr.msk.f32.gmra.mrb[136].mxu0 %vm2942_vm2, %v4678_v54 }
 0x90a   :  { %8963 = vtanh.f32 %v6501_v31  ;;  %v8562_v39 = vpop.f32.mrb[88].mxu1  ;;  %v8954_v13 = vpop.eup %8953  ;;  %3827 = vrot.lane.b32.xlu0 %v3679_v38, %s9679_s14  ;;  %v4787_v58 = vld [vmem:[#allocation4 + $0x710] sm:$0xff] }
 0x90b   :  { %v6516_v14 = vadd.f32 %v13181_v50, %v8562_v39  ;;  %v6510_v0 = vpop.f32.mrb[89].mxu1  ;;  %v8956_v53 = vpop.eup %8955  ;;  %7361 = vst.msk [vmem:[%s14738_s9 + $0x528] sm:$0xff] %vm7195_vm3, %v8954_v13  ;;  %8644 = vmatprep.mubr.msk.f32.mxu1 %vm2942_vm2, %v4787_v58 }
 0x90c   :  { %v6511_v12 = vadd.f32 %v13181_v50, %v6510_v0  ;;  %v4378_v56 = vpop.permute.xlu1 %4377  ;;  %7360 = vst.msk [vmem:[%s14738_s9 + $0x520] sm:$0xff] %vm7195_vm3, %v8956_v53  ;;  %v3382_v59 = vpop.permute.xlu0 %3381  ;;  %v4679_v41 = vld [vmem:[#allocation4 + $0x3b0] sm:$0xff] }
 0x90d   :  { %8965 = vtanh.f32 %v6516_v14  ;;  %4533 = vst.msk [vmem:[#allocation4 + $0x720] sm:$0xff] %vm2942_vm2, %v4378_v56  ;;  %v8403_v18 = vpop.f32.mrb[84].mxu0  ;;  %3517 = vst.msk [vmem:[#allocation4 + $0x3c0] sm:$0xff] %vm2942_vm2, %v3382_v59  ;;  %8482 = vmatprep.mubr.msk.f32.mxu0 %vm2942_vm2, %v4679_v41 }
 0x90e   :  { %8967 = vtanh.f32 %v6511_v12  ;;  %v5986_v40 = vadd.f32 %v13181_v50, %v8403_v18  ;;  %v5980_v23 = vpop.f32.mrb[85].mxu0  ;;  %v8565_v42 = vpop.f32.mrb[90].mxu1  ;;  %3829 = vrot.lane.b32.xlu0 %v3680_v7, %s9679_s14 }
 0x90f   :  { %v8958_v45 = vpop.eup %8957  ;;  %v5981_v9 = vadd.f32 %v13181_v50, %v5980_v23  ;;  %v6526_v5 = vadd.f32 %v13181_v50, %v8565_v42  ;;  %v6520_v51 = vpop.f32.mrb[91].mxu1 }
 0x910   :  { %v8960_v46 = vpop.eup %8959  ;;  %7363 = vst.msk [vmem:[%s14738_s9 + $0x538] sm:$0xff] %vm7195_vm3, %v8958_v45  ;;  %8969 = vtanh.f32 %v5986_v40  ;;  %v6521_v24 = vadd.f32 %v13181_v50, %v6520_v51  ;;  %v4380_v43 = vpop.permute.xlu1 %4379  ;;  %v4788_v26 = vld [vmem:[#allocation4 + $0x718] sm:$0xff] }
 0x911   :  { %7362 = vst.msk [vmem:[%s14738_s9 + $0x530] sm:$0xff] %vm7195_vm3, %v8960_v46  ;;  %8971 = vtanh.f32 %v5981_v9  ;;  %v3384_v8 = vpop.permute.xlu0 %3383  ;;  %v4680_v1 = vld [vmem:[#allocation4 + $0x3b8] sm:$0xff]  ;;  %8645 = vmatmul.mubr.msk.f32.gmra.mrb[144].mxu1 %vm2942_vm2, %v4788_v26 }
 0x912   :  { %4534 = vst.msk [vmem:[#allocation4 + $0x728] sm:$0xff] %vm2942_vm2, %v4380_v43  ;;  %8973 = vtanh.f32 %v6526_v5  ;;  %3518 = vst.msk [vmem:[#allocation4 + $0x3c8] sm:$0xff] %vm2942_vm2, %v3384_v8  ;;  %8483 = vmatmul.mubr.msk.f32.gmra.mrb[138].mxu0 %vm2942_vm2, %v4680_v1  ;;  %v8568_v10 = vpop.f32.mrb[92].mxu1 }
 0x913   :  { %v8962_v63 = vpop.eup %8961  ;;  %8975 = vtanh.f32 %v6521_v24  ;;  %v6536_v6 = vadd.f32 %v13181_v50, %v8568_v10  ;;  %v6530_v36 = vpop.f32.mrb[93].mxu1 }
 0x914   :  { %v8964_v27 = vpop.eup %8963  ;;  %7365 = vst.msk [vmem:[%s14738_s9 + $0x548] sm:$0xff] %vm7195_vm3, %v8962_v63  ;;  %v4382_v60 = vpop.permute.xlu1 %4381  ;;  %v4789_v15 = vld [vmem:[#allocation4 + $0x720] sm:$0xff]  ;;  %v6531_v35 = vadd.f32 %v13181_v50, %v6530_v36 }
 0x915   :  { %7364 = vst.msk [vmem:[%s14738_s9 + $0x540] sm:$0xff] %vm7195_vm3, %v8964_v27  ;;  %v3386_v52 = vpop.permute.xlu0 %3385  ;;  %v8406_v32 = vpop.f32.mrb[86].mxu0  ;;  %v4681_v11 = vld [vmem:[#allocation4 + $0x3c0] sm:$0xff]  ;;  %8647 = vmatprep.mubr.msk.f32.mxu1 %vm2942_vm2, %v4789_v15  ;;  %8977 = vtanh.f32 %v6536_v6 }
 0x916   :  { %4535 = vst.msk [vmem:[#allocation4 + $0x730] sm:$0xff] %vm2942_vm2, %v4382_v60  ;;  %3519 = vst.msk [vmem:[#allocation4 + $0x3d0] sm:$0xff] %vm2942_vm2, %v3386_v52  ;;  %v5996_v47 = vadd.f32 %v13181_v50, %v8406_v32  ;;  %v5990_v28 = vpop.f32.mrb[87].mxu0  ;;  %8485 = vmatprep.mubr.msk.f32.mxu0 %vm2942_vm2, %v4681_v11 }
 0x917   :  { %v8966_v34 = vpop.eup %8965  ;;  %v5991_v57 = vadd.f32 %v13181_v50, %v5990_v28 }
 0x918   :  { %v8968_v17 = vpop.eup %8967  ;;  %7367 = vst.msk [vmem:[%s14738_s9 + $0x558] sm:$0xff] %vm7195_vm3, %v8966_v34  ;;  %8979 = vtanh.f32 %v5996_v47  ;;  %v4384_v55 = vpop.permute.xlu1 %4383 }
 0x919   :  { %v4790_v48 = vld [vmem:[#allocation4 + $0x728] sm:$0xff]  ;;  %7366 = vst.msk [vmem:[%s14738_s9 + $0x550] sm:$0xff] %vm7195_vm3, %v8968_v17  ;;  %8981 = vtanh.f32 %v5991_v57  ;;  %v3388_v16 = vpop.permute.xlu0 %3387 }
 0x91a   :  { %4536 = vst.msk [vmem:[#allocation4 + $0x738] sm:$0xff] %vm2942_vm2, %v4384_v55  ;;  %v4682_v62 = vld [vmem:[#allocation4 + $0x3c8] sm:$0xff]  ;;  %8648 = vmatmul.mubr.msk.f32.gmra.mrb[146].mxu1 %vm2942_vm2, %v4790_v48  ;;  %v8970_v22 = vpop.eup %8969  ;;  %8983 = vtanh.f32 %v6531_v35  ;;  %3520 = vst.msk [vmem:[#allocation4 + $0x3d8] sm:$0xff] %vm2942_vm2, %v3388_v16  ;;  %v8571_v29 = vpop.f32.mrb[94].mxu1 }
 0x91b   :  { %8486 = vmatmul.mubr.msk.f32.gmra.mrb[140].mxu0 %vm2942_vm2, %v4682_v62  ;;  %v8972_v3 = vpop.eup %8971  ;;  %7261 = vst.msk [vmem:[%s14738_s9 + $0x208] sm:$0xff] %vm7195_vm3, %v8970_v22  ;;  %v6546_v61 = vadd.f32 %v13181_v50, %v8571_v29  ;;  %v6540_v21 = vpop.f32.mrb[95].mxu1 }
 0x91c   :  { %v8974_v49 = vpop.eup %8973  ;;  %7260 = vst.msk [vmem:[%s14738_s9 + $0x200] sm:$0xff] %vm7195_vm3, %v8972_v3  ;;  %v4386_v30 = vpop.permute.xlu1 %4385  ;;  %v6541_v54 = vadd.f32 %v13181_v50, %v6540_v21 }
 0x91d   :  { %v4791_v25 = vld [vmem:[#allocation4 + $0x730] sm:$0xff]  ;;  %v8976_v44 = vpop.eup %8975  ;;  %7369 = vst.msk [vmem:[%s14738_s9 + $0x568] sm:$0xff] %vm7195_vm3, %v8974_v49  ;;  %v3390_v4 = vpop.permute.xlu0 %3389  ;;  %8985 = vtanh.f32 %v6546_v61 }
 0x91e   :  { %4537 = vst.msk [vmem:[#allocation4 + $0x740] sm:$0xff] %vm2942_vm2, %v4386_v30  ;;  %v8409_v19 = vpop.f32.mrb[88].mxu0  ;;  %v4683_v33 = vld [vmem:[#allocation4 + $0x3d0] sm:$0xff]  ;;  %8650 = vmatprep.mubr.msk.f32.mxu1 %vm2942_vm2, %v4791_v25  ;;  %3521 = vst.msk [vmem:[#allocation4 + $0x3e0] sm:$0xff] %vm2942_vm2, %v3390_v4 }
 0x91f   :  { %7368 = vst.msk [vmem:[%s14738_s9 + $0x560] sm:$0xff] %vm7195_vm3, %v8976_v44  ;;  %v6006_v31 = vadd.f32 %v13181_v50, %v8409_v19  ;;  %v6000_v2 = vpop.f32.mrb[89].mxu0  ;;  %8488 = vmatprep.mubr.msk.f32.mxu0 %vm2942_vm2, %v4683_v33  ;;  %v8978_v39 = vpop.eup %8977 }
 0x920   :  { %v6001_v37 = vadd.f32 %v13181_v50, %v6000_v2  ;;  %v4388_v38 = vpop.permute.xlu1 %4387  ;;  %7371 = vst.msk [vmem:[%s14738_s9 + $0x578] sm:$0xff] %vm7195_vm3, %v8978_v39 }
 0x921   :  { %8987 = vtanh.f32 %v6006_v31  ;;  %v4792_v20 = vld [vmem:[#allocation4 + $0x738] sm:$0xff]  ;;  %v3392_v13 = vpop.permute.xlu0 %3391  ;;  %4538 = vst.msk [vmem:[#allocation4 + $0x748] sm:$0xff] %vm2942_vm2, %v4388_v38 }
 0x922   :  { %8989 = vtanh.f32 %v6001_v37  ;;  %v4684_v14 = vld [vmem:[#allocation4 + $0x3d8] sm:$0xff]  ;;  %8651 = vmatmul.mubr.msk.f32.gmra.mrb[148].mxu1 %vm2942_vm2, %v4792_v20  ;;  %v8980_v0 = vpop.eup %8979  ;;  %3522 = vst.msk [vmem:[#allocation4 + $0x3e8] sm:$0xff] %vm2942_vm2, %v3392_v13  ;;  %v8574_v56 = vpop.f32.mrb[96].mxu1 }
 0x923   :  { %8991 = vtanh.f32 %v6541_v54  ;;  %8489 = vmatmul.mubr.msk.f32.gmra.mrb[142].mxu0 %vm2942_vm2, %v4684_v14  ;;  %v8982_v53 = vpop.eup %8981  ;;  %7263 = vst.msk [vmem:[%s14738_s9 + $0x218] sm:$0xff] %vm7195_vm3, %v8980_v0  ;;  %v6556_v41 = vadd.f32 %v13181_v50, %v8574_v56  ;;  %v6550_v45 = vpop.f32.mrb[97].mxu1 }
 0x924   :  { %v8984_v12 = vpop.eup %8983  ;;  %7262 = vst.msk [vmem:[%s14738_s9 + $0x210] sm:$0xff] %vm7195_vm3, %v8982_v53  ;;  %v4390_v58 = vpop.permute.xlu1 %4389  ;;  %v6551_v5 = vadd.f32 %v13181_v50, %v6550_v45 }
 0x925   :  { %v4793_v59 = vld [vmem:[#allocation4 + $0x740] sm:$0xff]  ;;  %7370 = vst.msk [vmem:[%s14738_s9 + $0x570] sm:$0xff] %vm7195_vm3, %v8984_v12  ;;  %v3394_v18 = vpop.permute.xlu0 %3393  ;;  %v8412_v7 = vpop.f32.mrb[90].mxu0  ;;  %8993 = vtanh.f32 %v6556_v41 }
 0x926   :  { %4539 = vst.msk [vmem:[#allocation4 + $0x750] sm:$0xff] %vm2942_vm2, %v4390_v58  ;;  %v4685_v40 = vld [vmem:[#allocation4 + $0x3e0] sm:$0xff]  ;;  %8653 = vmatprep.mubr.msk.f32.mxu1 %vm2942_vm2, %v4793_v59  ;;  %3523 = vst.msk [vmem:[#allocation4 + $0x3f0] sm:$0xff] %vm2942_vm2, %v3394_v18  ;;  %v6016_v23 = vadd.f32 %v13181_v50, %v8412_v7  ;;  %v6010_v42 = vpop.f32.mrb[91].mxu0 }
 0x927   :  { %8491 = vmatprep.mubr.msk.f32.mxu0 %vm2942_vm2, %v4685_v40  ;;  %v6011_v9 = vadd.f32 %v13181_v50, %v6010_v42  ;;  %v8986_v24 = vpop.eup %8985 }
 0x928   :  { %8995 = vtanh.f32 %v6016_v23  ;;  %v4392_v51 = vpop.permute.xlu1 %4391  ;;  %v4794_v46 = vld [vmem:[#allocation4 + $0x748] sm:$0xff]  ;;  %7373 = vst.msk [vmem:[%s14738_s9 + $0x588] sm:$0xff] %vm7195_vm3, %v8986_v24 }
 0x929   :  { %8997 = vtanh.f32 %v6011_v9  ;;  %v3396_v43 = vpop.permute.xlu0 %3395  ;;  %4540 = vst.msk [vmem:[#allocation4 + $0x758] sm:$0xff] %vm2942_vm2, %v4392_v51  ;;  %v4686_v26 = vld [vmem:[#allocation4 + $0x3e8] sm:$0xff]  ;;  %8654 = vmatmul.mubr.msk.f32.gmra.mrb[150].mxu1 %vm2942_vm2, %v4794_v46 }
 0x92a   :  { %8999 = vtanh.f32 %v6551_v5  ;;  %3524 = vst.msk [vmem:[#allocation4 + $0x3f8] sm:$0xff] %vm2942_vm2, %v3396_v43  ;;  %8492 = vmatmul.mubr.msk.f32.gmra.mrb[144].mxu0 %vm2942_vm2, %v4686_v26  ;;  %v8577_v27 = vpop.f32.mrb[98].mxu1 }
 0x92b   :  { %v8988_v8 = vpop.eup %8987  ;;  %v6566_v52 = vadd.f32 %v13181_v50, %v8577_v27  ;;  %v6560_v28 = vpop.f32.mrb[99].mxu1  ;;  %v13598_v27 = vld [vmem:[#allocation27] ss:$0 sm:$0xff] }
 0x92c   :  { %v8990_v1 = vpop.eup %8989  ;;  %7265 = vst.msk [vmem:[%s14738_s9 + $0x228] sm:$0xff] %vm7195_vm3, %v8988_v8  ;;  %v4394_v10 = vpop.permute.xlu1 %4393  ;;  %v6561_v34 = vadd.f32 %v13181_v50, %v6560_v28 }
 0x92d   :  { %v8992_v63 = vpop.eup %8991  ;;  %7264 = vst.msk [vmem:[%s14738_s9 + $0x220] sm:$0xff] %vm7195_vm3, %v8990_v1  ;;  %v4795_v60 = vld [vmem:[#allocation4 + $0x750] sm:$0xff]  ;;  %v3788_v15 = vpop.permute.xlu0 %3787  ;;  %9001 = vtanh.f32 %v6566_v52 }
 0x92e   :  { %7372 = vst.msk [vmem:[%s14738_s9 + $0x580] sm:$0xff] %vm7195_vm3, %v8992_v63  ;;  %v8415_v6 = vpop.f32.mrb[92].mxu0  ;;  %v4687_v32 = vld [vmem:[#allocation4 + $0x3f0] sm:$0xff]  ;;  %8656 = vmatprep.mubr.msk.f32.mxu1 %vm2942_vm2, %v4795_v60 }
 0x92f   :  { %4541 = vst.msk [vmem:[#allocation4 + $0x760] sm:$0xff] %vm2942_vm2, %v4394_v10  ;;  %3979 = vst.msk [vmem:[#allocation4 + $0x400] sm:$0xff] %vm2942_vm2, %v3788_v15  ;;  %v6026_v11 = vadd.f32 %v13181_v50, %v8415_v6  ;;  %v6020_v47 = vpop.f32.mrb[93].mxu0  ;;  %8494 = vmatprep.mubr.msk.f32.mxu0 %vm2942_vm2, %v4687_v32  ;;  %v8994_v17 = vpop.eup %8993 }
 0x930   :  { %v6021_v36 = vadd.f32 %v13181_v50, %v6020_v47  ;;  %v4396_v57 = vpop.permute.xlu1 %4395  ;;  %v4796_v35 = vld [vmem:[#allocation4 + $0x758] sm:$0xff]  ;;  %7375 = vst.msk [vmem:[%s14738_s9 + $0x598] sm:$0xff] %vm7195_vm3, %v8994_v17 }
 0x931   :  { %9003 = vtanh.f32 %v6026_v11  ;;  %v3790_v55 = vpop.permute.xlu0 %3789  ;;  %4542 = vst.msk [vmem:[#allocation4 + $0x768] sm:$0xff] %vm2942_vm2, %v4396_v57  ;;  %v4688_v48 = vld [vmem:[#allocation4 + $0x3f8] sm:$0xff]  ;;  %8657 = vmatmul.mubr.msk.f32.gmra.mrb[152].mxu1 %vm2942_vm2, %v4796_v35 }
 0x932   :  { %9005 = vtanh.f32 %v6021_v36  ;;  %v8996_v16 = vpop.eup %8995  ;;  %3980 = vst.msk [vmem:[#allocation4 + $0x408] sm:$0xff] %vm2942_vm2, %v3790_v55  ;;  %8495 = vmatmul.mubr.msk.f32.gmra.mrb[146].mxu0 %vm2942_vm2, %v4688_v48  ;;  %v8580_v3 = vpop.f32.mrb[100].mxu1 }
 0x933   :  { %9007 = vtanh.f32 %v6561_v34  ;;  %v8998_v62 = vpop.eup %8997  ;;  %7267 = vst.msk [vmem:[%s14738_s9 + $0x238] sm:$0xff] %vm7195_vm3, %v8996_v16  ;;  %v6576_v25 = vadd.f32 %v13181_v50, %v8580_v3  ;;  %v6570_v33 = vpop.f32.mrb[101].mxu1 }
 0x934   :  { %v9000_v22 = vpop.eup %8999  ;;  %7266 = vst.msk [vmem:[%s14738_s9 + $0x230] sm:$0xff] %vm7195_vm3, %v8998_v62  ;;  %v4398_v49 = vpop.permute.xlu1 %4397  ;;  %v6571_v2 = vadd.f32 %v13181_v50, %v6570_v33 }
 0x935   :  { %7374 = vst.msk [vmem:[%s14738_s9 + $0x590] sm:$0xff] %vm7195_vm3, %v9000_v22  ;;  %v3792_v30 = vpop.permute.xlu0 %3791  ;;  %v8418_v44 = vpop.f32.mrb[94].mxu0  ;;  %9009 = vtanh.f32 %v6576_v25 }
 0x936   :  { %v4797_v29 = vld [vmem:[#allocation4 + $0x760] sm:$0xff]  ;;  %4543 = vst.msk [vmem:[#allocation4 + $0x770] sm:$0xff] %vm2942_vm2, %v4398_v49  ;;  %3981 = vst.msk [vmem:[#allocation4 + $0x410] sm:$0xff] %vm2942_vm2, %v3792_v30  ;;  %v6036_v61 = vadd.f32 %v13181_v50, %v8418_v44  ;;  %v6030_v19 = vpop.f32.mrb[95].mxu0 }
 0x937   :  { %v4689_v4 = vld [vmem:[#allocation4 + $0x400] sm:$0xff]  ;;  %8659 = vmatprep.mubr.msk.f32.mxu1 %vm2942_vm2, %v4797_v29  ;;  %v6031_v31 = vadd.f32 %v13181_v50, %v6030_v19  ;;  %v9002_v54 = vpop.eup %9001 }
 0x938   :  { %8497 = vmatprep.mubr.msk.f32.mxu0 %vm2942_vm2, %v4689_v4  ;;  %9011 = vtanh.f32 %v6036_v61  ;;  %v4400_v21 = vpop.permute.xlu1 %4399  ;;  %v4798_v37 = vld [vmem:[#allocation4 + $0x768] sm:$0xff]  ;;  %7377 = vst.msk [vmem:[%s14738_s9 + $0x5a8] sm:$0xff] %vm7195_vm3, %v9002_v54 }
 0x939   :  { %9013 = vtanh.f32 %v6031_v31  ;;  %v3794_v38 = vpop.permute.xlu0 %3793  ;;  %4544 = vst.msk [vmem:[#allocation4 + $0x778] sm:$0xff] %vm2942_vm2, %v4400_v21  ;;  %v4690_v20 = vld [vmem:[#allocation4 + $0x408] sm:$0xff]  ;;  %8660 = vmatmul.mubr.msk.f32.gmra.mrb[154].mxu1 %vm2942_vm2, %v4798_v37 }
 0x93a   :  { %9015 = vtanh.f32 %v6571_v2  ;;  %3982 = vst.msk [vmem:[#allocation4 + $0x418] sm:$0xff] %vm2942_vm2, %v3794_v38  ;;  %8498 = vmatmul.mubr.msk.f32.gmra.mrb[148].mxu0 %vm2942_vm2, %v4690_v20  ;;  %v8583_v0 = vpop.f32.mrb[102].mxu1 }
 0x93b   :  { %v9004_v39 = vpop.eup %9003  ;;  %v6586_v58 = vadd.f32 %v13181_v50, %v8583_v0  ;;  %v6580_v40 = vpop.f32.mrb[103].mxu1 }
 0x93c   :  { %v9006_v13 = vpop.eup %9005  ;;  %7269 = vst.msk [vmem:[%s14738_s9 + $0x248] sm:$0xff] %vm7195_vm3, %v9004_v39  ;;  %v4402_v53 = vpop.permute.xlu1 %4401  ;;  %v6581_v42 = vadd.f32 %v13181_v50, %v6580_v40 }
 0x93d   :  { %v9008_v14 = vpop.eup %9007  ;;  %7268 = vst.msk [vmem:[%s14738_s9 + $0x240] sm:$0xff] %vm7195_vm3, %v9006_v13  ;;  %v4799_v12 = vld [vmem:[#allocation4 + $0x770] sm:$0xff]  ;;  %v3796_v56 = vpop.permute.xlu0 %3795  ;;  %9017 = vtanh.f32 %v6586_v58 }
 0x93e   :  { %7376 = vst.msk [vmem:[%s14738_s9 + $0x5a0] sm:$0xff] %vm7195_vm3, %v9008_v14  ;;  %v8421_v59 = vpop.f32.mrb[96].mxu0  ;;  %v4691_v18 = vld [vmem:[#allocation4 + $0x410] sm:$0xff]  ;;  %8662 = vmatprep.mubr.msk.f32.mxu1 %vm2942_vm2, %v4799_v12 }
 0x93f   :  { %4545 = vst.msk [vmem:[#allocation4 + $0x780] sm:$0xff] %vm2942_vm2, %v4402_v53  ;;  %3983 = vst.msk [vmem:[#allocation4 + $0x420] sm:$0xff] %vm2942_vm2, %v3796_v56  ;;  %v6046_v41 = vadd.f32 %v13181_v50, %v8421_v59  ;;  %v6040_v7 = vpop.f32.mrb[97].mxu0  ;;  %8500 = vmatprep.mubr.msk.f32.mxu0 %vm2942_vm2, %v4691_v18  ;;  %v9010_v5 = vpop.eup %9009 }
 0x940   :  { %v6041_v23 = vadd.f32 %v13181_v50, %v6040_v7  ;;  %v4404_v45 = vpop.permute.xlu1 %4403  ;;  %v4800_v9 = vld [vmem:[#allocation4 + $0x778] sm:$0xff]  ;;  %7379 = vst.msk [vmem:[%s14738_s9 + $0x5b8] sm:$0xff] %vm7195_vm3, %v9010_v5 }
 0x941   :  { %9019 = vtanh.f32 %v6046_v41  ;;  %v3798_v51 = vpop.permute.xlu0 %3797  ;;  %4546 = vst.msk [vmem:[#allocation4 + $0x788] sm:$0xff] %vm2942_vm2, %v4404_v45  ;;  %v4692_v46 = vld [vmem:[#allocation4 + $0x418] sm:$0xff]  ;;  %8663 = vmatmul.mubr.msk.f32.gmra.mrb[156].mxu1 %vm2942_vm2, %v4800_v9 }
 0x942   :  { %9021 = vtanh.f32 %v6041_v23  ;;  %v9012_v24 = vpop.eup %9011  ;;  %3984 = vst.msk [vmem:[#allocation4 + $0x428] sm:$0xff] %vm2942_vm2, %v3798_v51  ;;  %8501 = vmatmul.mubr.msk.f32.gmra.mrb[150].mxu0 %vm2942_vm2, %v4692_v46  ;;  %v8586_v26 = vpop.f32.mrb[104].mxu1 }
 0x943   :  { %9023 = vtanh.f32 %v6581_v42  ;;  %v9014_v50 = vpop.eup %9013  ;;  %7271 = vst.msk [vmem:[%s14738_s9 + $0x258] sm:$0xff] %vm7195_vm3, %v9012_v24  ;;  %v6596_v10 = vadd.f32 %v13598_v27, %v8586_v26  ;;  %v6590_v32 = vpop.f32.mrb[105].mxu1 }
 0x944   :  { %v9016_v43 = vpop.eup %9015  ;;  %7270 = vst.msk [vmem:[%s14738_s9 + $0x250] sm:$0xff] %vm7195_vm3, %v9014_v50  ;;  %v4406_v8 = vpop.permute.xlu1 %4405  ;;  %v6591_v47 = vadd.f32 %v13598_v27, %v6590_v32 }
 0x945   :  { %7378 = vst.msk [vmem:[%s14738_s9 + $0x5b0] sm:$0xff] %vm7195_vm3, %v9016_v43  ;;  %v3800_v63 = vpop.permute.xlu0 %3799  ;;  %v8424_v60 = vpop.f32.mrb[98].mxu0  ;;  %9025 = vtanh.f32 %v6596_v10 }
 0x946   :  { %v4801_v1 = vld [vmem:[#allocation4 + $0x780] sm:$0xff]  ;;  %4547 = vst.msk [vmem:[#allocation4 + $0x790] sm:$0xff] %vm2942_vm2, %v4406_v8  ;;  %3985 = vst.msk [vmem:[#allocation4 + $0x430] sm:$0xff] %vm2942_vm2, %v3800_v63  ;;  %v6056_v52 = vadd.f32 %v13598_v27, %v8424_v60  ;;  %v6050_v6 = vpop.f32.mrb[99].mxu0 }
 0x947   :  { %v4693_v15 = vld [vmem:[#allocation4 + $0x420] sm:$0xff]  ;;  %8665 = vmatprep.mubr.msk.f32.mxu1 %vm2942_vm2, %v4801_v1  ;;  %v6051_v11 = vadd.f32 %v13598_v27, %v6050_v6  ;;  %v9018_v34 = vpop.eup %9017 }
 0x948   :  { %8503 = vmatprep.mubr.msk.f32.mxu0 %vm2942_vm2, %v4693_v15  ;;  %9027 = vtanh.f32 %v6056_v52  ;;  %v4408_v28 = vpop.permute.xlu1 %4407  ;;  %v4802_v36 = vld [vmem:[#allocation4 + $0x788] sm:$0xff]  ;;  %7381 = vst.msk [vmem:[%s14738_s9 + $0x5c8] sm:$0xff] %vm7195_vm3, %v9018_v34 }
 0x949   :  { %9029 = vtanh.f32 %v6051_v11  ;;  %v3802_v57 = vpop.permute.xlu0 %3801  ;;  %4548 = vst.msk [vmem:[#allocation4 + $0x798] sm:$0xff] %vm2942_vm2, %v4408_v28  ;;  %v4694_v35 = vld [vmem:[#allocation4 + $0x428] sm:$0xff]  ;;  %8666 = vmatmul.mubr.msk.f32.gmra.mrb[158].mxu1 %vm2942_vm2, %v4802_v36 }
 0x94a   :  { %9031 = vtanh.f32 %v6591_v47  ;;  %3986 = vst.msk [vmem:[#allocation4 + $0x438] sm:$0xff] %vm2942_vm2, %v3802_v57  ;;  %8504 = vmatmul.mubr.msk.f32.gmra.mrb[152].mxu0 %vm2942_vm2, %v4694_v35  ;;  %v8589_v16 = vpop.f32.mrb[106].mxu1 }
 0x94b   :  { %v9020_v17 = vpop.eup %9019  ;;  %v6606_v49 = vadd.f32 %v13598_v27, %v8589_v16  ;;  %v6600_v4 = vpop.f32.mrb[107].mxu1 }
 0x94c   :  { %v9022_v55 = vpop.eup %9021  ;;  %7273 = vst.msk [vmem:[%s14738_s9 + $0x268] sm:$0xff] %vm7195_vm3, %v9020_v17  ;;  %v4410_v62 = vpop.permute.xlu1 %4409  ;;  %v6601_v19 = vadd.f32 %v13598_v27, %v6600_v4 }
 0x94d   :  { %v9024_v48 = vpop.eup %9023  ;;  %7272 = vst.msk [vmem:[%s14738_s9 + $0x260] sm:$0xff] %vm7195_vm3, %v9022_v55  ;;  %v4803_v22 = vld [vmem:[#allocation4 + $0x790] sm:$0xff]  ;;  %v3804_v3 = vpop.permute.xlu0 %3803  ;;  %9033 = vtanh.f32 %v6606_v49 }
 0x94e   :  { %7380 = vst.msk [vmem:[%s14738_s9 + $0x5c0] sm:$0xff] %vm7195_vm3, %v9024_v48  ;;  %v8427_v29 = vpop.f32.mrb[100].mxu0  ;;  %v4695_v30 = vld [vmem:[#allocation4 + $0x430] sm:$0xff]  ;;  %8668 = vmatprep.mubr.msk.f32.mxu1 %vm2942_vm2, %v4803_v22 }
 0x94f   :  { %4549 = vst.msk [vmem:[#allocation4 + $0x7a0] sm:$0xff] %vm2942_vm2, %v4410_v62  ;;  %3987 = vst.msk [vmem:[#allocation4 + $0x440] sm:$0xff] %vm2942_vm2, %v3804_v3  ;;  %v6066_v25 = vadd.f32 %v13598_v27, %v8427_v29  ;;  %v6060_v44 = vpop.f32.mrb[101].mxu0  ;;  %8506 = vmatprep.mubr.msk.f32.mxu0 %vm2942_vm2, %v4695_v30  ;;  %v9026_v2 = vpop.eup %9025 }
 0x950   :  { %v6061_v61 = vadd.f32 %v13598_v27, %v6060_v44  ;;  %v4412_v33 = vpop.permute.xlu1 %4411  ;;  %v4804_v31 = vld [vmem:[#allocation4 + $0x798] sm:$0xff]  ;;  %7383 = vst.msk [vmem:[%s14738_s9 + $0x5d8] sm:$0xff] %vm7195_vm3, %v9026_v2 }
 0x951   :  { %9035 = vtanh.f32 %v6066_v25  ;;  %v3806_v21 = vpop.permute.xlu0 %3805  ;;  %4550 = vst.msk [vmem:[#allocation4 + $0x7a8] sm:$0xff] %vm2942_vm2, %v4412_v33  ;;  %v4696_v37 = vld [vmem:[#allocation4 + $0x438] sm:$0xff]  ;;  %8669 = vmatmul.mubr.msk.f32.gmra.mrb[160].mxu1 %vm2942_vm2, %v4804_v31 }
 0x952   :  { %9037 = vtanh.f32 %v6061_v61  ;;  %v9028_v54 = vpop.eup %9027  ;;  %3988 = vst.msk [vmem:[#allocation4 + $0x448] sm:$0xff] %vm2942_vm2, %v3806_v21  ;;  %8507 = vmatmul.mubr.msk.f32.gmra.mrb[154].mxu0 %vm2942_vm2, %v4696_v37  ;;  %v8592_v39 = vpop.f32.mrb[108].mxu1 }
 0x953   :  { %9039 = vtanh.f32 %v6601_v19  ;;  %v9030_v38 = vpop.eup %9029  ;;  %7275 = vst.msk [vmem:[%s14738_s9 + $0x278] sm:$0xff] %vm7195_vm3, %v9028_v54  ;;  %v6616_v53 = vadd.f32 %v13598_v27, %v8592_v39  ;;  %v6610_v18 = vpop.f32.mrb[109].mxu1 }
 0x954   :  { %v9032_v20 = vpop.eup %9031  ;;  %7274 = vst.msk [vmem:[%s14738_s9 + $0x270] sm:$0xff] %vm7195_vm3, %v9030_v38  ;;  %v4414_v13 = vpop.permute.xlu1 %4413  ;;  %v6611_v7 = vadd.f32 %v13598_v27, %v6610_v18 }
 0x955   :  { %7382 = vst.msk [vmem:[%s14738_s9 + $0x5d0] sm:$0xff] %vm7195_vm3, %v9032_v20  ;;  %v3808_v0 = vpop.permute.xlu0 %3807  ;;  %v8430_v12 = vpop.f32.mrb[102].mxu0  ;;  %9041 = vtanh.f32 %v6616_v53 }
 0x956   :  { %v4805_v14 = vld [vmem:[#allocation4 + $0x7a0] sm:$0xff]  ;;  %4551 = vst.msk [vmem:[#allocation4 + $0x7b0] sm:$0xff] %vm2942_vm2, %v4414_v13  ;;  %3989 = vst.msk [vmem:[#allocation4 + $0x450] sm:$0xff] %vm2942_vm2, %v3808_v0  ;;  %v6076_v58 = vadd.f32 %v13598_v27, %v8430_v12  ;;  %v6070_v59 = vpop.f32.mrb[103].mxu0 }
 0x957   :  { %v4697_v56 = vld [vmem:[#allocation4 + $0x440] sm:$0xff]  ;;  %8671 = vmatprep.mubr.msk.f32.mxu1 %vm2942_vm2, %v4805_v14  ;;  %v6071_v41 = vadd.f32 %v13598_v27, %v6070_v59  ;;  %v9034_v42 = vpop.eup %9033 }
 0x958   :  { %8509 = vmatprep.mubr.msk.f32.mxu0 %vm2942_vm2, %v4697_v56  ;;  %9043 = vtanh.f32 %v6076_v58  ;;  %v4416_v40 = vpop.permute.xlu1 %4415  ;;  %v4806_v23 = vld [vmem:[#allocation4 + $0x7a8] sm:$0xff]  ;;  %7385 = vst.msk [vmem:[%s14738_s9 + $0x5e8] sm:$0xff] %vm7195_vm3, %v9034_v42 }
 0x959   :  { %9045 = vtanh.f32 %v6071_v41  ;;  %v3810_v45 = vpop.permute.xlu0 %3809  ;;  %4552 = vst.msk [vmem:[#allocation4 + $0x7b8] sm:$0xff] %vm2942_vm2, %v4416_v40  ;;  %v4698_v9 = vld [vmem:[#allocation4 + $0x448] sm:$0xff]  ;;  %8672 = vmatmul.mubr.msk.f32.gmra.mrb[162].mxu1 %vm2942_vm2, %v4806_v23 }
 0x95a   :  { %9047 = vtanh.f32 %v6611_v7  ;;  %3990 = vst.msk [vmem:[#allocation4 + $0x458] sm:$0xff] %vm2942_vm2, %v3810_v45  ;;  %8510 = vmatmul.mubr.msk.f32.gmra.mrb[156].mxu0 %vm2942_vm2, %v4698_v9  ;;  %v8595_v24 = vpop.f32.mrb[110].mxu1 }
 0x95b   :  { %v9036_v5 = vpop.eup %9035  ;;  %v6626_v8 = vadd.f32 %v13598_v27, %v8595_v24  ;;  %v6620_v15 = vpop.f32.mrb[111].mxu1 }
 0x95c   :  { %v9038_v51 = vpop.eup %9037  ;;  %7277 = vst.msk [vmem:[%s14738_s9 + $0x288] sm:$0xff] %vm7195_vm3, %v9036_v5  ;;  %v4418_v50 = vpop.permute.xlu1 %4417  ;;  %v6621_v6 = vadd.f32 %v13598_v27, %v6620_v15 }
 0x95d   :  { %v9040_v46 = vpop.eup %9039  ;;  %7276 = vst.msk [vmem:[%s14738_s9 + $0x280] sm:$0xff] %vm7195_vm3, %v9038_v51  ;;  %v4807_v43 = vld [vmem:[#allocation4 + $0x7b0] sm:$0xff]  ;;  %v3812_v26 = vpop.permute.xlu0 %3811  ;;  %9049 = vtanh.f32 %v6626_v8 }
 0x95e   :  { %7384 = vst.msk [vmem:[%s14738_s9 + $0x5e0] sm:$0xff] %vm7195_vm3, %v9040_v46  ;;  %v8433_v1 = vpop.f32.mrb[104].mxu0  ;;  %v4699_v63 = vld [vmem:[#allocation4 + $0x450] sm:$0xff]  ;;  %8674 = vmatprep.mubr.msk.f32.mxu1 %vm2942_vm2, %v4807_v43 }
 0x95f   :  { %4553 = vst.msk [vmem:[#allocation4 + $0x7c0] sm:$0xff] %vm2942_vm2, %v4418_v50  ;;  %3991 = vst.msk [vmem:[#allocation4 + $0x460] sm:$0xff] %vm2942_vm2, %v3812_v26  ;;  %v6086_v10 = vadd.f32 %v13598_v27, %v8433_v1  ;;  %v6080_v60 = vpop.f32.mrb[105].mxu0  ;;  %8512 = vmatprep.mubr.msk.f32.mxu0 %vm2942_vm2, %v4699_v63  ;;  %v9042_v47 = vpop.eup %9041 }
 0x960   :  { %v6081_v52 = vadd.f32 %v13598_v27, %v6080_v60  ;;  %v4420_v32 = vpop.permute.xlu1 %4419  ;;  %v4808_v11 = vld [vmem:[#allocation4 + $0x7b8] sm:$0xff]  ;;  %7387 = vst.msk [vmem:[%s14738_s9 + $0x5f8] sm:$0xff] %vm7195_vm3, %v9042_v47 }
 0x961   :  { %9051 = vtanh.f32 %v6086_v10  ;;  %v3814_v28 = vpop.permute.xlu0 %3813  ;;  %4554 = vst.msk [vmem:[#allocation4 + $0x7c8] sm:$0xff] %vm2942_vm2, %v4420_v32  ;;  %v4700_v36 = vld [vmem:[#allocation4 + $0x458] sm:$0xff]  ;;  %8675 = vmatmul.mubr.msk.f32.gmra.mrb[164].mxu1 %vm2942_vm2, %v4808_v11 }
 0x962   :  { %9053 = vtanh.f32 %v6081_v52  ;;  %v9044_v34 = vpop.eup %9043  ;;  %3992 = vst.msk [vmem:[#allocation4 + $0x468] sm:$0xff] %vm2942_vm2, %v3814_v28  ;;  %8513 = vmatmul.mubr.msk.f32.gmra.mrb[158].mxu0 %vm2942_vm2, %v4700_v36  ;;  %v8598_v17 = vpop.f32.mrb[112].mxu1 }
 0x963   :  { %9055 = vtanh.f32 %v6621_v6  ;;  %v9046_v57 = vpop.eup %9045  ;;  %7279 = vst.msk [vmem:[%s14738_s9 + $0x298] sm:$0xff] %vm7195_vm3, %v9044_v34  ;;  %v6636_v62 = vadd.f32 %v13598_v27, %v8598_v17  ;;  %v6630_v30 = vpop.f32.mrb[113].mxu1 }
 0x964   :  { %v9048_v35 = vpop.eup %9047  ;;  %7278 = vst.msk [vmem:[%s14738_s9 + $0x290] sm:$0xff] %vm7195_vm3, %v9046_v57  ;;  %v4422_v55 = vpop.permute.xlu1 %4421  ;;  %v6631_v44 = vadd.f32 %v13598_v27, %v6630_v30 }
 0x965   :  { %7386 = vst.msk [vmem:[%s14738_s9 + $0x5f0] sm:$0xff] %vm7195_vm3, %v9048_v35  ;;  %v3816_v16 = vpop.permute.xlu0 %3815  ;;  %v8436_v22 = vpop.f32.mrb[106].mxu0  ;;  %9057 = vtanh.f32 %v6636_v62 }
 0x966   :  { %v4809_v48 = vld [vmem:[#allocation4 + $0x7c0] sm:$0xff]  ;;  %4555 = vst.msk [vmem:[#allocation4 + $0x7d0] sm:$0xff] %vm2942_vm2, %v4422_v55  ;;  %3993 = vst.msk [vmem:[#allocation4 + $0x470] sm:$0xff] %vm2942_vm2, %v3816_v16  ;;  %v6096_v49 = vadd.f32 %v13598_v27, %v8436_v22  ;;  %v6090_v29 = vpop.f32.mrb[107].mxu0 }
 0x967   :  { %v4701_v3 = vld [vmem:[#allocation4 + $0x460] sm:$0xff]  ;;  %8677 = vmatprep.mubr.msk.f32.mxu1 %vm2942_vm2, %v4809_v48  ;;  %v6091_v25 = vadd.f32 %v13598_v27, %v6090_v29  ;;  %v9050_v19 = vpop.eup %9049 }
 0x968   :  { %8515 = vmatprep.mubr.msk.f32.mxu0 %vm2942_vm2, %v4701_v3  ;;  %9059 = vtanh.f32 %v6096_v49  ;;  %v4424_v4 = vpop.permute.xlu1 %4423  ;;  %v4810_v61 = vld [vmem:[#allocation4 + $0x7c8] sm:$0xff]  ;;  %7389 = vst.msk [vmem:[%s14738_s9 + $0x608] sm:$0xff] %vm7195_vm3, %v9050_v19 }
 0x969   :  { %9061 = vtanh.f32 %v6091_v25  ;;  %v3818_v33 = vpop.permute.xlu0 %3817  ;;  %4556 = vst.msk [vmem:[#allocation4 + $0x7d8] sm:$0xff] %vm2942_vm2, %v4424_v4  ;;  %v4702_v31 = vld [vmem:[#allocation4 + $0x468] sm:$0xff]  ;;  %8678 = vmatmul.mubr.msk.f32.gmra.mrb[166].mxu1 %vm2942_vm2, %v4810_v61 }
 0x96a   :  { %9063 = vtanh.f32 %v6631_v44  ;;  %3994 = vst.msk [vmem:[#allocation4 + $0x478] sm:$0xff] %vm2942_vm2, %v3818_v33  ;;  %8516 = vmatmul.mubr.msk.f32.gmra.mrb[160].mxu0 %vm2942_vm2, %v4702_v31  ;;  %v8601_v54 = vpop.f32.mrb[114].mxu1 }
 0x96b   :  { %v9052_v2 = vpop.eup %9051  ;;  %v6646_v13 = vadd.f32 %v13598_v27, %v8601_v54  ;;  %v6640_v56 = vpop.f32.mrb[115].mxu1 }
 0x96c   :  { %v9054_v21 = vpop.eup %9053  ;;  %7281 = vst.msk [vmem:[%s14738_s9 + $0x2a8] sm:$0xff] %vm7195_vm3, %v9052_v2  ;;  %v4426_v38 = vpop.permute.xlu1 %4425  ;;  %v6641_v59 = vadd.f32 %v13598_v27, %v6640_v56 }
 0x96d   :  { %v9056_v37 = vpop.eup %9055  ;;  %7280 = vst.msk [vmem:[%s14738_s9 + $0x2a0] sm:$0xff] %vm7195_vm3, %v9054_v21  ;;  %v4811_v20 = vld [vmem:[#allocation4 + $0x7d0] sm:$0xff]  ;;  %v3820_v39 = vpop.permute.xlu0 %3819  ;;  %9065 = vtanh.f32 %v6646_v13 }
 0x96e   :  { %7388 = vst.msk [vmem:[%s14738_s9 + $0x600] sm:$0xff] %vm7195_vm3, %v9056_v37  ;;  %v8439_v14 = vpop.f32.mrb[108].mxu0  ;;  %v4703_v0 = vld [vmem:[#allocation4 + $0x470] sm:$0xff]  ;;  %8680 = vmatprep.mubr.msk.f32.mxu1 %vm2942_vm2, %v4811_v20 }
 0x96f   :  { %4557 = vst.msk [vmem:[#allocation4 + $0x7e0] sm:$0xff] %vm2942_vm2, %v4426_v38  ;;  %3995 = vst.msk [vmem:[#allocation4 + $0x480] sm:$0xff] %vm2942_vm2, %v3820_v39  ;;  %v6106_v53 = vadd.f32 %v13598_v27, %v8439_v14  ;;  %v6100_v12 = vpop.f32.mrb[109].mxu0  ;;  %8518 = vmatprep.mubr.msk.f32.mxu0 %vm2942_vm2, %v4703_v0  ;;  %v9058_v7 = vpop.eup %9057 }
 0x970   :  { %v6101_v58 = vadd.f32 %v13598_v27, %v6100_v12  ;;  %v4428_v18 = vpop.permute.xlu1 %4427  ;;  %v4812_v41 = vld [vmem:[#allocation4 + $0x7d8] sm:$0xff]  ;;  %7391 = vst.msk [vmem:[%s14738_s9 + $0x618] sm:$0xff] %vm7195_vm3, %v9058_v7 }
 0x971   :  { %9067 = vtanh.f32 %v6106_v53  ;;  %v3822_v40 = vpop.permute.xlu0 %3821  ;;  %4558 = vst.msk [vmem:[#allocation4 + $0x7e8] sm:$0xff] %vm2942_vm2, %v4428_v18  ;;  %v4704_v23 = vld [vmem:[#allocation4 + $0x478] sm:$0xff]  ;;  %8681 = vmatmul.mubr.msk.f32.gmra.mrb[168].mxu1 %vm2942_vm2, %v4812_v41 }
 0x972   :  { %9069 = vtanh.f32 %v6101_v58  ;;  %v9060_v42 = vpop.eup %9059  ;;  %3996 = vst.msk [vmem:[#allocation4 + $0x488] sm:$0xff] %vm2942_vm2, %v3822_v40  ;;  %8519 = vmatmul.mubr.msk.f32.gmra.mrb[162].mxu0 %vm2942_vm2, %v4704_v23  ;;  %v8604_v5 = vpop.f32.mrb[116].mxu1 }
 0x973   :  { %9071 = vtanh.f32 %v6641_v59  ;;  %v9062_v45 = vpop.eup %9061  ;;  %7283 = vst.msk [vmem:[%s14738_s9 + $0x2b8] sm:$0xff] %vm7195_vm3, %v9060_v42  ;;  %v6656_v50 = vadd.f32 %v13598_v27, %v8604_v5  ;;  %v6650_v63 = vpop.f32.mrb[117].mxu1 }
 0x974   :  { %v9064_v9 = vpop.eup %9063  ;;  %7282 = vst.msk [vmem:[%s14738_s9 + $0x2b0] sm:$0xff] %vm7195_vm3, %v9062_v45  ;;  %v4430_v51 = vpop.permute.xlu1 %4429  ;;  %v6651_v60 = vadd.f32 %v13598_v27, %v6650_v63 }
 0x975   :  { %7390 = vst.msk [vmem:[%s14738_s9 + $0x610] sm:$0xff] %vm7195_vm3, %v9064_v9  ;;  %v3824_v24 = vpop.permute.xlu0 %3823  ;;  %v8442_v43 = vpop.f32.mrb[110].mxu0  ;;  %9073 = vtanh.f32 %v6656_v50 }
 0x976   :  { %v4813_v46 = vld [vmem:[#allocation4 + $0x7e0] sm:$0xff]  ;;  %4559 = vst.msk [vmem:[#allocation4 + $0x7f0] sm:$0xff] %vm2942_vm2, %v4430_v51  ;;  %3997 = vst.msk [vmem:[#allocation4 + $0x490] sm:$0xff] %vm2942_vm2, %v3824_v24  ;;  %v6116_v8 = vadd.f32 %v13598_v27, %v8442_v43  ;;  %v6110_v1 = vpop.f32.mrb[111].mxu0 }
 0x977   :  { %v4705_v26 = vld [vmem:[#allocation4 + $0x480] sm:$0xff]  ;;  %8683 = vmatprep.mubr.msk.f32.mxu1 %vm2942_vm2, %v4813_v46  ;;  %v6111_v10 = vadd.f32 %v13598_v27, %v6110_v1  ;;  %v9066_v6 = vpop.eup %9065 }
 0x978   :  { %8521 = vmatprep.mubr.msk.f32.mxu0 %vm2942_vm2, %v4705_v26  ;;  %9075 = vtanh.f32 %v6116_v8  ;;  %v4432_v15 = vpop.permute.xlu1 %4431  ;;  %v4814_v52 = vld [vmem:[#allocation4 + $0x7e8] sm:$0xff]  ;;  %7393 = vst.msk [vmem:[%s14738_s9 + $0x628] sm:$0xff] %vm7195_vm3, %v9066_v6 }
 0x979   :  { %9077 = vtanh.f32 %v6111_v10  ;;  %v3826_v32 = vpop.permute.xlu0 %3825  ;;  %4560 = vst.msk [vmem:[#allocation4 + $0x7f8] sm:$0xff] %vm2942_vm2, %v4432_v15  ;;  %v4706_v11 = vld [vmem:[#allocation4 + $0x488] sm:$0xff]  ;;  %8684 = vmatmul.mubr.msk.f32.gmra.mrb[170].mxu1 %vm2942_vm2, %v4814_v52 }
 0x97a   :  { %9079 = vtanh.f32 %v6651_v60  ;;  %3998 = vst.msk [vmem:[#allocation4 + $0x498] sm:$0xff] %vm2942_vm2, %v3826_v32  ;;  %8522 = vmatmul.mubr.msk.f32.gmra.mrb[164].mxu0 %vm2942_vm2, %v4706_v11  ;;  %v8607_v34 = vpop.f32.mrb[118].mxu1 }
 0x97b   :  { %v9068_v47 = vpop.eup %9067  ;;  %v6666_v55 = vadd.f32 %v13598_v27, %v8607_v34  ;;  %v6660_v22 = vpop.f32.mrb[119].mxu1 }
 0x97c   :  { %v9070_v28 = vpop.eup %9069  ;;  %7285 = vst.msk [vmem:[%s14738_s9 + $0x2c8] sm:$0xff] %vm7195_vm3, %v9068_v47  ;;  %v8445_v17 = vpop.f32.mrb[112].mxu0  ;;  %v6661_v49 = vadd.f32 %v13598_v27, %v6660_v22 }
 0x97d   :  { %v9072_v36 = vpop.eup %9071  ;;  %7284 = vst.msk [vmem:[%s14738_s9 + $0x2c0] sm:$0xff] %vm7195_vm3, %v9070_v28  ;;  %v4815_v57 = vld [vmem:[#allocation4 + $0x7f0] sm:$0xff]  ;;  %v3828_v35 = vpop.permute.xlu0 %3827  ;;  %v6126_v16 = vadd.f32 %v13598_v27, %v8445_v17  ;;  %9081 = vtanh.f32 %v6666_v55 }
 0x97e   :  { %7392 = vst.msk [vmem:[%s14738_s9 + $0x620] sm:$0xff] %vm7195_vm3, %v9072_v36  ;;  %v4707_v48 = vld [vmem:[#allocation4 + $0x490] sm:$0xff]  ;;  %8686 = vmatprep.mubr.msk.f32.mxu1 %vm2942_vm2, %v4815_v57  ;;  %v6120_v62 = vpop.f32.mrb[113].mxu0 }
 0x97f   :  { %3999 = vst.msk [vmem:[#allocation4 + $0x4a0] sm:$0xff] %vm2942_vm2, %v3828_v35  ;;  %8524 = vmatprep.mubr.msk.f32.mxu0 %vm2942_vm2, %v4707_v48  ;;  %v6121_v3 = vadd.f32 %v13598_v27, %v6120_v62  ;;  %9083 = vtanh.f32 %v6126_v16  ;;  %v9074_v30 = vpop.eup %9073 }
 0x980   :  { %v4816_v29 = vld [vmem:[#allocation4 + $0x7f8] sm:$0xff]  ;;  %7395 = vst.msk [vmem:[%s14738_s9 + $0x638] sm:$0xff] %vm7195_vm3, %v9074_v30 }
 0x981   :  { %9085 = vtanh.f32 %v6121_v3  ;;  %v3830_v25 = vpop.permute.xlu0 %3829  ;;  %v4708_v44 = vld [vmem:[#allocation4 + $0x498] sm:$0xff]  ;;  %8687 = vmatmul.mubr.msk.f32.gmra.mrb[172].mxu1 %vm2942_vm2, %v4816_v29 }
 0x982   :  { %v9076_v4 = vpop.eup %9075  ;;  %9087 = vtanh.f32 %v6661_v49  ;;  %4000 = vst.msk [vmem:[#allocation4 + $0x4a8] sm:$0xff] %vm2942_vm2, %v3830_v25  ;;  %8525 = vmatmul.mubr.msk.f32.gmra.mrb[166].mxu0 %vm2942_vm2, %v4708_v44  ;;  %v8610_v33 = vpop.f32.mrb[120].mxu1 }
 0x983   :  { %v9078_v61 = vpop.eup %9077  ;;  %7287 = vst.msk [vmem:[%s14738_s9 + $0x2d8] sm:$0xff] %vm7195_vm3, %v9076_v4  ;;  %v6676_v2 = vadd.f32 %v13598_v27, %v8610_v33  ;;  %v6670_v37 = vpop.f32.mrb[121].mxu1 }
 0x984   :  { %v9080_v19 = vpop.eup %9079  ;;  %7286 = vst.msk [vmem:[%s14738_s9 + $0x2d0] sm:$0xff] %vm7195_vm3, %v9078_v61  ;;  %v8448_v31 = vpop.f32.mrb[114].mxu0  ;;  %v6671_v20 = vadd.f32 %v13598_v27, %v6670_v37 }
 0x985   :  { %7394 = vst.msk [vmem:[%s14738_s9 + $0x630] sm:$0xff] %vm7195_vm3, %v9080_v19  ;;  %v6136_v54 = vadd.f32 %v13598_v27, %v8448_v31  ;;  %v6130_v38 = vpop.f32.mrb[115].mxu0  ;;  %9089 = vtanh.f32 %v6676_v2 }
 0x986   :  { %v4709_v21 = vld [vmem:[#allocation4 + $0x4a0] sm:$0xff]  ;;  %v6131_v39 = vadd.f32 %v13598_v27, %v6130_v38 }
 0x987   :  { %8527 = vmatprep.mubr.msk.f32.mxu0 %vm2942_vm2, %v4709_v21  ;;  %9091 = vtanh.f32 %v6136_v54  ;;  %v9082_v13 = vpop.eup %9081 }
 0x988   :  { %9093 = vtanh.f32 %v6131_v39  ;;  %7397 = vst.msk [vmem:[%s14738_s9 + $0x648] sm:$0xff] %vm7195_vm3, %v9082_v13 }
 0x989   :  { %v4710_v14 = vld [vmem:[#allocation4 + $0x4a8] sm:$0xff]  ;;  %v9084_v0 = vpop.eup %9083  ;;  %9095 = vtanh.f32 %v6671_v20 }
 0x98a   :  { %8528 = vmatmul.mubr.msk.f32.gmra.mrb[168].mxu0 %vm2942_vm2, %v4710_v14  ;;  %7289 = vst.msk [vmem:[%s14738_s9 + $0x2e8] sm:$0xff] %vm7195_vm3, %v9084_v0  ;;  %v8613_v56 = vpop.f32.mrb[122].mxu1 }
 0x98b   :  { %v9086_v53 = vpop.eup %9085  ;;  %v6686_v59 = vadd.f32 %v13598_v27, %v8613_v56  ;;  %v6680_v18 = vpop.f32.mrb[123].mxu1 }
 0x98c   :  { %v9088_v12 = vpop.eup %9087  ;;  %7288 = vst.msk [vmem:[%s14738_s9 + $0x2e0] sm:$0xff] %vm7195_vm3, %v9086_v53  ;;  %v8451_v58 = vpop.f32.mrb[116].mxu0  ;;  %v6681_v40 = vadd.f32 %v13598_v27, %v6680_v18 }
 0x98d   :  { %7396 = vst.msk [vmem:[%s14738_s9 + $0x640] sm:$0xff] %vm7195_vm3, %v9088_v12  ;;  %v6146_v41 = vadd.f32 %v13598_v27, %v8451_v58  ;;  %v6140_v7 = vpop.f32.mrb[117].mxu0  ;;  %9097 = vtanh.f32 %v6686_v59 }
 0x98e   :  { %v6141_v23 = vadd.f32 %v13598_v27, %v6140_v7 }
 0x98f   :  { %9099 = vtanh.f32 %v6146_v41  ;;  %v9090_v42 = vpop.eup %9089 }
 0x990   :  { %9101 = vtanh.f32 %v6141_v23  ;;  %7399 = vst.msk [vmem:[%s14738_s9 + $0x658] sm:$0xff] %vm7195_vm3, %v9090_v42 }
 0x991   :  { %v9092_v45 = vpop.eup %9091  ;;  %9103 = vtanh.f32 %v6681_v40 }
 0x992   :  { %v9094_v9 = vpop.eup %9093  ;;  %7291 = vst.msk [vmem:[%s14738_s9 + $0x2f8] sm:$0xff] %vm7195_vm3, %v9092_v45  ;;  %v8616_v51 = vpop.f32.mrb[124].mxu1 }
 0x993   :  { %v9096_v5 = vpop.eup %9095  ;;  %7290 = vst.msk [vmem:[%s14738_s9 + $0x2f0] sm:$0xff] %vm7195_vm3, %v9094_v9  ;;  %v6696_v24 = vadd.f32 %v13598_v27, %v8616_v51  ;;  %v6690_v50 = vpop.f32.mrb[125].mxu1 }
 0x994   :  { %7398 = vst.msk [vmem:[%s14738_s9 + $0x650] sm:$0xff] %vm7195_vm3, %v9096_v5  ;;  %v8454_v46 = vpop.f32.mrb[118].mxu0  ;;  %v6691_v8 = vadd.f32 %v13598_v27, %v6690_v50 }
 0x995   :  { %v6156_v43 = vadd.f32 %v13598_v27, %v8454_v46  ;;  %v6150_v26 = vpop.f32.mrb[119].mxu0  ;;  %9105 = vtanh.f32 %v6696_v24 }
 0x996   :  { %v6151_v1 = vadd.f32 %v13598_v27, %v6150_v26 }
 0x997   :  { %9107 = vtanh.f32 %v6156_v43  ;;  %v9098_v63 = vpop.eup %9097 }
 0x998   :  { %9109 = vtanh.f32 %v6151_v1  ;;  %7401 = vst.msk [vmem:[%s14738_s9 + $0x668] sm:$0xff] %vm7195_vm3, %v9098_v63 }
 0x999   :  { %v9100_v10 = vpop.eup %9099  ;;  %9111 = vtanh.f32 %v6691_v8 }
 0x99a   :  { %v9102_v60 = vpop.eup %9101  ;;  %7293 = vst.msk [vmem:[%s14738_s9 + $0x308] sm:$0xff] %vm7195_vm3, %v9100_v10  ;;  %v8619_v52 = vpop.f32.mrb[126].mxu1 }
 0x99b   :  { %v9104_v15 = vpop.eup %9103  ;;  %7292 = vst.msk [vmem:[%s14738_s9 + $0x300] sm:$0xff] %vm7195_vm3, %v9102_v60  ;;  %v6706_v32 = vadd.f32 %v13598_v27, %v8619_v52  ;;  %v6700_v11 = vpop.f32.mrb[127].mxu1 }
 0x99c   :  { %7400 = vst.msk [vmem:[%s14738_s9 + $0x660] sm:$0xff] %vm7195_vm3, %v9104_v15  ;;  %v8457_v6 = vpop.f32.mrb[120].mxu0  ;;  %v6701_v36 = vadd.f32 %v13598_v27, %v6700_v11 }
 0x99d   :  { %v6166_v47 = vadd.f32 %v13598_v27, %v8457_v6  ;;  %v6160_v28 = vpop.f32.mrb[121].mxu0  ;;  %9113 = vtanh.f32 %v6706_v32 }
 0x99e   :  { %v6161_v34 = vadd.f32 %v13598_v27, %v6160_v28 }
 0x99f   :  { %9115 = vtanh.f32 %v6166_v47  ;;  %v9106_v57 = vpop.eup %9105 }
 0x9a0   :  { %9117 = vtanh.f32 %v6161_v34  ;;  %7403 = vst.msk [vmem:[%s14738_s9 + $0x678] sm:$0xff] %vm7195_vm3, %v9106_v57 }
 0x9a1   :  { %v9108_v35 = vpop.eup %9107  ;;  %9119 = vtanh.f32 %v6701_v36 }
 0x9a2   :  { %v9110_v17 = vpop.eup %9109  ;;  %7295 = vst.msk [vmem:[%s14738_s9 + $0x318] sm:$0xff] %vm7195_vm3, %v9108_v35  ;;  %v8622_v48 = vpop.f32.mrb[128].mxu1 }
 0x9a3   :  { %v9112_v55 = vpop.eup %9111  ;;  %7294 = vst.msk [vmem:[%s14738_s9 + $0x310] sm:$0xff] %vm7195_vm3, %v9110_v17  ;;  %v6716_v62 = vadd.f32 %v13598_v27, %v8622_v48  ;;  %v6710_v22 = vpop.f32.mrb[129].mxu1 }
 0x9a4   :  { %7402 = vst.msk [vmem:[%s14738_s9 + $0x670] sm:$0xff] %vm7195_vm3, %v9112_v55  ;;  %v8460_v16 = vpop.f32.mrb[122].mxu0  ;;  %v6711_v29 = vadd.f32 %v13598_v27, %v6710_v22 }
 0x9a5   :  { %v6176_v3 = vadd.f32 %v13598_v27, %v8460_v16  ;;  %v6170_v49 = vpop.f32.mrb[123].mxu0  ;;  %9121 = vtanh.f32 %v6716_v62 }
 0x9a6   :  { %v6171_v30 = vadd.f32 %v13598_v27, %v6170_v49 }
 0x9a7   :  { %9123 = vtanh.f32 %v6176_v3  ;;  %v9114_v25 = vpop.eup %9113 }
 0x9a8   :  { %9125 = vtanh.f32 %v6171_v30  ;;  %7405 = vst.msk [vmem:[%s14738_s9 + $0x688] sm:$0xff] %vm7195_vm3, %v9114_v25 }
 0x9a9   :  { %v9116_v44 = vpop.eup %9115  ;;  %9127 = vtanh.f32 %v6711_v29 }
 0x9aa   :  { %v9118_v4 = vpop.eup %9117  ;;  %7297 = vst.msk [vmem:[%s14738_s9 + $0x328] sm:$0xff] %vm7195_vm3, %v9116_v44  ;;  %v8625_v19 = vpop.f32.mrb[130].mxu1 }
 0x9ab   :  { %v9120_v61 = vpop.eup %9119  ;;  %7296 = vst.msk [vmem:[%s14738_s9 + $0x320] sm:$0xff] %vm7195_vm3, %v9118_v4  ;;  %v6726_v31 = vadd.f32 %v13598_v27, %v8625_v19  ;;  %v6720_v2 = vpop.f32.mrb[131].mxu1 }
 0x9ac   :  { %7404 = vst.msk [vmem:[%s14738_s9 + $0x680] sm:$0xff] %vm7195_vm3, %v9120_v61  ;;  %v8463_v33 = vpop.f32.mrb[124].mxu0  ;;  %v6721_v54 = vadd.f32 %v13598_v27, %v6720_v2 }
 0x9ad   :  { %v6186_v21 = vadd.f32 %v13598_v27, %v8463_v33  ;;  %v6180_v37 = vpop.f32.mrb[125].mxu0  ;;  %9129 = vtanh.f32 %v6726_v31 }
 0x9ae   :  { %v6181_v38 = vadd.f32 %v13598_v27, %v6180_v37 }
 0x9af   :  { %9131 = vtanh.f32 %v6186_v21  ;;  %v9122_v20 = vpop.eup %9121 }
 0x9b0   :  { %9133 = vtanh.f32 %v6181_v38  ;;  %7407 = vst.msk [vmem:[%s14738_s9 + $0x698] sm:$0xff] %vm7195_vm3, %v9122_v20 }
 0x9b1   :  { %v9124_v39 = vpop.eup %9123  ;;  %9135 = vtanh.f32 %v6721_v54 }
 0x9b2   :  { %v9126_v13 = vpop.eup %9125  ;;  %7299 = vst.msk [vmem:[%s14738_s9 + $0x338] sm:$0xff] %vm7195_vm3, %v9124_v39  ;;  %v8628_v0 = vpop.f32.mrb[132].mxu1 }
 0x9b3   :  { %v9128_v14 = vpop.eup %9127  ;;  %7298 = vst.msk [vmem:[%s14738_s9 + $0x330] sm:$0xff] %vm7195_vm3, %v9126_v13  ;;  %v6736_v12 = vadd.f32 %v13598_v27, %v8628_v0  ;;  %v6730_v56 = vpop.f32.mrb[133].mxu1 }
 0x9b4   :  { %7406 = vst.msk [vmem:[%s14738_s9 + $0x690] sm:$0xff] %vm7195_vm3, %v9128_v14  ;;  %v8466_v53 = vpop.f32.mrb[126].mxu0  ;;  %v6731_v18 = vadd.f32 %v13598_v27, %v6730_v56 }
 0x9b5   :  { %v6196_v58 = vadd.f32 %v13598_v27, %v8466_v53  ;;  %v6190_v59 = vpop.f32.mrb[127].mxu0  ;;  %9137 = vtanh.f32 %v6736_v12 }
 0x9b6   :  { %v6191_v41 = vadd.f32 %v13598_v27, %v6190_v59 }
 0x9b7   :  { %9139 = vtanh.f32 %v6196_v58  ;;  %v9130_v7 = vpop.eup %9129  ;;  %v14047_v58 = vld [vmem:[#allocation27] ss:$0 sm:$0xff] }
 0x9b8   :  { %9141 = vtanh.f32 %v6191_v41  ;;  %7409 = vst.msk [vmem:[%s14738_s9 + $0x6a8] sm:$0xff] %vm7195_vm3, %v9130_v7 }
 0x9b9   :  { %v9132_v40 = vpop.eup %9131  ;;  %9143 = vtanh.f32 %v6731_v18 }
 0x9ba   :  { %v9134_v23 = vpop.eup %9133  ;;  %7301 = vst.msk [vmem:[%s14738_s9 + $0x348] sm:$0xff] %vm7195_vm3, %v9132_v40  ;;  %v8631_v45 = vpop.f32.mrb[134].mxu1 }
 0x9bb   :  { %v9136_v42 = vpop.eup %9135  ;;  %7300 = vst.msk [vmem:[%s14738_s9 + $0x340] sm:$0xff] %vm7195_vm3, %v9134_v23  ;;  %v6746_v5 = vadd.f32 %v13598_v27, %v8631_v45  ;;  %v6740_v51 = vpop.f32.mrb[135].mxu1 }
 0x9bc   :  { %7408 = vst.msk [vmem:[%s14738_s9 + $0x6a0] sm:$0xff] %vm7195_vm3, %v9136_v42  ;;  %v8469_v9 = vpop.f32.mrb[128].mxu0  ;;  %v6741_v50 = vadd.f32 %v13598_v27, %v6740_v51 }
 0x9bd   :  { %v6206_v46 = vadd.f32 %v13598_v27, %v8469_v9  ;;  %v6200_v24 = vpop.f32.mrb[129].mxu0  ;;  %9145 = vtanh.f32 %v6746_v5 }
 0x9be   :  { %v6201_v43 = vadd.f32 %v13598_v27, %v6200_v24 }
 0x9bf   :  { %9147 = vtanh.f32 %v6206_v46  ;;  %v9138_v26 = vpop.eup %9137 }
 0x9c0   :  { %9149 = vtanh.f32 %v6201_v43  ;;  %7411 = vst.msk [vmem:[%s14738_s9 + $0x6b8] sm:$0xff] %vm7195_vm3, %v9138_v26 }
 0x9c1   :  { %v9140_v8 = vpop.eup %9139  ;;  %9151 = vtanh.f32 %v6741_v50 }
 0x9c2   :  { %v9142_v1 = vpop.eup %9141  ;;  %7303 = vst.msk [vmem:[%s14738_s9 + $0x358] sm:$0xff] %vm7195_vm3, %v9140_v8  ;;  %v8634_v10 = vpop.f32.mrb[136].mxu1 }
 0x9c3   :  { %v9144_v63 = vpop.eup %9143  ;;  %7302 = vst.msk [vmem:[%s14738_s9 + $0x350] sm:$0xff] %vm7195_vm3, %v9142_v1  ;;  %v6756_v15 = vadd.f32 %v13598_v27, %v8634_v10  ;;  %v6750_v52 = vpop.f32.mrb[137].mxu1 }
 0x9c4   :  { %7410 = vst.msk [vmem:[%s14738_s9 + $0x6b0] sm:$0xff] %vm7195_vm3, %v9144_v63  ;;  %v8472_v60 = vpop.f32.mrb[130].mxu0  ;;  %v6751_v11 = vadd.f32 %v13598_v27, %v6750_v52 }
 0x9c5   :  { %v6216_v6 = vadd.f32 %v13598_v27, %v8472_v60  ;;  %v6210_v32 = vpop.f32.mrb[131].mxu0  ;;  %9153 = vtanh.f32 %v6756_v15 }
 0x9c6   :  { %v6211_v47 = vadd.f32 %v13598_v27, %v6210_v32 }
 0x9c7   :  { %9155 = vtanh.f32 %v6216_v6  ;;  %v9146_v28 = vpop.eup %9145 }
 0x9c8   :  { %9157 = vtanh.f32 %v6211_v47  ;;  %7413 = vst.msk [vmem:[%s14738_s9 + $0x6c8] sm:$0xff] %vm7195_vm3, %v9146_v28 }
 0x9c9   :  { %v9148_v36 = vpop.eup %9147  ;;  %9159 = vtanh.f32 %v6751_v11 }
 0x9ca   :  { %v9150_v34 = vpop.eup %9149  ;;  %7305 = vst.msk [vmem:[%s14738_s9 + $0x368] sm:$0xff] %vm7195_vm3, %v9148_v36  ;;  %v8637_v35 = vpop.f32.mrb[138].mxu1 }
 0x9cb   :  { %v9152_v57 = vpop.eup %9151  ;;  %7304 = vst.msk [vmem:[%s14738_s9 + $0x360] sm:$0xff] %vm7195_vm3, %v9150_v34  ;;  %v6766_v55 = vadd.f32 %v13598_v27, %v8637_v35  ;;  %v6760_v48 = vpop.f32.mrb[139].mxu1 }
 0x9cc   :  { %7412 = vst.msk [vmem:[%s14738_s9 + $0x6c0] sm:$0xff] %vm7195_vm3, %v9152_v57  ;;  %v8475_v17 = vpop.f32.mrb[132].mxu0  ;;  %v6761_v22 = vadd.f32 %v13598_v27, %v6760_v48 }
 0x9cd   :  { %v6226_v16 = vadd.f32 %v13598_v27, %v8475_v17  ;;  %v6220_v62 = vpop.f32.mrb[133].mxu0  ;;  %9161 = vtanh.f32 %v6766_v55 }
 0x9ce   :  { %v6221_v3 = vadd.f32 %v13598_v27, %v6220_v62 }
 0x9cf   :  { %9163 = vtanh.f32 %v6226_v16  ;;  %v9154_v49 = vpop.eup %9153 }
 0x9d0   :  { %9165 = vtanh.f32 %v6221_v3  ;;  %7415 = vst.msk [vmem:[%s14738_s9 + $0x6d8] sm:$0xff] %vm7195_vm3, %v9154_v49 }
 0x9d1   :  { %v9156_v29 = vpop.eup %9155  ;;  %9167 = vtanh.f32 %v6761_v22 }
 0x9d2   :  { %v9158_v30 = vpop.eup %9157  ;;  %7307 = vst.msk [vmem:[%s14738_s9 + $0x378] sm:$0xff] %vm7195_vm3, %v9156_v29  ;;  %v8640_v44 = vpop.f32.mrb[140].mxu1 }
 0x9d3   :  { %v9160_v25 = vpop.eup %9159  ;;  %7306 = vst.msk [vmem:[%s14738_s9 + $0x370] sm:$0xff] %vm7195_vm3, %v9158_v30  ;;  %v6776_v61 = vadd.f32 %v13598_v27, %v8640_v44  ;;  %v6770_v19 = vpop.f32.mrb[141].mxu1 }
 0x9d4   :  { %7414 = vst.msk [vmem:[%s14738_s9 + $0x6d0] sm:$0xff] %vm7195_vm3, %v9160_v25  ;;  %v8478_v4 = vpop.f32.mrb[134].mxu0  ;;  %v6771_v2 = vadd.f32 %v13598_v27, %v6770_v19 }
 0x9d5   :  { %v6236_v33 = vadd.f32 %v13598_v27, %v8478_v4  ;;  %v6230_v31 = vpop.f32.mrb[135].mxu0  ;;  %9169 = vtanh.f32 %v6776_v61 }
 0x9d6   :  { %v6231_v21 = vadd.f32 %v13598_v27, %v6230_v31 }
 0x9d7   :  { %9171 = vtanh.f32 %v6236_v33  ;;  %v9162_v37 = vpop.eup %9161 }
 0x9d8   :  { %9173 = vtanh.f32 %v6231_v21  ;;  %7417 = vst.msk [vmem:[%s14738_s9 + $0x6e8] sm:$0xff] %vm7195_vm3, %v9162_v37 }
 0x9d9   :  { %v9164_v54 = vpop.eup %9163  ;;  %9175 = vtanh.f32 %v6771_v2 }
 0x9da   :  { %v9166_v38 = vpop.eup %9165  ;;  %7309 = vst.msk [vmem:[%s14738_s9 + $0x388] sm:$0xff] %vm7195_vm3, %v9164_v54  ;;  %v8643_v39 = vpop.f32.mrb[142].mxu1 }
 0x9db   :  { %v9168_v20 = vpop.eup %9167  ;;  %7308 = vst.msk [vmem:[%s14738_s9 + $0x380] sm:$0xff] %vm7195_vm3, %v9166_v38  ;;  %v6786_v14 = vadd.f32 %v13598_v27, %v8643_v39  ;;  %v6780_v0 = vpop.f32.mrb[143].mxu1 }
 0x9dc   :  { %7416 = vst.msk [vmem:[%s14738_s9 + $0x6e0] sm:$0xff] %vm7195_vm3, %v9168_v20  ;;  %v8481_v13 = vpop.f32.mrb[136].mxu0  ;;  %v6781_v56 = vadd.f32 %v13598_v27, %v6780_v0 }
 0x9dd   :  { %v6246_v53 = vadd.f32 %v13598_v27, %v8481_v13  ;;  %v6240_v12 = vpop.f32.mrb[137].mxu0  ;;  %9177 = vtanh.f32 %v6786_v14 }
 0x9de   :  { %v6241_v59 = vadd.f32 %v14047_v58, %v6240_v12 }
 0x9df   :  { %9179 = vtanh.f32 %v6246_v53  ;;  %v9170_v18 = vpop.eup %9169 }
 0x9e0   :  { %9181 = vtanh.f32 %v6241_v59  ;;  %7419 = vst.msk [vmem:[%s14738_s9 + $0x6f8] sm:$0xff] %vm7195_vm3, %v9170_v18 }
 0x9e1   :  { %v9172_v41 = vpop.eup %9171  ;;  %9183 = vtanh.f32 %v6781_v56 }
 0x9e2   :  { %v9174_v7 = vpop.eup %9173  ;;  %7311 = vst.msk [vmem:[%s14738_s9 + $0x398] sm:$0xff] %vm7195_vm3, %v9172_v41 }
 0x9e3   :  { %v9176_v27 = vpop.eup %9175  ;;  %7310 = vst.msk [vmem:[%s14738_s9 + $0x390] sm:$0xff] %vm7195_vm3, %v9174_v7 }
 0x9e4   :  { %v8646_v40 = vpop.f32.mrb[144].mxu1  ;;  %7418 = vst.msk [vmem:[%s14738_s9 + $0x6f0] sm:$0xff] %vm7195_vm3, %v9176_v27 }
 0x9e5   :  { %v8484_v23 = vpop.f32.mrb[138].mxu0  ;;  %v6796_v42 = vadd.f32 %v14047_v58, %v8646_v40  ;;  %v6790_v45 = vpop.f32.mrb[145].mxu1 }
 0x9e6   :  { %v6256_v9 = vadd.f32 %v14047_v58, %v8484_v23  ;;  %v6250_v5 = vpop.f32.mrb[139].mxu0  ;;  %v6791_v51 = vadd.f32 %v14047_v58, %v6790_v45 }
 0x9e7   :  { %9185 = vtanh.f32 %v6796_v42  ;;  %v6251_v46 = vadd.f32 %v14047_v58, %v6250_v5  ;;  %v9178_v24 = vpop.eup %9177 }
 0x9e8   :  { %9187 = vtanh.f32 %v6256_v9  ;;  %7421 = vst.msk [vmem:[%s14738_s9 + $0x708] sm:$0xff] %vm7195_vm3, %v9178_v24 }
 0x9e9   :  { %9189 = vtanh.f32 %v6251_v46  ;;  %v9180_v50 = vpop.eup %9179 }
 0x9ea   :  { %9191 = vtanh.f32 %v6791_v51  ;;  %v9182_v43 = vpop.eup %9181  ;;  %7313 = vst.msk [vmem:[%s14738_s9 + $0x3a8] sm:$0xff] %vm7195_vm3, %v9180_v50 }
 0x9eb   :  { %v9184_v26 = vpop.eup %9183  ;;  %7312 = vst.msk [vmem:[%s14738_s9 + $0x3a0] sm:$0xff] %vm7195_vm3, %v9182_v43 }
 0x9ec   :  { %7420 = vst.msk [vmem:[%s14738_s9 + $0x700] sm:$0xff] %vm7195_vm3, %v9184_v26 }
 0x9ed   :  { %v8649_v8 = vpop.f32.mrb[146].mxu1 }
 0x9ee   :  { %v8487_v1 = vpop.f32.mrb[140].mxu0  ;;  %v6806_v63 = vadd.f32 %v14047_v58, %v8649_v8  ;;  %v6800_v10 = vpop.f32.mrb[147].mxu1 }
 0x9ef   :  { %v6266_v60 = vadd.f32 %v14047_v58, %v8487_v1  ;;  %v6260_v15 = vpop.f32.mrb[141].mxu0  ;;  %v6801_v52 = vadd.f32 %v14047_v58, %v6800_v10 }
 0x9f0   :  { %9193 = vtanh.f32 %v6806_v63  ;;  %v6261_v6 = vadd.f32 %v14047_v58, %v6260_v15 }
 0x9f1   :  { %9195 = vtanh.f32 %v6266_v60  ;;  %v9186_v32 = vpop.eup %9185 }
 0x9f2   :  { %9197 = vtanh.f32 %v6261_v6  ;;  %v9188_v11 = vpop.eup %9187  ;;  %7423 = vst.msk [vmem:[%s14738_s9 + $0x718] sm:$0xff] %vm7195_vm3, %v9186_v32 }
 0x9f3   :  { %9199 = vtanh.f32 %v6801_v52  ;;  %v9190_v47 = vpop.eup %9189  ;;  %7315 = vst.msk [vmem:[%s14738_s9 + $0x3b8] sm:$0xff] %vm7195_vm3, %v9188_v11 }
 0x9f4   :  { %v9192_v28 = vpop.eup %9191  ;;  %7314 = vst.msk [vmem:[%s14738_s9 + $0x3b0] sm:$0xff] %vm7195_vm3, %v9190_v47 }
 0x9f5   :  { %v8652_v36 = vpop.f32.mrb[148].mxu1  ;;  %7422 = vst.msk [vmem:[%s14738_s9 + $0x710] sm:$0xff] %vm7195_vm3, %v9192_v28 }
 0x9f6   :  { %v8490_v34 = vpop.f32.mrb[142].mxu0  ;;  %v6816_v57 = vadd.f32 %v14047_v58, %v8652_v36  ;;  %v6810_v35 = vpop.f32.mrb[149].mxu1 }
 0x9f7   :  { %v6276_v17 = vadd.f32 %v14047_v58, %v8490_v34  ;;  %v6270_v55 = vpop.f32.mrb[143].mxu0  ;;  %v6811_v48 = vadd.f32 %v14047_v58, %v6810_v35 }
 0x9f8   :  { %9201 = vtanh.f32 %v6816_v57  ;;  %v6271_v16 = vadd.f32 %v14047_v58, %v6270_v55 }
 0x9f9   :  { %9203 = vtanh.f32 %v6276_v17 }
 0x9fa   :  { %v9194_v62 = vpop.eup %9193  ;;  %9205 = vtanh.f32 %v6271_v16 }
 0x9fb   :  { %v9196_v22 = vpop.eup %9195  ;;  %7425 = vst.msk [vmem:[%s14738_s9 + $0x728] sm:$0xff] %vm7195_vm3, %v9194_v62  ;;  %9207 = vtanh.f32 %v6811_v48 }
 0x9fc   :  { %v9198_v3 = vpop.eup %9197  ;;  %7317 = vst.msk [vmem:[%s14738_s9 + $0x3c8] sm:$0xff] %vm7195_vm3, %v9196_v22  ;;  %v8655_v29 = vpop.f32.mrb[150].mxu1 }
 0x9fd   :  { %v9200_v49 = vpop.eup %9199  ;;  %7316 = vst.msk [vmem:[%s14738_s9 + $0x3c0] sm:$0xff] %vm7195_vm3, %v9198_v3  ;;  %v8493_v30 = vpop.f32.mrb[144].mxu0  ;;  %v6826_v25 = vadd.f32 %v14047_v58, %v8655_v29 }
 0x9fe   :  { %7424 = vst.msk [vmem:[%s14738_s9 + $0x720] sm:$0xff] %vm7195_vm3, %v9200_v49  ;;  %v6820_v44 = vpop.f32.mrb[151].mxu1  ;;  %v6286_v4 = vadd.f32 %v14047_v58, %v8493_v30  ;;  %v6280_v61 = vpop.f32.mrb[145].mxu0 }
 0x9ff   :  { %v6821_v19 = vadd.f32 %v14047_v58, %v6820_v44  ;;  %9209 = vtanh.f32 %v6826_v25  ;;  %v6281_v33 = vadd.f32 %v14047_v58, %v6280_v61 }
 0xa00   :  { %9211 = vtanh.f32 %v6286_v4 }
 0xa01   :  { %9213 = vtanh.f32 %v6281_v33 }
 0xa02   :  { %v9202_v31 = vpop.eup %9201  ;;  %9215 = vtanh.f32 %v6821_v19 }
 0xa03   :  { %v9204_v2 = vpop.eup %9203  ;;  %7427 = vst.msk [vmem:[%s14738_s9 + $0x738] sm:$0xff] %vm7195_vm3, %v9202_v31 }
 0xa04   :  { %v9206_v21 = vpop.eup %9205  ;;  %7319 = vst.msk [vmem:[%s14738_s9 + $0x3d8] sm:$0xff] %vm7195_vm3, %v9204_v2  ;;  %v8658_v54 = vpop.f32.mrb[152].mxu1 }
 0xa05   :  { %v9208_v37 = vpop.eup %9207  ;;  %7318 = vst.msk [vmem:[%s14738_s9 + $0x3d0] sm:$0xff] %vm7195_vm3, %v9206_v21  ;;  %v8496_v38 = vpop.f32.mrb[146].mxu0  ;;  %v6836_v20 = vadd.f32 %v14047_v58, %v8658_v54 }
 0xa06   :  { %7426 = vst.msk [vmem:[%s14738_s9 + $0x730] sm:$0xff] %vm7195_vm3, %v9208_v37  ;;  %v6830_v39 = vpop.f32.mrb[153].mxu1  ;;  %v6296_v13 = vadd.f32 %v14047_v58, %v8496_v38  ;;  %v6290_v14 = vpop.f32.mrb[147].mxu0 }
 0xa07   :  { %v6831_v0 = vadd.f32 %v14047_v58, %v6830_v39  ;;  %9217 = vtanh.f32 %v6836_v20  ;;  %v6291_v53 = vadd.f32 %v14047_v58, %v6290_v14 }
 0xa08   :  { %9219 = vtanh.f32 %v6296_v13 }
 0xa09   :  { %v9210_v12 = vpop.eup %9209  ;;  %9221 = vtanh.f32 %v6291_v53 }
 0xa0a   :  { %v9212_v56 = vpop.eup %9211  ;;  %7429 = vst.msk [vmem:[%s14738_s9 + $0x748] sm:$0xff] %vm7195_vm3, %v9210_v12  ;;  %9223 = vtanh.f32 %v6831_v0 }
 0xa0b   :  { %v9214_v59 = vpop.eup %9213  ;;  %7321 = vst.msk [vmem:[%s14738_s9 + $0x3e8] sm:$0xff] %vm7195_vm3, %v9212_v56 }
 0xa0c   :  { %v9216_v18 = vpop.eup %9215  ;;  %7320 = vst.msk [vmem:[%s14738_s9 + $0x3e0] sm:$0xff] %vm7195_vm3, %v9214_v59  ;;  %v8661_v41 = vpop.f32.mrb[154].mxu1 }
 0xa0d   :  { %7428 = vst.msk [vmem:[%s14738_s9 + $0x740] sm:$0xff] %vm7195_vm3, %v9216_v18  ;;  %v8499_v7 = vpop.f32.mrb[148].mxu0  ;;  %v6846_v27 = vadd.f32 %v14047_v58, %v8661_v41  ;;  %v6840_v40 = vpop.f32.mrb[155].mxu1 }
 0xa0e   :  { %v6306_v23 = vadd.f32 %v14047_v58, %v8499_v7  ;;  %v6300_v42 = vpop.f32.mrb[149].mxu0  ;;  %v6841_v45 = vadd.f32 %v14047_v58, %v6840_v40 }
 0xa0f   :  { %9225 = vtanh.f32 %v6846_v27  ;;  %v6301_v9 = vadd.f32 %v14047_v58, %v6300_v42 }
 0xa10   :  { %9227 = vtanh.f32 %v6306_v23 }
 0xa11   :  { %v9218_v5 = vpop.eup %9217  ;;  %9229 = vtanh.f32 %v6301_v9 }
 0xa12   :  { %v9220_v51 = vpop.eup %9219  ;;  %7431 = vst.msk [vmem:[%s14738_s9 + $0x758] sm:$0xff] %vm7195_vm3, %v9218_v5  ;;  %9231 = vtanh.f32 %v6841_v45 }
 0xa13   :  { %v9222_v46 = vpop.eup %9221  ;;  %7323 = vst.msk [vmem:[%s14738_s9 + $0x3f8] sm:$0xff] %vm7195_vm3, %v9220_v51 }
 0xa14   :  { %v9224_v24 = vpop.eup %9223  ;;  %7322 = vst.msk [vmem:[%s14738_s9 + $0x3f0] sm:$0xff] %vm7195_vm3, %v9222_v46  ;;  %v8664_v50 = vpop.f32.mrb[156].mxu1 }
 0xa15   :  { %7430 = vst.msk [vmem:[%s14738_s9 + $0x750] sm:$0xff] %vm7195_vm3, %v9224_v24  ;;  %v8502_v43 = vpop.f32.mrb[150].mxu0  ;;  %v6856_v26 = vadd.f32 %v14047_v58, %v8664_v50  ;;  %v6850_v8 = vpop.f32.mrb[157].mxu1 }
 0xa16   :  { %v6316_v1 = vadd.f32 %v14047_v58, %v8502_v43  ;;  %v6310_v63 = vpop.f32.mrb[151].mxu0  ;;  %v6851_v10 = vadd.f32 %v14047_v58, %v6850_v8 }
 0xa17   :  { %9233 = vtanh.f32 %v6856_v26  ;;  %v6311_v60 = vadd.f32 %v14047_v58, %v6310_v63 }
 0xa18   :  { %9235 = vtanh.f32 %v6316_v1 }
 0xa19   :  { %v9226_v15 = vpop.eup %9225  ;;  %9237 = vtanh.f32 %v6311_v60 }
 0xa1a   :  { %v9228_v52 = vpop.eup %9227  ;;  %7433 = vst.msk [vmem:[%s14738_s9 + $0x768] sm:$0xff] %vm7195_vm3, %v9226_v15  ;;  %9239 = vtanh.f32 %v6851_v10 }
 0xa1b   :  { %v9230_v6 = vpop.eup %9229  ;;  %7325 = vst.msk [vmem:[%s14738_s9 + $0x408] sm:$0xff] %vm7195_vm3, %v9228_v52 }
 0xa1c   :  { %v9232_v32 = vpop.eup %9231  ;;  %7324 = vst.msk [vmem:[%s14738_s9 + $0x400] sm:$0xff] %vm7195_vm3, %v9230_v6  ;;  %v8667_v11 = vpop.f32.mrb[158].mxu1 }
 0xa1d   :  { %7432 = vst.msk [vmem:[%s14738_s9 + $0x760] sm:$0xff] %vm7195_vm3, %v9232_v32  ;;  %v8505_v47 = vpop.f32.mrb[152].mxu0  ;;  %v6866_v28 = vadd.f32 %v14047_v58, %v8667_v11  ;;  %v6860_v36 = vpop.f32.mrb[159].mxu1 }
 0xa1e   :  { %v6326_v34 = vadd.f32 %v14047_v58, %v8505_v47  ;;  %v6320_v57 = vpop.f32.mrb[153].mxu0  ;;  %v6861_v35 = vadd.f32 %v14047_v58, %v6860_v36 }
 0xa1f   :  { %9241 = vtanh.f32 %v6866_v28  ;;  %v6321_v17 = vadd.f32 %v14047_v58, %v6320_v57 }
 0xa20   :  { %9243 = vtanh.f32 %v6326_v34 }
 0xa21   :  { %v9234_v55 = vpop.eup %9233  ;;  %9245 = vtanh.f32 %v6321_v17 }
 0xa22   :  { %v9236_v48 = vpop.eup %9235  ;;  %7435 = vst.msk [vmem:[%s14738_s9 + $0x778] sm:$0xff] %vm7195_vm3, %v9234_v55  ;;  %9247 = vtanh.f32 %v6861_v35 }
 0xa23   :  { %v9238_v16 = vpop.eup %9237  ;;  %7327 = vst.msk [vmem:[%s14738_s9 + $0x418] sm:$0xff] %vm7195_vm3, %v9236_v48 }
 0xa24   :  { %v9240_v62 = vpop.eup %9239  ;;  %7326 = vst.msk [vmem:[%s14738_s9 + $0x410] sm:$0xff] %vm7195_vm3, %v9238_v16  ;;  %v8670_v22 = vpop.f32.mrb[160].mxu1 }
 0xa25   :  { %7434 = vst.msk [vmem:[%s14738_s9 + $0x770] sm:$0xff] %vm7195_vm3, %v9240_v62  ;;  %v8508_v3 = vpop.f32.mrb[154].mxu0  ;;  %v6876_v49 = vadd.f32 %v14047_v58, %v8670_v22  ;;  %v6870_v29 = vpop.f32.mrb[161].mxu1 }
 0xa26   :  { %v6336_v30 = vadd.f32 %v14047_v58, %v8508_v3  ;;  %v6330_v25 = vpop.f32.mrb[155].mxu0  ;;  %v6871_v44 = vadd.f32 %v14047_v58, %v6870_v29 }
 0xa27   :  { %9249 = vtanh.f32 %v6876_v49  ;;  %v6331_v4 = vadd.f32 %v14047_v58, %v6330_v25 }
 0xa28   :  { %9251 = vtanh.f32 %v6336_v30 }
 0xa29   :  { %v9242_v61 = vpop.eup %9241  ;;  %9253 = vtanh.f32 %v6331_v4 }
 0xa2a   :  { %v9244_v19 = vpop.eup %9243  ;;  %7437 = vst.msk [vmem:[%s14738_s9 + $0x788] sm:$0xff] %vm7195_vm3, %v9242_v61  ;;  %9255 = vtanh.f32 %v6871_v44 }
 0xa2b   :  { %v9246_v33 = vpop.eup %9245  ;;  %7329 = vst.msk [vmem:[%s14738_s9 + $0x428] sm:$0xff] %vm7195_vm3, %v9244_v19 }
 0xa2c   :  { %v9248_v31 = vpop.eup %9247  ;;  %7328 = vst.msk [vmem:[%s14738_s9 + $0x420] sm:$0xff] %vm7195_vm3, %v9246_v33  ;;  %v8673_v2 = vpop.f32.mrb[162].mxu1 }
 0xa2d   :  { %7436 = vst.msk [vmem:[%s14738_s9 + $0x780] sm:$0xff] %vm7195_vm3, %v9248_v31  ;;  %v8511_v21 = vpop.f32.mrb[156].mxu0  ;;  %v6886_v37 = vadd.f32 %v14047_v58, %v8673_v2  ;;  %v6880_v54 = vpop.f32.mrb[163].mxu1 }
 0xa2e   :  { %v6346_v38 = vadd.f32 %v14047_v58, %v8511_v21  ;;  %v6340_v20 = vpop.f32.mrb[157].mxu0  ;;  %v6881_v39 = vadd.f32 %v14047_v58, %v6880_v54 }
 0xa2f   :  { %9257 = vtanh.f32 %v6886_v37  ;;  %v6341_v13 = vadd.f32 %v14047_v58, %v6340_v20 }
 0xa30   :  { %9259 = vtanh.f32 %v6346_v38 }
 0xa31   :  { %v9250_v14 = vpop.eup %9249  ;;  %9261 = vtanh.f32 %v6341_v13 }
 0xa32   :  { %v9252_v0 = vpop.eup %9251  ;;  %7439 = vst.msk [vmem:[%s14738_s9 + $0x798] sm:$0xff] %vm7195_vm3, %v9250_v14  ;;  %9263 = vtanh.f32 %v6881_v39 }
 0xa33   :  { %v9254_v53 = vpop.eup %9253  ;;  %7331 = vst.msk [vmem:[%s14738_s9 + $0x438] sm:$0xff] %vm7195_vm3, %v9252_v0 }
 0xa34   :  { %v9256_v12 = vpop.eup %9255  ;;  %7330 = vst.msk [vmem:[%s14738_s9 + $0x430] sm:$0xff] %vm7195_vm3, %v9254_v53  ;;  %v8676_v56 = vpop.f32.mrb[164].mxu1 }
 0xa35   :  { %7438 = vst.msk [vmem:[%s14738_s9 + $0x790] sm:$0xff] %vm7195_vm3, %v9256_v12  ;;  %v8514_v59 = vpop.f32.mrb[158].mxu0  ;;  %v6896_v18 = vadd.f32 %v14047_v58, %v8676_v56  ;;  %v6890_v41 = vpop.f32.mrb[165].mxu1 }
 0xa36   :  { %v6356_v7 = vadd.f32 %v14047_v58, %v8514_v59  ;;  %v6350_v27 = vpop.f32.mrb[159].mxu0  ;;  %v6891_v40 = vadd.f32 %v14047_v58, %v6890_v41 }
 0xa37   :  { %9265 = vtanh.f32 %v6896_v18  ;;  %v6351_v23 = vadd.f32 %v14047_v58, %v6350_v27 }
 0xa38   :  { %9267 = vtanh.f32 %v6356_v7 }
 0xa39   :  { %v9258_v42 = vpop.eup %9257  ;;  %9269 = vtanh.f32 %v6351_v23 }
 0xa3a   :  { %v9260_v45 = vpop.eup %9259  ;;  %7441 = vst.msk [vmem:[%s14738_s9 + $0x7a8] sm:$0xff] %vm7195_vm3, %v9258_v42  ;;  %9271 = vtanh.f32 %v6891_v40 }
 0xa3b   :  { %v9262_v9 = vpop.eup %9261  ;;  %7333 = vst.msk [vmem:[%s14738_s9 + $0x448] sm:$0xff] %vm7195_vm3, %v9260_v45 }
 0xa3c   :  { %v9264_v5 = vpop.eup %9263  ;;  %7332 = vst.msk [vmem:[%s14738_s9 + $0x440] sm:$0xff] %vm7195_vm3, %v9262_v9  ;;  %v8679_v51 = vpop.f32.mrb[166].mxu1 }
 0xa3d   :  { %7440 = vst.msk [vmem:[%s14738_s9 + $0x7a0] sm:$0xff] %vm7195_vm3, %v9264_v5  ;;  %v8517_v46 = vpop.f32.mrb[160].mxu0  ;;  %v6906_v24 = vadd.f32 %v14047_v58, %v8679_v51  ;;  %v6900_v50 = vpop.f32.mrb[167].mxu1 }
 0xa3e   :  { %v6366_v43 = vadd.f32 %v14047_v58, %v8517_v46  ;;  %v6360_v26 = vpop.f32.mrb[161].mxu0  ;;  %v6901_v8 = vadd.f32 %v14047_v58, %v6900_v50 }
 0xa3f   :  { %9273 = vtanh.f32 %v6906_v24  ;;  %v6361_v1 = vadd.f32 %v14047_v58, %v6360_v26 }
 0xa40   :  { %9275 = vtanh.f32 %v6366_v43 }
 0xa41   :  { %v9266_v63 = vpop.eup %9265  ;;  %9277 = vtanh.f32 %v6361_v1 }
 0xa42   :  { %v9268_v10 = vpop.eup %9267  ;;  %7443 = vst.msk [vmem:[%s14738_s9 + $0x7b8] sm:$0xff] %vm7195_vm3, %v9266_v63  ;;  %9279 = vtanh.f32 %v6901_v8 }
 0xa43   :  { %v9270_v60 = vpop.eup %9269  ;;  %7335 = vst.msk [vmem:[%s14738_s9 + $0x458] sm:$0xff] %vm7195_vm3, %v9268_v10 }
 0xa44   :  { %v9272_v15 = vpop.eup %9271  ;;  %7334 = vst.msk [vmem:[%s14738_s9 + $0x450] sm:$0xff] %vm7195_vm3, %v9270_v60  ;;  %v8682_v52 = vpop.f32.mrb[168].mxu1 }
 0xa45   :  { %7442 = vst.msk [vmem:[%s14738_s9 + $0x7b0] sm:$0xff] %vm7195_vm3, %v9272_v15  ;;  %v8520_v6 = vpop.f32.mrb[162].mxu0  ;;  %v6916_v32 = vadd.f32 %v14047_v58, %v8682_v52  ;;  %v6910_v11 = vpop.f32.mrb[169].mxu1 }
 0xa46   :  { %v6376_v47 = vadd.f32 %v14047_v58, %v8520_v6  ;;  %v6370_v28 = vpop.f32.mrb[163].mxu0  ;;  %v6911_v36 = vadd.f32 %v14047_v58, %v6910_v11 }
 0xa47   :  { %9281 = vtanh.f32 %v6916_v32  ;;  %v6371_v34 = vadd.f32 %v14047_v58, %v6370_v28 }
 0xa48   :  { %9283 = vtanh.f32 %v6376_v47 }
 0xa49   :  { %v9274_v57 = vpop.eup %9273  ;;  %9285 = vtanh.f32 %v6371_v34 }
 0xa4a   :  { %v9276_v35 = vpop.eup %9275  ;;  %7445 = vst.msk [vmem:[%s14738_s9 + $0x7c8] sm:$0xff] %vm7195_vm3, %v9274_v57  ;;  %9287 = vtanh.f32 %v6911_v36 }
 0xa4b   :  { %v9278_v17 = vpop.eup %9277  ;;  %7337 = vst.msk [vmem:[%s14738_s9 + $0x468] sm:$0xff] %vm7195_vm3, %v9276_v35 }
 0xa4c   :  { %v9280_v55 = vpop.eup %9279  ;;  %7336 = vst.msk [vmem:[%s14738_s9 + $0x460] sm:$0xff] %vm7195_vm3, %v9278_v17  ;;  %v8685_v48 = vpop.f32.mrb[170].mxu1 }
 0xa4d   :  { %7444 = vst.msk [vmem:[%s14738_s9 + $0x7c0] sm:$0xff] %vm7195_vm3, %v9280_v55  ;;  %v8523_v16 = vpop.f32.mrb[164].mxu0  ;;  %v6926_v62 = vadd.f32 %v14047_v58, %v8685_v48  ;;  %v6920_v22 = vpop.f32.mrb[171].mxu1 }
 0xa4e   :  { %v6386_v3 = vadd.f32 %v14047_v58, %v8523_v16  ;;  %v6380_v49 = vpop.f32.mrb[165].mxu0  ;;  %v6921_v29 = vadd.f32 %v14047_v58, %v6920_v22 }
 0xa4f   :  { %9289 = vtanh.f32 %v6926_v62  ;;  %v6381_v30 = vadd.f32 %v14047_v58, %v6380_v49 }
 0xa50   :  { %9291 = vtanh.f32 %v6386_v3 }
 0xa51   :  { %v9282_v25 = vpop.eup %9281  ;;  %9293 = vtanh.f32 %v6381_v30 }
 0xa52   :  { %v9284_v44 = vpop.eup %9283  ;;  %7447 = vst.msk [vmem:[%s14738_s9 + $0x7d8] sm:$0xff] %vm7195_vm3, %v9282_v25  ;;  %9295 = vtanh.f32 %v6921_v29 }
 0xa53   :  { %v9286_v4 = vpop.eup %9285  ;;  %7339 = vst.msk [vmem:[%s14738_s9 + $0x478] sm:$0xff] %vm7195_vm3, %v9284_v44 }
 0xa54   :  { %v9288_v61 = vpop.eup %9287  ;;  %7338 = vst.msk [vmem:[%s14738_s9 + $0x470] sm:$0xff] %vm7195_vm3, %v9286_v4  ;;  %v8688_v19 = vpop.f32.mrb[172].mxu1 }
 0xa55   :  { %7446 = vst.msk [vmem:[%s14738_s9 + $0x7d0] sm:$0xff] %vm7195_vm3, %v9288_v61  ;;  %v8526_v33 = vpop.f32.mrb[166].mxu0  ;;  %v6936_v31 = vadd.f32 %v14047_v58, %v8688_v19  ;;  %v6930_v2 = vpop.f32.mrb[173].mxu1 }
 0xa56   :  { %v6396_v21 = vadd.f32 %v14047_v58, %v8526_v33  ;;  %v6390_v37 = vpop.f32.mrb[167].mxu0  ;;  %v6931_v54 = vadd.f32 %v14047_v58, %v6930_v2 }
 0xa57   :  { %9297 = vtanh.f32 %v6936_v31  ;;  %v6391_v38 = vadd.f32 %v14047_v58, %v6390_v37 }
 0xa58   :  { %9299 = vtanh.f32 %v6396_v21 }
 0xa59   :  { %v9290_v20 = vpop.eup %9289  ;;  %9301 = vtanh.f32 %v6391_v38 }
 0xa5a   :  { %v9292_v39 = vpop.eup %9291  ;;  %7449 = vst.msk [vmem:[%s14738_s9 + $0x7e8] sm:$0xff] %vm7195_vm3, %v9290_v20  ;;  %9303 = vtanh.f32 %v6931_v54 }
 0xa5b   :  { %v9294_v13 = vpop.eup %9293  ;;  %7341 = vst.msk [vmem:[%s14738_s9 + $0x488] sm:$0xff] %vm7195_vm3, %v9292_v39 }
 0xa5c   :  { %v9296_v14 = vpop.eup %9295  ;;  %7340 = vst.msk [vmem:[%s14738_s9 + $0x480] sm:$0xff] %vm7195_vm3, %v9294_v13 }
 0xa5d   :  { %7448 = vst.msk [vmem:[%s14738_s9 + $0x7e0] sm:$0xff] %vm7195_vm3, %v9296_v14  ;;  %v8529_v0 = vpop.f32.mrb[168].mxu0 }
 0xa5e   :  { %v6406_v53 = vadd.f32 %v14047_v58, %v8529_v0  ;;  %v6400_v12 = vpop.f32.mrb[169].mxu0 }
 0xa5f   :  { %v6401_v56 = vadd.f32 %v14047_v58, %v6400_v12 }
 0xa60   :  { %9305 = vtanh.f32 %v6406_v53 }
 0xa61   :  { %v9298_v59 = vpop.eup %9297  ;;  %9307 = vtanh.f32 %v6401_v56 }
 0xa62   :  { %v9300_v18 = vpop.eup %9299  ;;  %7451 = vst.msk [vmem:[%s14738_s9 + $0x7f8] sm:$0xff] %vm7195_vm3, %v9298_v59 }
 0xa63   :  { %v9302_v41 = vpop.eup %9301  ;;  %7343 = vst.msk [vmem:[%s14738_s9 + $0x498] sm:$0xff] %vm7195_vm3, %v9300_v18 }
 0xa64   :  { %v9304_v7 = vpop.eup %9303  ;;  %7342 = vst.msk [vmem:[%s14738_s9 + $0x490] sm:$0xff] %vm7195_vm3, %v9302_v41 }
 0xa65   :  { %7450 = vst.msk [vmem:[%s14738_s9 + $0x7f0] sm:$0xff] %vm7195_vm3, %v9304_v7 }
 0xa6a   :  { %v9306_v58 = vpop.eup %9305 }
 0xa6b   :  { %v9308_v27 = vpop.eup %9307  ;;  %7345 = vst.msk [vmem:[%s14738_s9 + $0x4a8] sm:$0xff] %vm7195_vm3, %v9306_v58 }
 0xa6c   :  { %7344 = vst.msk [vmem:[%s14738_s9 + $0x4a0] sm:$0xff] %vm7195_vm3, %v9308_v27 }
 0xa6d   :  { %7456 = vsyncpa [#allocation6], 1 }
 0xa6e   :  { %7457 = vsyncpa [#allocation8], 1 }
 0xa6f   :  { %7458 = vsyncpa [#allocation11], 1 }
 0xa70   :  { %7459 = vsyncpa [#allocation14], 1 }
 0xa71   :  { %7460 = vsyncpa [#allocation17], 1 }
 0xa72   :  { %7461 = vsyncpa [#allocation20], 1 }
 0xa73   :  { %7462 = vsyncpa [#allocation23], 1 }
 0xa74   :  { %7463 = vsyncpa [#allocation26], 1 }

</bundles_post_ra>
